<compile_context>
chip_gen: v7x
topology: tpu7x:2x2x1
jax: 0.10.0
libtpu: 0.0.40
codegen_flags: <defaults>
</compile_context>

<pallas_src>
import functools

import jax
import jax.numpy as jnp
from jax.experimental import pallas as pl
from jax.experimental.pallas import tpu as pltpu


_PARALLEL = ("parallel",)


# ----------------------------------------------------------------------------
# Pallas kernels
# ----------------------------------------------------------------------------
def _mm_epilogue_kernel(a_ref, b_ref, bias_ref, o_ref, *, act):
    """One M-tile of C = A @ B with fused bias + activation epilogue.

    A/B are bf16 (MXU-native), accumulation is f32; the epilogue and the
    output store happen exactly once per tile (no k-grid).
    """
    acc = jnp.dot(a_ref[...], b_ref[...], preferred_element_type=jnp.float32)
    acc = acc + bias_ref[...]
    if act == "relu":
        acc = jnp.maximum(acc, 0.0)
    elif act == "relu6_div6":
        acc = jnp.clip(acc, 0.0, 6.0) * (1.0 / 6.0)
    o_ref[...] = acc.astype(o_ref.dtype)


def _mm_instnorm_kernel(a_ref, b_ref, g_ref, be_ref, o_ref, *, eps, relu):
    """Conv matmul for one image fused with InstanceNorm (+ optional ReLU).

    The M tile is exactly one image's Ho*Wo rows, so the per-(n, c) statistics
    are fully local to the tile (biased variance, matching PyTorch)."""
    acc = jnp.dot(a_ref[...], b_ref[...], preferred_element_type=jnp.float32)
    mean = jnp.mean(acc, axis=0, keepdims=True)
    xc = acc - mean
    var = jnp.mean(xc * xc, axis=0, keepdims=True)
    y = xc * jax.lax.rsqrt(var + eps) * g_ref[...] + be_ref[...]
    if relu:
        y = jnp.maximum(y, 0.0)
    o_ref[...] = y.astype(o_ref.dtype)


def _mm_instnorm_res_kernel(a_ref, b_ref, g_ref, be_ref, r_ref, o_ref, *, eps):
    """Conv matmul + InstanceNorm + residual add (ResidualBlock tail).

    NOTE: ordering is norm -> add residual (no ReLU), matching `x + main(x)`.
    """
    acc = jnp.dot(a_ref[...], b_ref[...], preferred_element_type=jnp.float32)
    mean = jnp.mean(acc, axis=0, keepdims=True)
    xc = acc - mean
    var = jnp.mean(xc * xc, axis=0, keepdims=True)
    y = xc * jax.lax.rsqrt(var + eps) * g_ref[...] + be_ref[...]
    o_ref[...] = (y + r_ref[...].astype(jnp.float32)).astype(o_ref.dtype)


def _colnorm_kernel(x_ref, g_ref, b_ref, o_ref, *, eps, relu):
    """Column (channel) normalization over the rows of one block.

    Used for train-mode BatchNorm (one block = all N*H*W rows) and for the
    up-path InstanceNorm (one block = one image).  Channels stay in lanes, so
    there is no transpose round-trip and the store is as lane-dense as the
    channel count allows."""
    x = x_ref[...].astype(jnp.float32)
    mean = jnp.mean(x, axis=0, keepdims=True)
    xc = x - mean
    var = jnp.mean(xc * xc, axis=0, keepdims=True)
    y = xc * jax.lax.rsqrt(var + eps) * g_ref[...] + b_ref[...]
    if relu:
        y = jnp.maximum(y, 0.0)
    o_ref[...] = y.astype(o_ref.dtype)


def _rcab_attn_kernel(x_ref, r_ref, w1_ref, b1_ref, w2_ref, b2_ref, o_ref):
    """RCAB channel-attention branch fused into one per-image kernel:
    adaptive max-pool + fc1 + ReLU + fc2 + sigmoid + gating + residual add."""
    x = x_ref[...].astype(jnp.float32)                    # (HW, C)
    pooled = jnp.max(x, axis=0, keepdims=True)            # (1, C)
    h = jnp.dot(pooled, w1_ref[...], preferred_element_type=jnp.float32)
    h = jnp.maximum(h + b1_ref[...], 0.0)                 # (1, C // r)
    a = jnp.dot(h, w2_ref[...], preferred_element_type=jnp.float32)
    s = jax.nn.sigmoid(a + b2_ref[...])                   # (1, C)
    o_ref[...] = (x * s + r_ref[...].astype(jnp.float32)).astype(o_ref.dtype)


# ----------------------------------------------------------------------------
# Wrappers (layout plumbing; the heavy math lives in the kernels above).
# Activations are carried flat as (N*H*W, C).
# ----------------------------------------------------------------------------
def _pick_tm(m):
    """Pick an M tile that keeps >= 2 grid steps (megacore) when possible.

    All candidates are multiples of 16 (bf16 sublane packing); fallback is a
    full-extent block."""
    for tm in (256, 128, 64, 32, 16):
        if m % tm == 0 and m // tm >= 2:
            return tm
    return m


def _im2col(x2d, dims, kh, kw, stride, pad):
    """(N*H*W, C) flat activation -> bf16 patch matrix (N*Ho*Wo, kh*kw*C)."""
    n, h, w, c = dims
    x = x2d.reshape(n, h, w, c).astype(jnp.bfloat16)
    x = jnp.pad(x, ((0, 0), (pad, pad), (pad, pad), (0, 0)))
    hp, wp = h + 2 * pad, w + 2 * pad
    ho = (hp - kh) // stride + 1
    wo = (wp - kw) // stride + 1
    cols = []
    for i in range(kh):
        for j in range(kw):
            cols.append(x[:, i:i + stride * ho:stride, j:j + stride * wo:stride, :])
    patches = jnp.stack(cols, axis=3).reshape(n * ho * wo, kh * kw * c)
    return patches, (n, ho, wo)


def _matmul_bias_act(patches, w2_bf16, bias_f32, act):
    """Tiled (M-parallel) MXU matmul with fused bias/activation epilogue."""
    m, k = patches.shape
    o = w2_bf16.shape[1]
    tm = _pick_tm(m)
    return pl.pallas_call(
        functools.partial(_mm_epilogue_kernel, act=act),
        out_shape=jax.ShapeDtypeStruct((m, o), jnp.float32),
        grid_spec=pltpu.PrefetchScalarGridSpec(
            num_scalar_prefetch=0,
            grid=(m // tm,),
            in_specs=[pl.BlockSpec((tm, k), lambda gi: (gi, 0)),
                      pl.BlockSpec((k, o), lambda gi: (0, 0)),
                      pl.BlockSpec((1, o), lambda gi: (0, 0))],
            out_specs=pl.BlockSpec((tm, o), lambda gi: (gi, 0))),
        compiler_params=pltpu.CompilerParams(dimension_semantics=_PARALLEL),
    )(patches, w2_bf16, bias_f32)


def conv2d(x2d, dims, w_oikk, stride, pad, bias=None, act=None):
    """Conv2d (+ optional bias + activation) on the flat activation layout."""
    o, i, kh, kw = w_oikk.shape
    patches, (n, ho, wo) = _im2col(x2d, dims, kh, kw, stride, pad)
    k = patches.shape[1]
    w2 = jnp.transpose(w_oikk, (2, 3, 1, 0)).reshape(k, o).astype(jnp.bfloat16)
    b = bias if bias is not None else jnp.zeros((o,), jnp.float32)
    y = _matmul_bias_act(patches, w2, b.reshape(1, o).astype(jnp.float32), act)
    return y, (n, ho, wo, o)


def conv2d_instnorm(x2d, dims, w_oikk, gamma, beta, *, stride, pad,
                    relu, residual2d=None, eps=1e-5):
    """Conv2d (bias-free) fused with InstanceNorm (+ReLU or +residual)."""
    o, i, kh, kw = w_oikk.shape
    patches, (n, ho, wo) = _im2col(x2d, dims, kh, kw, stride, pad)
    hw = ho * wo
    k = patches.shape[1]
    w2 = jnp.transpose(w_oikk, (2, 3, 1, 0)).reshape(k, o).astype(jnp.bfloat16)
    g = gamma.reshape(1, o).astype(jnp.float32)
    be = beta.reshape(1, o).astype(jnp.float32)

    in_specs = [pl.BlockSpec((hw, k), lambda gi: (gi, 0)),
                pl.BlockSpec((k, o), lambda gi: (0, 0)),
                pl.BlockSpec((1, o), lambda gi: (0, 0)),
                pl.BlockSpec((1, o), lambda gi: (0, 0))]
    args = [patches, w2, g, be]
    if residual2d is None:
        kern = functools.partial(_mm_instnorm_kernel, eps=eps, relu=relu)
    else:
        assert not relu  # residual path is norm -> add (no ReLU)
        kern = functools.partial(_mm_instnorm_res_kernel, eps=eps)
        in_specs.append(pl.BlockSpec((hw, o), lambda gi: (gi, 0)))
        args.append(residual2d)

    y = pl.pallas_call(
        kern,
        out_shape=jax.ShapeDtypeStruct((n * hw, o), jnp.float32),
        grid_spec=pltpu.PrefetchScalarGridSpec(
            num_scalar_prefetch=0,
            grid=(n,),
            in_specs=in_specs,
            out_specs=pl.BlockSpec((hw, o), lambda gi: (gi, 0))),
        compiler_params=pltpu.CompilerParams(dimension_semantics=_PARALLEL),
    )(*args)
    return y, (n, ho, wo, o)


def channel_norm(x2d, n_groups, rows, c, gamma, beta, *, relu, eps=1e-5):
    """Train-mode BatchNorm (n_groups=1) / InstanceNorm (n_groups=N)."""
    return pl.pallas_call(
        functools.partial(_colnorm_kernel, eps=eps, relu=relu),
        out_shape=jax.ShapeDtypeStruct((n_groups * rows, c), jnp.float32),
        grid_spec=pltpu.PrefetchScalarGridSpec(
            num_scalar_prefetch=0,
            grid=(n_groups,),
            in_specs=[pl.BlockSpec((rows, c), lambda gi: (gi, 0)),
                      pl.BlockSpec((1, c), lambda gi: (0, 0)),
                      pl.BlockSpec((1, c), lambda gi: (0, 0))],
            out_specs=pl.BlockSpec((rows, c), lambda gi: (gi, 0))),
        compiler_params=pltpu.CompilerParams(dimension_semantics=_PARALLEL),
    )(x2d, gamma.reshape(1, c).astype(jnp.float32),
      beta.reshape(1, c).astype(jnp.float32))


def _convtranspose_phase_weight(w_iokk):
    """Fold ConvTranspose2d(k=4, s=2, p=1) into one 3x3 stride-1 conv that
    produces all 4 sub-pixel phases (column layout: phase-major, then O)."""
    i, o, _, _ = w_iokk.shape
    # tap[phase][patch_row_offset] = original kernel index along that dim.
    tap = ({0: 3, 1: 1}, {1: 2, 2: 0})
    w9 = jnp.zeros((3, 3, i, 4, o), w_iokk.dtype)
    for ry in range(2):
        for rx in range(2):
            for di, ky in tap[ry].items():
                for dj, kx in tap[rx].items():
                    w9 = w9.at[di, dj, :, ry * 2 + rx, :].set(w_iokk[:, :, ky, kx])
    return w9.reshape(9 * i, 4 * o)


def conv_transpose2d_instnorm(x2d, dims, w_iokk, gamma, beta, *, eps=1e-5):
    """ConvTranspose2d(4,4,s=2,p=1) via sub-pixel phases + InstanceNorm+ReLU."""
    n, h, w, i = dims
    o = w_iokk.shape[1]
    w9 = _convtranspose_phase_weight(w_iokk).astype(jnp.bfloat16)
    patches, _ = _im2col(x2d, dims, 3, 3, 1, 1)          # (N*H*W, 9*I)
    y = _matmul_bias_act(patches, w9, jnp.zeros((1, 4 * o), jnp.float32), None)
    # Sub-pixel interleave: (N, H, W, ry, rx, O) -> flat (N*2H*2W, O).
    y = y.reshape(n, h, w, 2, 2, o)
    y = jnp.transpose(y, (0, 1, 3, 2, 4, 5)).reshape(n * 2 * h * 2 * w, o)
    y = channel_norm(y, n, 4 * h * w, o, gamma, beta, relu=True, eps=eps)
    return y, (n, 2 * h, 2 * w, o)


# ----------------------------------------------------------------------------
# Blocks
# ----------------------------------------------------------------------------
def rcab_forward(x2d, dims, p):
    n, h, w, c = dims
    hw = h * w
    red = p['fc1_w'].shape[0]
    out, _ = conv2d(x2d, dims, p['w1'], 1, 1, bias=p['b1'], act="relu")
    out, _ = conv2d(out, dims, p['w2'], 1, 1, bias=p['b2'], act="relu")
    out, _ = conv2d(out, dims, p['w3'], 1, 1, bias=p['b3'], act="relu")
    y = pl.pallas_call(
        _rcab_attn_kernel,
        out_shape=jax.ShapeDtypeStruct((n * hw, c), jnp.float32),
        grid_spec=pltpu.PrefetchScalarGridSpec(
            num_scalar_prefetch=0,
            grid=(n,),
            in_specs=[pl.BlockSpec((hw, c), lambda gi: (gi, 0)),
                      pl.BlockSpec((hw, c), lambda gi: (gi, 0)),
                      pl.BlockSpec((c, red), lambda gi: (0, 0)),
                      pl.BlockSpec((1, red), lambda gi: (0, 0)),
                      pl.BlockSpec((red, c), lambda gi: (0, 0)),
                      pl.BlockSpec((1, c), lambda gi: (0, 0))],
            out_specs=pl.BlockSpec((hw, c), lambda gi: (gi, 0))),
        compiler_params=pltpu.CompilerParams(dimension_semantics=_PARALLEL),
    )(out, x2d,
      jnp.transpose(p['fc1_w']).astype(jnp.float32),
      p['fc1_b'].reshape(1, red).astype(jnp.float32),
      jnp.transpose(p['fc2_w']).astype(jnp.float32),
      p['fc2_b'].reshape(1, c).astype(jnp.float32))
    return y, dims


def resblock_forward(x2d, dims, p):
    h2d, _ = conv2d_instnorm(x2d, dims, p['w1'], p['g1'], p['be1'],
                             stride=1, pad=1, relu=True)
    y2d, _ = conv2d_instnorm(h2d, dims, p['w2'], p['g2'], p['be2'],
                             stride=1, pad=1, relu=False, residual2d=x2d)
    return y2d, dims


def rsm_forward(params, x_nchw, c):
    n, _, h, w = x_nchw.shape
    c_map = jnp.broadcast_to(c.reshape(n, 1, 1, 1), (n, 1, h, w)).astype(x_nchw.dtype)
    x = jnp.concatenate([x_nchw, c_map], axis=1)          # NCHW, 4 channels
    x2d = jnp.transpose(x, (0, 2, 3, 1)).reshape(n * h * w, 4)
    dims = (n, h, w, 4)

    # Stem: 7x7 conv (bias-free) + train-mode BatchNorm + ReLU.
    x2d, dims = conv2d(x2d, dims, params['stem_w'], 1, 3)
    nb, hb, wb, cb = dims
    x2d = channel_norm(x2d, 1, nb * hb * wb, cb,
                       params['stem_g'], params['stem_b'], relu=True)

    # Down-sampling: conv(4x4, s=2) fused with InstanceNorm + ReLU.
    for d in params['down']:
        x2d, dims = conv2d_instnorm(x2d, dims, d['w'], d['g'], d['b'],
                                    stride=2, pad=1, relu=True)

    for p in params['rcab']:
        x2d, dims = rcab_forward(x2d, dims, p)

    for p in params['res']:
        x2d, dims = resblock_forward(x2d, dims, p)

    # Up-sampling: sub-pixel ConvTranspose + InstanceNorm + ReLU.
    for u in params['up']:
        x2d, dims = conv_transpose2d_instnorm(x2d, dims, u['w'], u['g'], u['b'])

    # Output conv with fused ReLU6 / 6 epilogue.
    x2d, dims = conv2d(x2d, dims, params['out_w'], 1, 3, act="relu6_div6")
    nf, hf, wf, cf = dims
    y = x2d.reshape(nf, hf, wf, cf)
    return jnp.transpose(y, (0, 3, 1, 2))                 # back to NCHW


# ----------------------------------------------------------------------------
# Deterministic parameter init (matches the torch module's shapes)
# ----------------------------------------------------------------------------
def init_params(key, conv_dim=16, repeat_num=2, reduction_ratio=16):
    keys = iter(jax.random.split(key, 1024))
    nk = lambda: next(keys)
    std = 0.05
    conv_w = lambda o, i, k: std * jax.random.normal(nk(), (o, i, k, k), jnp.float32)
    rvec = lambda m: std * jax.random.normal(nk(), (m,), jnp.float32)
    ones = lambda m: jnp.ones((m,), jnp.float32)
    zeros = lambda m: jnp.zeros((m,), jnp.float32)

    params = {}
    params['stem_w'] = conv_w(conv_dim, 4, 7)
    params['stem_g'] = ones(conv_dim)
    params['stem_b'] = zeros(conv_dim)

    curr = conv_dim
    down = []
    for _ in range(2):
        down.append(dict(w=conv_w(curr * 2, curr, 4), g=ones(curr * 2), b=zeros(curr * 2)))
        curr *= 2
    params['down'] = down

    red = curr // reduction_ratio
    rcab = []
    for _ in range(repeat_num):
        rcab.append(dict(
            w1=conv_w(curr, curr, 3), b1=rvec(curr),
            w2=conv_w(curr, curr, 3), b2=rvec(curr),
            w3=conv_w(curr, curr, 3), b3=rvec(curr),
            fc1_w=std * jax.random.normal(nk(), (red, curr), jnp.float32),
            fc1_b=rvec(red),
            fc2_w=std * jax.random.normal(nk(), (curr, red), jnp.float32),
            fc2_b=rvec(curr)))
    params['rcab'] = rcab

    res = []
    for _ in range(repeat_num):
        res.append(dict(w1=conv_w(curr, curr, 3), g1=ones(curr), be1=zeros(curr),
                        w2=conv_w(curr, curr, 3), g2=ones(curr), be2=zeros(curr)))
    params['res'] = res

    up = []
    for _ in range(2):
        # ConvTranspose2d weight shape: (in, out, kh, kw)
        up.append(dict(w=std * jax.random.normal(nk(), (curr, curr // 2, 4, 4), jnp.float32),
                       g=ones(curr // 2), b=zeros(curr // 2)))
        curr //= 2
    params['up'] = up

    params['out_w'] = conv_w(3, curr, 7)
    return params


# ----------------------------------------------------------------------------
if __name__ == "__main__":
    # TODO(synk): running-stat buffer updates (track_running_stats) are a
    # training side effect with no functional forward-pass equivalent; the
    # kernels compute train-mode statistics on the fly instead.
    key = jax.random.PRNGKey(0)
    k_param, k_x, k_c = jax.random.split(key, 3)

    conv_dim, repeat_num = 16, 2
    N, H, W = 2, 16, 16

    params = init_params(k_param, conv_dim=conv_dim, repeat_num=repeat_num)
    x = jax.random.normal(k_x, (N, 3, H, W), jnp.float32)
    c = jax.random.normal(k_c, (N,), jnp.float32)

    out = jax.jit(rsm_forward)(params, x, c)
    out = jax.block_until_ready(out)
    assert out.shape == (N, 3, H, W), out.shape
    assert bool(jnp.all(jnp.isfinite(out)))
    print("KERNEL_OK")
</pallas_src>

<mosaic_0001>
module attributes {stable_mosaic.version = 11 : i64} {
  func.func @_colnorm_kernel(%arg0: i32, %arg1: memref<512x16xf32, #tpu.memory_space<vmem>>, %arg2: memref<1x16xf32, #tpu.memory_space<vmem>>, %arg3: memref<1x16xf32, #tpu.memory_space<vmem>>, %arg4: memref<512x16xf32, #tpu.memory_space<vmem>>) attributes {dimension_semantics = [#tpu.dimension_semantics<parallel>], iteration_bounds = array<i64: 1>, scalar_prefetch = 0 : i64, scratch_operands = 0 : i64, tpu.core_type = #tpu.core_type<tc>, window_params = [{transform_indices = @transform_0, window_bounds = array<i64: 512, 16>}, {pipeline_mode = #tpu.pipeline_mode<synchronous>, transform_indices = @transform_1, window_bounds = array<i64: 1, 16>}, {pipeline_mode = #tpu.pipeline_mode<synchronous>, transform_indices = @transform_2, window_bounds = array<i64: 1, 16>}, {transform_indices = @transform_3, window_bounds = array<i64: 512, 16>}]} {
    %c0 = arith.constant 0 : index
    %c0_0 = arith.constant 0 : index
    %0 = vector.load %arg1[%c0, %c0_0] : memref<512x16xf32, #tpu.memory_space<vmem>>, vector<512x16xf32>
    %cst = arith.constant dense<0.000000e+00> : vector<16xf32>
    %1 = vector.multi_reduction <add>, %0, %cst [0] : vector<512x16xf32> to vector<16xf32>
    %2 = vector.shape_cast %1 : vector<16xf32> to vector<1x16xf32>
    %cst_1 = arith.constant 5.120000e+02 : f32
    %3 = vector.broadcast %cst_1 : f32 to vector<1x16xf32>
    %4 = arith.divf %2, %3 : vector<1x16xf32>
    %5 = vector.broadcast %4 : vector<1x16xf32> to vector<512x16xf32>
    %6 = arith.subf %0, %5 : vector<512x16xf32>
    %7 = arith.mulf %6, %6 : vector<512x16xf32>
    %cst_2 = arith.constant dense<0.000000e+00> : vector<16xf32>
    %8 = vector.multi_reduction <add>, %7, %cst_2 [0] : vector<512x16xf32> to vector<16xf32>
    %9 = vector.shape_cast %8 : vector<16xf32> to vector<1x16xf32>
    %cst_3 = arith.constant 5.120000e+02 : f32
    %10 = vector.broadcast %cst_3 : f32 to vector<1x16xf32>
    %11 = arith.divf %9, %10 : vector<1x16xf32>
    %cst_4 = arith.constant 9.99999974E-6 : f32
    %12 = vector.broadcast %cst_4 : f32 to vector<1x16xf32>
    %13 = arith.addf %11, %12 : vector<1x16xf32>
    %14 = math.rsqrt %13 : vector<1x16xf32>
    %15 = vector.broadcast %14 : vector<1x16xf32> to vector<512x16xf32>
    %16 = arith.mulf %6, %15 : vector<512x16xf32>
    %c0_5 = arith.constant 0 : index
    %c0_6 = arith.constant 0 : index
    %17 = vector.load %arg2[%c0_5, %c0_6] : memref<1x16xf32, #tpu.memory_space<vmem>>, vector<1x16xf32>
    %18 = vector.broadcast %17 : vector<1x16xf32> to vector<512x16xf32>
    %19 = arith.mulf %16, %18 : vector<512x16xf32>
    %c0_7 = arith.constant 0 : index
    %c0_8 = arith.constant 0 : index
    %20 = vector.load %arg3[%c0_7, %c0_8] : memref<1x16xf32, #tpu.memory_space<vmem>>, vector<1x16xf32>
    %21 = vector.broadcast %20 : vector<1x16xf32> to vector<512x16xf32>
    %22 = arith.addf %19, %21 : vector<512x16xf32>
    %cst_9 = arith.constant 0.000000e+00 : f32
    %23 = vector.broadcast %cst_9 : f32 to vector<512x16xf32>
    %24 = arith.maximumf %22, %23 : vector<512x16xf32>
    %c0_10 = arith.constant 0 : index
    %c0_11 = arith.constant 0 : index
    %25 = vector.load %arg4[%c0_10, %c0_11] : memref<512x16xf32, #tpu.memory_space<vmem>>, vector<512x16xf32>
    tpu.vector_store %arg4[%c0_10, %c0_11], %24 {strides = array<i32>} : memref<512x16xf32, #tpu.memory_space<vmem>>, vector<512x16xf32>,
    return
  }
  func.func @transform_0(%arg0: i32) -> (i32, i32) {
    %c0_i32 = arith.constant 0 : i32
    %c0_i32_0 = arith.constant 0 : i32
    return %arg0, %c0_i32 : i32, i32
  }
  func.func @transform_1(%arg0: i32) -> (i32, i32) {
    %c0_i32 = arith.constant 0 : i32
    %c0_i32_0 = arith.constant 0 : i32
    %c0_i32_1 = arith.constant 0 : i32
    return %c0_i32, %c0_i32_0 : i32, i32
  }
  func.func @transform_2(%arg0: i32) -> (i32, i32) {
    %c0_i32 = arith.constant 0 : i32
    %c0_i32_0 = arith.constant 0 : i32
    %c0_i32_1 = arith.constant 0 : i32
    return %c0_i32, %c0_i32_0 : i32, i32
  }
  func.func @transform_3(%arg0: i32) -> (i32, i32) {
    %c0_i32 = arith.constant 0 : i32
    %c0_i32_0 = arith.constant 0 : i32
    return %arg0, %c0_i32 : i32, i32
  }
}

module attributes {stable_mosaic.version = 11 : i64} {
  func.func @_mm_epilogue_kernel(%arg0: i32, %arg1: memref<256x196xbf16, #tpu.memory_space<vmem>>, %arg2: memref<196x16xbf16, #tpu.memory_space<vmem>>, %arg3: memref<1x16xf32, #tpu.memory_space<vmem>>, %arg4: memref<256x16xf32, #tpu.memory_space<vmem>>) attributes {dimension_semantics = [#tpu.dimension_semantics<parallel>], iteration_bounds = array<i64: 2>, scalar_prefetch = 0 : i64, scratch_operands = 0 : i64, tpu.core_type = #tpu.core_type<tc>, window_params = [{transform_indices = @transform_0, window_bounds = array<i64: 256, 196>}, {pipeline_mode = #tpu.pipeline_mode<synchronous>, transform_indices = @transform_1, window_bounds = array<i64: 196, 16>}, {pipeline_mode = #tpu.pipeline_mode<synchronous>, transform_indices = @transform_2, window_bounds = array<i64: 1, 16>}, {transform_indices = @transform_3, window_bounds = array<i64: 256, 16>}]} {
    %c0 = arith.constant 0 : index
    %c0_0 = arith.constant 0 : index
    %0 = vector.load %arg1[%c0, %c0_0] : memref<256x196xbf16, #tpu.memory_space<vmem>>, vector<256x196xbf16>
    %c0_1 = arith.constant 0 : index
    %c0_2 = arith.constant 0 : index
    %1 = vector.load %arg2[%c0_1, %c0_2] : memref<196x16xbf16, #tpu.memory_space<vmem>>, vector<196x16xbf16>
    %cst = arith.constant dense<0.000000e+00> : vector<256x16xf32>
    %2 = tpu.matmul %0, %1, %cst {dimension_numbers = #tpu.dot_dimension_numbers<[1], [0], [0], [1], [0, 0, 1, 1], [], []>} : vector<256x196xbf16>, vector<196x16xbf16>, vector<256x16xf32> -> vector<256x16xf32>
    %c0_3 = arith.constant 0 : index
    %c0_4 = arith.constant 0 : index
    %3 = vector.load %arg3[%c0_3, %c0_4] : memref<1x16xf32, #tpu.memory_space<vmem>>, vector<1x16xf32>
    %4 = vector.broadcast %3 : vector<1x16xf32> to vector<256x16xf32>
    %5 = arith.addf %2, %4 : vector<256x16xf32>
    %c0_5 = arith.constant 0 : index
    %c0_6 = arith.constant 0 : index
    %6 = vector.load %arg4[%c0_5, %c0_6] : memref<256x16xf32, #tpu.memory_space<vmem>>, vector<256x16xf32>
    tpu.vector_store %arg4[%c0_5, %c0_6], %5 {strides = array<i32>} : memref<256x16xf32, #tpu.memory_space<vmem>>, vector<256x16xf32>,
    return
  }
  func.func @transform_0(%arg0: i32) -> (i32, i32) {
    %c0_i32 = arith.constant 0 : i32
    %c0_i32_0 = arith.constant 0 : i32
    return %arg0, %c0_i32 : i32, i32
  }
  func.func @transform_1(%arg0: i32) -> (i32, i32) {
    %c0_i32 = arith.constant 0 : i32
    %c0_i32_0 = arith.constant 0 : i32
    %c0_i32_1 = arith.constant 0 : i32
    return %c0_i32, %c0_i32_0 : i32, i32
  }
  func.func @transform_2(%arg0: i32) -> (i32, i32) {
    %c0_i32 = arith.constant 0 : i32
    %c0_i32_0 = arith.constant 0 : i32
    %c0_i32_1 = arith.constant 0 : i32
    return %c0_i32, %c0_i32_0 : i32, i32
  }
  func.func @transform_3(%arg0: i32) -> (i32, i32) {
    %c0_i32 = arith.constant 0 : i32
    %c0_i32_0 = arith.constant 0 : i32
    return %arg0, %c0_i32 : i32, i32
  }
}

module attributes {stable_mosaic.version = 11 : i64} {
  func.func @_mm_instnorm_kernel(%arg0: i32, %arg1: memref<64x256xbf16, #tpu.memory_space<vmem>>, %arg2: memref<256x32xbf16, #tpu.memory_space<vmem>>, %arg3: memref<1x32xf32, #tpu.memory_space<vmem>>, %arg4: memref<1x32xf32, #tpu.memory_space<vmem>>, %arg5: memref<64x32xf32, #tpu.memory_space<vmem>>) attributes {dimension_semantics = [#tpu.dimension_semantics<parallel>], iteration_bounds = array<i64: 2>, scalar_prefetch = 0 : i64, scratch_operands = 0 : i64, tpu.core_type = #tpu.core_type<tc>, window_params = [{transform_indices = @transform_0, window_bounds = array<i64: 64, 256>}, {pipeline_mode = #tpu.pipeline_mode<synchronous>, transform_indices = @transform_1, window_bounds = array<i64: 256, 32>}, {pipeline_mode = #tpu.pipeline_mode<synchronous>, transform_indices = @transform_2, window_bounds = array<i64: 1, 32>}, {pipeline_mode = #tpu.pipeline_mode<synchronous>, transform_indices = @transform_3, window_bounds = array<i64: 1, 32>}, {transform_indices = @transform_4, window_bounds = array<i64: 64, 32>}]} {
    %c0 = arith.constant 0 : index
    %c0_0 = arith.constant 0 : index
    %0 = vector.load %arg1[%c0, %c0_0] : memref<64x256xbf16, #tpu.memory_space<vmem>>, vector<64x256xbf16>
    %c0_1 = arith.constant 0 : index
    %c0_2 = arith.constant 0 : index
    %1 = vector.load %arg2[%c0_1, %c0_2] : memref<256x32xbf16, #tpu.memory_space<vmem>>, vector<256x32xbf16>
    %cst = arith.constant dense<0.000000e+00> : vector<64x32xf32>
    %2 = tpu.matmul %0, %1, %cst {dimension_numbers = #tpu.dot_dimension_numbers<[1], [0], [0], [1], [0, 0, 1, 1], [], []>} : vector<64x256xbf16>, vector<256x32xbf16>, vector<64x32xf32> -> vector<64x32xf32>
    %cst_3 = arith.constant dense<0.000000e+00> : vector<32xf32>
    %3 = vector.multi_reduction <add>, %2, %cst_3 [0] : vector<64x32xf32> to vector<32xf32>
    %4 = vector.shape_cast %3 : vector<32xf32> to vector<1x32xf32>
    %cst_4 = arith.constant 6.400000e+01 : f32
    %5 = vector.broadcast %cst_4 : f32 to vector<1x32xf32>
    %6 = arith.divf %4, %5 : vector<1x32xf32>
    %7 = vector.broadcast %6 : vector<1x32xf32> to vector<64x32xf32>
    %8 = arith.subf %2, %7 : vector<64x32xf32>
    %9 = arith.mulf %8, %8 : vector<64x32xf32>
    %cst_5 = arith.constant dense<0.000000e+00> : vector<32xf32>
    %10 = vector.multi_reduction <add>, %9, %cst_5 [0] : vector<64x32xf32> to vector<32xf32>
    %11 = vector.shape_cast %10 : vector<32xf32> to vector<1x32xf32>
    %cst_6 = arith.constant 6.400000e+01 : f32
    %12 = vector.broadcast %cst_6 : f32 to vector<1x32xf32>
    %13 = arith.divf %11, %12 : vector<1x32xf32>
    %cst_7 = arith.constant 9.99999974E-6 : f32
    %14 = vector.broadcast %cst_7 : f32 to vector<1x32xf32>
    %15 = arith.addf %13, %14 : vector<1x32xf32>
    %16 = math.rsqrt %15 : vector<1x32xf32>
    %17 = vector.broadcast %16 : vector<1x32xf32> to vector<64x32xf32>
    %18 = arith.mulf %8, %17 : vector<64x32xf32>
    %c0_8 = arith.constant 0 : index
    %c0_9 = arith.constant 0 : index
    %19 = vector.load %arg3[%c0_8, %c0_9] : memref<1x32xf32, #tpu.memory_space<vmem>>, vector<1x32xf32>
    %20 = vector.broadcast %19 : vector<1x32xf32> to vector<64x32xf32>
    %21 = arith.mulf %18, %20 : vector<64x32xf32>
    %c0_10 = arith.constant 0 : index
    %c0_11 = arith.constant 0 : index
    %22 = vector.load %arg4[%c0_10, %c0_11] : memref<1x32xf32, #tpu.memory_space<vmem>>, vector<1x32xf32>
    %23 = vector.broadcast %22 : vector<1x32xf32> to vector<64x32xf32>
    %24 = arith.addf %21, %23 : vector<64x32xf32>
    %cst_12 = arith.constant 0.000000e+00 : f32
    %25 = vector.broadcast %cst_12 : f32 to vector<64x32xf32>
    %26 = arith.maximumf %24, %25 : vector<64x32xf32>
    %c0_13 = arith.constant 0 : index
    %c0_14 = arith.constant 0 : index
    %27 = vector.load %arg5[%c0_13, %c0_14] : memref<64x32xf32, #tpu.memory_space<vmem>>, vector<64x32xf32>
    tpu.vector_store %arg5[%c0_13, %c0_14], %26 {strides = array<i32>} : memref<64x32xf32, #tpu.memory_space<vmem>>, vector<64x32xf32>,
    return
  }
  func.func @transform_0(%arg0: i32) -> (i32, i32) {
    %c0_i32 = arith.constant 0 : i32
    %c0_i32_0 = arith.constant 0 : i32
    return %arg0, %c0_i32 : i32, i32
  }
  func.func @transform_1(%arg0: i32) -> (i32, i32) {
    %c0_i32 = arith.constant 0 : i32
    %c0_i32_0 = arith.constant 0 : i32
    %c0_i32_1 = arith.constant 0 : i32
    return %c0_i32, %c0_i32_0 : i32, i32
  }
  func.func @transform_2(%arg0: i32) -> (i32, i32) {
    %c0_i32 = arith.constant 0 : i32
    %c0_i32_0 = arith.constant 0 : i32
    %c0_i32_1 = arith.constant 0 : i32
    return %c0_i32, %c0_i32_0 : i32, i32
  }
  func.func @transform_3(%arg0: i32) -> (i32, i32) {
    %c0_i32 = arith.constant 0 : i32
    %c0_i32_0 = arith.constant 0 : i32
    %c0_i32_1 = arith.constant 0 : i32
    return %c0_i32, %c0_i32_0 : i32, i32
  }
  func.func @transform_4(%arg0: i32) -> (i32, i32) {
    %c0_i32 = arith.constant 0 : i32
    %c0_i32_0 = arith.constant 0 : i32
    return %arg0, %c0_i32 : i32, i32
  }
}

module attributes {stable_mosaic.version = 11 : i64} {
  func.func @_mm_instnorm_kernel(%arg0: i32, %arg1: memref<16x512xbf16, #tpu.memory_space<vmem>>, %arg2: memref<512x64xbf16, #tpu.memory_space<vmem>>, %arg3: memref<1x64xf32, #tpu.memory_space<vmem>>, %arg4: memref<1x64xf32, #tpu.memory_space<vmem>>, %arg5: memref<16x64xf32, #tpu.memory_space<vmem>>) attributes {dimension_semantics = [#tpu.dimension_semantics<parallel>], iteration_bounds = array<i64: 2>, scalar_prefetch = 0 : i64, scratch_operands = 0 : i64, tpu.core_type = #tpu.core_type<tc>, window_params = [{transform_indices = @transform_0, window_bounds = array<i64: 16, 512>}, {pipeline_mode = #tpu.pipeline_mode<synchronous>, transform_indices = @transform_1, window_bounds = array<i64: 512, 64>}, {pipeline_mode = #tpu.pipeline_mode<synchronous>, transform_indices = @transform_2, window_bounds = array<i64: 1, 64>}, {pipeline_mode = #tpu.pipeline_mode<synchronous>, transform_indices = @transform_3, window_bounds = array<i64: 1, 64>}, {transform_indices = @transform_4, window_bounds = array<i64: 16, 64>}]} {
    %c0 = arith.constant 0 : index
    %c0_0 = arith.constant 0 : index
    %0 = vector.load %arg1[%c0, %c0_0] : memref<16x512xbf16, #tpu.memory_space<vmem>>, vector<16x512xbf16>
    %c0_1 = arith.constant 0 : index
    %c0_2 = arith.constant 0 : index
    %1 = vector.load %arg2[%c0_1, %c0_2] : memref<512x64xbf16, #tpu.memory_space<vmem>>, vector<512x64xbf16>
    %cst = arith.constant dense<0.000000e+00> : vector<16x64xf32>
    %2 = tpu.matmul %0, %1, %cst {dimension_numbers = #tpu.dot_dimension_numbers<[1], [0], [0], [1], [0, 0, 1, 1], [], []>} : vector<16x512xbf16>, vector<512x64xbf16>, vector<16x64xf32> -> vector<16x64xf32>
    %cst_3 = arith.constant dense<0.000000e+00> : vector<64xf32>
    %3 = vector.multi_reduction <add>, %2, %cst_3 [0] : vector<16x64xf32> to vector<64xf32>
    %4 = vector.shape_cast %3 : vector<64xf32> to vector<1x64xf32>
    %cst_4 = arith.constant 1.600000e+01 : f32
    %5 = vector.broadcast %cst_4 : f32 to vector<1x64xf32>
    %6 = arith.divf %4, %5 : vector<1x64xf32>
    %7 = vector.broadcast %6 : vector<1x64xf32> to vector<16x64xf32>
    %8 = arith.subf %2, %7 : vector<16x64xf32>
    %9 = arith.mulf %8, %8 : vector<16x64xf32>
    %cst_5 = arith.constant dense<0.000000e+00> : vector<64xf32>
    %10 = vector.multi_reduction <add>, %9, %cst_5 [0] : vector<16x64xf32> to vector<64xf32>
    %11 = vector.shape_cast %10 : vector<64xf32> to vector<1x64xf32>
    %cst_6 = arith.constant 1.600000e+01 : f32
    %12 = vector.broadcast %cst_6 : f32 to vector<1x64xf32>
    %13 = arith.divf %11, %12 : vector<1x64xf32>
    %cst_7 = arith.constant 9.99999974E-6 : f32
    %14 = vector.broadcast %cst_7 : f32 to vector<1x64xf32>
    %15 = arith.addf %13, %14 : vector<1x64xf32>
    %16 = math.rsqrt %15 : vector<1x64xf32>
    %17 = vector.broadcast %16 : vector<1x64xf32> to vector<16x64xf32>
    %18 = arith.mulf %8, %17 : vector<16x64xf32>
    %c0_8 = arith.constant 0 : index
    %c0_9 = arith.constant 0 : index
    %19 = vector.load %arg3[%c0_8, %c0_9] : memref<1x64xf32, #tpu.memory_space<vmem>>, vector<1x64xf32>
    %20 = vector.broadcast %19 : vector<1x64xf32> to vector<16x64xf32>
    %21 = arith.mulf %18, %20 : vector<16x64xf32>
    %c0_10 = arith.constant 0 : index
    %c0_11 = arith.constant 0 : index
    %22 = vector.load %arg4[%c0_10, %c0_11] : memref<1x64xf32, #tpu.memory_space<vmem>>, vector<1x64xf32>
    %23 = vector.broadcast %22 : vector<1x64xf32> to vector<16x64xf32>
    %24 = arith.addf %21, %23 : vector<16x64xf32>
    %cst_12 = arith.constant 0.000000e+00 : f32
    %25 = vector.broadcast %cst_12 : f32 to vector<16x64xf32>
    %26 = arith.maximumf %24, %25 : vector<16x64xf32>
    %c0_13 = arith.constant 0 : index
    %c0_14 = arith.constant 0 : index
    %27 = vector.load %arg5[%c0_13, %c0_14] : memref<16x64xf32, #tpu.memory_space<vmem>>, vector<16x64xf32>
    tpu.vector_store %arg5[%c0_13, %c0_14], %26 {strides = array<i32>} : memref<16x64xf32, #tpu.memory_space<vmem>>, vector<16x64xf32>,
    return
  }
  func.func @transform_0(%arg0: i32) -> (i32, i32) {
    %c0_i32 = arith.constant 0 : i32
    %c0_i32_0 = arith.constant 0 : i32
    return %arg0, %c0_i32 : i32, i32
  }
  func.func @transform_1(%arg0: i32) -> (i32, i32) {
    %c0_i32 = arith.constant 0 : i32
    %c0_i32_0 = arith.constant 0 : i32
    %c0_i32_1 = arith.constant 0 : i32
    return %c0_i32, %c0_i32_0 : i32, i32
  }
  func.func @transform_2(%arg0: i32) -> (i32, i32) {
    %c0_i32 = arith.constant 0 : i32
    %c0_i32_0 = arith.constant 0 : i32
    %c0_i32_1 = arith.constant 0 : i32
    return %c0_i32, %c0_i32_0 : i32, i32
  }
  func.func @transform_3(%arg0: i32) -> (i32, i32) {
    %c0_i32 = arith.constant 0 : i32
    %c0_i32_0 = arith.constant 0 : i32
    %c0_i32_1 = arith.constant 0 : i32
    return %c0_i32, %c0_i32_0 : i32, i32
  }
  func.func @transform_4(%arg0: i32) -> (i32, i32) {
    %c0_i32 = arith.constant 0 : i32
    %c0_i32_0 = arith.constant 0 : i32
    return %arg0, %c0_i32 : i32, i32
  }
}

module attributes {stable_mosaic.version = 11 : i64} {
  func.func @_mm_epilogue_kernel(%arg0: i32, %arg1: memref<16x576xbf16, #tpu.memory_space<vmem>>, %arg2: memref<576x64xbf16, #tpu.memory_space<vmem>>, %arg3: memref<1x64xf32, #tpu.memory_space<vmem>>, %arg4: memref<16x64xf32, #tpu.memory_space<vmem>>) attributes {dimension_semantics = [#tpu.dimension_semantics<parallel>], iteration_bounds = array<i64: 2>, scalar_prefetch = 0 : i64, scratch_operands = 0 : i64, tpu.core_type = #tpu.core_type<tc>, window_params = [{transform_indices = @transform_0, window_bounds = array<i64: 16, 576>}, {pipeline_mode = #tpu.pipeline_mode<synchronous>, transform_indices = @transform_1, window_bounds = array<i64: 576, 64>}, {pipeline_mode = #tpu.pipeline_mode<synchronous>, transform_indices = @transform_2, window_bounds = array<i64: 1, 64>}, {transform_indices = @transform_3, window_bounds = array<i64: 16, 64>}]} {
    %c0 = arith.constant 0 : index
    %c0_0 = arith.constant 0 : index
    %0 = vector.load %arg1[%c0, %c0_0] : memref<16x576xbf16, #tpu.memory_space<vmem>>, vector<16x576xbf16>
    %c0_1 = arith.constant 0 : index
    %c0_2 = arith.constant 0 : index
    %1 = vector.load %arg2[%c0_1, %c0_2] : memref<576x64xbf16, #tpu.memory_space<vmem>>, vector<576x64xbf16>
    %cst = arith.constant dense<0.000000e+00> : vector<16x64xf32>
    %2 = tpu.matmul %0, %1, %cst {dimension_numbers = #tpu.dot_dimension_numbers<[1], [0], [0], [1], [0, 0, 1, 1], [], []>} : vector<16x576xbf16>, vector<576x64xbf16>, vector<16x64xf32> -> vector<16x64xf32>
    %c0_3 = arith.constant 0 : index
    %c0_4 = arith.constant 0 : index
    %3 = vector.load %arg3[%c0_3, %c0_4] : memref<1x64xf32, #tpu.memory_space<vmem>>, vector<1x64xf32>
    %4 = vector.broadcast %3 : vector<1x64xf32> to vector<16x64xf32>
    %5 = arith.addf %2, %4 : vector<16x64xf32>
    %cst_5 = arith.constant 0.000000e+00 : f32
    %6 = vector.broadcast %cst_5 : f32 to vector<16x64xf32>
    %7 = arith.maximumf %5, %6 : vector<16x64xf32>
    %c0_6 = arith.constant 0 : index
    %c0_7 = arith.constant 0 : index
    %8 = vector.load %arg4[%c0_6, %c0_7] : memref<16x64xf32, #tpu.memory_space<vmem>>, vector<16x64xf32>
    tpu.vector_store %arg4[%c0_6, %c0_7], %7 {strides = array<i32>} : memref<16x64xf32, #tpu.memory_space<vmem>>, vector<16x64xf32>,
    return
  }
  func.func @transform_0(%arg0: i32) -> (i32, i32) {
    %c0_i32 = arith.constant 0 : i32
    %c0_i32_0 = arith.constant 0 : i32
    return %arg0, %c0_i32 : i32, i32
  }
  func.func @transform_1(%arg0: i32) -> (i32, i32) {
    %c0_i32 = arith.constant 0 : i32
    %c0_i32_0 = arith.constant 0 : i32
    %c0_i32_1 = arith.constant 0 : i32
    return %c0_i32, %c0_i32_0 : i32, i32
  }
  func.func @transform_2(%arg0: i32) -> (i32, i32) {
    %c0_i32 = arith.constant 0 : i32
    %c0_i32_0 = arith.constant 0 : i32
    %c0_i32_1 = arith.constant 0 : i32
    return %c0_i32, %c0_i32_0 : i32, i32
  }
  func.func @transform_3(%arg0: i32) -> (i32, i32) {
    %c0_i32 = arith.constant 0 : i32
    %c0_i32_0 = arith.constant 0 : i32
    return %arg0, %c0_i32 : i32, i32
  }
}

module attributes {stable_mosaic.version = 11 : i64} {
  func.func @_rcab_attn_kernel(%arg0: i32, %arg1: memref<16x64xf32, #tpu.memory_space<vmem>>, %arg2: memref<16x64xf32, #tpu.memory_space<vmem>>, %arg3: memref<64x4xf32, #tpu.memory_space<vmem>>, %arg4: memref<1x4xf32, #tpu.memory_space<vmem>>, %arg5: memref<4x64xf32, #tpu.memory_space<vmem>>, %arg6: memref<1x64xf32, #tpu.memory_space<vmem>>, %arg7: memref<16x64xf32, #tpu.memory_space<vmem>>) attributes {dimension_semantics = [#tpu.dimension_semantics<parallel>], iteration_bounds = array<i64: 2>, scalar_prefetch = 0 : i64, scratch_operands = 0 : i64, tpu.core_type = #tpu.core_type<tc>, window_params = [{transform_indices = @transform_0, window_bounds = array<i64: 16, 64>}, {transform_indices = @transform_1, window_bounds = array<i64: 16, 64>}, {pipeline_mode = #tpu.pipeline_mode<synchronous>, transform_indices = @transform_2, window_bounds = array<i64: 64, 4>}, {pipeline_mode = #tpu.pipeline_mode<synchronous>, transform_indices = @transform_3, window_bounds = array<i64: 1, 4>}, {pipeline_mode = #tpu.pipeline_mode<synchronous>, transform_indices = @transform_4, window_bounds = array<i64: 4, 64>}, {pipeline_mode = #tpu.pipeline_mode<synchronous>, transform_indices = @transform_5, window_bounds = array<i64: 1, 64>}, {transform_indices = @transform_6, window_bounds = array<i64: 16, 64>}]} {
    %c0 = arith.constant 0 : index
    %c0_0 = arith.constant 0 : index
    %0 = vector.load %arg1[%c0, %c0_0] : memref<16x64xf32, #tpu.memory_space<vmem>>, vector<16x64xf32>
    %cst = arith.constant dense<0xFF800000> : vector<64xf32>
    %1 = vector.multi_reduction <maximumf>, %0, %cst [0] : vector<16x64xf32> to vector<64xf32>
    %2 = vector.shape_cast %1 : vector<64xf32> to vector<1x64xf32>
    %c0_1 = arith.constant 0 : index
    %c0_2 = arith.constant 0 : index
    %3 = vector.load %arg3[%c0_1, %c0_2] : memref<64x4xf32, #tpu.memory_space<vmem>>, vector<64x4xf32>
    %cst_3 = arith.constant dense<0.000000e+00> : vector<1x4xf32>
    %4 = tpu.matmul %2, %3, %cst_3 {dimension_numbers = #tpu.dot_dimension_numbers<[1], [0], [0], [1], [0, 0, 1, 1], [], []>} : vector<1x64xf32>, vector<64x4xf32>, vector<1x4xf32> -> vector<1x4xf32>
    %c0_4 = arith.constant 0 : index
    %c0_5 = arith.constant 0 : index
    %5 = vector.load %arg4[%c0_4, %c0_5] : memref<1x4xf32, #tpu.memory_space<vmem>>, vector<1x4xf32>
    %6 = arith.addf %4, %5 : vector<1x4xf32>
    %cst_6 = arith.constant 0.000000e+00 : f32
    %7 = vector.broadcast %cst_6 : f32 to vector<1x4xf32>
    %8 = arith.maximumf %6, %7 : vector<1x4xf32>
    %c0_7 = arith.constant 0 : index
    %c0_8 = arith.constant 0 : index
    %9 = vector.load %arg5[%c0_7, %c0_8] : memref<4x64xf32, #tpu.memory_space<vmem>>, vector<4x64xf32>
    %cst_9 = arith.constant dense<0.000000e+00> : vector<1x64xf32>
    %10 = tpu.matmul %8, %9, %cst_9 {dimension_numbers = #tpu.dot_dimension_numbers<[1], [0], [0], [1], [0, 0, 1, 1], [], []>} : vector<1x4xf32>, vector<4x64xf32>, vector<1x64xf32> -> vector<1x64xf32>
    %c0_10 = arith.constant 0 : index
    %c0_11 = arith.constant 0 : index
    %11 = vector.load %arg6[%c0_10, %c0_11] : memref<1x64xf32, #tpu.memory_space<vmem>>, vector<1x64xf32>
    %12 = arith.addf %10, %11 : vector<1x64xf32>
    %13 = arith.negf %12 : vector<1x64xf32>
    %14 = math.exp %13 : vector<1x64xf32>
    %cst_12 = arith.constant 1.000000e+00 : f32
    %15 = vector.broadcast %cst_12 : f32 to vector<1x64xf32>
    %16 = arith.addf %15, %14 : vector<1x64xf32>
    %17 = arith.divf %15, %16 : vector<1x64xf32>
    %18 = vector.broadcast %17 : vector<1x64xf32> to vector<16x64xf32>
    %19 = arith.mulf %0, %18 : vector<16x64xf32>
    %c0_13 = arith.constant 0 : index
    %c0_14 = arith.constant 0 : index
    %20 = vector.load %arg2[%c0_13, %c0_14] : memref<16x64xf32, #tpu.memory_space<vmem>>, vector<16x64xf32>
    %21 = arith.addf %19, %20 : vector<16x64xf32>
    %c0_15 = arith.constant 0 : index
    %c0_16 = arith.constant 0 : index
    %22 = vector.load %arg7[%c0_15, %c0_16] : memref<16x64xf32, #tpu.memory_space<vmem>>, vector<16x64xf32>
    tpu.vector_store %arg7[%c0_15, %c0_16], %21 {strides = array<i32>} : memref<16x64xf32, #tpu.memory_space<vmem>>, vector<16x64xf32>,
    return
  }
  func.func @transform_0(%arg0: i32) -> (i32, i32) {
    %c0_i32 = arith.constant 0 : i32
    %c0_i32_0 = arith.constant 0 : i32
    return %arg0, %c0_i32 : i32, i32
  }
  func.func @transform_1(%arg0: i32) -> (i32, i32) {
    %c0_i32 = arith.constant 0 : i32
    %c0_i32_0 = arith.constant 0 : i32
    return %arg0, %c0_i32 : i32, i32
  }
  func.func @transform_2(%arg0: i32) -> (i32, i32) {
    %c0_i32 = arith.constant 0 : i32
    %c0_i32_0 = arith.constant 0 : i32
    %c0_i32_1 = arith.constant 0 : i32
    return %c0_i32, %c0_i32_0 : i32, i32
  }
  func.func @transform_3(%arg0: i32) -> (i32, i32) {
    %c0_i32 = arith.constant 0 : i32
    %c0_i32_0 = arith.constant 0 : i32
    %c0_i32_1 = arith.constant 0 : i32
    return %c0_i32, %c0_i32_0 : i32, i32
  }
  func.func @transform_4(%arg0: i32) -> (i32, i32) {
    %c0_i32 = arith.constant 0 : i32
    %c0_i32_0 = arith.constant 0 : i32
    %c0_i32_1 = arith.constant 0 : i32
    return %c0_i32, %c0_i32_0 : i32, i32
  }
  func.func @transform_5(%arg0: i32) -> (i32, i32) {
    %c0_i32 = arith.constant 0 : i32
    %c0_i32_0 = arith.constant 0 : i32
    %c0_i32_1 = arith.constant 0 : i32
    return %c0_i32, %c0_i32_0 : i32, i32
  }
  func.func @transform_6(%arg0: i32) -> (i32, i32) {
    %c0_i32 = arith.constant 0 : i32
    %c0_i32_0 = arith.constant 0 : i32
    return %arg0, %c0_i32 : i32, i32
  }
}

module attributes {stable_mosaic.version = 11 : i64} {
  func.func @_mm_instnorm_kernel(%arg0: i32, %arg1: memref<16x576xbf16, #tpu.memory_space<vmem>>, %arg2: memref<576x64xbf16, #tpu.memory_space<vmem>>, %arg3: memref<1x64xf32, #tpu.memory_space<vmem>>, %arg4: memref<1x64xf32, #tpu.memory_space<vmem>>, %arg5: memref<16x64xf32, #tpu.memory_space<vmem>>) attributes {dimension_semantics = [#tpu.dimension_semantics<parallel>], iteration_bounds = array<i64: 2>, scalar_prefetch = 0 : i64, scratch_operands = 0 : i64, tpu.core_type = #tpu.core_type<tc>, window_params = [{transform_indices = @transform_0, window_bounds = array<i64: 16, 576>}, {pipeline_mode = #tpu.pipeline_mode<synchronous>, transform_indices = @transform_1, window_bounds = array<i64: 576, 64>}, {pipeline_mode = #tpu.pipeline_mode<synchronous>, transform_indices = @transform_2, window_bounds = array<i64: 1, 64>}, {pipeline_mode = #tpu.pipeline_mode<synchronous>, transform_indices = @transform_3, window_bounds = array<i64: 1, 64>}, {transform_indices = @transform_4, window_bounds = array<i64: 16, 64>}]} {
    %c0 = arith.constant 0 : index
    %c0_0 = arith.constant 0 : index
    %0 = vector.load %arg1[%c0, %c0_0] : memref<16x576xbf16, #tpu.memory_space<vmem>>, vector<16x576xbf16>
    %c0_1 = arith.constant 0 : index
    %c0_2 = arith.constant 0 : index
    %1 = vector.load %arg2[%c0_1, %c0_2] : memref<576x64xbf16, #tpu.memory_space<vmem>>, vector<576x64xbf16>
    %cst = arith.constant dense<0.000000e+00> : vector<16x64xf32>
    %2 = tpu.matmul %0, %1, %cst {dimension_numbers = #tpu.dot_dimension_numbers<[1], [0], [0], [1], [0, 0, 1, 1], [], []>} : vector<16x576xbf16>, vector<576x64xbf16>, vector<16x64xf32> -> vector<16x64xf32>
    %cst_3 = arith.constant dense<0.000000e+00> : vector<64xf32>
    %3 = vector.multi_reduction <add>, %2, %cst_3 [0] : vector<16x64xf32> to vector<64xf32>
    %4 = vector.shape_cast %3 : vector<64xf32> to vector<1x64xf32>
    %cst_4 = arith.constant 1.600000e+01 : f32
    %5 = vector.broadcast %cst_4 : f32 to vector<1x64xf32>
    %6 = arith.divf %4, %5 : vector<1x64xf32>
    %7 = vector.broadcast %6 : vector<1x64xf32> to vector<16x64xf32>
    %8 = arith.subf %2, %7 : vector<16x64xf32>
    %9 = arith.mulf %8, %8 : vector<16x64xf32>
    %cst_5 = arith.constant dense<0.000000e+00> : vector<64xf32>
    %10 = vector.multi_reduction <add>, %9, %cst_5 [0] : vector<16x64xf32> to vector<64xf32>
    %11 = vector.shape_cast %10 : vector<64xf32> to vector<1x64xf32>
    %cst_6 = arith.constant 1.600000e+01 : f32
    %12 = vector.broadcast %cst_6 : f32 to vector<1x64xf32>
    %13 = arith.divf %11, %12 : vector<1x64xf32>
    %cst_7 = arith.constant 9.99999974E-6 : f32
    %14 = vector.broadcast %cst_7 : f32 to vector<1x64xf32>
    %15 = arith.addf %13, %14 : vector<1x64xf32>
    %16 = math.rsqrt %15 : vector<1x64xf32>
    %17 = vector.broadcast %16 : vector<1x64xf32> to vector<16x64xf32>
    %18 = arith.mulf %8, %17 : vector<16x64xf32>
    %c0_8 = arith.constant 0 : index
    %c0_9 = arith.constant 0 : index
    %19 = vector.load %arg3[%c0_8, %c0_9] : memref<1x64xf32, #tpu.memory_space<vmem>>, vector<1x64xf32>
    %20 = vector.broadcast %19 : vector<1x64xf32> to vector<16x64xf32>
    %21 = arith.mulf %18, %20 : vector<16x64xf32>
    %c0_10 = arith.constant 0 : index
    %c0_11 = arith.constant 0 : index
    %22 = vector.load %arg4[%c0_10, %c0_11] : memref<1x64xf32, #tpu.memory_space<vmem>>, vector<1x64xf32>
    %23 = vector.broadcast %22 : vector<1x64xf32> to vector<16x64xf32>
    %24 = arith.addf %21, %23 : vector<16x64xf32>
    %cst_12 = arith.constant 0.000000e+00 : f32
    %25 = vector.broadcast %cst_12 : f32 to vector<16x64xf32>
    %26 = arith.maximumf %24, %25 : vector<16x64xf32>
    %c0_13 = arith.constant 0 : index
    %c0_14 = arith.constant 0 : index
    %27 = vector.load %arg5[%c0_13, %c0_14] : memref<16x64xf32, #tpu.memory_space<vmem>>, vector<16x64xf32>
    tpu.vector_store %arg5[%c0_13, %c0_14], %26 {strides = array<i32>} : memref<16x64xf32, #tpu.memory_space<vmem>>, vector<16x64xf32>,
    return
  }
  func.func @transform_0(%arg0: i32) -> (i32, i32) {
    %c0_i32 = arith.constant 0 : i32
    %c0_i32_0 = arith.constant 0 : i32
    return %arg0, %c0_i32 : i32, i32
  }
  func.func @transform_1(%arg0: i32) -> (i32, i32) {
    %c0_i32 = arith.constant 0 : i32
    %c0_i32_0 = arith.constant 0 : i32
    %c0_i32_1 = arith.constant 0 : i32
    return %c0_i32, %c0_i32_0 : i32, i32
  }
  func.func @transform_2(%arg0: i32) -> (i32, i32) {
    %c0_i32 = arith.constant 0 : i32
    %c0_i32_0 = arith.constant 0 : i32
    %c0_i32_1 = arith.constant 0 : i32
    return %c0_i32, %c0_i32_0 : i32, i32
  }
  func.func @transform_3(%arg0: i32) -> (i32, i32) {
    %c0_i32 = arith.constant 0 : i32
    %c0_i32_0 = arith.constant 0 : i32
    %c0_i32_1 = arith.constant 0 : i32
    return %c0_i32, %c0_i32_0 : i32, i32
  }
  func.func @transform_4(%arg0: i32) -> (i32, i32) {
    %c0_i32 = arith.constant 0 : i32
    %c0_i32_0 = arith.constant 0 : i32
    return %arg0, %c0_i32 : i32, i32
  }
}

module attributes {stable_mosaic.version = 11 : i64} {
  func.func @_mm_instnorm_res_kernel(%arg0: i32, %arg1: memref<16x576xbf16, #tpu.memory_space<vmem>>, %arg2: memref<576x64xbf16, #tpu.memory_space<vmem>>, %arg3: memref<1x64xf32, #tpu.memory_space<vmem>>, %arg4: memref<1x64xf32, #tpu.memory_space<vmem>>, %arg5: memref<16x64xf32, #tpu.memory_space<vmem>>, %arg6: memref<16x64xf32, #tpu.memory_space<vmem>>) attributes {dimension_semantics = [#tpu.dimension_semantics<parallel>], iteration_bounds = array<i64: 2>, scalar_prefetch = 0 : i64, scratch_operands = 0 : i64, tpu.core_type = #tpu.core_type<tc>, window_params = [{transform_indices = @transform_0, window_bounds = array<i64: 16, 576>}, {pipeline_mode = #tpu.pipeline_mode<synchronous>, transform_indices = @transform_1, window_bounds = array<i64: 576, 64>}, {pipeline_mode = #tpu.pipeline_mode<synchronous>, transform_indices = @transform_2, window_bounds = array<i64: 1, 64>}, {pipeline_mode = #tpu.pipeline_mode<synchronous>, transform_indices = @transform_3, window_bounds = array<i64: 1, 64>}, {transform_indices = @transform_4, window_bounds = array<i64: 16, 64>}, {transform_indices = @transform_5, window_bounds = array<i64: 16, 64>}]} {
    %c0 = arith.constant 0 : index
    %c0_0 = arith.constant 0 : index
    %0 = vector.load %arg1[%c0, %c0_0] : memref<16x576xbf16, #tpu.memory_space<vmem>>, vector<16x576xbf16>
    %c0_1 = arith.constant 0 : index
    %c0_2 = arith.constant 0 : index
    %1 = vector.load %arg2[%c0_1, %c0_2] : memref<576x64xbf16, #tpu.memory_space<vmem>>, vector<576x64xbf16>
    %cst = arith.constant dense<0.000000e+00> : vector<16x64xf32>
    %2 = tpu.matmul %0, %1, %cst {dimension_numbers = #tpu.dot_dimension_numbers<[1], [0], [0], [1], [0, 0, 1, 1], [], []>} : vector<16x576xbf16>, vector<576x64xbf16>, vector<16x64xf32> -> vector<16x64xf32>
    %cst_3 = arith.constant dense<0.000000e+00> : vector<64xf32>
    %3 = vector.multi_reduction <add>, %2, %cst_3 [0] : vector<16x64xf32> to vector<64xf32>
    %4 = vector.shape_cast %3 : vector<64xf32> to vector<1x64xf32>
    %cst_4 = arith.constant 1.600000e+01 : f32
    %5 = vector.broadcast %cst_4 : f32 to vector<1x64xf32>
    %6 = arith.divf %4, %5 : vector<1x64xf32>
    %7 = vector.broadcast %6 : vector<1x64xf32> to vector<16x64xf32>
    %8 = arith.subf %2, %7 : vector<16x64xf32>
    %9 = arith.mulf %8, %8 : vector<16x64xf32>
    %cst_5 = arith.constant dense<0.000000e+00> : vector<64xf32>
    %10 = vector.multi_reduction <add>, %9, %cst_5 [0] : vector<16x64xf32> to vector<64xf32>
    %11 = vector.shape_cast %10 : vector<64xf32> to vector<1x64xf32>
    %cst_6 = arith.constant 1.600000e+01 : f32
    %12 = vector.broadcast %cst_6 : f32 to vector<1x64xf32>
    %13 = arith.divf %11, %12 : vector<1x64xf32>
    %cst_7 = arith.constant 9.99999974E-6 : f32
    %14 = vector.broadcast %cst_7 : f32 to vector<1x64xf32>
    %15 = arith.addf %13, %14 : vector<1x64xf32>
    %16 = math.rsqrt %15 : vector<1x64xf32>
    %17 = vector.broadcast %16 : vector<1x64xf32> to vector<16x64xf32>
    %18 = arith.mulf %8, %17 : vector<16x64xf32>
    %c0_8 = arith.constant 0 : index
    %c0_9 = arith.constant 0 : index
    %19 = vector.load %arg3[%c0_8, %c0_9] : memref<1x64xf32, #tpu.memory_space<vmem>>, vector<1x64xf32>
    %20 = vector.broadcast %19 : vector<1x64xf32> to vector<16x64xf32>
    %21 = arith.mulf %18, %20 : vector<16x64xf32>
    %c0_10 = arith.constant 0 : index
    %c0_11 = arith.constant 0 : index
    %22 = vector.load %arg4[%c0_10, %c0_11] : memref<1x64xf32, #tpu.memory_space<vmem>>, vector<1x64xf32>
    %23 = vector.broadcast %22 : vector<1x64xf32> to vector<16x64xf32>
    %24 = arith.addf %21, %23 : vector<16x64xf32>
    %c0_12 = arith.constant 0 : index
    %c0_13 = arith.constant 0 : index
    %25 = vector.load %arg5[%c0_12, %c0_13] : memref<16x64xf32, #tpu.memory_space<vmem>>, vector<16x64xf32>
    %26 = arith.addf %24, %25 : vector<16x64xf32>
    %c0_14 = arith.constant 0 : index
    %c0_15 = arith.constant 0 : index
    %27 = vector.load %arg6[%c0_14, %c0_15] : memref<16x64xf32, #tpu.memory_space<vmem>>, vector<16x64xf32>
    tpu.vector_store %arg6[%c0_14, %c0_15], %26 {strides = array<i32>} : memref<16x64xf32, #tpu.memory_space<vmem>>, vector<16x64xf32>,
    return
  }
  func.func @transform_0(%arg0: i32) -> (i32, i32) {
    %c0_i32 = arith.constant 0 : i32
    %c0_i32_0 = arith.constant 0 : i32
    return %arg0, %c0_i32 : i32, i32
  }
  func.func @transform_1(%arg0: i32) -> (i32, i32) {
    %c0_i32 = arith.constant 0 : i32
    %c0_i32_0 = arith.constant 0 : i32
    %c0_i32_1 = arith.constant 0 : i32
    return %c0_i32, %c0_i32_0 : i32, i32
  }
  func.func @transform_2(%arg0: i32) -> (i32, i32) {
    %c0_i32 = arith.constant 0 : i32
    %c0_i32_0 = arith.constant 0 : i32
    %c0_i32_1 = arith.constant 0 : i32
    return %c0_i32, %c0_i32_0 : i32, i32
  }
  func.func @transform_3(%arg0: i32) -> (i32, i32) {
    %c0_i32 = arith.constant 0 : i32
    %c0_i32_0 = arith.constant 0 : i32
    %c0_i32_1 = arith.constant 0 : i32
    return %c0_i32, %c0_i32_0 : i32, i32
  }
  func.func @transform_4(%arg0: i32) -> (i32, i32) {
    %c0_i32 = arith.constant 0 : i32
    %c0_i32_0 = arith.constant 0 : i32
    return %arg0, %c0_i32 : i32, i32
  }
  func.func @transform_5(%arg0: i32) -> (i32, i32) {
    %c0_i32 = arith.constant 0 : i32
    %c0_i32_0 = arith.constant 0 : i32
    return %arg0, %c0_i32 : i32, i32
  }
}

module attributes {stable_mosaic.version = 11 : i64} {
  func.func @_mm_epilogue_kernel(%arg0: i32, %arg1: memref<16x576xbf16, #tpu.memory_space<vmem>>, %arg2: memref<576x128xbf16, #tpu.memory_space<vmem>>, %arg3: memref<1x128xf32, #tpu.memory_space<vmem>>, %arg4: memref<16x128xf32, #tpu.memory_space<vmem>>) attributes {dimension_semantics = [#tpu.dimension_semantics<parallel>], iteration_bounds = array<i64: 2>, scalar_prefetch = 0 : i64, scratch_operands = 0 : i64, tpu.core_type = #tpu.core_type<tc>, window_params = [{transform_indices = @transform_0, window_bounds = array<i64: 16, 576>}, {pipeline_mode = #tpu.pipeline_mode<synchronous>, transform_indices = @transform_1, window_bounds = array<i64: 576, 128>}, {pipeline_mode = #tpu.pipeline_mode<synchronous>, transform_indices = @transform_2, window_bounds = array<i64: 1, 128>}, {transform_indices = @transform_3, window_bounds = array<i64: 16, 128>}]} {
    %c0 = arith.constant 0 : index
    %c0_0 = arith.constant 0 : index
    %0 = vector.load %arg1[%c0, %c0_0] : memref<16x576xbf16, #tpu.memory_space<vmem>>, vector<16x576xbf16>
    %c0_1 = arith.constant 0 : index
    %c0_2 = arith.constant 0 : index
    %1 = vector.load %arg2[%c0_1, %c0_2] : memref<576x128xbf16, #tpu.memory_space<vmem>>, vector<576x128xbf16>
    %cst = arith.constant dense<0.000000e+00> : vector<16x128xf32>
    %2 = tpu.matmul %0, %1, %cst {dimension_numbers = #tpu.dot_dimension_numbers<[1], [0], [0], [1], [0, 0, 1, 1], [], []>} : vector<16x576xbf16>, vector<576x128xbf16>, vector<16x128xf32> -> vector<16x128xf32>
    %c0_3 = arith.constant 0 : index
    %c0_4 = arith.constant 0 : index
    %3 = vector.load %arg3[%c0_3, %c0_4] : memref<1x128xf32, #tpu.memory_space<vmem>>, vector<1x128xf32>
    %4 = vector.broadcast %3 : vector<1x128xf32> to vector<16x128xf32>
    %5 = arith.addf %2, %4 : vector<16x128xf32>
    %c0_5 = arith.constant 0 : index
    %c0_6 = arith.constant 0 : index
    %6 = vector.load %arg4[%c0_5, %c0_6] : memref<16x128xf32, #tpu.memory_space<vmem>>, vector<16x128xf32>
    tpu.vector_store %arg4[%c0_5, %c0_6], %5 {strides = array<i32>} : memref<16x128xf32, #tpu.memory_space<vmem>>, vector<16x128xf32>,
    return
  }
  func.func @transform_0(%arg0: i32) -> (i32, i32) {
    %c0_i32 = arith.constant 0 : i32
    %c0_i32_0 = arith.constant 0 : i32
    return %arg0, %c0_i32 : i32, i32
  }
  func.func @transform_1(%arg0: i32) -> (i32, i32) {
    %c0_i32 = arith.constant 0 : i32
    %c0_i32_0 = arith.constant 0 : i32
    %c0_i32_1 = arith.constant 0 : i32
    return %c0_i32, %c0_i32_0 : i32, i32
  }
  func.func @transform_2(%arg0: i32) -> (i32, i32) {
    %c0_i32 = arith.constant 0 : i32
    %c0_i32_0 = arith.constant 0 : i32
    %c0_i32_1 = arith.constant 0 : i32
    return %c0_i32, %c0_i32_0 : i32, i32
  }
  func.func @transform_3(%arg0: i32) -> (i32, i32) {
    %c0_i32 = arith.constant 0 : i32
    %c0_i32_0 = arith.constant 0 : i32
    return %arg0, %c0_i32 : i32, i32
  }
}

module attributes {stable_mosaic.version = 11 : i64} {
  func.func @_colnorm_kernel(%arg0: i32, %arg1: memref<64x32xf32, #tpu.memory_space<vmem>>, %arg2: memref<1x32xf32, #tpu.memory_space<vmem>>, %arg3: memref<1x32xf32, #tpu.memory_space<vmem>>, %arg4: memref<64x32xf32, #tpu.memory_space<vmem>>) attributes {dimension_semantics = [#tpu.dimension_semantics<parallel>], iteration_bounds = array<i64: 2>, scalar_prefetch = 0 : i64, scratch_operands = 0 : i64, tpu.core_type = #tpu.core_type<tc>, window_params = [{transform_indices = @transform_0, window_bounds = array<i64: 64, 32>}, {pipeline_mode = #tpu.pipeline_mode<synchronous>, transform_indices = @transform_1, window_bounds = array<i64: 1, 32>}, {pipeline_mode = #tpu.pipeline_mode<synchronous>, transform_indices = @transform_2, window_bounds = array<i64: 1, 32>}, {transform_indices = @transform_3, window_bounds = array<i64: 64, 32>}]} {
    %c0 = arith.constant 0 : index
    %c0_0 = arith.constant 0 : index
    %0 = vector.load %arg1[%c0, %c0_0] : memref<64x32xf32, #tpu.memory_space<vmem>>, vector<64x32xf32>
    %cst = arith.constant dense<0.000000e+00> : vector<32xf32>
    %1 = vector.multi_reduction <add>, %0, %cst [0] : vector<64x32xf32> to vector<32xf32>
    %2 = vector.shape_cast %1 : vector<32xf32> to vector<1x32xf32>
    %cst_1 = arith.constant 6.400000e+01 : f32
    %3 = vector.broadcast %cst_1 : f32 to vector<1x32xf32>
    %4 = arith.divf %2, %3 : vector<1x32xf32>
    %5 = vector.broadcast %4 : vector<1x32xf32> to vector<64x32xf32>
    %6 = arith.subf %0, %5 : vector<64x32xf32>
    %7 = arith.mulf %6, %6 : vector<64x32xf32>
    %cst_2 = arith.constant dense<0.000000e+00> : vector<32xf32>
    %8 = vector.multi_reduction <add>, %7, %cst_2 [0] : vector<64x32xf32> to vector<32xf32>
    %9 = vector.shape_cast %8 : vector<32xf32> to vector<1x32xf32>
    %cst_3 = arith.constant 6.400000e+01 : f32
    %10 = vector.broadcast %cst_3 : f32 to vector<1x32xf32>
    %11 = arith.divf %9, %10 : vector<1x32xf32>
    %cst_4 = arith.constant 9.99999974E-6 : f32
    %12 = vector.broadcast %cst_4 : f32 to vector<1x32xf32>
    %13 = arith.addf %11, %12 : vector<1x32xf32>
    %14 = math.rsqrt %13 : vector<1x32xf32>
    %15 = vector.broadcast %14 : vector<1x32xf32> to vector<64x32xf32>
    %16 = arith.mulf %6, %15 : vector<64x32xf32>
    %c0_5 = arith.constant 0 : index
    %c0_6 = arith.constant 0 : index
    %17 = vector.load %arg2[%c0_5, %c0_6] : memref<1x32xf32, #tpu.memory_space<vmem>>, vector<1x32xf32>
    %18 = vector.broadcast %17 : vector<1x32xf32> to vector<64x32xf32>
    %19 = arith.mulf %16, %18 : vector<64x32xf32>
    %c0_7 = arith.constant 0 : index
    %c0_8 = arith.constant 0 : index
    %20 = vector.load %arg3[%c0_7, %c0_8] : memref<1x32xf32, #tpu.memory_space<vmem>>, vector<1x32xf32>
    %21 = vector.broadcast %20 : vector<1x32xf32> to vector<64x32xf32>
    %22 = arith.addf %19, %21 : vector<64x32xf32>
    %cst_9 = arith.constant 0.000000e+00 : f32
    %23 = vector.broadcast %cst_9 : f32 to vector<64x32xf32>
    %24 = arith.maximumf %22, %23 : vector<64x32xf32>
    %c0_10 = arith.constant 0 : index
    %c0_11 = arith.constant 0 : index
    %25 = vector.load %arg4[%c0_10, %c0_11] : memref<64x32xf32, #tpu.memory_space<vmem>>, vector<64x32xf32>
    tpu.vector_store %arg4[%c0_10, %c0_11], %24 {strides = array<i32>} : memref<64x32xf32, #tpu.memory_space<vmem>>, vector<64x32xf32>,
    return
  }
  func.func @transform_0(%arg0: i32) -> (i32, i32) {
    %c0_i32 = arith.constant 0 : i32
    %c0_i32_0 = arith.constant 0 : i32
    return %arg0, %c0_i32 : i32, i32
  }
  func.func @transform_1(%arg0: i32) -> (i32, i32) {
    %c0_i32 = arith.constant 0 : i32
    %c0_i32_0 = arith.constant 0 : i32
    %c0_i32_1 = arith.constant 0 : i32
    return %c0_i32, %c0_i32_0 : i32, i32
  }
  func.func @transform_2(%arg0: i32) -> (i32, i32) {
    %c0_i32 = arith.constant 0 : i32
    %c0_i32_0 = arith.constant 0 : i32
    %c0_i32_1 = arith.constant 0 : i32
    return %c0_i32, %c0_i32_0 : i32, i32
  }
  func.func @transform_3(%arg0: i32) -> (i32, i32) {
    %c0_i32 = arith.constant 0 : i32
    %c0_i32_0 = arith.constant 0 : i32
    return %arg0, %c0_i32 : i32, i32
  }
}

module attributes {stable_mosaic.version = 11 : i64} {
  func.func @_mm_epilogue_kernel(%arg0: i32, %arg1: memref<64x288xbf16, #tpu.memory_space<vmem>>, %arg2: memref<288x64xbf16, #tpu.memory_space<vmem>>, %arg3: memref<1x64xf32, #tpu.memory_space<vmem>>, %arg4: memref<64x64xf32, #tpu.memory_space<vmem>>) attributes {dimension_semantics = [#tpu.dimension_semantics<parallel>], iteration_bounds = array<i64: 2>, scalar_prefetch = 0 : i64, scratch_operands = 0 : i64, tpu.core_type = #tpu.core_type<tc>, window_params = [{transform_indices = @transform_0, window_bounds = array<i64: 64, 288>}, {pipeline_mode = #tpu.pipeline_mode<synchronous>, transform_indices = @transform_1, window_bounds = array<i64: 288, 64>}, {pipeline_mode = #tpu.pipeline_mode<synchronous>, transform_indices = @transform_2, window_bounds = array<i64: 1, 64>}, {transform_indices = @transform_3, window_bounds = array<i64: 64, 64>}]} {
    %c0 = arith.constant 0 : index
    %c0_0 = arith.constant 0 : index
    %0 = vector.load %arg1[%c0, %c0_0] : memref<64x288xbf16, #tpu.memory_space<vmem>>, vector<64x288xbf16>
    %c0_1 = arith.constant 0 : index
    %c0_2 = arith.constant 0 : index
    %1 = vector.load %arg2[%c0_1, %c0_2] : memref<288x64xbf16, #tpu.memory_space<vmem>>, vector<288x64xbf16>
    %cst = arith.constant dense<0.000000e+00> : vector<64x64xf32>
    %2 = tpu.matmul %0, %1, %cst {dimension_numbers = #tpu.dot_dimension_numbers<[1], [0], [0], [1], [0, 0, 1, 1], [], []>} : vector<64x288xbf16>, vector<288x64xbf16>, vector<64x64xf32> -> vector<64x64xf32>
    %c0_3 = arith.constant 0 : index
    %c0_4 = arith.constant 0 : index
    %3 = vector.load %arg3[%c0_3, %c0_4] : memref<1x64xf32, #tpu.memory_space<vmem>>, vector<1x64xf32>
    %4 = vector.broadcast %3 : vector<1x64xf32> to vector<64x64xf32>
    %5 = arith.addf %2, %4 : vector<64x64xf32>
    %c0_5 = arith.constant 0 : index
    %c0_6 = arith.constant 0 : index
    %6 = vector.load %arg4[%c0_5, %c0_6] : memref<64x64xf32, #tpu.memory_space<vmem>>, vector<64x64xf32>
    tpu.vector_store %arg4[%c0_5, %c0_6], %5 {strides = array<i32>} : memref<64x64xf32, #tpu.memory_space<vmem>>, vector<64x64xf32>,
    return
  }
  func.func @transform_0(%arg0: i32) -> (i32, i32) {
    %c0_i32 = arith.constant 0 : i32
    %c0_i32_0 = arith.constant 0 : i32
    return %arg0, %c0_i32 : i32, i32
  }
  func.func @transform_1(%arg0: i32) -> (i32, i32) {
    %c0_i32 = arith.constant 0 : i32
    %c0_i32_0 = arith.constant 0 : i32
    %c0_i32_1 = arith.constant 0 : i32
    return %c0_i32, %c0_i32_0 : i32, i32
  }
  func.func @transform_2(%arg0: i32) -> (i32, i32) {
    %c0_i32 = arith.constant 0 : i32
    %c0_i32_0 = arith.constant 0 : i32
    %c0_i32_1 = arith.constant 0 : i32
    return %c0_i32, %c0_i32_0 : i32, i32
  }
  func.func @transform_3(%arg0: i32) -> (i32, i32) {
    %c0_i32 = arith.constant 0 : i32
    %c0_i32_0 = arith.constant 0 : i32
    return %arg0, %c0_i32 : i32, i32
  }
}

module attributes {stable_mosaic.version = 11 : i64} {
  func.func @_colnorm_kernel(%arg0: i32, %arg1: memref<256x16xf32, #tpu.memory_space<vmem>>, %arg2: memref<1x16xf32, #tpu.memory_space<vmem>>, %arg3: memref<1x16xf32, #tpu.memory_space<vmem>>, %arg4: memref<256x16xf32, #tpu.memory_space<vmem>>) attributes {dimension_semantics = [#tpu.dimension_semantics<parallel>], iteration_bounds = array<i64: 2>, scalar_prefetch = 0 : i64, scratch_operands = 0 : i64, tpu.core_type = #tpu.core_type<tc>, window_params = [{transform_indices = @transform_0, window_bounds = array<i64: 256, 16>}, {pipeline_mode = #tpu.pipeline_mode<synchronous>, transform_indices = @transform_1, window_bounds = array<i64: 1, 16>}, {pipeline_mode = #tpu.pipeline_mode<synchronous>, transform_indices = @transform_2, window_bounds = array<i64: 1, 16>}, {transform_indices = @transform_3, window_bounds = array<i64: 256, 16>}]} {
    %c0 = arith.constant 0 : index
    %c0_0 = arith.constant 0 : index
    %0 = vector.load %arg1[%c0, %c0_0] : memref<256x16xf32, #tpu.memory_space<vmem>>, vector<256x16xf32>
    %cst = arith.constant dense<0.000000e+00> : vector<16xf32>
    %1 = vector.multi_reduction <add>, %0, %cst [0] : vector<256x16xf32> to vector<16xf32>
    %2 = vector.shape_cast %1 : vector<16xf32> to vector<1x16xf32>
    %cst_1 = arith.constant 2.560000e+02 : f32
    %3 = vector.broadcast %cst_1 : f32 to vector<1x16xf32>
    %4 = arith.divf %2, %3 : vector<1x16xf32>
    %5 = vector.broadcast %4 : vector<1x16xf32> to vector<256x16xf32>
    %6 = arith.subf %0, %5 : vector<256x16xf32>
    %7 = arith.mulf %6, %6 : vector<256x16xf32>
    %cst_2 = arith.constant dense<0.000000e+00> : vector<16xf32>
    %8 = vector.multi_reduction <add>, %7, %cst_2 [0] : vector<256x16xf32> to vector<16xf32>
    %9 = vector.shape_cast %8 : vector<16xf32> to vector<1x16xf32>
    %cst_3 = arith.constant 2.560000e+02 : f32
    %10 = vector.broadcast %cst_3 : f32 to vector<1x16xf32>
    %11 = arith.divf %9, %10 : vector<1x16xf32>
    %cst_4 = arith.constant 9.99999974E-6 : f32
    %12 = vector.broadcast %cst_4 : f32 to vector<1x16xf32>
    %13 = arith.addf %11, %12 : vector<1x16xf32>
    %14 = math.rsqrt %13 : vector<1x16xf32>
    %15 = vector.broadcast %14 : vector<1x16xf32> to vector<256x16xf32>
    %16 = arith.mulf %6, %15 : vector<256x16xf32>
    %c0_5 = arith.constant 0 : index
    %c0_6 = arith.constant 0 : index
    %17 = vector.load %arg2[%c0_5, %c0_6] : memref<1x16xf32, #tpu.memory_space<vmem>>, vector<1x16xf32>
    %18 = vector.broadcast %17 : vector<1x16xf32> to vector<256x16xf32>
    %19 = arith.mulf %16, %18 : vector<256x16xf32>
    %c0_7 = arith.constant 0 : index
    %c0_8 = arith.constant 0 : index
    %20 = vector.load %arg3[%c0_7, %c0_8] : memref<1x16xf32, #tpu.memory_space<vmem>>, vector<1x16xf32>
    %21 = vector.broadcast %20 : vector<1x16xf32> to vector<256x16xf32>
    %22 = arith.addf %19, %21 : vector<256x16xf32>
    %cst_9 = arith.constant 0.000000e+00 : f32
    %23 = vector.broadcast %cst_9 : f32 to vector<256x16xf32>
    %24 = arith.maximumf %22, %23 : vector<256x16xf32>
    %c0_10 = arith.constant 0 : index
    %c0_11 = arith.constant 0 : index
    %25 = vector.load %arg4[%c0_10, %c0_11] : memref<256x16xf32, #tpu.memory_space<vmem>>, vector<256x16xf32>
    tpu.vector_store %arg4[%c0_10, %c0_11], %24 {strides = array<i32>} : memref<256x16xf32, #tpu.memory_space<vmem>>, vector<256x16xf32>,
    return
  }
  func.func @transform_0(%arg0: i32) -> (i32, i32) {
    %c0_i32 = arith.constant 0 : i32
    %c0_i32_0 = arith.constant 0 : i32
    return %arg0, %c0_i32 : i32, i32
  }
  func.func @transform_1(%arg0: i32) -> (i32, i32) {
    %c0_i32 = arith.constant 0 : i32
    %c0_i32_0 = arith.constant 0 : i32
    %c0_i32_1 = arith.constant 0 : i32
    return %c0_i32, %c0_i32_0 : i32, i32
  }
  func.func @transform_2(%arg0: i32) -> (i32, i32) {
    %c0_i32 = arith.constant 0 : i32
    %c0_i32_0 = arith.constant 0 : i32
    %c0_i32_1 = arith.constant 0 : i32
    return %c0_i32, %c0_i32_0 : i32, i32
  }
  func.func @transform_3(%arg0: i32) -> (i32, i32) {
    %c0_i32 = arith.constant 0 : i32
    %c0_i32_0 = arith.constant 0 : i32
    return %arg0, %c0_i32 : i32, i32
  }
}

module attributes {stable_mosaic.version = 11 : i64} {
  func.func @_mm_epilogue_kernel(%arg0: i32, %arg1: memref<256x784xbf16, #tpu.memory_space<vmem>>, %arg2: memref<784x3xbf16, #tpu.memory_space<vmem>>, %arg3: memref<1x3xf32, #tpu.memory_space<vmem>>, %arg4: memref<256x3xf32, #tpu.memory_space<vmem>>) attributes {dimension_semantics = [#tpu.dimension_semantics<parallel>], iteration_bounds = array<i64: 2>, scalar_prefetch = 0 : i64, scratch_operands = 0 : i64, tpu.core_type = #tpu.core_type<tc>, window_params = [{transform_indices = @transform_0, window_bounds = array<i64: 256, 784>}, {pipeline_mode = #tpu.pipeline_mode<synchronous>, transform_indices = @transform_1, window_bounds = array<i64: 784, 3>}, {pipeline_mode = #tpu.pipeline_mode<synchronous>, transform_indices = @transform_2, window_bounds = array<i64: 1, 3>}, {transform_indices = @transform_3, window_bounds = array<i64: 256, 3>}]} {
    %c0 = arith.constant 0 : index
    %c0_0 = arith.constant 0 : index
    %0 = vector.load %arg1[%c0, %c0_0] : memref<256x784xbf16, #tpu.memory_space<vmem>>, vector<256x784xbf16>
    %c0_1 = arith.constant 0 : index
    %c0_2 = arith.constant 0 : index
    %1 = vector.load %arg2[%c0_1, %c0_2] : memref<784x3xbf16, #tpu.memory_space<vmem>>, vector<784x3xbf16>
    %cst = arith.constant dense<0.000000e+00> : vector<256x3xf32>
    %2 = tpu.matmul %0, %1, %cst {dimension_numbers = #tpu.dot_dimension_numbers<[1], [0], [0], [1], [0, 0, 1, 1], [], []>} : vector<256x784xbf16>, vector<784x3xbf16>, vector<256x3xf32> -> vector<256x3xf32>
    %c0_3 = arith.constant 0 : index
    %c0_4 = arith.constant 0 : index
    %3 = vector.load %arg3[%c0_3, %c0_4] : memref<1x3xf32, #tpu.memory_space<vmem>>, vector<1x3xf32>
    %4 = vector.broadcast %3 : vector<1x3xf32> to vector<256x3xf32>
    %5 = arith.addf %2, %4 : vector<256x3xf32>
    %cst_5 = arith.constant 0.000000e+00 : f32
    %cst_6 = arith.constant 6.000000e+00 : f32
    %6 = vector.broadcast %cst_5 : f32 to vector<256x3xf32>
    %7 = arith.maximumf %6, %5 : vector<256x3xf32>
    %8 = vector.broadcast %cst_6 : f32 to vector<256x3xf32>
    %9 = arith.minimumf %8, %7 : vector<256x3xf32>
    %cst_7 = arith.constant 0.166666672 : f32
    %10 = vector.broadcast %cst_7 : f32 to vector<256x3xf32>
    %11 = arith.mulf %9, %10 : vector<256x3xf32>
    %c0_8 = arith.constant 0 : index
    %c0_9 = arith.constant 0 : index
    %12 = vector.load %arg4[%c0_8, %c0_9] : memref<256x3xf32, #tpu.memory_space<vmem>>, vector<256x3xf32>
    tpu.vector_store %arg4[%c0_8, %c0_9], %11 {strides = array<i32>} : memref<256x3xf32, #tpu.memory_space<vmem>>, vector<256x3xf32>,
    return
  }
  func.func @transform_0(%arg0: i32) -> (i32, i32) {
    %c0_i32 = arith.constant 0 : i32
    %c0_i32_0 = arith.constant 0 : i32
    return %arg0, %c0_i32 : i32, i32
  }
  func.func @transform_1(%arg0: i32) -> (i32, i32) {
    %c0_i32 = arith.constant 0 : i32
    %c0_i32_0 = arith.constant 0 : i32
    %c0_i32_1 = arith.constant 0 : i32
    return %c0_i32, %c0_i32_0 : i32, i32
  }
  func.func @transform_2(%arg0: i32) -> (i32, i32) {
    %c0_i32 = arith.constant 0 : i32
    %c0_i32_0 = arith.constant 0 : i32
    %c0_i32_1 = arith.constant 0 : i32
    return %c0_i32, %c0_i32_0 : i32, i32
  }
  func.func @transform_3(%arg0: i32) -> (i32, i32) {
    %c0_i32 = arith.constant 0 : i32
    %c0_i32_0 = arith.constant 0 : i32
    return %arg0, %c0_i32 : i32, i32
  }
}

</mosaic_0001>

<bundles_post_ra>
// kernel: rsm_forward.22
= control target key start
LH: loop header
LB: loop body
LE: loop exit
PB: predicated region body
PF: predicated region fallthrough
CT: control target
= control target key end

     0   :  { %vm78_vm0 = vcmask 130048   ;;  %s2262_s0 = inlined_call_operand.vmem [shape: f32[512,16], index: 0, kind: input, shape index: {}]   ;;  %s2263_s1 = inlined_call_operand.vmem [shape: f32[1,16], index: 1, kind: input, shape index: {}]   ;;  %s2264_s2 = inlined_call_operand.vmem [shape: f32[1,16], index: 2, kind: input, shape index: {}]   ;;  %s2265_s3 = inlined_call_operand.vmem [shape: f32[512,16], index: 3, kind: output, shape index: {}]  }
   0x1   :  { %v843_v0 = vld [vmem:[%s2262_s0] sm:$0xff]  ;;  %v848_v1 = vld [vmem:[%s2262_s0 + $0x8] sm:$0xff]  ;;  %v853_v2 = vld [vmem:[%s2262_s0 + $0x10] sm:$0xff] }
   0x2   :  { %v858_v3 = vld [vmem:[%s2262_s0 + $0x18] sm:$0xff]  ;;  %v79_v4 = vsel %vm78_vm0, %v843_v0, 0.0  ;;  %v80_v5 = vsel %vm78_vm0, %v848_v1, 0.0  ;;  %v82_v6 = vsel %vm78_vm0, %v853_v2, 0.0  ;;  %v869_v7 = vld [vmem:[%s2262_s0 + $0x20] sm:$0xff]  ;;  %v876_v10 = vld [vmem:[%s2262_s0 + $0x28] sm:$0xff] }
   0x3   :  { %v81_v8 = vadd.f32 %v80_v5, %v79_v4  ;;  %v84_v9 = vsel %vm78_vm0, %v858_v3, 0.0  ;;  %v86_v12 = vsel %vm78_vm0, %v869_v7, 0.0  ;;  %v883_v13 = vld [vmem:[%s2262_s0 + $0x30] sm:$0xff]  ;;  %v88_v15 = vsel %vm78_vm0, %v876_v10, 0.0  ;;  %v890_v16 = vld [vmem:[%s2262_s0 + $0x38] sm:$0xff]  ;;  %v897_v19 = vld [vmem:[%s2262_s0 + $0x40] sm:$0xff] }
   0x4   :  { %v90_v18 = vsel %vm78_vm0, %v883_v13, 0.0  ;;  %v92_v21 = vsel %vm78_vm0, %v890_v16, 0.0  ;;  %v904_v22 = vld [vmem:[%s2262_s0 + $0x48] sm:$0xff]  ;;  %v94_v24 = vsel %vm78_vm0, %v897_v19, 0.0  ;;  %v911_v25 = vld [vmem:[%s2262_s0 + $0x50] sm:$0xff]  ;;  %v918_v28 = vld [vmem:[%s2262_s0 + $0x58] sm:$0xff] }
   0x5   :  { %v83_v11 = vadd.f32 %v82_v6, %v81_v8  ;;  %v96_v27 = vsel %vm78_vm0, %v904_v22, 0.0  ;;  %v98_v30 = vsel %vm78_vm0, %v911_v25, 0.0  ;;  %v925_v31 = vld [vmem:[%s2262_s0 + $0x60] sm:$0xff]  ;;  %v100_v33 = vsel %vm78_vm0, %v918_v28, 0.0  ;;  %v932_v34 = vld [vmem:[%s2262_s0 + $0x68] sm:$0xff]  ;;  %v939_v37 = vld [vmem:[%s2262_s0 + $0x70] sm:$0xff] }
   0x6   :  { %v102_v36 = vsel %vm78_vm0, %v925_v31, 0.0  ;;  %v104_v39 = vsel %vm78_vm0, %v932_v34, 0.0  ;;  %v946_v40 = vld [vmem:[%s2262_s0 + $0x78] sm:$0xff]  ;;  %v106_v42 = vsel %vm78_vm0, %v939_v37, 0.0  ;;  %v953_v43 = vld [vmem:[%s2262_s0 + $0x80] sm:$0xff]  ;;  %v960_v46 = vld [vmem:[%s2262_s0 + $0x88] sm:$0xff] }
   0x7   :  { %v85_v14 = vadd.f32 %v84_v9, %v83_v11  ;;  %v108_v45 = vsel %vm78_vm0, %v946_v40, 0.0  ;;  %v110_v48 = vsel %vm78_vm0, %v953_v43, 0.0  ;;  %v967_v49 = vld [vmem:[%s2262_s0 + $0x90] sm:$0xff]  ;;  %v112_v51 = vsel %vm78_vm0, %v960_v46, 0.0  ;;  %v974_v52 = vld [vmem:[%s2262_s0 + $0x98] sm:$0xff]  ;;  %v981_v55 = vld [vmem:[%s2262_s0 + $0xa0] sm:$0xff] }
   0x8   :  { %v114_v54 = vsel %vm78_vm0, %v967_v49, 0.0  ;;  %v116_v57 = vsel %vm78_vm0, %v974_v52, 0.0  ;;  %v988_v58 = vld [vmem:[%s2262_s0 + $0xa8] sm:$0xff]  ;;  %v118_v60 = vsel %vm78_vm0, %v981_v55, 0.0  ;;  %v995_v61 = vld [vmem:[%s2262_s0 + $0xb0] sm:$0xff]  ;;  %v1002_v4 = vld [vmem:[%s2262_s0 + $0xb8] sm:$0xff] }
   0x9   :  { %v87_v17 = vadd.f32 %v86_v12, %v85_v14  ;;  %v120_v63 = vsel %vm78_vm0, %v988_v58, 0.0  ;;  %v122_v6 = vsel %vm78_vm0, %v995_v61, 0.0  ;;  %v1009_v8 = vld [vmem:[%s2262_s0 + $0xc0] sm:$0xff]  ;;  %v124_v11 = vsel %vm78_vm0, %v1002_v4, 0.0  ;;  %v1016_v12 = vld [vmem:[%s2262_s0 + $0xc8] sm:$0xff] }
   0xb   :  { %v89_v20 = vadd.f32 %v88_v15, %v87_v17  ;;  %v126_v15 = vsel %vm78_vm0, %v1009_v8, 0.0  ;;  %v1023_v17 = vld [vmem:[%s2262_s0 + $0xd0] sm:$0xff] }
   0xd   :  { %v91_v23 = vadd.f32 %v90_v18, %v89_v20  ;;  %v128_v20 = vsel %vm78_vm0, %v1016_v12, 0.0 }
   0xf   :  { %v93_v26 = vadd.f32 %v92_v21, %v91_v23  ;;  %v1030_v21 = vld [vmem:[%s2262_s0 + $0xd8] sm:$0xff] }
  0x11   :  { %v95_v29 = vadd.f32 %v94_v24, %v93_v26  ;;  %v130_v24 = vsel %vm78_vm0, %v1023_v17, 0.0  ;;  %v1037_v26 = vld [vmem:[%s2262_s0 + $0xe0] sm:$0xff] }
  0x13   :  { %v97_v32 = vadd.f32 %v96_v27, %v95_v29  ;;  %v132_v29 = vsel %vm78_vm0, %v1030_v21, 0.0 }
  0x15   :  { %v99_v35 = vadd.f32 %v98_v30, %v97_v32  ;;  %v1044_v30 = vld [vmem:[%s2262_s0 + $0xe8] sm:$0xff] }
  0x17   :  { %v101_v38 = vadd.f32 %v100_v33, %v99_v35  ;;  %v134_v33 = vsel %vm78_vm0, %v1037_v26, 0.0  ;;  %v1051_v35 = vld [vmem:[%s2262_s0 + $0xf0] sm:$0xff] }
  0x19   :  { %v103_v41 = vadd.f32 %v102_v36, %v101_v38  ;;  %v136_v38 = vsel %vm78_vm0, %v1044_v30, 0.0 }
  0x1b   :  { %v105_v44 = vadd.f32 %v104_v39, %v103_v41  ;;  %v1058_v39 = vld [vmem:[%s2262_s0 + $0xf8] sm:$0xff] }
  0x1d   :  { %v107_v47 = vadd.f32 %v106_v42, %v105_v44  ;;  %v138_v42 = vsel %vm78_vm0, %v1051_v35, 0.0  ;;  %v1065_v44 = vld [vmem:[%s2262_s0 + $0x100] sm:$0xff] }
  0x1f   :  { %v109_v50 = vadd.f32 %v108_v45, %v107_v47  ;;  %v140_v47 = vsel %vm78_vm0, %v1058_v39, 0.0 }
  0x21   :  { %v111_v53 = vadd.f32 %v110_v48, %v109_v50  ;;  %v1072_v48 = vld [vmem:[%s2262_s0 + $0x108] sm:$0xff] }
  0x23   :  { %v113_v56 = vadd.f32 %v112_v51, %v111_v53  ;;  %v142_v51 = vsel %vm78_vm0, %v1065_v44, 0.0  ;;  %v1079_v53 = vld [vmem:[%s2262_s0 + $0x110] sm:$0xff] }
  0x25   :  { %v115_v59 = vadd.f32 %v114_v54, %v113_v56  ;;  %v144_v56 = vsel %vm78_vm0, %v1072_v48, 0.0 }
  0x27   :  { %v117_v62 = vadd.f32 %v116_v57, %v115_v59  ;;  %v1086_v57 = vld [vmem:[%s2262_s0 + $0x118] sm:$0xff] }
  0x29   :  { %v119_v5 = vadd.f32 %v118_v60, %v117_v62  ;;  %v146_v60 = vsel %vm78_vm0, %v1079_v53, 0.0  ;;  %v1093_v62 = vld [vmem:[%s2262_s0 + $0x120] sm:$0xff] }
  0x2b   :  { %v121_v9 = vadd.f32 %v120_v63, %v119_v5  ;;  %v148_v5 = vsel %vm78_vm0, %v1086_v57, 0.0 }
  0x2d   :  { %v123_v14 = vadd.f32 %v122_v6, %v121_v9  ;;  %v1100_v6 = vld [vmem:[%s2262_s0 + $0x128] sm:$0xff] }
  0x2f   :  { %v125_v18 = vadd.f32 %v124_v11, %v123_v14  ;;  %v150_v11 = vsel %vm78_vm0, %v1093_v62, 0.0  ;;  %v1107_v14 = vld [vmem:[%s2262_s0 + $0x130] sm:$0xff] }
  0x31   :  { %v127_v23 = vadd.f32 %v126_v15, %v125_v18  ;;  %v152_v18 = vsel %vm78_vm0, %v1100_v6, 0.0 }
  0x33   :  { %v129_v27 = vadd.f32 %v128_v20, %v127_v23  ;;  %v1114_v20 = vld [vmem:[%s2262_s0 + $0x138] sm:$0xff] }
  0x35   :  { %v131_v32 = vadd.f32 %v130_v24, %v129_v27  ;;  %v154_v24 = vsel %vm78_vm0, %v1107_v14, 0.0  ;;  %v1121_v27 = vld [vmem:[%s2262_s0 + $0x140] sm:$0xff] }
  0x37   :  { %v133_v36 = vadd.f32 %v132_v29, %v131_v32  ;;  %v156_v32 = vsel %vm78_vm0, %v1114_v20, 0.0 }
  0x39   :  { %v135_v41 = vadd.f32 %v134_v33, %v133_v36  ;;  %v1128_v33 = vld [vmem:[%s2262_s0 + $0x148] sm:$0xff] }
  0x3b   :  { %v137_v45 = vadd.f32 %v136_v38, %v135_v41  ;;  %v158_v38 = vsel %vm78_vm0, %v1121_v27, 0.0  ;;  %v1135_v41 = vld [vmem:[%s2262_s0 + $0x150] sm:$0xff] }
  0x3d   :  { %v139_v50 = vadd.f32 %v138_v42, %v137_v45  ;;  %v160_v45 = vsel %vm78_vm0, %v1128_v33, 0.0 }
  0x3f   :  { %v141_v54 = vadd.f32 %v140_v47, %v139_v50  ;;  %v1142_v47 = vld [vmem:[%s2262_s0 + $0x158] sm:$0xff] }
  0x41   :  { %v143_v59 = vadd.f32 %v142_v51, %v141_v54  ;;  %v162_v51 = vsel %vm78_vm0, %v1135_v41, 0.0  ;;  %v1149_v54 = vld [vmem:[%s2262_s0 + $0x160] sm:$0xff] }
  0x43   :  { %v145_v63 = vadd.f32 %v144_v56, %v143_v59  ;;  %v164_v59 = vsel %vm78_vm0, %v1142_v47, 0.0 }
  0x45   :  { %v147_v9 = vadd.f32 %v146_v60, %v145_v63  ;;  %v1156_v60 = vld [vmem:[%s2262_s0 + $0x168] sm:$0xff] }
  0x47   :  { %v149_v15 = vadd.f32 %v148_v5, %v147_v9  ;;  %v166_v5 = vsel %vm78_vm0, %v1149_v54, 0.0  ;;  %v1163_v9 = vld [vmem:[%s2262_s0 + $0x170] sm:$0xff] }
  0x49   :  { %v151_v23 = vadd.f32 %v150_v11, %v149_v15  ;;  %v168_v15 = vsel %vm78_vm0, %v1156_v60, 0.0 }
  0x4b   :  { %v153_v29 = vadd.f32 %v152_v18, %v151_v23  ;;  %v1170_v18 = vld [vmem:[%s2262_s0 + $0x178] sm:$0xff] }
  0x4d   :  { %v155_v36 = vadd.f32 %v154_v24, %v153_v29  ;;  %v170_v24 = vsel %vm78_vm0, %v1163_v9, 0.0  ;;  %v1177_v29 = vld [vmem:[%s2262_s0 + $0x180] sm:$0xff] }
  0x4f   :  { %v157_v42 = vadd.f32 %v156_v32, %v155_v36  ;;  %v172_v36 = vsel %vm78_vm0, %v1170_v18, 0.0 }
  0x51   :  { %v159_v50 = vadd.f32 %v158_v38, %v157_v42  ;;  %v1184_v38 = vld [vmem:[%s2262_s0 + $0x188] sm:$0xff] }
  0x52   :  { %2301 = vst [vmem:[#allocation2_spill] sm:$0xff] %v1184_v38 }
  0x53   :  { %v161_v56 = vadd.f32 %v160_v45, %v159_v50  ;;  %v174_v45 = vsel %vm78_vm0, %v1177_v29, 0.0  ;;  %v1191_v50 = vld [vmem:[%s2262_s0 + $0x190] sm:$0xff] }
  0x54   :  { %2302 = vst [vmem:[#allocation3_spill] sm:$0xff] %v1191_v50 }
  0x55   :  { %v163_v63 = vadd.f32 %v162_v51, %v161_v56  ;;  %v176_v56 = vsel %vm78_vm0, %v1184_v38, 0.0 }
  0x57   :  { %v165_v11 = vadd.f32 %v164_v59, %v163_v63  ;;  %v1198_v59 = vld [vmem:[%s2262_s0 + $0x198] sm:$0xff] }
  0x58   :  { %2303 = vst [vmem:[#allocation4_spill] sm:$0xff] %v1198_v59 }
  0x59   :  { %v167_v23 = vadd.f32 %v166_v5, %v165_v11  ;;  %v178_v5 = vsel %vm78_vm0, %v1191_v50, 0.0  ;;  %v1205_v11 = vld [vmem:[%s2262_s0 + $0x1a0] sm:$0xff] }
  0x5a   :  { %2304 = vst [vmem:[#allocation5_spill] sm:$0xff] %v1205_v11 }
  0x5b   :  { %v169_v32 = vadd.f32 %v168_v15, %v167_v23  ;;  %v180_v23 = vsel %vm78_vm0, %v1198_v59, 0.0 }
  0x5d   :  { %v171_v42 = vadd.f32 %v170_v24, %v169_v32  ;;  %v1212_v24 = vld [vmem:[%s2262_s0 + $0x1a8] sm:$0xff] }
  0x5e   :  { %2305 = vst [vmem:[#allocation6_spill] sm:$0xff] %v1212_v24 }
  0x5f   :  { %v173_v51 = vadd.f32 %v172_v36, %v171_v42  ;;  %v182_v36 = vsel %vm78_vm0, %v1205_v11, 0.0  ;;  %v1219_v42 = vld [vmem:[%s2262_s0 + $0x1b0] sm:$0xff] }
  0x60   :  { %2306 = vst [vmem:[#allocation7_spill] sm:$0xff] %v1219_v42 }
  0x61   :  { %v175_v63 = vadd.f32 %v174_v45, %v173_v51  ;;  %v184_v51 = vsel %vm78_vm0, %v1212_v24, 0.0 }
  0x63   :  { %v177_v15 = vadd.f32 %v176_v56, %v175_v63  ;;  %v1226_v56 = vld [vmem:[%s2262_s0 + $0x1b8] sm:$0xff] }
  0x64   :  { %2307 = vst [vmem:[#allocation8_spill] sm:$0xff] %v1226_v56 }
  0x65   :  { %v179_v32 = vadd.f32 %v178_v5, %v177_v15  ;;  %v186_v5 = vsel %vm78_vm0, %v1219_v42, 0.0  ;;  %v1233_v15 = vld [vmem:[%s2262_s0 + $0x1c0] sm:$0xff] }
  0x66   :  { %2308 = vst [vmem:[#allocation9_spill] sm:$0xff] %v1233_v15 }
  0x67   :  { %v181_v45 = vadd.f32 %v180_v23, %v179_v32  ;;  %v188_v23 = vsel %vm78_vm0, %v1226_v56, 0.0  ;;  %v1240_v32 = vld [vmem:[%s2262_s0 + $0x1c8] sm:$0xff] }
  0x68   :  { %2309 = vst [vmem:[#allocation10_spill] sm:$0xff] %v1240_v32 }
  0x69   :  { %v183_v63 = vadd.f32 %v182_v36, %v181_v45  ;;  %v190_v36 = vsel %vm78_vm0, %v1233_v15, 0.0  ;;  %v1247_v45 = vld [vmem:[%s2262_s0 + $0x1d0] sm:$0xff] }
  0x6a   :  { %2310 = vst [vmem:[#allocation11_spill] sm:$0xff] %v1247_v45 }
  0x6b   :  { %v185_v11 = vadd.f32 %v184_v51, %v183_v63  ;;  %v192_v51 = vsel %vm78_vm0, %v1240_v32, 0.0  ;;  %v1254_v63 = vld [vmem:[%s2262_s0 + $0x1d8] sm:$0xff] }
  0x6c   :  { %2311 = vst [vmem:[#allocation12_spill] sm:$0xff] %v1254_v63  ;;  %v196_v15 = vsel %vm78_vm0, %v1254_v63, 0.0 }
  0x6d   :  { %v187_v24 = vadd.f32 %v186_v5, %v185_v11  ;;  %v194_v11 = vsel %vm78_vm0, %v1247_v45, 0.0 }
  0x6f   :  { %v189_v42 = vadd.f32 %v188_v23, %v187_v24  ;;  %v1263_v24 = vld [vmem:[%s2262_s0 + $0x1e0] sm:$0xff] }
  0x70   :  { %2312 = vst [vmem:[#allocation13_spill] sm:$0xff] %v1263_v24  ;;  %v198_v59 = vsel %vm78_vm0, %v1263_v24, 0.0 }
  0x71   :  { %v191_v56 = vadd.f32 %v190_v36, %v189_v42  ;;  %v1270_v42 = vld [vmem:[%s2262_s0 + $0x1e8] sm:$0xff] }
  0x72   :  { %2313 = vst [vmem:[#allocation14_spill] sm:$0xff] %v1270_v42 }
  0x73   :  { %v193_v5 = vadd.f32 %v192_v51, %v191_v56  ;;  %v200_v56 = vsel %vm78_vm0, %v1270_v42, 0.0  ;;  %v1277_v51 = vld [vmem:[%s2262_s0 + $0x1f0] sm:$0xff] }
  0x74   :  { %2314 = vst [vmem:[#allocation15_spill] sm:$0xff] %v1277_v51 }
  0x75   :  { %v195_v23 = vadd.f32 %v194_v11, %v193_v5  ;;  %v1284_v11 = vld [vmem:[%s2262_s0 + $0x1f8] sm:$0xff] }
  0x77   :  { %v197_v32 = vadd.f32 %v196_v15, %v195_v23  ;;  %v202_v15 = vsel %vm78_vm0, %v1277_v51, 0.0 }
  0x79   :  { %v199_v36 = vadd.f32 %v198_v59, %v197_v32  ;;  %v204_v59 = vsel %vm78_vm0, %v1284_v11, 0.0 }
  0x7b   :  { %v201_v63 = vadd.f32 %v200_v56, %v199_v36 }
  0x7d   :  { %v203_v5 = vadd.f32 %v202_v15, %v201_v63 }
  0x7f   :  { %v205_v32 = vadd.f32 %v204_v59, %v203_v5 }
  0x81   :  { %v206_v23 = vrot.slane %v205_v32, 4 }
  0x83   :  { %v207_v42 = vadd.f32 %v206_v23, %v205_v32 }
  0x85   :  { %v208_v24 = vrot.slane %v207_v42, 2 }
  0x87   :  { %v209_v45 = vadd.f32 %v208_v24, %v207_v42 }
  0x89   :  { %v210_v50 = vrot.slane %v209_v45, 1 }
  0x8b   :  { %v211_v38 = vadd.f32 %v210_v50, %v209_v45 }
  0x8d   :  { %v1288_v36 = vmul.f32 0.001953125, %v211_v38 }
  0x8f   :  { %v1292_v56 = vsub.f32 %v843_v0, %v1288_v36  ;;  %v1296_v51 = vsub.f32 %v848_v1, %v1288_v36  ;;  %v1300_v63 = vsub.f32 %v853_v2, %v1288_v36  ;;  %v1304_v15 = vsub.f32 %v858_v3, %v1288_v36 }
  0x90   :  { %v1308_v38 = vsub.f32 %v869_v7, %v1288_v36  ;;  %v1318_v2 = vsub.f32 %v876_v10, %v1288_v36  ;;  %v1324_v7 = vsub.f32 %v883_v13, %v1288_v36  ;;  %v1333_v10 = vsub.f32 %v890_v16, %v1288_v36 }
  0x91   :  { %v278_v0 = vmul.f32 %v1292_v56, %v1292_v56  ;;  %v279_v50 = vmul.f32 %v1296_v51, %v1296_v51  ;;  %v280_v1 = vmul.f32 %v1300_v63, %v1300_v63  ;;  %v281_v3 = vmul.f32 %v1304_v15, %v1304_v15 }
  0x92   :  { %2315 = vst [vmem:[#allocation16_spill] sm:$0xff] %v1308_v38  ;;  %v282_v45 = vmul.f32 %v1308_v38, %v1308_v38  ;;  %v283_v32 = vmul.f32 %v1318_v2, %v1318_v2  ;;  %v1340_v38 = vsub.f32 %v897_v19, %v1288_v36  ;;  %v1347_v16 = vsub.f32 %v904_v22, %v1288_v36 }
  0x93   :  { %v342_v24 = vsel %vm78_vm0, %v278_v0, 0.0  ;;  %v343_v42 = vsel %vm78_vm0, %v279_v50, 0.0  ;;  %v345_v5 = vsel %vm78_vm0, %v280_v1, 0.0  ;;  %v347_v13 = vsel %vm78_vm0, %v281_v3, 0.0 }
  0x94   :  { %v344_v59 = vadd.f32 %v343_v42, %v342_v24  ;;  %v284_v0 = vmul.f32 %v1324_v7, %v1324_v7  ;;  %v349_v50 = vsel %vm78_vm0, %v282_v45, 0.0  ;;  %v285_v24 = vmul.f32 %v1333_v10, %v1333_v10 }
  0x95   :  { %v351_v3 = vsel %vm78_vm0, %v283_v32, 0.0  ;;  %v1354_v19 = vsub.f32 %v911_v25, %v1288_v36  ;;  %v1361_v22 = vsub.f32 %v918_v28, %v1288_v36  ;;  %v1368_v25 = vsub.f32 %v925_v31, %v1288_v36 }
  0x96   :  { %v346_v23 = vadd.f32 %v345_v5, %v344_v59  ;;  %v286_v5 = vmul.f32 %v1340_v38, %v1340_v38  ;;  %v353_v45 = vsel %vm78_vm0, %v284_v0, 0.0  ;;  %v355_v32 = vsel %vm78_vm0, %v285_v24, 0.0 }
  0x97   :  { %v1375_v28 = vsub.f32 %v932_v34, %v1288_v36  ;;  %v1382_v31 = vsub.f32 %v939_v37, %v1288_v36  ;;  %v1389_v34 = vsub.f32 %v946_v40, %v1288_v36  ;;  %v1396_v37 = vsub.f32 %v953_v43, %v1288_v36 }
  0x98   :  { %v348_v1 = vadd.f32 %v347_v13, %v346_v23  ;;  %v287_v13 = vmul.f32 %v1347_v16, %v1347_v16  ;;  %v357_v0 = vsel %vm78_vm0, %v286_v5, 0.0  ;;  %v1403_v40 = vsub.f32 %v960_v46, %v1288_v36 }
  0x99   :  { %v1410_v43 = vsub.f32 %v967_v49, %v1288_v36  ;;  %v1417_v46 = vsub.f32 %v974_v52, %v1288_v36  ;;  %v1424_v49 = vsub.f32 %v981_v55, %v1288_v36  ;;  %v1431_v52 = vsub.f32 %v988_v58, %v1288_v36 }
  0x9a   :  { %v350_v42 = vadd.f32 %v349_v50, %v348_v1  ;;  %v288_v50 = vmul.f32 %v1354_v19, %v1354_v19  ;;  %v359_v24 = vsel %vm78_vm0, %v287_v13, 0.0  ;;  %v1438_v55 = vsub.f32 %v995_v61, %v1288_v36 }
  0x9b   :  { %v1445_v58 = vsub.f32 %v1002_v4, %v1288_v36  ;;  %v1452_v61 = vsub.f32 %v1009_v8, %v1288_v36  ;;  %v1459_v4 = vsub.f32 %v1016_v12, %v1288_v36  ;;  %v1466_v8 = vsub.f32 %v1023_v17, %v1288_v36 }
  0x9c   :  { %v352_v59 = vadd.f32 %v351_v3, %v350_v42  ;;  %v289_v3 = vmul.f32 %v1361_v22, %v1361_v22  ;;  %v361_v5 = vsel %vm78_vm0, %v288_v50, 0.0  ;;  %v1473_v12 = vsub.f32 %v1030_v21, %v1288_v36 }
  0x9d   :  { %v1480_v17 = vsub.f32 %v1037_v26, %v1288_v36  ;;  %v1487_v21 = vsub.f32 %v1044_v30, %v1288_v36  ;;  %v1494_v26 = vsub.f32 %v1051_v35, %v1288_v36  ;;  %v1501_v30 = vsub.f32 %v1058_v39, %v1288_v36 }
  0x9e   :  { %v354_v23 = vadd.f32 %v353_v45, %v352_v59  ;;  %v290_v45 = vmul.f32 %v1368_v25, %v1368_v25  ;;  %v363_v13 = vsel %vm78_vm0, %v289_v3, 0.0  ;;  %v1508_v35 = vsub.f32 %v1065_v44, %v1288_v36 }
  0x9f   :  { %v1515_v39 = vsub.f32 %v1072_v48, %v1288_v36  ;;  %v1522_v44 = vsub.f32 %v1079_v53, %v1288_v36  ;;  %v1529_v48 = vsub.f32 %v1086_v57, %v1288_v36  ;;  %v1536_v53 = vsub.f32 %v1093_v62, %v1288_v36 }
  0xa0   :  { %v356_v1 = vadd.f32 %v355_v32, %v354_v23  ;;  %v291_v32 = vmul.f32 %v1375_v28, %v1375_v28  ;;  %v365_v50 = vsel %vm78_vm0, %v290_v45, 0.0  ;;  %v1543_v57 = vsub.f32 %v1100_v6, %v1288_v36 }
  0xa1   :  { %v1550_v62 = vsub.f32 %v1107_v14, %v1288_v36  ;;  %v1557_v6 = vsub.f32 %v1114_v20, %v1288_v36  ;;  %v1564_v14 = vsub.f32 %v1121_v27, %v1288_v36  ;;  %v1571_v20 = vsub.f32 %v1128_v33, %v1288_v36 }
  0xa2   :  { %v358_v42 = vadd.f32 %v357_v0, %v356_v1  ;;  %v292_v0 = vmul.f32 %v1382_v31, %v1382_v31  ;;  %v367_v3 = vsel %vm78_vm0, %v291_v32, 0.0  ;;  %v1578_v27 = vsub.f32 %v1135_v41, %v1288_v36 }
  0xa3   :  { %v1585_v33 = vsub.f32 %v1142_v47, %v1288_v36  ;;  %v1592_v41 = vsub.f32 %v1149_v54, %v1288_v36  ;;  %v1599_v47 = vsub.f32 %v1156_v60, %v1288_v36  ;;  %v1606_v54 = vsub.f32 %v1163_v9, %v1288_v36 }
  0xa4   :  { %v360_v59 = vadd.f32 %v359_v24, %v358_v42  ;;  %v293_v24 = vmul.f32 %v1389_v34, %v1389_v34  ;;  %v369_v45 = vsel %vm78_vm0, %v292_v0, 0.0  ;;  %v1613_v60 = vsub.f32 %v1170_v18, %v1288_v36 }
  0xa5   :  { %2316 = vst [vmem:[#allocation17_spill] sm:$0xff] %v1592_v41  ;;  %2317 = vst [vmem:[#allocation18_spill] sm:$0xff] %v1599_v47  ;;  %v1620_v9 = vsub.f32 %v1177_v29, %v1288_v36 }
  0xa6   :  { %v362_v23 = vadd.f32 %v361_v5, %v360_v59  ;;  %v294_v5 = vmul.f32 %v1396_v37, %v1396_v37  ;;  %v371_v32 = vsel %vm78_vm0, %v293_v24, 0.0  ;;  %2318 = vst [vmem:[#allocation19_spill] sm:$0xff] %v1606_v54  ;;  %2319 = vst [vmem:[#allocation20_spill] sm:$0xff] %v1613_v60 }
  0xa7   :  { %2320 = vst [vmem:[#allocation21_spill] sm:$0xff] %v1620_v9 }
  0xa8   :  { %v364_v1 = vadd.f32 %v363_v13, %v362_v23  ;;  %v295_v13 = vmul.f32 %v1403_v40, %v1403_v40  ;;  %v373_v0 = vsel %vm78_vm0, %v294_v5, 0.0 }
  0xaa   :  { %v366_v42 = vadd.f32 %v365_v50, %v364_v1  ;;  %v296_v50 = vmul.f32 %v1410_v43, %v1410_v43  ;;  %v375_v24 = vsel %vm78_vm0, %v295_v13, 0.0 }
  0xac   :  { %v368_v59 = vadd.f32 %v367_v3, %v366_v42  ;;  %v297_v3 = vmul.f32 %v1417_v46, %v1417_v46  ;;  %v377_v5 = vsel %vm78_vm0, %v296_v50, 0.0 }
  0xae   :  { %v370_v23 = vadd.f32 %v369_v45, %v368_v59  ;;  %v298_v45 = vmul.f32 %v1424_v49, %v1424_v49  ;;  %v379_v13 = vsel %vm78_vm0, %v297_v3, 0.0 }
  0xb0   :  { %v372_v1 = vadd.f32 %v371_v32, %v370_v23  ;;  %v299_v32 = vmul.f32 %v1431_v52, %v1431_v52  ;;  %v381_v50 = vsel %vm78_vm0, %v298_v45, 0.0 }
  0xb2   :  { %v374_v42 = vadd.f32 %v373_v0, %v372_v1  ;;  %v300_v0 = vmul.f32 %v1438_v55, %v1438_v55  ;;  %v383_v3 = vsel %vm78_vm0, %v299_v32, 0.0 }
  0xb4   :  { %v376_v59 = vadd.f32 %v375_v24, %v374_v42  ;;  %v301_v24 = vmul.f32 %v1445_v58, %v1445_v58  ;;  %v385_v45 = vsel %vm78_vm0, %v300_v0, 0.0 }
  0xb6   :  { %v378_v23 = vadd.f32 %v377_v5, %v376_v59  ;;  %v302_v5 = vmul.f32 %v1452_v61, %v1452_v61  ;;  %v387_v32 = vsel %vm78_vm0, %v301_v24, 0.0 }
  0xb8   :  { %v380_v1 = vadd.f32 %v379_v13, %v378_v23  ;;  %v303_v13 = vmul.f32 %v1459_v4, %v1459_v4  ;;  %v389_v0 = vsel %vm78_vm0, %v302_v5, 0.0 }
  0xba   :  { %v382_v42 = vadd.f32 %v381_v50, %v380_v1  ;;  %v304_v50 = vmul.f32 %v1466_v8, %v1466_v8  ;;  %v391_v24 = vsel %vm78_vm0, %v303_v13, 0.0 }
  0xbc   :  { %v384_v59 = vadd.f32 %v383_v3, %v382_v42  ;;  %v305_v3 = vmul.f32 %v1473_v12, %v1473_v12  ;;  %v393_v5 = vsel %vm78_vm0, %v304_v50, 0.0 }
  0xbe   :  { %v386_v23 = vadd.f32 %v385_v45, %v384_v59  ;;  %v306_v45 = vmul.f32 %v1480_v17, %v1480_v17  ;;  %v395_v13 = vsel %vm78_vm0, %v305_v3, 0.0 }
  0xc0   :  { %v388_v1 = vadd.f32 %v387_v32, %v386_v23  ;;  %v307_v32 = vmul.f32 %v1487_v21, %v1487_v21  ;;  %v397_v50 = vsel %vm78_vm0, %v306_v45, 0.0 }
  0xc2   :  { %v390_v42 = vadd.f32 %v389_v0, %v388_v1  ;;  %v308_v0 = vmul.f32 %v1494_v26, %v1494_v26  ;;  %v399_v3 = vsel %vm78_vm0, %v307_v32, 0.0 }
  0xc4   :  { %v392_v59 = vadd.f32 %v391_v24, %v390_v42  ;;  %v309_v24 = vmul.f32 %v1501_v30, %v1501_v30  ;;  %v401_v45 = vsel %vm78_vm0, %v308_v0, 0.0 }
  0xc6   :  { %v394_v23 = vadd.f32 %v393_v5, %v392_v59  ;;  %v310_v5 = vmul.f32 %v1508_v35, %v1508_v35  ;;  %v403_v32 = vsel %vm78_vm0, %v309_v24, 0.0 }
  0xc8   :  { %v396_v1 = vadd.f32 %v395_v13, %v394_v23  ;;  %v311_v13 = vmul.f32 %v1515_v39, %v1515_v39  ;;  %v405_v0 = vsel %vm78_vm0, %v310_v5, 0.0 }
  0xca   :  { %v398_v42 = vadd.f32 %v397_v50, %v396_v1  ;;  %v312_v50 = vmul.f32 %v1522_v44, %v1522_v44  ;;  %v407_v24 = vsel %vm78_vm0, %v311_v13, 0.0 }
  0xcc   :  { %v400_v59 = vadd.f32 %v399_v3, %v398_v42  ;;  %v313_v3 = vmul.f32 %v1529_v48, %v1529_v48  ;;  %v409_v5 = vsel %vm78_vm0, %v312_v50, 0.0 }
  0xce   :  { %v402_v23 = vadd.f32 %v401_v45, %v400_v59  ;;  %v314_v45 = vmul.f32 %v1536_v53, %v1536_v53  ;;  %v411_v13 = vsel %vm78_vm0, %v313_v3, 0.0 }
  0xd0   :  { %v404_v1 = vadd.f32 %v403_v32, %v402_v23  ;;  %v315_v32 = vmul.f32 %v1543_v57, %v1543_v57  ;;  %v413_v50 = vsel %vm78_vm0, %v314_v45, 0.0 }
  0xd2   :  { %v406_v42 = vadd.f32 %v405_v0, %v404_v1  ;;  %v316_v0 = vmul.f32 %v1550_v62, %v1550_v62  ;;  %v415_v3 = vsel %vm78_vm0, %v315_v32, 0.0 }
  0xd4   :  { %v408_v59 = vadd.f32 %v407_v24, %v406_v42  ;;  %v317_v24 = vmul.f32 %v1557_v6, %v1557_v6  ;;  %v417_v45 = vsel %vm78_vm0, %v316_v0, 0.0 }
  0xd6   :  { %v410_v23 = vadd.f32 %v409_v5, %v408_v59  ;;  %v318_v5 = vmul.f32 %v1564_v14, %v1564_v14  ;;  %v419_v32 = vsel %vm78_vm0, %v317_v24, 0.0 }
  0xd8   :  { %v412_v1 = vadd.f32 %v411_v13, %v410_v23  ;;  %v319_v13 = vmul.f32 %v1571_v20, %v1571_v20  ;;  %v421_v0 = vsel %vm78_vm0, %v318_v5, 0.0 }
  0xda   :  { %v414_v42 = vadd.f32 %v413_v50, %v412_v1  ;;  %v320_v50 = vmul.f32 %v1578_v27, %v1578_v27  ;;  %v423_v24 = vsel %vm78_vm0, %v319_v13, 0.0 }
  0xdc   :  { %v416_v59 = vadd.f32 %v415_v3, %v414_v42  ;;  %v321_v3 = vmul.f32 %v1585_v33, %v1585_v33  ;;  %v425_v5 = vsel %vm78_vm0, %v320_v50, 0.0 }
  0xde   :  { %v418_v23 = vadd.f32 %v417_v45, %v416_v59  ;;  %v322_v45 = vmul.f32 %v1592_v41, %v1592_v41  ;;  %v427_v13 = vsel %vm78_vm0, %v321_v3, 0.0 }
  0xe0   :  { %v420_v1 = vadd.f32 %v419_v32, %v418_v23  ;;  %v323_v32 = vmul.f32 %v1599_v47, %v1599_v47  ;;  %v429_v50 = vsel %vm78_vm0, %v322_v45, 0.0 }
  0xe2   :  { %v422_v42 = vadd.f32 %v421_v0, %v420_v1  ;;  %v324_v0 = vmul.f32 %v1606_v54, %v1606_v54  ;;  %v431_v3 = vsel %vm78_vm0, %v323_v32, 0.0  ;;  %v326_v54 = vmul.f32 %v1620_v9, %v1620_v9 }
  0xe4   :  { %v424_v59 = vadd.f32 %v423_v24, %v422_v42  ;;  %v2321_v24 = vld [vmem:[#allocation2_spill] sm:$0xff]  ;;  %v325_v42 = vmul.f32 %v1613_v60, %v1613_v60  ;;  %v433_v45 = vsel %vm78_vm0, %v324_v0, 0.0  ;;  %v437_v0 = vsel %vm78_vm0, %v326_v54, 0.0 }
  0xe5   :  { %v1627_v18 = vsub.f32 %v2321_v24, %v1288_v36 }
  0xe6   :  { %v426_v23 = vadd.f32 %v425_v5, %v424_v59  ;;  %v2323_v59 = vld [vmem:[#allocation3_spill] sm:$0xff]  ;;  %v435_v32 = vsel %vm78_vm0, %v325_v42, 0.0 }
  0xe7   :  { %2322 = vst [vmem:[#allocation2_spill] sm:$0xff] %v1627_v18  ;;  %v1634_v29 = vsub.f32 %v2323_v59, %v1288_v36  ;;  %v327_v60 = vmul.f32 %v1627_v18, %v1627_v18 }
  0xe8   :  { %v428_v1 = vadd.f32 %v427_v13, %v426_v23  ;;  %v2325_v23 = vld [vmem:[#allocation4_spill] sm:$0xff] }
  0xe9   :  { %2324 = vst [vmem:[#allocation3_spill] sm:$0xff] %v1634_v29  ;;  %v1641_v24 = vsub.f32 %v2325_v23, %v1288_v36  ;;  %v328_v9 = vmul.f32 %v1634_v29, %v1634_v29  ;;  %v439_v42 = vsel %vm78_vm0, %v327_v60, 0.0 }
  0xea   :  { %v430_v5 = vadd.f32 %v429_v50, %v428_v1  ;;  %v2327_v1 = vld [vmem:[#allocation5_spill] sm:$0xff] }
  0xeb   :  { %2326 = vst [vmem:[#allocation4_spill] sm:$0xff] %v1641_v24  ;;  %v1648_v59 = vsub.f32 %v2327_v1, %v1288_v36  ;;  %v329_v18 = vmul.f32 %v1641_v24, %v1641_v24  ;;  %v441_v54 = vsel %vm78_vm0, %v328_v9, 0.0 }
  0xec   :  { %v432_v13 = vadd.f32 %v431_v3, %v430_v5  ;;  %v2329_v5 = vld [vmem:[#allocation6_spill] sm:$0xff] }
  0xed   :  { %2328 = vst [vmem:[#allocation5_spill] sm:$0xff] %v1648_v59  ;;  %v1655_v23 = vsub.f32 %v2329_v5, %v1288_v36  ;;  %v330_v29 = vmul.f32 %v1648_v59, %v1648_v59  ;;  %v443_v60 = vsel %vm78_vm0, %v329_v18, 0.0 }
  0xee   :  { %v434_v50 = vadd.f32 %v433_v45, %v432_v13  ;;  %v2331_v13 = vld [vmem:[#allocation7_spill] sm:$0xff] }
  0xef   :  { %2330 = vst [vmem:[#allocation6_spill] sm:$0xff] %v1655_v23  ;;  %v1662_v1 = vsub.f32 %v2331_v13, %v1288_v36  ;;  %v331_v24 = vmul.f32 %v1655_v23, %v1655_v23  ;;  %v445_v9 = vsel %vm78_vm0, %v330_v29, 0.0 }
  0xf0   :  { %v436_v3 = vadd.f32 %v435_v32, %v434_v50  ;;  %v2333_v50 = vld [vmem:[#allocation8_spill] sm:$0xff] }
  0xf1   :  { %2332 = vst [vmem:[#allocation7_spill] sm:$0xff] %v1662_v1  ;;  %v1669_v5 = vsub.f32 %v2333_v50, %v1288_v36  ;;  %v332_v59 = vmul.f32 %v1662_v1, %v1662_v1  ;;  %v447_v18 = vsel %vm78_vm0, %v331_v24, 0.0 }
  0xf2   :  { %v438_v45 = vadd.f32 %v437_v0, %v436_v3  ;;  %v2335_v3 = vld [vmem:[#allocation9_spill] sm:$0xff] }
  0xf3   :  { %2334 = vst [vmem:[#allocation8_spill] sm:$0xff] %v1669_v5  ;;  %v1676_v13 = vsub.f32 %v2335_v3, %v1288_v36  ;;  %v333_v23 = vmul.f32 %v1669_v5, %v1669_v5  ;;  %v449_v29 = vsel %vm78_vm0, %v332_v59, 0.0 }
  0xf4   :  { %v440_v32 = vadd.f32 %v439_v42, %v438_v45  ;;  %v2337_v45 = vld [vmem:[#allocation10_spill] sm:$0xff] }
  0xf5   :  { %2336 = vst [vmem:[#allocation9_spill] sm:$0xff] %v1676_v13  ;;  %v1683_v50 = vsub.f32 %v2337_v45, %v1288_v36  ;;  %v334_v1 = vmul.f32 %v1676_v13, %v1676_v13  ;;  %v451_v24 = vsel %vm78_vm0, %v333_v23, 0.0 }
  0xf6   :  { %v442_v0 = vadd.f32 %v441_v54, %v440_v32  ;;  %v2339_v32 = vld [vmem:[#allocation11_spill] sm:$0xff] }
  0xf7   :  { %2338 = vst [vmem:[#allocation10_spill] sm:$0xff] %v1683_v50  ;;  %v1690_v3 = vsub.f32 %v2339_v32, %v1288_v36  ;;  %v335_v5 = vmul.f32 %v1683_v50, %v1683_v50  ;;  %v453_v59 = vsel %vm78_vm0, %v334_v1, 0.0 }
  0xf8   :  { %v444_v42 = vadd.f32 %v443_v60, %v442_v0  ;;  %v2341_v0 = vld [vmem:[#allocation12_spill] sm:$0xff] }
  0xf9   :  { %2340 = vst [vmem:[#allocation11_spill] sm:$0xff] %v1690_v3  ;;  %v1697_v45 = vsub.f32 %v2341_v0, %v1288_v36  ;;  %v336_v13 = vmul.f32 %v1690_v3, %v1690_v3  ;;  %v455_v23 = vsel %vm78_vm0, %v335_v5, 0.0 }
  0xfa   :  { %v446_v54 = vadd.f32 %v445_v9, %v444_v42  ;;  %v2343_v42 = vld [vmem:[#allocation13_spill] sm:$0xff] }
  0xfb   :  { %2342 = vst [vmem:[#allocation12_spill] sm:$0xff] %v1697_v45  ;;  %v1704_v32 = vsub.f32 %v2343_v42, %v1288_v36  ;;  %v337_v50 = vmul.f32 %v1697_v45, %v1697_v45  ;;  %v457_v1 = vsel %vm78_vm0, %v336_v13, 0.0 }
  0xfc   :  { %v448_v60 = vadd.f32 %v447_v18, %v446_v54  ;;  %v2345_v54 = vld [vmem:[#allocation14_spill] sm:$0xff] }
  0xfd   :  { %2344 = vst [vmem:[#allocation13_spill] sm:$0xff] %v1704_v32  ;;  %v1711_v0 = vsub.f32 %v2345_v54, %v1288_v36  ;;  %v338_v3 = vmul.f32 %v1704_v32, %v1704_v32  ;;  %v459_v5 = vsel %vm78_vm0, %v337_v50, 0.0 }
  0xfe   :  { %v450_v9 = vadd.f32 %v449_v29, %v448_v60  ;;  %v2347_v60 = vld [vmem:[#allocation15_spill] sm:$0xff] }
  0xff   :  { %2346 = vst [vmem:[#allocation14_spill] sm:$0xff] %v1711_v0  ;;  %v1718_v42 = vsub.f32 %v2347_v60, %v1288_v36  ;;  %v339_v54 = vmul.f32 %v1711_v0, %v1711_v0  ;;  %v461_v60 = vsel %vm78_vm0, %v338_v3, 0.0 }
 0x100   :  { %v452_v18 = vadd.f32 %v451_v24, %v450_v9  ;;  %v1725_v9 = vsub.f32 %v1284_v11, %v1288_v36 }
 0x101   :  { %2348 = vst [vmem:[#allocation15_spill] sm:$0xff] %v1718_v42 }
 0x102   :  { %v454_v29 = vadd.f32 %v453_v59, %v452_v18  ;;  %2349 = vst [vmem:[#allocation22_spill] sm:$0xff] %v1725_v9  ;;  %v340_v18 = vmul.f32 %v1718_v42, %v1718_v42  ;;  %v341_v13 = vmul.f32 %v1725_v9, %v1725_v9 }
 0x104   :  { %v456_v24 = vadd.f32 %v455_v23, %v454_v29  ;;  %v463_v23 = vsel %vm78_vm0, %v339_v54, 0.0  ;;  %v465_v11 = vsel %vm78_vm0, %v340_v18, 0.0  ;;  %v467_v0 = vsel %vm78_vm0, %v341_v13, 0.0 }
 0x106   :  { %v458_v59 = vadd.f32 %v457_v1, %v456_v24 }
 0x108   :  { %v460_v45 = vadd.f32 %v459_v5, %v458_v59 }
 0x10a   :  { %v462_v29 = vadd.f32 %v461_v60, %v460_v45  ;;  %v1743_v45 = vld [vmem:[%s2263_s1] ss:$0 sm:$0xff] }
 0x10c   :  { %v464_v36 = vadd.f32 %v463_v23, %v462_v29 }
 0x10e   :  { %v466_v32 = vadd.f32 %v465_v11, %v464_v36 }
 0x110   :  { %v468_v50 = vadd.f32 %v467_v0, %v466_v32  ;;  %v1756_v0 = vld [vmem:[%s2264_s2] ss:$0 sm:$0xff] }
 0x112   :  { %v469_v1 = vrot.slane %v468_v50, 4 }
 0x114   :  { %v470_v24 = vadd.f32 %v469_v1, %v468_v50 }
 0x116   :  { %v471_v47 = vrot.slane %v470_v24, 2 }
 0x118   :  { %v472_v42 = vadd.f32 %v471_v47, %v470_v24 }
 0x11a   :  { %v473_v41 = vrot.slane %v472_v42, 1 }
 0x11c   :  { %v474_v3 = vadd.f32 %v473_v41, %v472_v42  ;;  %v2350_v42 = vld [vmem:[#allocation16_spill] sm:$0xff] }
 0x11e   :  { %v475_v5 = vmul.f32 0.001953125, %v474_v3 }
 0x120   :  { %v476_v59 = vadd.f32 1e-05, %v475_v5 }
 0x122   :  { %818 = vrsqrt.f32 %v476_v59 }
 0x12c   :  { %v1738_v9 = vpop.eup %818 }
 0x12d   :  { %v478_v54 = vmul.f32 %v1738_v9, %v1292_v56  ;;  %v479_v32 = vmul.f32 %v1738_v9, %v1296_v51  ;;  %v480_v47 = vmul.f32 %v1738_v9, %v1300_v63  ;;  %v481_v41 = vmul.f32 %v1738_v9, %v1304_v15 }
 0x12e   :  { %v482_v18 = vmul.f32 %v1738_v9, %v2350_v42  ;;  %v483_v56 = vmul.f32 %v1738_v9, %v1318_v2  ;;  %v484_v51 = vmul.f32 %v1738_v9, %v1324_v7  ;;  %v485_v63 = vmul.f32 %v1738_v9, %v1333_v10 }
 0x12f   :  { %v549_v60 = vmul.f32 %v1743_v45, %v478_v54  ;;  %v550_v15 = vmul.f32 %v1743_v45, %v479_v32  ;;  %v551_v13 = vmul.f32 %v1743_v45, %v480_v47  ;;  %v552_v23 = vmul.f32 %v1743_v45, %v481_v41 }
 0x130   :  { %v553_v29 = vmul.f32 %v1743_v45, %v482_v18  ;;  %v554_v11 = vmul.f32 %v1743_v45, %v483_v56  ;;  %v555_v2 = vmul.f32 %v1743_v45, %v484_v51  ;;  %v556_v36 = vmul.f32 %v1743_v45, %v485_v63 }
 0x131   :  { %v620_v7 = vadd.f32 %v1756_v0, %v549_v60  ;;  %v621_v10 = vadd.f32 %v1756_v0, %v550_v15  ;;  %v622_v50 = vadd.f32 %v1756_v0, %v551_v13  ;;  %v623_v1 = vadd.f32 %v1756_v0, %v552_v23 }
 0x132   :  { %v624_v24 = vadd.f32 %v1756_v0, %v553_v29  ;;  %v625_v3 = vadd.f32 %v1756_v0, %v554_v11  ;;  %v626_v5 = vadd.f32 %v1756_v0, %v555_v2  ;;  %v627_v59 = vadd.f32 %v1756_v0, %v556_v36 }
 0x133   :  { %v684_v54 = vmax.f32 %v620_v7, 0.0  ;;  %v685_v32 = vmax.f32 %v621_v10, 0.0  ;;  %v686_v47 = vmax.f32 %v622_v50, 0.0  ;;  %v687_v41 = vmax.f32 %v623_v1, 0.0 }
 0x134   :  { %v688_v42 = vmax.f32 %v624_v24, 0.0  ;;  %v689_v18 = vmax.f32 %v625_v3, 0.0  ;;  %v690_v56 = vmax.f32 %v626_v5, 0.0  ;;  %v691_v51 = vmax.f32 %v627_v59, 0.0 }
 0x135   :  { %748 = vst.msk [vmem:[%s2265_s3] sm:$0xff] %vm78_vm0, %v684_v54  ;;  %749 = vst.msk [vmem:[%s2265_s3 + $0x8] sm:$0xff] %vm78_vm0, %v685_v32  ;;  %v486_v63 = vmul.f32 %v1738_v9, %v1340_v38  ;;  %v487_v60 = vmul.f32 %v1738_v9, %v1347_v16  ;;  %v488_v15 = vmul.f32 %v1738_v9, %v1354_v19 }
 0x136   :  { %750 = vst.msk [vmem:[%s2265_s3 + $0x10] sm:$0xff] %vm78_vm0, %v686_v47  ;;  %751 = vst.msk [vmem:[%s2265_s3 + $0x18] sm:$0xff] %vm78_vm0, %v687_v41  ;;  %v489_v13 = vmul.f32 %v1738_v9, %v1361_v22  ;;  %v490_v38 = vmul.f32 %v1738_v9, %v1368_v25  ;;  %v491_v16 = vmul.f32 %v1738_v9, %v1375_v28 }
 0x137   :  { %752 = vst.msk [vmem:[%s2265_s3 + $0x20] sm:$0xff] %vm78_vm0, %v688_v42  ;;  %753 = vst.msk [vmem:[%s2265_s3 + $0x28] sm:$0xff] %vm78_vm0, %v689_v18  ;;  %v492_v19 = vmul.f32 %v1738_v9, %v1382_v31  ;;  %v493_v22 = vmul.f32 %v1738_v9, %v1389_v34  ;;  %v557_v23 = vmul.f32 %v1743_v45, %v486_v63 }
 0x138   :  { %754 = vst.msk [vmem:[%s2265_s3 + $0x30] sm:$0xff] %vm78_vm0, %v690_v56  ;;  %755 = vst.msk [vmem:[%s2265_s3 + $0x38] sm:$0xff] %vm78_vm0, %v691_v51  ;;  %v558_v29 = vmul.f32 %v1743_v45, %v487_v60  ;;  %v559_v11 = vmul.f32 %v1743_v45, %v488_v15  ;;  %v560_v2 = vmul.f32 %v1743_v45, %v489_v13 }
 0x139   :  { %v561_v36 = vmul.f32 %v1743_v45, %v490_v38  ;;  %v562_v25 = vmul.f32 %v1743_v45, %v491_v16  ;;  %v563_v28 = vmul.f32 %v1743_v45, %v492_v19  ;;  %v564_v7 = vmul.f32 %v1743_v45, %v493_v22 }
 0x13a   :  { %v628_v31 = vadd.f32 %v1756_v0, %v557_v23  ;;  %v629_v34 = vadd.f32 %v1756_v0, %v558_v29  ;;  %v630_v10 = vadd.f32 %v1756_v0, %v559_v11  ;;  %v631_v50 = vadd.f32 %v1756_v0, %v560_v2 }
 0x13b   :  { %v632_v1 = vadd.f32 %v1756_v0, %v561_v36  ;;  %v633_v24 = vadd.f32 %v1756_v0, %v562_v25  ;;  %v634_v3 = vadd.f32 %v1756_v0, %v563_v28  ;;  %v635_v5 = vadd.f32 %v1756_v0, %v564_v7 }
 0x13c   :  { %v692_v59 = vmax.f32 %v628_v31, 0.0  ;;  %v693_v54 = vmax.f32 %v629_v34, 0.0  ;;  %v694_v32 = vmax.f32 %v630_v10, 0.0  ;;  %v695_v47 = vmax.f32 %v631_v50, 0.0 }
 0x13d   :  { %v696_v41 = vmax.f32 %v632_v1, 0.0  ;;  %v697_v42 = vmax.f32 %v633_v24, 0.0  ;;  %v698_v18 = vmax.f32 %v634_v3, 0.0  ;;  %v699_v56 = vmax.f32 %v635_v5, 0.0 }
 0x13e   :  { %756 = vst.msk [vmem:[%s2265_s3 + $0x40] sm:$0xff] %vm78_vm0, %v692_v59  ;;  %757 = vst.msk [vmem:[%s2265_s3 + $0x48] sm:$0xff] %vm78_vm0, %v693_v54  ;;  %v494_v51 = vmul.f32 %v1738_v9, %v1396_v37  ;;  %v495_v63 = vmul.f32 %v1738_v9, %v1403_v40  ;;  %v496_v60 = vmul.f32 %v1738_v9, %v1410_v43 }
 0x13f   :  { %758 = vst.msk [vmem:[%s2265_s3 + $0x50] sm:$0xff] %vm78_vm0, %v694_v32  ;;  %759 = vst.msk [vmem:[%s2265_s3 + $0x58] sm:$0xff] %vm78_vm0, %v695_v47  ;;  %v497_v15 = vmul.f32 %v1738_v9, %v1417_v46  ;;  %v498_v37 = vmul.f32 %v1738_v9, %v1424_v49  ;;  %v499_v40 = vmul.f32 %v1738_v9, %v1431_v52 }
 0x140   :  { %760 = vst.msk [vmem:[%s2265_s3 + $0x60] sm:$0xff] %vm78_vm0, %v696_v41  ;;  %761 = vst.msk [vmem:[%s2265_s3 + $0x68] sm:$0xff] %vm78_vm0, %v697_v42  ;;  %v500_v43 = vmul.f32 %v1738_v9, %v1438_v55  ;;  %v501_v46 = vmul.f32 %v1738_v9, %v1445_v58  ;;  %v565_v13 = vmul.f32 %v1743_v45, %v494_v51 }
 0x141   :  { %762 = vst.msk [vmem:[%s2265_s3 + $0x70] sm:$0xff] %vm78_vm0, %v698_v18  ;;  %763 = vst.msk [vmem:[%s2265_s3 + $0x78] sm:$0xff] %vm78_vm0, %v699_v56  ;;  %v566_v38 = vmul.f32 %v1743_v45, %v495_v63  ;;  %v567_v16 = vmul.f32 %v1743_v45, %v496_v60  ;;  %v568_v19 = vmul.f32 %v1743_v45, %v497_v15 }
 0x142   :  { %v569_v22 = vmul.f32 %v1743_v45, %v498_v37  ;;  %v570_v49 = vmul.f32 %v1743_v45, %v499_v40  ;;  %v571_v52 = vmul.f32 %v1743_v45, %v500_v43  ;;  %v572_v23 = vmul.f32 %v1743_v45, %v501_v46 }
 0x143   :  { %v636_v55 = vadd.f32 %v1756_v0, %v565_v13  ;;  %v637_v58 = vadd.f32 %v1756_v0, %v566_v38  ;;  %v638_v29 = vadd.f32 %v1756_v0, %v567_v16  ;;  %v639_v11 = vadd.f32 %v1756_v0, %v568_v19 }
 0x144   :  { %v640_v2 = vadd.f32 %v1756_v0, %v569_v22  ;;  %v641_v36 = vadd.f32 %v1756_v0, %v570_v49  ;;  %v642_v25 = vadd.f32 %v1756_v0, %v571_v52  ;;  %v643_v28 = vadd.f32 %v1756_v0, %v572_v23 }
 0x145   :  { %v700_v7 = vmax.f32 %v636_v55, 0.0  ;;  %v701_v31 = vmax.f32 %v637_v58, 0.0  ;;  %v702_v34 = vmax.f32 %v638_v29, 0.0  ;;  %v703_v10 = vmax.f32 %v639_v11, 0.0 }
 0x146   :  { %v704_v50 = vmax.f32 %v640_v2, 0.0  ;;  %v705_v1 = vmax.f32 %v641_v36, 0.0  ;;  %v706_v24 = vmax.f32 %v642_v25, 0.0  ;;  %v707_v3 = vmax.f32 %v643_v28, 0.0 }
 0x147   :  { %764 = vst.msk [vmem:[%s2265_s3 + $0x80] sm:$0xff] %vm78_vm0, %v700_v7  ;;  %765 = vst.msk [vmem:[%s2265_s3 + $0x88] sm:$0xff] %vm78_vm0, %v701_v31  ;;  %v502_v5 = vmul.f32 %v1738_v9, %v1452_v61  ;;  %v503_v59 = vmul.f32 %v1738_v9, %v1459_v4  ;;  %v504_v54 = vmul.f32 %v1738_v9, %v1466_v8 }
 0x148   :  { %766 = vst.msk [vmem:[%s2265_s3 + $0x90] sm:$0xff] %vm78_vm0, %v702_v34  ;;  %767 = vst.msk [vmem:[%s2265_s3 + $0x98] sm:$0xff] %vm78_vm0, %v703_v10  ;;  %v505_v32 = vmul.f32 %v1738_v9, %v1473_v12  ;;  %v506_v61 = vmul.f32 %v1738_v9, %v1480_v17  ;;  %v507_v4 = vmul.f32 %v1738_v9, %v1487_v21 }
 0x149   :  { %768 = vst.msk [vmem:[%s2265_s3 + $0xa0] sm:$0xff] %vm78_vm0, %v704_v50  ;;  %769 = vst.msk [vmem:[%s2265_s3 + $0xa8] sm:$0xff] %vm78_vm0, %v705_v1  ;;  %v508_v8 = vmul.f32 %v1738_v9, %v1494_v26  ;;  %v509_v12 = vmul.f32 %v1738_v9, %v1501_v30  ;;  %v573_v47 = vmul.f32 %v1743_v45, %v502_v5 }
 0x14a   :  { %770 = vst.msk [vmem:[%s2265_s3 + $0xb0] sm:$0xff] %vm78_vm0, %v706_v24  ;;  %771 = vst.msk [vmem:[%s2265_s3 + $0xb8] sm:$0xff] %vm78_vm0, %v707_v3  ;;  %v574_v41 = vmul.f32 %v1743_v45, %v503_v59  ;;  %v575_v42 = vmul.f32 %v1743_v45, %v504_v54  ;;  %v576_v18 = vmul.f32 %v1743_v45, %v505_v32 }
 0x14b   :  { %v577_v56 = vmul.f32 %v1743_v45, %v506_v61  ;;  %v578_v17 = vmul.f32 %v1743_v45, %v507_v4  ;;  %v579_v21 = vmul.f32 %v1743_v45, %v508_v8  ;;  %v580_v51 = vmul.f32 %v1743_v45, %v509_v12 }
 0x14c   :  { %v644_v26 = vadd.f32 %v1756_v0, %v573_v47  ;;  %v645_v30 = vadd.f32 %v1756_v0, %v574_v41  ;;  %v646_v63 = vadd.f32 %v1756_v0, %v575_v42  ;;  %v647_v60 = vadd.f32 %v1756_v0, %v576_v18  ;;  %v2353_v18 = vld [vmem:[#allocation19_spill] sm:$0xff] }
 0x14d   :  { %v648_v15 = vadd.f32 %v1756_v0, %v577_v56  ;;  %v649_v37 = vadd.f32 %v1756_v0, %v578_v17  ;;  %v650_v40 = vadd.f32 %v1756_v0, %v579_v21  ;;  %v651_v43 = vadd.f32 %v1756_v0, %v580_v51  ;;  %v2354_v17 = vld [vmem:[#allocation20_spill] sm:$0xff] }
 0x14e   :  { %v708_v46 = vmax.f32 %v644_v26, 0.0  ;;  %v709_v13 = vmax.f32 %v645_v30, 0.0  ;;  %v710_v38 = vmax.f32 %v646_v63, 0.0  ;;  %v711_v16 = vmax.f32 %v647_v60, 0.0 }
 0x14f   :  { %v712_v19 = vmax.f32 %v648_v15, 0.0  ;;  %v713_v22 = vmax.f32 %v649_v37, 0.0  ;;  %v714_v49 = vmax.f32 %v650_v40, 0.0  ;;  %v715_v52 = vmax.f32 %v651_v43, 0.0 }
 0x150   :  { %772 = vst.msk [vmem:[%s2265_s3 + $0xc0] sm:$0xff] %vm78_vm0, %v708_v46  ;;  %773 = vst.msk [vmem:[%s2265_s3 + $0xc8] sm:$0xff] %vm78_vm0, %v709_v13  ;;  %v510_v23 = vmul.f32 %v1738_v9, %v1508_v35  ;;  %v511_v55 = vmul.f32 %v1738_v9, %v1515_v39  ;;  %v512_v58 = vmul.f32 %v1738_v9, %v1522_v44 }
 0x151   :  { %774 = vst.msk [vmem:[%s2265_s3 + $0xd0] sm:$0xff] %vm78_vm0, %v710_v38  ;;  %775 = vst.msk [vmem:[%s2265_s3 + $0xd8] sm:$0xff] %vm78_vm0, %v711_v16  ;;  %v513_v29 = vmul.f32 %v1738_v9, %v1529_v48  ;;  %v514_v35 = vmul.f32 %v1738_v9, %v1536_v53  ;;  %v515_v39 = vmul.f32 %v1738_v9, %v1543_v57 }
 0x152   :  { %776 = vst.msk [vmem:[%s2265_s3 + $0xe0] sm:$0xff] %vm78_vm0, %v712_v19  ;;  %777 = vst.msk [vmem:[%s2265_s3 + $0xe8] sm:$0xff] %vm78_vm0, %v713_v22  ;;  %v516_v44 = vmul.f32 %v1738_v9, %v1550_v62  ;;  %v517_v48 = vmul.f32 %v1738_v9, %v1557_v6  ;;  %v581_v11 = vmul.f32 %v1743_v45, %v510_v23 }
 0x153   :  { %778 = vst.msk [vmem:[%s2265_s3 + $0xf0] sm:$0xff] %vm78_vm0, %v714_v49  ;;  %779 = vst.msk [vmem:[%s2265_s3 + $0xf8] sm:$0xff] %vm78_vm0, %v715_v52  ;;  %v582_v2 = vmul.f32 %v1743_v45, %v511_v55  ;;  %v583_v36 = vmul.f32 %v1743_v45, %v512_v58  ;;  %v584_v25 = vmul.f32 %v1743_v45, %v513_v29 }
 0x154   :  { %v585_v28 = vmul.f32 %v1743_v45, %v514_v35  ;;  %v586_v53 = vmul.f32 %v1743_v45, %v515_v39  ;;  %v587_v57 = vmul.f32 %v1743_v45, %v516_v44  ;;  %v588_v7 = vmul.f32 %v1743_v45, %v517_v48  ;;  %v2355_v48 = vld [vmem:[#allocation21_spill] sm:$0xff] }
 0x155   :  { %v652_v62 = vadd.f32 %v1756_v0, %v581_v11  ;;  %v653_v6 = vadd.f32 %v1756_v0, %v582_v2  ;;  %v654_v31 = vadd.f32 %v1756_v0, %v583_v36  ;;  %v655_v34 = vadd.f32 %v1756_v0, %v584_v25  ;;  %v2356_v2 = vld [vmem:[#allocation2_spill] sm:$0xff]  ;;  %v2357_v25 = vld [vmem:[#allocation3_spill] sm:$0xff] }
 0x156   :  { %v656_v10 = vadd.f32 %v1756_v0, %v585_v28  ;;  %v657_v50 = vadd.f32 %v1756_v0, %v586_v53  ;;  %v658_v1 = vadd.f32 %v1756_v0, %v587_v57  ;;  %v659_v24 = vadd.f32 %v1756_v0, %v588_v7  ;;  %v2358_v53 = vld [vmem:[#allocation4_spill] sm:$0xff]  ;;  %v2359_v7 = vld [vmem:[#allocation5_spill] sm:$0xff] }
 0x157   :  { %v716_v3 = vmax.f32 %v652_v62, 0.0  ;;  %v717_v5 = vmax.f32 %v653_v6, 0.0  ;;  %v718_v59 = vmax.f32 %v654_v31, 0.0  ;;  %v719_v54 = vmax.f32 %v655_v34, 0.0  ;;  %v2360_v6 = vld [vmem:[#allocation6_spill] sm:$0xff]  ;;  %v2361_v34 = vld [vmem:[#allocation7_spill] sm:$0xff] }
 0x158   :  { %v720_v32 = vmax.f32 %v656_v10, 0.0  ;;  %v721_v61 = vmax.f32 %v657_v50, 0.0  ;;  %v722_v4 = vmax.f32 %v658_v1, 0.0  ;;  %v723_v8 = vmax.f32 %v659_v24, 0.0  ;;  %v2362_v50 = vld [vmem:[#allocation8_spill] sm:$0xff] }
 0x159   :  { %780 = vst.msk [vmem:[%s2265_s3 + $0x100] sm:$0xff] %vm78_vm0, %v716_v3  ;;  %781 = vst.msk [vmem:[%s2265_s3 + $0x108] sm:$0xff] %vm78_vm0, %v717_v5  ;;  %v518_v12 = vmul.f32 %v1738_v9, %v1564_v14  ;;  %v519_v47 = vmul.f32 %v1738_v9, %v1571_v20  ;;  %v520_v41 = vmul.f32 %v1738_v9, %v1578_v27  ;;  %v2351_v14 = vld [vmem:[#allocation17_spill] sm:$0xff]  ;;  %v2352_v27 = vld [vmem:[#allocation18_spill] sm:$0xff] }
 0x15a   :  { %782 = vst.msk [vmem:[%s2265_s3 + $0x110] sm:$0xff] %vm78_vm0, %v718_v59  ;;  %783 = vst.msk [vmem:[%s2265_s3 + $0x118] sm:$0xff] %vm78_vm0, %v719_v54  ;;  %v521_v42 = vmul.f32 %v1738_v9, %v1585_v33  ;;  %v522_v20 = vmul.f32 %v1738_v9, %v2351_v14  ;;  %v523_v33 = vmul.f32 %v1738_v9, %v2352_v27 }
 0x15b   :  { %784 = vst.msk [vmem:[%s2265_s3 + $0x120] sm:$0xff] %vm78_vm0, %v720_v32  ;;  %785 = vst.msk [vmem:[%s2265_s3 + $0x128] sm:$0xff] %vm78_vm0, %v721_v61  ;;  %v524_v56 = vmul.f32 %v1738_v9, %v2353_v18  ;;  %v525_v21 = vmul.f32 %v1738_v9, %v2354_v17  ;;  %v589_v51 = vmul.f32 %v1743_v45, %v518_v12 }
 0x15c   :  { %786 = vst.msk [vmem:[%s2265_s3 + $0x130] sm:$0xff] %vm78_vm0, %v722_v4  ;;  %787 = vst.msk [vmem:[%s2265_s3 + $0x138] sm:$0xff] %vm78_vm0, %v723_v8  ;;  %v590_v26 = vmul.f32 %v1743_v45, %v519_v47  ;;  %v591_v30 = vmul.f32 %v1743_v45, %v520_v41  ;;  %v592_v63 = vmul.f32 %v1743_v45, %v521_v42 }
 0x15d   :  { %v593_v60 = vmul.f32 %v1743_v45, %v522_v20  ;;  %v594_v15 = vmul.f32 %v1743_v45, %v523_v33  ;;  %v595_v37 = vmul.f32 %v1743_v45, %v524_v56  ;;  %v596_v40 = vmul.f32 %v1743_v45, %v525_v21 }
 0x15e   :  { %v660_v43 = vadd.f32 %v1756_v0, %v589_v51  ;;  %v661_v46 = vadd.f32 %v1756_v0, %v590_v26  ;;  %v662_v13 = vadd.f32 %v1756_v0, %v591_v30  ;;  %v663_v38 = vadd.f32 %v1756_v0, %v592_v63  ;;  %v2363_v63 = vld [vmem:[#allocation9_spill] sm:$0xff] }
 0x15f   :  { %v664_v16 = vadd.f32 %v1756_v0, %v593_v60  ;;  %v665_v19 = vadd.f32 %v1756_v0, %v594_v15  ;;  %v666_v22 = vadd.f32 %v1756_v0, %v595_v37  ;;  %v667_v49 = vadd.f32 %v1756_v0, %v596_v40  ;;  %v2364_v15 = vld [vmem:[#allocation10_spill] sm:$0xff]  ;;  %v2365_v40 = vld [vmem:[#allocation11_spill] sm:$0xff] }
 0x160   :  { %v724_v52 = vmax.f32 %v660_v43, 0.0  ;;  %v725_v23 = vmax.f32 %v661_v46, 0.0  ;;  %v726_v55 = vmax.f32 %v662_v13, 0.0  ;;  %v727_v58 = vmax.f32 %v663_v38, 0.0  ;;  %v2366_v46 = vld [vmem:[#allocation12_spill] sm:$0xff]  ;;  %v2367_v38 = vld [vmem:[#allocation13_spill] sm:$0xff] }
 0x161   :  { %v728_v29 = vmax.f32 %v664_v16, 0.0  ;;  %v729_v35 = vmax.f32 %v665_v19, 0.0  ;;  %v730_v39 = vmax.f32 %v666_v22, 0.0  ;;  %v731_v44 = vmax.f32 %v667_v49, 0.0  ;;  %v2368_v19 = vld [vmem:[#allocation14_spill] sm:$0xff]  ;;  %v2369_v49 = vld [vmem:[#allocation15_spill] sm:$0xff] }
 0x162   :  { %788 = vst.msk [vmem:[%s2265_s3 + $0x140] sm:$0xff] %vm78_vm0, %v724_v52  ;;  %789 = vst.msk [vmem:[%s2265_s3 + $0x148] sm:$0xff] %vm78_vm0, %v725_v23  ;;  %v526_v11 = vmul.f32 %v1738_v9, %v2355_v48  ;;  %v527_v36 = vmul.f32 %v1738_v9, %v2356_v2  ;;  %v528_v28 = vmul.f32 %v1738_v9, %v2357_v25  ;;  %v2370_v23 = vld [vmem:[#allocation22_spill] sm:$0xff] }
 0x163   :  { %790 = vst.msk [vmem:[%s2265_s3 + $0x150] sm:$0xff] %vm78_vm0, %v726_v55  ;;  %791 = vst.msk [vmem:[%s2265_s3 + $0x158] sm:$0xff] %vm78_vm0, %v727_v58  ;;  %v529_v57 = vmul.f32 %v1738_v9, %v2358_v53  ;;  %v530_v62 = vmul.f32 %v1738_v9, %v2359_v7  ;;  %v531_v31 = vmul.f32 %v1738_v9, %v2360_v6 }
 0x164   :  { %792 = vst.msk [vmem:[%s2265_s3 + $0x160] sm:$0xff] %vm78_vm0, %v728_v29  ;;  %793 = vst.msk [vmem:[%s2265_s3 + $0x168] sm:$0xff] %vm78_vm0, %v729_v35  ;;  %v532_v10 = vmul.f32 %v1738_v9, %v2361_v34  ;;  %v533_v1 = vmul.f32 %v1738_v9, %v2362_v50  ;;  %v597_v24 = vmul.f32 %v1743_v45, %v526_v11 }
 0x165   :  { %794 = vst.msk [vmem:[%s2265_s3 + $0x170] sm:$0xff] %vm78_vm0, %v730_v39  ;;  %795 = vst.msk [vmem:[%s2265_s3 + $0x178] sm:$0xff] %vm78_vm0, %v731_v44  ;;  %v598_v3 = vmul.f32 %v1743_v45, %v527_v36  ;;  %v599_v5 = vmul.f32 %v1743_v45, %v528_v28  ;;  %v600_v59 = vmul.f32 %v1743_v45, %v529_v57 }
 0x166   :  { %v601_v54 = vmul.f32 %v1743_v45, %v530_v62  ;;  %v602_v32 = vmul.f32 %v1743_v45, %v531_v31  ;;  %v603_v61 = vmul.f32 %v1743_v45, %v532_v10  ;;  %v604_v4 = vmul.f32 %v1743_v45, %v533_v1 }
 0x167   :  { %v668_v8 = vadd.f32 %v1756_v0, %v597_v24  ;;  %v669_v12 = vadd.f32 %v1756_v0, %v598_v3  ;;  %v670_v47 = vadd.f32 %v1756_v0, %v599_v5  ;;  %v671_v41 = vadd.f32 %v1756_v0, %v600_v59 }
 0x168   :  { %v672_v42 = vadd.f32 %v1756_v0, %v601_v54  ;;  %v673_v14 = vadd.f32 %v1756_v0, %v602_v32  ;;  %v674_v20 = vadd.f32 %v1756_v0, %v603_v61  ;;  %v675_v27 = vadd.f32 %v1756_v0, %v604_v4 }
 0x169   :  { %v732_v33 = vmax.f32 %v668_v8, 0.0  ;;  %v733_v18 = vmax.f32 %v669_v12, 0.0  ;;  %v734_v56 = vmax.f32 %v670_v47, 0.0  ;;  %v735_v17 = vmax.f32 %v671_v41, 0.0 }
 0x16a   :  { %v736_v21 = vmax.f32 %v672_v42, 0.0  ;;  %v737_v51 = vmax.f32 %v673_v14, 0.0  ;;  %v738_v26 = vmax.f32 %v674_v20, 0.0  ;;  %v739_v30 = vmax.f32 %v675_v27, 0.0 }
 0x16b   :  { %796 = vst.msk [vmem:[%s2265_s3 + $0x180] sm:$0xff] %vm78_vm0, %v732_v33  ;;  %797 = vst.msk [vmem:[%s2265_s3 + $0x188] sm:$0xff] %vm78_vm0, %v733_v18  ;;  %v534_v60 = vmul.f32 %v1738_v9, %v2363_v63  ;;  %v535_v37 = vmul.f32 %v1738_v9, %v2364_v15  ;;  %v536_v43 = vmul.f32 %v1738_v9, %v2365_v40 }
 0x16c   :  { %798 = vst.msk [vmem:[%s2265_s3 + $0x190] sm:$0xff] %vm78_vm0, %v734_v56  ;;  %799 = vst.msk [vmem:[%s2265_s3 + $0x198] sm:$0xff] %vm78_vm0, %v735_v17  ;;  %v537_v13 = vmul.f32 %v1738_v9, %v2366_v46  ;;  %v538_v16 = vmul.f32 %v1738_v9, %v2367_v38  ;;  %v539_v22 = vmul.f32 %v1738_v9, %v2368_v19 }
 0x16d   :  { %800 = vst.msk [vmem:[%s2265_s3 + $0x1a0] sm:$0xff] %vm78_vm0, %v736_v21  ;;  %801 = vst.msk [vmem:[%s2265_s3 + $0x1a8] sm:$0xff] %vm78_vm0, %v737_v51  ;;  %v540_v52 = vmul.f32 %v1738_v9, %v2369_v49  ;;  %v541_v55 = vmul.f32 %v1738_v9, %v2370_v23  ;;  %v605_v58 = vmul.f32 %v1743_v45, %v534_v60 }
 0x16e   :  { %802 = vst.msk [vmem:[%s2265_s3 + $0x1b0] sm:$0xff] %vm78_vm0, %v738_v26  ;;  %803 = vst.msk [vmem:[%s2265_s3 + $0x1b8] sm:$0xff] %vm78_vm0, %v739_v30  ;;  %v606_v29 = vmul.f32 %v1743_v45, %v535_v37  ;;  %v607_v35 = vmul.f32 %v1743_v45, %v536_v43  ;;  %v608_v39 = vmul.f32 %v1743_v45, %v537_v13 }
 0x16f   :  { %v609_v44 = vmul.f32 %v1743_v45, %v538_v16  ;;  %v610_v48 = vmul.f32 %v1743_v45, %v539_v22  ;;  %v611_v11 = vmul.f32 %v1743_v45, %v540_v52  ;;  %v612_v2 = vmul.f32 %v1743_v45, %v541_v55 }
 0x170   :  { %v676_v36 = vadd.f32 %v1756_v0, %v605_v58  ;;  %v677_v9 = vadd.f32 %v1756_v0, %v606_v29  ;;  %v678_v25 = vadd.f32 %v1756_v0, %v607_v35  ;;  %v679_v28 = vadd.f32 %v1756_v0, %v608_v39 }
 0x171   :  { %v680_v53 = vadd.f32 %v1756_v0, %v609_v44  ;;  %v681_v57 = vadd.f32 %v1756_v0, %v610_v48  ;;  %v682_v7 = vadd.f32 %v1756_v0, %v611_v11  ;;  %v683_v62 = vadd.f32 %v1756_v0, %v612_v2 }
 0x172   :  { %v740_v6 = vmax.f32 %v676_v36, 0.0  ;;  %v741_v31 = vmax.f32 %v677_v9, 0.0  ;;  %v742_v34 = vmax.f32 %v678_v25, 0.0  ;;  %v743_v45 = vmax.f32 %v679_v28, 0.0 }
 0x173   :  { %v744_v10 = vmax.f32 %v680_v53, 0.0  ;;  %v745_v50 = vmax.f32 %v681_v57, 0.0  ;;  %v746_v1 = vmax.f32 %v682_v7, 0.0  ;;  %v747_v24 = vmax.f32 %v683_v62, 0.0 }
 0x174   :  { %804 = vst.msk [vmem:[%s2265_s3 + $0x1c0] sm:$0xff] %vm78_vm0, %v740_v6  ;;  %805 = vst.msk [vmem:[%s2265_s3 + $0x1c8] sm:$0xff] %vm78_vm0, %v741_v31 }
 0x175   :  { %806 = vst.msk [vmem:[%s2265_s3 + $0x1d0] sm:$0xff] %vm78_vm0, %v742_v34  ;;  %807 = vst.msk [vmem:[%s2265_s3 + $0x1d8] sm:$0xff] %vm78_vm0, %v743_v45 }
 0x176   :  { %808 = vst.msk [vmem:[%s2265_s3 + $0x1e0] sm:$0xff] %vm78_vm0, %v744_v10  ;;  %809 = vst.msk [vmem:[%s2265_s3 + $0x1e8] sm:$0xff] %vm78_vm0, %v745_v50 }
 0x177   :  { %810 = vst.msk [vmem:[%s2265_s3 + $0x1f0] sm:$0xff] %vm78_vm0, %v746_v1  ;;  %811 = vst.msk [vmem:[%s2265_s3 + $0x1f8] sm:$0xff] %vm78_vm0, %v747_v24 }

// kernel: rsm_forward.21
= control target key start
LH: loop header
LB: loop body
LE: loop exit
PB: predicated region body
PF: predicated region fallthrough
CT: control target
= control target key end

     0   :  { %s964_s12 = smov 0   ;;  %s1206_s0 = inlined_call_operand.vmem [shape: bf16[512,196], index: 0, kind: input, shape index: {}]   ;;  %s1207_s1 = inlined_call_operand.vmem [shape: bf16[196,16], index: 1, kind: input, shape index: {}]   ;;  %s1208_s2 = inlined_call_operand.vmem [shape: f32[1,16], index: 2, kind: input, shape index: {}]   ;;  %s1209_s3 = inlined_call_operand.vmem [shape: f32[512,16], index: 3, kind: output, shape index: {}]  }
   0x1 LB: > { %s764_s13 = sadd.s32 4294967295, %s941_s12   ;;  %p768_p0 = scmp.ge.s32.totalorder %s941_s12, 1  ;;  %s941_s12 = sphi %s964_s12, %s13_s12  }
   0x2   : > { %p139_p1 = scmp.lt.s32.totalorder %s941_s12, 3 }
   0x4   : > { %p140_p2 = pnand %p768_p0, %p139_p1 }
   0x5   : > { %v874_v0 = vld [vmem:[%s1207_s1] sm:$0xff] (!%p140_p2)   ;;  %v943_v1 = vmov (!%p140_p2), 0   ;;  %v875_v2 = vld [vmem:[%s1207_s1 + $0x8] sm:$0xff] (!%p140_p2)   ;;  %s769_s18 = sshll.u32 (!%p140_p2), %s764_s13, 5  ;;  %v876_v3 = vld [vmem:[%s1207_s1 + $0x10] sm:$0xff] (!%p140_p2)   ;;  %vm461_vm0 = vcmask (!%p140_p2), 556032  }
   0x6   : > { %143 = sbr.rel (%p140_p2) target bundleno = 331 (0x14b), region = 32  ;;  %514 = vmatprep.subr.bf16.mxu0 (!%p140_p2), %v943_v1  ;;  %839 = vmatprep.subr.bf16.mxu1 (!%p140_p2), %v943_v1  ;;  %p165_p3 = scmp.lt.s32.totalorder (!%p140_p2), %s769_s18, 63  ;;  %v877_v4 = vld [vmem:[%s1207_s1 + $0x18] sm:$0xff] (!%p140_p2)   ;;  %v878_v6 = vld [vmem:[%s1207_s1 + $0x20] sm:$0xff] (!%p140_p2)   ;;  %v879_v8 = vld [vmem:[%s1207_s1 + $0x28] sm:$0xff] (!%p140_p2)   ;;  %vm510_vm1 = vcmask (!%p140_p2), 1041408  }
   0x7   : > { %515 = vmatpush1.bf16.msra.mxu0 (!%p140_p2), %v874_v0  ;;  %852 = vmatpush1.bf16.msra.mxu1 (!%p140_p2), %v874_v0  ;;  %v880_v9 = vld [vmem:[%s1207_s1 + $0x30] sm:$0xff] (!%p140_p2)   ;;  %v881_v10 = vld [vmem:[%s1207_s1 + $0x38] sm:$0xff] (!%p140_p2)   ;;  %v882_v11 = vld [vmem:[%s1207_s1 + $0x40] sm:$0xff] (!%p140_p2)   ;;  %vm675_vm2 = vcmask (!%p140_p2), 130048  }
   0x8   : > { %516 = vmatprep.subr.bf16.mxu0 (!%p140_p2), %v943_v1  ;;  %840 = vmatprep.subr.bf16.mxu1 (!%p140_p2), %v943_v1  ;;  %v883_v12 = vld [vmem:[%s1207_s1 + $0x48] sm:$0xff] (!%p140_p2)   ;;  %v884_v13 = vld [vmem:[%s1207_s1 + $0x50] sm:$0xff] (!%p140_p2)   ;;  %v885_v14 = vld [vmem:[%s1207_s1 + $0x58] sm:$0xff] (!%p140_p2)  }
   0x9   : > { %v886_v15 = vld [vmem:[%s1207_s1 + $0x60] ss:$0 sps:$4 sm:$0x33] (!%p140_p2)  }
   0xa   : > { %v512_v16 = vsel (!%p140_p2), %vm510_vm1, %v886_v15, 0  ;;  %v1098_v47 = vld [vmem:[%s1208_s2] ss:$0 sm:$0xff] (!%p140_p2) }
   0xb   : > { %517 = vmatpush1.bf16.msra.mxu0 (!%p140_p2), %v875_v2  ;;  %853 = vmatpush1.bf16.msra.mxu1 (!%p140_p2), %v875_v2 }
   0xc   : > { %518 = vmatprep.subr.bf16.mxu0 (!%p140_p2), %v943_v1  ;;  %841 = vmatprep.subr.bf16.mxu1 (!%p140_p2), %v943_v1 }
   0xd   : > { %s1211_s18 = smov (!%p165_p3, %s769_s18), 63 }
   0xe   : > { %s838_s21 = sshll.u32 %s1211_s18, 3 }
   0xf   : > { %519 = vmatpush1.bf16.msra.mxu0 %v876_v3  ;;  %854 = vmatpush1.bf16.msra.mxu1 %v876_v3  ;;  %s998_s26 = scalar_lea.vmem %s1206_s0, %s838_s21  ;;  %s1105_s25 = scalar_lea.vmem %s1209_s3, %s838_s21 }
  0x10   : > { %520 = vmatprep.subr.bf16.mxu0 %v943_v1  ;;  %842 = vmatprep.subr.bf16.mxu1 %v943_v1  ;;  %v889_v5 = vld [vmem:[%s998_s26 + $0x4] ss:$8 sps:$4 sm:$0xff]   ;;  %v887_v17 = vld [vmem:[%s998_s26] ss:$8 sps:$4 sm:$0xff]   ;;  %v893_v19 = vld [vmem:[%s998_s26 + $0x14] ss:$8 sps:$4 sm:$0xff]  }
  0x11   : > { %v892_v7 = vld [vmem:[%s998_s26 + $0x84] ss:$8 sps:$4 sm:$0xff]   ;;  %820 = vmatprep.mubr.msk.bf16.mxu0 %vm461_vm0, %v889_v5  ;;  %v890_v18 = vld [vmem:[%s998_s26 + $0x80] ss:$8 sps:$4 sm:$0xff]   ;;  %v895_v20 = vld [vmem:[%s998_s26 + $0x94] ss:$8 sps:$4 sm:$0xff]  }
  0x12   : > { %828 = vmatprep.mubr.msk.bf16.mxu1 %vm461_vm0, %v892_v7  ;;  %v897_v21 = vld [vmem:[%s998_s26 + $0x10] ss:$8 sps:$4 sm:$0xff]   ;;  %v899_v23 = vld [vmem:[%s998_s26 + $0x24] ss:$8 sps:$4 sm:$0xff]   ;;  %v903_v25 = vld [vmem:[%s998_s26 + $0x20] ss:$8 sps:$4 sm:$0xff]  }
  0x13   : > { %521 = vmatpush1.bf16.msra.mxu0 %v877_v4  ;;  %855 = vmatpush1.bf16.msra.mxu1 %v877_v4  ;;  %v898_v22 = vld [vmem:[%s998_s26 + $0x90] ss:$8 sps:$4 sm:$0xff]   ;;  %v901_v24 = vld [vmem:[%s998_s26 + $0xa4] ss:$8 sps:$4 sm:$0xff]   ;;  %v904_v26 = vld [vmem:[%s998_s26 + $0xa0] ss:$8 sps:$4 sm:$0xff]  }
  0x14   : > { %522 = vmatprep.subr.bf16.mxu0 %v943_v1  ;;  %843 = vmatprep.subr.bf16.mxu1 %v943_v1  ;;  %v905_v27 = vld [vmem:[%s998_s26 + $0x34] ss:$8 sps:$4 sm:$0xff]   ;;  %v909_v29 = vld [vmem:[%s998_s26 + $0x30] ss:$8 sps:$4 sm:$0xff]   ;;  %v911_v31 = vld [vmem:[%s998_s26 + $0x44] ss:$8 sps:$4 sm:$0xff]  }
  0x15   : > { %v907_v28 = vld [vmem:[%s998_s26 + $0xb4] ss:$8 sps:$4 sm:$0xff]   ;;  %v910_v30 = vld [vmem:[%s998_s26 + $0xb0] ss:$8 sps:$4 sm:$0xff]   ;;  %v913_v32 = vld [vmem:[%s998_s26 + $0xc4] ss:$8 sps:$4 sm:$0xff]  }
  0x16   : > { %v915_v33 = vld [vmem:[%s998_s26 + $0x40] ss:$8 sps:$4 sm:$0xff]   ;;  %v917_v35 = vld [vmem:[%s998_s26 + $0x54] ss:$8 sps:$4 sm:$0xff]   ;;  %v921_v37 = vld [vmem:[%s998_s26 + $0x50] ss:$8 sps:$4 sm:$0xff]  }
  0x17   : > { %523 = vmatpush1.bf16.msra.mxu0 %v878_v6  ;;  %856 = vmatpush1.bf16.msra.mxu1 %v878_v6  ;;  %v916_v34 = vld [vmem:[%s998_s26 + $0xc0] ss:$8 sps:$4 sm:$0xff]   ;;  %v919_v36 = vld [vmem:[%s998_s26 + $0xd4] ss:$8 sps:$4 sm:$0xff]   ;;  %v922_v38 = vld [vmem:[%s998_s26 + $0xd0] ss:$8 sps:$4 sm:$0xff]  }
  0x18   : > { %524 = vmatprep.subr.bf16.mxu0 %v943_v1  ;;  %844 = vmatprep.subr.bf16.mxu1 %v943_v1  ;;  %v923_v39 = vld [vmem:[%s998_s26 + $0x64] ss:$8 sps:$4 sm:$0xff]   ;;  %v927_v41 = vld [vmem:[%s998_s26 + $0x60] ss:$8 sps:$4 sm:$0xff]   ;;  %v929_v43 = vld [vmem:[%s998_s26 + $0x74] ss:$8 sps:$4 sm:$0xff]  }
  0x19   : > { %v925_v40 = vld [vmem:[%s998_s26 + $0xe4] ss:$8 sps:$4 sm:$0xff]   ;;  %v928_v42 = vld [vmem:[%s998_s26 + $0xe0] ss:$8 sps:$4 sm:$0xff]   ;;  %v931_v44 = vld [vmem:[%s998_s26 + $0xf4] ss:$8 sps:$4 sm:$0xff]  }
  0x1a   : > { %v933_v45 = vld [vmem:[%s998_s26 + $0x70] ss:$8 sps:$4 sm:$0xff]  }
  0x1b   : > { %525 = vmatpush1.bf16.msra.mxu0 %v879_v8  ;;  %857 = vmatpush1.bf16.msra.mxu1 %v879_v8  ;;  %v934_v46 = vld [vmem:[%s998_s26 + $0xf0] ss:$8 sps:$4 sm:$0xff]  }
  0x1c   : > { %526 = vmatprep.subr.bf16.mxu0 %v943_v1  ;;  %845 = vmatprep.subr.bf16.mxu1 %v943_v1 }
  0x1f   : > { %527 = vmatpush1.bf16.msra.mxu0 %v880_v9  ;;  %858 = vmatpush1.bf16.msra.mxu1 %v880_v9 }
  0x20   : > { %528 = vmatprep.subr.bf16.mxu0 %v943_v1  ;;  %846 = vmatprep.subr.bf16.mxu1 %v943_v1 }
  0x23   : > { %529 = vmatpush1.bf16.msra.mxu0 %v881_v10  ;;  %859 = vmatpush1.bf16.msra.mxu1 %v881_v10 }
  0x24   : > { %530 = vmatprep.subr.bf16.mxu0 %v943_v1  ;;  %847 = vmatprep.subr.bf16.mxu1 %v943_v1 }
  0x27   : > { %531 = vmatpush1.bf16.msra.mxu0 %v882_v11  ;;  %860 = vmatpush1.bf16.msra.mxu1 %v882_v11 }
  0x28   : > { %532 = vmatprep.subr.bf16.mxu0 %v943_v1  ;;  %848 = vmatprep.subr.bf16.mxu1 %v943_v1 }
  0x2b   : > { %533 = vmatpush1.bf16.msra.mxu0 %v883_v12  ;;  %861 = vmatpush1.bf16.msra.mxu1 %v883_v12 }
  0x2c   : > { %534 = vmatprep.subr.bf16.mxu0 %v943_v1  ;;  %849 = vmatprep.subr.bf16.mxu1 %v943_v1 }
  0x2f   : > { %535 = vmatpush1.bf16.msra.mxu0 %v884_v13  ;;  %862 = vmatpush1.bf16.msra.mxu1 %v884_v13 }
  0x30   : > { %536 = vmatprep.subr.bf16.mxu0 %v943_v1  ;;  %850 = vmatprep.subr.bf16.mxu1 %v943_v1 }
  0x33   : > { %537 = vmatpush1.bf16.msra.mxu0 %v885_v14  ;;  %863 = vmatpush1.bf16.msra.mxu1 %v885_v14 }
  0x34   : > { %538 = vmatprep.subr.bf16.mxu0 %v943_v1  ;;  %851 = vmatprep.subr.bf16.mxu1 %v943_v1 }
  0x37   : > { %539 = vmatpush1.bf16.msra.mxu0 %v512_v16  ;;  %864 = vmatpush1.bf16.msra.mxu1 %v512_v16 }
  0x3a   : > { %547 = vmatmul.mubr.bf16.vlgmr.msra.gmra.mrb[0].mxu0 %v887_v17  ;;  %611 = vmatmul.mubr.bf16.vlgmr.msra.gmra.mrb[0].mxu1 %v890_v18 }
  0x3b   : > { %821 = vmatprep.mubr.msk.bf16.mxu0 %vm461_vm0, %v893_v19  ;;  %829 = vmatprep.mubr.msk.bf16.mxu1 %vm461_vm0, %v895_v20 }
  0x42   : > { %555 = vmatmul.mubr.bf16.gmra.mrb[4].mxu0 %v897_v21  ;;  %619 = vmatmul.mubr.bf16.gmra.mrb[4].mxu1 %v898_v22 }
  0x43   : > { %822 = vmatprep.mubr.msk.bf16.mxu0 %vm461_vm0, %v899_v23  ;;  %830 = vmatprep.mubr.msk.bf16.mxu1 %vm461_vm0, %v901_v24 }
  0x4a   : > { %563 = vmatmul.mubr.bf16.gmra.mrb[8].mxu0 %v903_v25  ;;  %627 = vmatmul.mubr.bf16.gmra.mrb[8].mxu1 %v904_v26 }
  0x4b   : > { %823 = vmatprep.mubr.msk.bf16.mxu0 %vm461_vm0, %v905_v27  ;;  %831 = vmatprep.mubr.msk.bf16.mxu1 %vm461_vm0, %v907_v28 }
  0x52   : > { %571 = vmatmul.mubr.bf16.gmra.mrb[12].mxu0 %v909_v29  ;;  %635 = vmatmul.mubr.bf16.gmra.mrb[12].mxu1 %v910_v30 }
  0x53   : > { %824 = vmatprep.mubr.msk.bf16.mxu0 %vm461_vm0, %v911_v31  ;;  %832 = vmatprep.mubr.msk.bf16.mxu1 %vm461_vm0, %v913_v32 }
  0x5a   : > { %579 = vmatmul.mubr.bf16.gmra.mrb[16].mxu0 %v915_v33  ;;  %643 = vmatmul.mubr.bf16.gmra.mrb[16].mxu1 %v916_v34 }
  0x5b   : > { %825 = vmatprep.mubr.msk.bf16.mxu0 %vm461_vm0, %v917_v35  ;;  %833 = vmatprep.mubr.msk.bf16.mxu1 %vm461_vm0, %v919_v36 }
  0x62   : > { %587 = vmatmul.mubr.bf16.gmra.mrb[20].mxu0 %v921_v37  ;;  %651 = vmatmul.mubr.bf16.gmra.mrb[20].mxu1 %v922_v38 }
  0x63   : > { %826 = vmatprep.mubr.msk.bf16.mxu0 %vm461_vm0, %v923_v39  ;;  %834 = vmatprep.mubr.msk.bf16.mxu1 %vm461_vm0, %v925_v40 }
  0x6a   : > { %595 = vmatmul.mubr.bf16.gmra.mrb[24].mxu0 %v927_v41  ;;  %659 = vmatmul.mubr.bf16.gmra.mrb[24].mxu1 %v928_v42 }
  0x6b   : > { %827 = vmatprep.mubr.msk.bf16.mxu0 %vm461_vm0, %v929_v43  ;;  %835 = vmatprep.mubr.msk.bf16.mxu1 %vm461_vm0, %v931_v44 }
  0x72   : > { %603 = vmatmul.mubr.bf16.gmra.mrb[28].mxu0 %v933_v45  ;;  %667 = vmatmul.mubr.bf16.gmra.mrb[28].mxu1 %v934_v46 }
 0x10d   : > { %v548_v48 = vpop.f32.mrb[0].mxu0  ;;  %v612_v49 = vpop.f32.mrb[0].mxu1 }
 0x10e   : > { %v549_v50 = vadd.f32 %v1098_v47, %v548_v48  ;;  %v613_v51 = vadd.f32 %v1098_v47, %v612_v49  ;;  %v550_v52 = vpop.f32.mrb[1].mxu0  ;;  %v614_v53 = vpop.f32.mrb[1].mxu1 }
 0x10f   : > { %v551_v54 = vpop.f32.mrb[2].mxu0  ;;  %v615_v55 = vpop.f32.mrb[2].mxu1 }
 0x110   : > { %676 = vst.msk [vmem:[%s1105_s25] sm:$0xff] %vm675_vm2, %v549_v50  ;;  %692 = vst.msk [vmem:[%s1105_s25 + $0x80] sm:$0xff] %vm675_vm2, %v613_v51  ;;  %v552_v56 = vadd.f32 %v1098_v47, %v551_v54  ;;  %v616_v57 = vadd.f32 %v1098_v47, %v615_v55  ;;  %v553_v58 = vpop.f32.mrb[3].mxu0  ;;  %v617_v59 = vpop.f32.mrb[3].mxu1 }
 0x112   : > { %677 = vst.msk [vmem:[%s1105_s25 + $0x8] sm:$0xff] %vm675_vm2, %v552_v56  ;;  %693 = vst.msk [vmem:[%s1105_s25 + $0x88] sm:$0xff] %vm675_vm2, %v616_v57 }
 0x115   : > { %v556_v60 = vpop.f32.mrb[4].mxu0  ;;  %v620_v61 = vpop.f32.mrb[4].mxu1 }
 0x116   : > { %v557_v62 = vadd.f32 %v1098_v47, %v556_v60  ;;  %v621_v63 = vadd.f32 %v1098_v47, %v620_v61  ;;  %v558_v0 = vpop.f32.mrb[5].mxu0  ;;  %v622_v1 = vpop.f32.mrb[5].mxu1 }
 0x117   : > { %v559_v2 = vpop.f32.mrb[6].mxu0  ;;  %v623_v3 = vpop.f32.mrb[6].mxu1 }
 0x118   : > { %678 = vst.msk [vmem:[%s1105_s25 + $0x10] sm:$0xff] %vm675_vm2, %v557_v62  ;;  %694 = vst.msk [vmem:[%s1105_s25 + $0x90] sm:$0xff] %vm675_vm2, %v621_v63  ;;  %v560_v4 = vadd.f32 %v1098_v47, %v559_v2  ;;  %v624_v5 = vadd.f32 %v1098_v47, %v623_v3  ;;  %v561_v6 = vpop.f32.mrb[7].mxu0  ;;  %v625_v7 = vpop.f32.mrb[7].mxu1 }
 0x11a   : > { %679 = vst.msk [vmem:[%s1105_s25 + $0x18] sm:$0xff] %vm675_vm2, %v560_v4  ;;  %695 = vst.msk [vmem:[%s1105_s25 + $0x98] sm:$0xff] %vm675_vm2, %v624_v5 }
 0x11d   : > { %v564_v8 = vpop.f32.mrb[8].mxu0  ;;  %v628_v9 = vpop.f32.mrb[8].mxu1 }
 0x11e   : > { %v565_v10 = vadd.f32 %v1098_v47, %v564_v8  ;;  %v629_v11 = vadd.f32 %v1098_v47, %v628_v9  ;;  %v566_v12 = vpop.f32.mrb[9].mxu0  ;;  %v630_v13 = vpop.f32.mrb[9].mxu1 }
 0x11f   : > { %v567_v14 = vpop.f32.mrb[10].mxu0  ;;  %v631_v15 = vpop.f32.mrb[10].mxu1 }
 0x120   : > { %680 = vst.msk [vmem:[%s1105_s25 + $0x20] sm:$0xff] %vm675_vm2, %v565_v10  ;;  %696 = vst.msk [vmem:[%s1105_s25 + $0xa0] sm:$0xff] %vm675_vm2, %v629_v11  ;;  %v568_v16 = vadd.f32 %v1098_v47, %v567_v14  ;;  %v632_v17 = vadd.f32 %v1098_v47, %v631_v15  ;;  %v569_v18 = vpop.f32.mrb[11].mxu0  ;;  %v633_v19 = vpop.f32.mrb[11].mxu1 }
 0x122   : > { %681 = vst.msk [vmem:[%s1105_s25 + $0x28] sm:$0xff] %vm675_vm2, %v568_v16  ;;  %697 = vst.msk [vmem:[%s1105_s25 + $0xa8] sm:$0xff] %vm675_vm2, %v632_v17 }
 0x125   : > { %v572_v20 = vpop.f32.mrb[12].mxu0  ;;  %v636_v21 = vpop.f32.mrb[12].mxu1 }
 0x126   : > { %v573_v22 = vadd.f32 %v1098_v47, %v572_v20  ;;  %v637_v23 = vadd.f32 %v1098_v47, %v636_v21  ;;  %v574_v24 = vpop.f32.mrb[13].mxu0  ;;  %v638_v25 = vpop.f32.mrb[13].mxu1 }
 0x127   : > { %v575_v26 = vpop.f32.mrb[14].mxu0  ;;  %v639_v27 = vpop.f32.mrb[14].mxu1 }
 0x128   : > { %682 = vst.msk [vmem:[%s1105_s25 + $0x30] sm:$0xff] %vm675_vm2, %v573_v22  ;;  %698 = vst.msk [vmem:[%s1105_s25 + $0xb0] sm:$0xff] %vm675_vm2, %v637_v23  ;;  %v576_v28 = vadd.f32 %v1098_v47, %v575_v26  ;;  %v640_v29 = vadd.f32 %v1098_v47, %v639_v27  ;;  %v577_v30 = vpop.f32.mrb[15].mxu0  ;;  %v641_v31 = vpop.f32.mrb[15].mxu1 }
 0x12a   : > { %683 = vst.msk [vmem:[%s1105_s25 + $0x38] sm:$0xff] %vm675_vm2, %v576_v28  ;;  %699 = vst.msk [vmem:[%s1105_s25 + $0xb8] sm:$0xff] %vm675_vm2, %v640_v29 }
 0x12d   : > { %v580_v32 = vpop.f32.mrb[16].mxu0  ;;  %v644_v33 = vpop.f32.mrb[16].mxu1 }
 0x12e   : > { %v581_v34 = vadd.f32 %v1098_v47, %v580_v32  ;;  %v645_v35 = vadd.f32 %v1098_v47, %v644_v33  ;;  %v582_v36 = vpop.f32.mrb[17].mxu0  ;;  %v646_v37 = vpop.f32.mrb[17].mxu1 }
 0x12f   : > { %v583_v38 = vpop.f32.mrb[18].mxu0  ;;  %v647_v39 = vpop.f32.mrb[18].mxu1 }
 0x130   : > { %684 = vst.msk [vmem:[%s1105_s25 + $0x40] sm:$0xff] %vm675_vm2, %v581_v34  ;;  %700 = vst.msk [vmem:[%s1105_s25 + $0xc0] sm:$0xff] %vm675_vm2, %v645_v35  ;;  %v584_v40 = vadd.f32 %v1098_v47, %v583_v38  ;;  %v648_v41 = vadd.f32 %v1098_v47, %v647_v39  ;;  %v585_v42 = vpop.f32.mrb[19].mxu0  ;;  %v649_v43 = vpop.f32.mrb[19].mxu1 }
 0x132   : > { %685 = vst.msk [vmem:[%s1105_s25 + $0x48] sm:$0xff] %vm675_vm2, %v584_v40  ;;  %701 = vst.msk [vmem:[%s1105_s25 + $0xc8] sm:$0xff] %vm675_vm2, %v648_v41 }
 0x135   : > { %v588_v44 = vpop.f32.mrb[20].mxu0  ;;  %v652_v45 = vpop.f32.mrb[20].mxu1 }
 0x136   : > { %v589_v46 = vadd.f32 %v1098_v47, %v588_v44  ;;  %v653_v48 = vadd.f32 %v1098_v47, %v652_v45  ;;  %v590_v49 = vpop.f32.mrb[21].mxu0  ;;  %v654_v50 = vpop.f32.mrb[21].mxu1 }
 0x137   : > { %v591_v51 = vpop.f32.mrb[22].mxu0  ;;  %v655_v52 = vpop.f32.mrb[22].mxu1 }
 0x138   : > { %686 = vst.msk [vmem:[%s1105_s25 + $0x50] sm:$0xff] %vm675_vm2, %v589_v46  ;;  %702 = vst.msk [vmem:[%s1105_s25 + $0xd0] sm:$0xff] %vm675_vm2, %v653_v48  ;;  %v592_v53 = vadd.f32 %v1098_v47, %v591_v51  ;;  %v656_v54 = vadd.f32 %v1098_v47, %v655_v52  ;;  %v593_v55 = vpop.f32.mrb[23].mxu0  ;;  %v657_v56 = vpop.f32.mrb[23].mxu1 }
 0x13a   : > { %687 = vst.msk [vmem:[%s1105_s25 + $0x58] sm:$0xff] %vm675_vm2, %v592_v53  ;;  %703 = vst.msk [vmem:[%s1105_s25 + $0xd8] sm:$0xff] %vm675_vm2, %v656_v54 }
 0x13d   : > { %v596_v57 = vpop.f32.mrb[24].mxu0  ;;  %v660_v58 = vpop.f32.mrb[24].mxu1 }
 0x13e   : > { %v597_v59 = vadd.f32 %v1098_v47, %v596_v57  ;;  %v661_v60 = vadd.f32 %v1098_v47, %v660_v58  ;;  %v598_v61 = vpop.f32.mrb[25].mxu0  ;;  %v662_v62 = vpop.f32.mrb[25].mxu1 }
 0x13f   : > { %v599_v63 = vpop.f32.mrb[26].mxu0  ;;  %v663_v0 = vpop.f32.mrb[26].mxu1 }
 0x140   : > { %688 = vst.msk [vmem:[%s1105_s25 + $0x60] sm:$0xff] %vm675_vm2, %v597_v59  ;;  %704 = vst.msk [vmem:[%s1105_s25 + $0xe0] sm:$0xff] %vm675_vm2, %v661_v60  ;;  %v600_v1 = vadd.f32 %v1098_v47, %v599_v63  ;;  %v664_v2 = vadd.f32 %v1098_v47, %v663_v0  ;;  %v601_v3 = vpop.f32.mrb[27].mxu0  ;;  %v665_v4 = vpop.f32.mrb[27].mxu1 }
 0x142   : > { %689 = vst.msk [vmem:[%s1105_s25 + $0x68] sm:$0xff] %vm675_vm2, %v600_v1  ;;  %705 = vst.msk [vmem:[%s1105_s25 + $0xe8] sm:$0xff] %vm675_vm2, %v664_v2 }
 0x145   : > { %v604_v5 = vpop.f32.mrb[28].mxu0  ;;  %v668_v6 = vpop.f32.mrb[28].mxu1 }
 0x146   : > { %v605_v7 = vadd.f32 %v1098_v47, %v604_v5  ;;  %v669_v8 = vadd.f32 %v1098_v47, %v668_v6  ;;  %v606_v9 = vpop.f32.mrb[29].mxu0  ;;  %v670_v10 = vpop.f32.mrb[29].mxu1 }
 0x147   : > { %v607_v11 = vpop.f32.mrb[30].mxu0  ;;  %v671_v12 = vpop.f32.mrb[30].mxu1 }
 0x148   : > { %690 = vst.msk [vmem:[%s1105_s25 + $0x70] sm:$0xff] %vm675_vm2, %v605_v7  ;;  %706 = vst.msk [vmem:[%s1105_s25 + $0xf0] sm:$0xff] %vm675_vm2, %v669_v8  ;;  %v608_v13 = vadd.f32 %v1098_v47, %v607_v11  ;;  %v672_v14 = vadd.f32 %v1098_v47, %v671_v12  ;;  %v609_v15 = vpop.f32.mrb[31].mxu0  ;;  %v673_v16 = vpop.f32.mrb[31].mxu1 }
 0x14a   : > { %691 = vst.msk [vmem:[%s1105_s25 + $0x78] sm:$0xff] %vm675_vm2, %v608_v13  ;;  %707 = vst.msk [vmem:[%s1105_s25 + $0xf8] sm:$0xff] %vm675_vm2, %v672_v14 }
 0x14b PF: > { %s13_s12 = sadd.s32 1, %s941_s12  }
 0x14c   : > { %p10_p4 = scmp.ge.s32.totalorder %s13_s12, 4  }
 0x14e   :  { %12 = sbr.rel (!%p10_p4) target bundleno = 1 (0x1), region = 62 }

// kernel: rsm_forward.23
= control target key start
LH: loop header
LB: loop body
LE: loop exit
PB: predicated region body
PF: predicated region fallthrough
CT: control target
= control target key end

     0   :  { %s786_s15 = smov 0   ;;  %s898_s0 = inlined_call_operand.vmem [shape: bf16[128,256], index: 0, kind: input, shape index: {}]   ;;  %s899_s1 = inlined_call_operand.vmem [shape: bf16[256,32], index: 1, kind: input, shape index: {}]   ;;  %s900_s2 = inlined_call_operand.vmem [shape: f32[1,32], index: 2, kind: input, shape index: {}]   ;;  %s901_s3 = inlined_call_operand.vmem [shape: f32[1,32], index: 3, kind: input, shape index: {}]   ;;  %s902_s4 = inlined_call_operand.vmem [shape: f32[128,32], index: 4, kind: output, shape index: {}]  }
   0x1 LB: > { %s620_s16 = sadd.s32 4294967295, %s759_s15   ;;  %p624_p0 = scmp.ge.s32.totalorder %s759_s15, 1  ;;  %s759_s15 = sphi %s786_s15, %s14_s15  }
   0x2   : > { %p164_p1 = scmp.lt.s32.totalorder %s759_s15, 3 }
   0x4   : > { %p165_p2 = pnand %p624_p0, %p164_p1 }
   0x5   : > { %v723_v0 = vld [vmem:[%s899_s1 + $0x40] sm:$0xff] (!%p165_p2)   ;;  %s625_s19 = sshll.u32 (!%p165_p2), %s620_s16, 3  ;;  %v725_v2 = vld [vmem:[%s899_s1 + $0x48] sm:$0xff] (!%p165_p2)   ;;  %v727_v4 = vld [vmem:[%s899_s1 + $0x50] sm:$0xff] (!%p165_p2)   ;;  %vm446_vm0 = vcmask (!%p165_p2), 261120  }
   0x6   : > { %168 = sbr.rel (%p165_p2) target bundleno = 346 (0x15a), region = 36  ;;  %v724_v1 = vld [vmem:[%s899_s1] sm:$0xff] (!%p165_p2)   ;;  %659 = vmatprep.subr.bf16.mxu0 (!%p165_p2), %v723_v0  ;;  %699 = vmatprep.subr.bf16.mxu1 (!%p165_p2), %v723_v0  ;;  %v726_v3 = vld [vmem:[%s899_s1 + $0x8] sm:$0xff] (!%p165_p2)   ;;  %p192_p3 = scmp.lt.s32.totalorder (!%p165_p2), %s625_s19, 15  ;;  %v728_v5 = vld [vmem:[%s899_s1 + $0x10] sm:$0xff] (!%p165_p2)  }
   0x7   : > { %660 = vmatpush3.bf16.msra.mxu0 (!%p165_p2), %v724_v1  ;;  %707 = vmatpush3.bf16.msra.mxu1 (!%p165_p2), %v724_v1  ;;  %v729_v6 = vld [vmem:[%s899_s1 + $0x58] sm:$0xff] (!%p165_p2)   ;;  %v731_v8 = vld [vmem:[%s899_s1 + $0x60] sm:$0xff] (!%p165_p2)   ;;  %v733_v10 = vld [vmem:[%s899_s1 + $0x68] sm:$0xff] (!%p165_p2)  }
   0x8   : > { %661 = vmatprep.subr.bf16.mxu0 (!%p165_p2), %v725_v2  ;;  %700 = vmatprep.subr.bf16.mxu1 (!%p165_p2), %v725_v2  ;;  %v730_v7 = vld [vmem:[%s899_s1 + $0x18] sm:$0xff] (!%p165_p2)   ;;  %v732_v9 = vld [vmem:[%s899_s1 + $0x20] sm:$0xff] (!%p165_p2)   ;;  %v734_v13 = vld [vmem:[%s899_s1 + $0x28] sm:$0xff] (!%p165_p2)  }
   0x9   : > { %v735_v14 = vld [vmem:[%s899_s1 + $0x70] sm:$0xff] (!%p165_p2)   ;;  %v737_v16 = vld [vmem:[%s899_s1 + $0x78] sm:$0xff] (!%p165_p2)  }
   0xa   : > { %v736_v15 = vld [vmem:[%s899_s1 + $0x30] sm:$0xff] (!%p165_p2)   ;;  %v738_v17 = vld [vmem:[%s899_s1 + $0x38] sm:$0xff] (!%p165_p2)  }
   0xb   : > { %662 = vmatpush3.bf16.msra.mxu0 (!%p165_p2), %v726_v3  ;;  %708 = vmatpush3.bf16.msra.mxu1 (!%p165_p2), %v726_v3 }
   0xc   : > { %663 = vmatprep.subr.bf16.mxu0 (!%p165_p2), %v727_v4  ;;  %701 = vmatprep.subr.bf16.mxu1 (!%p165_p2), %v727_v4 }
   0xd   : > { %s904_s19 = smov (!%p192_p3, %s625_s19), 15 }
   0xe   : > { %s658_s8 = sshll.u32 %s904_s19, 3 }
   0xf   : > { %664 = vmatpush3.bf16.msra.mxu0 %v728_v5  ;;  %709 = vmatpush3.bf16.msra.mxu1 %v728_v5  ;;  %s829_s13 = scalar_lea.vmem %s898_s0, %s658_s8  ;;  %s202_s11 = scalar_lea.vmem %s902_s4, %s658_s8 }
  0x10   : > { %665 = vmatprep.subr.bf16.mxu0 %v729_v6  ;;  %702 = vmatprep.subr.bf16.mxu1 %v729_v6  ;;  %v741_v11 = vld [vmem:[%s829_s13 + $0x4] ss:$8 sps:$4 sm:$0xff]   ;;  %v739_v18 = vld [vmem:[%s829_s13] ss:$8 sps:$4 sm:$0xff]   ;;  %v745_v20 = vld [vmem:[%s829_s13 + $0x14] ss:$8 sps:$4 sm:$0xff]  }
  0x11   : > { %v744_v12 = vld [vmem:[%s829_s13 + $0x24] ss:$8 sps:$4 sm:$0xff]   ;;  %413 = vmatprep.mubr.bf16.mxu0 %v741_v11  ;;  %v742_v19 = vld [vmem:[%s829_s13 + $0x20] ss:$8 sps:$4 sm:$0xff]   ;;  %v748_v21 = vld [vmem:[%s829_s13 + $0x34] ss:$8 sps:$4 sm:$0xff]  }
  0x12   : > { %429 = vmatprep.mubr.bf16.mxu1 %v744_v12  ;;  %v747_v22 = vld [vmem:[%s829_s13 + $0x10] ss:$8 sps:$4 sm:$0xff]  }
  0x13   : > { %666 = vmatpush3.bf16.msra.mxu0 %v730_v7  ;;  %710 = vmatpush3.bf16.msra.mxu1 %v730_v7  ;;  %v750_v23 = vld [vmem:[%s829_s13 + $0x30] ss:$8 sps:$4 sm:$0xff]  }
  0x14   : > { %667 = vmatprep.subr.bf16.mxu0 %v731_v8  ;;  %703 = vmatprep.subr.bf16.mxu1 %v731_v8 }
  0x17   : > { %668 = vmatpush3.bf16.msra.mxu0 %v732_v9  ;;  %711 = vmatpush3.bf16.msra.mxu1 %v732_v9 }
  0x18   : > { %669 = vmatprep.subr.bf16.mxu0 %v733_v10  ;;  %704 = vmatprep.subr.bf16.mxu1 %v733_v10 }
  0x1b   : > { %670 = vmatpush3.bf16.msra.mxu0 %v734_v13  ;;  %712 = vmatpush3.bf16.msra.mxu1 %v734_v13 }
  0x1c   : > { %671 = vmatprep.subr.bf16.mxu0 %v735_v14  ;;  %705 = vmatprep.subr.bf16.mxu1 %v735_v14 }
  0x1f   : > { %672 = vmatpush3.bf16.msra.mxu0 %v736_v15  ;;  %713 = vmatpush3.bf16.msra.mxu1 %v736_v15 }
  0x20   : > { %673 = vmatprep.subr.bf16.mxu0 %v737_v16  ;;  %706 = vmatprep.subr.bf16.mxu1 %v737_v16 }
  0x23   : > { %674 = vmatpush3.bf16.msra.mxu0 %v738_v17  ;;  %714 = vmatpush3.bf16.msra.mxu1 %v738_v17 }
  0x26   : > { %414 = vmatmul.mubr.bf16.vlgmr.msra.gmra.mrb[0].mxu0 %v739_v18  ;;  %430 = vmatmul.mubr.bf16.vlgmr.msra.gmra.mrb[0].mxu1 %v742_v19 }
  0x27   : > { %421 = vmatprep.mubr.bf16.mxu0 %v745_v20  ;;  %437 = vmatprep.mubr.bf16.mxu1 %v748_v21 }
  0x2e   : > { %422 = vmatmul.mubr.bf16.gmra.mrb[4].mxu0 %v747_v22  ;;  %438 = vmatmul.mubr.bf16.gmra.mrb[4].mxu1 %v750_v23 }
  0xf9   : > { %v675_v24 = vpop.f32.mrb[0].mxu0  ;;  %v687_v25 = vpop.f32.mrb[0].mxu1 }
  0xfa   : > { %v676_v26 = vpop.f32.mrb[1].mxu0  ;;  %v688_v27 = vpop.f32.mrb[1].mxu1 }
  0xfb   : > { %v677_v28 = vadd.f32 %v676_v26, %v675_v24  ;;  %v678_v29 = vpop.f32.mrb[2].mxu0  ;;  %v689_v30 = vadd.f32 %v688_v27, %v687_v25  ;;  %v690_v31 = vpop.f32.mrb[2].mxu1 }
  0xfc   : > { %v679_v32 = vpop.f32.mrb[3].mxu0  ;;  %v691_v33 = vpop.f32.mrb[3].mxu1 }
  0xfd   : > { %v680_v34 = vadd.f32 %v679_v32, %v678_v29  ;;  %v692_v35 = vadd.f32 %v691_v33, %v690_v31  ;;  %v447_v36 = vsel %vm446_vm0, %v677_v28, 0.0  ;;  %v454_v55 = vsel %vm446_vm0, %v689_v30, 0.0 }
  0xff   : > { %v448_v37 = vsel %vm446_vm0, %v680_v34, 0.0  ;;  %v456_v57 = vsel %vm446_vm0, %v692_v35, 0.0 }
 0x100   : > { %v449_v38 = vadd.f32 %v448_v37, %v447_v36 }
 0x101   : > { %v681_v39 = vpop.f32.mrb[4].mxu0  ;;  %v693_v40 = vpop.f32.mrb[4].mxu1 }
 0x102   : > { %v682_v41 = vpop.f32.mrb[5].mxu0  ;;  %v694_v42 = vpop.f32.mrb[5].mxu1 }
 0x103   : > { %v683_v43 = vadd.f32 %v682_v41, %v681_v39  ;;  %v684_v44 = vpop.f32.mrb[6].mxu0  ;;  %v695_v45 = vadd.f32 %v694_v42, %v693_v40  ;;  %v696_v46 = vpop.f32.mrb[6].mxu1 }
 0x104   : > { %v685_v47 = vpop.f32.mrb[7].mxu0  ;;  %v697_v48 = vpop.f32.mrb[7].mxu1 }
 0x105   : > { %v450_v49 = vsel %vm446_vm0, %v683_v43, 0.0  ;;  %v686_v50 = vadd.f32 %v685_v47, %v684_v44  ;;  %v698_v51 = vadd.f32 %v697_v48, %v696_v46  ;;  %v458_v58 = vsel %vm446_vm0, %v695_v45, 0.0  ;;  %v654_v46 = vld [vmem:[%s900_s2] ss:$0 sm:$0xff] }
 0x106   : > { %v451_v52 = vadd.f32 %v450_v49, %v449_v38 }
 0x107   : > { %v452_v53 = vsel %vm446_vm0, %v686_v50, 0.0  ;;  %v460_v61 = vsel %vm446_vm0, %v698_v51, 0.0 }
 0x108   : > { %v453_v54 = vadd.f32 %v452_v53, %v451_v52 }
 0x10a   : > { %v455_v56 = vadd.f32 %v454_v55, %v453_v54  ;;  %v655_v55 = vld [vmem:[%s901_s3] ss:$0 sm:$0xff] }
 0x10c   : > { %v457_v59 = vadd.f32 %v456_v57, %v455_v56 }
 0x10e   : > { %v459_v60 = vadd.f32 %v458_v58, %v457_v59 }
 0x110   : > { %v461_v62 = vadd.f32 %v460_v61, %v459_v60 }
 0x112   : > { %v462_v63 = vrot.slane %v461_v62, 4 }
 0x114   : > { %v463_v0 = vadd.f32 %v462_v63, %v461_v62 }
 0x116   : > { %v464_v1 = vrot.slane %v463_v0, 2 }
 0x118   : > { %v465_v2 = vadd.f32 %v464_v1, %v463_v0 }
 0x11a   : > { %v466_v3 = vrot.slane %v465_v2, 1 }
 0x11c   : > { %v467_v4 = vadd.f32 %v466_v3, %v465_v2 }
 0x11e   : > { %v469_v5 = vmul.f32 0.015625, %v467_v4 }
 0x120   : > { %v470_v6 = vsub.f32 %v677_v28, %v469_v5  ;;  %v471_v7 = vsub.f32 %v680_v34, %v469_v5  ;;  %v472_v8 = vsub.f32 %v683_v43, %v469_v5  ;;  %v473_v9 = vsub.f32 %v686_v50, %v469_v5 }
 0x121   : > { %v474_v10 = vsub.f32 %v689_v30, %v469_v5  ;;  %v475_v11 = vsub.f32 %v692_v35, %v469_v5  ;;  %v476_v12 = vsub.f32 %v695_v45, %v469_v5  ;;  %v477_v13 = vsub.f32 %v698_v51, %v469_v5 }
 0x122   : > { %v478_v14 = vmul.f32 %v470_v6, %v470_v6  ;;  %v479_v15 = vmul.f32 %v471_v7, %v471_v7  ;;  %v480_v16 = vmul.f32 %v472_v8, %v472_v8  ;;  %v481_v17 = vmul.f32 %v473_v9, %v473_v9 }
 0x123   : > { %v482_v21 = vmul.f32 %v474_v10, %v474_v10  ;;  %v483_v24 = vmul.f32 %v475_v11, %v475_v11  ;;  %v484_v27 = vmul.f32 %v476_v12, %v476_v12  ;;  %v485_v30 = vmul.f32 %v477_v13, %v477_v13 }
 0x124   : > { %v486_v18 = vsel %vm446_vm0, %v478_v14, 0.0  ;;  %v487_v19 = vsel %vm446_vm0, %v479_v15, 0.0  ;;  %v489_v22 = vsel %vm446_vm0, %v480_v16, 0.0  ;;  %v491_v25 = vsel %vm446_vm0, %v481_v17, 0.0 }
 0x125   : > { %v488_v20 = vadd.f32 %v487_v19, %v486_v18  ;;  %v493_v28 = vsel %vm446_vm0, %v482_v21, 0.0  ;;  %v495_v31 = vsel %vm446_vm0, %v483_v24, 0.0  ;;  %v497_v33 = vsel %vm446_vm0, %v484_v27, 0.0 }
 0x126   : > { %v499_v35 = vsel %vm446_vm0, %v485_v30, 0.0 }
 0x127   : > { %v490_v23 = vadd.f32 %v489_v22, %v488_v20 }
 0x129   : > { %v492_v26 = vadd.f32 %v491_v25, %v490_v23 }
 0x12b   : > { %v494_v29 = vadd.f32 %v493_v28, %v492_v26 }
 0x12d   : > { %v496_v32 = vadd.f32 %v495_v31, %v494_v29 }
 0x12f   : > { %v498_v34 = vadd.f32 %v497_v33, %v496_v32 }
 0x131   : > { %v500_v36 = vadd.f32 %v499_v35, %v498_v34 }
 0x133   : > { %v501_v37 = vrot.slane %v500_v36, 4 }
 0x135   : > { %v502_v38 = vadd.f32 %v501_v37, %v500_v36 }
 0x137   : > { %v503_v39 = vrot.slane %v502_v38, 2 }
 0x139   : > { %v504_v40 = vadd.f32 %v503_v39, %v502_v38 }
 0x13b   : > { %v505_v41 = vrot.slane %v504_v40, 1 }
 0x13d   : > { %v506_v42 = vadd.f32 %v505_v41, %v504_v40 }
 0x13f   : > { %v507_v43 = vmul.f32 0.015625, %v506_v42 }
 0x141   : > { %v508_v44 = vadd.f32 1e-05, %v507_v43 }
 0x143   : > { %751 = vrsqrt.f32 %v508_v44 }
 0x14d   : > { %v752_v45 = vpop.eup %751 }
 0x14e   : > { %v510_v47 = vmul.f32 %v752_v45, %v470_v6  ;;  %v511_v48 = vmul.f32 %v752_v45, %v471_v7  ;;  %v512_v49 = vmul.f32 %v752_v45, %v472_v8  ;;  %v513_v50 = vmul.f32 %v752_v45, %v473_v9 }
 0x14f   : > { %v514_v51 = vmul.f32 %v752_v45, %v474_v10  ;;  %v515_v52 = vmul.f32 %v752_v45, %v475_v11  ;;  %v516_v53 = vmul.f32 %v752_v45, %v476_v12  ;;  %v517_v54 = vmul.f32 %v752_v45, %v477_v13 }
 0x150   : > { %v525_v56 = vmul.f32 %v654_v46, %v510_v47  ;;  %v526_v57 = vmul.f32 %v654_v46, %v511_v48  ;;  %v527_v58 = vmul.f32 %v654_v46, %v512_v49  ;;  %v528_v59 = vmul.f32 %v654_v46, %v513_v50 }
 0x151   : > { %v529_v60 = vmul.f32 %v654_v46, %v514_v51  ;;  %v530_v61 = vmul.f32 %v654_v46, %v515_v52  ;;  %v531_v62 = vmul.f32 %v654_v46, %v516_v53  ;;  %v532_v63 = vmul.f32 %v654_v46, %v517_v54 }
 0x152   : > { %v540_v0 = vadd.f32 %v655_v55, %v525_v56  ;;  %v541_v1 = vadd.f32 %v655_v55, %v526_v57  ;;  %v542_v2 = vadd.f32 %v655_v55, %v527_v58  ;;  %v543_v3 = vadd.f32 %v655_v55, %v528_v59 }
 0x153   : > { %v544_v4 = vadd.f32 %v655_v55, %v529_v60  ;;  %v545_v5 = vadd.f32 %v655_v55, %v530_v61  ;;  %v546_v6 = vadd.f32 %v655_v55, %v531_v62  ;;  %v547_v7 = vadd.f32 %v655_v55, %v532_v63 }
 0x154   : > { %v548_v8 = vmax.f32 %v540_v0, 0.0  ;;  %v549_v9 = vmax.f32 %v541_v1, 0.0  ;;  %v550_v10 = vmax.f32 %v542_v2, 0.0  ;;  %v551_v11 = vmax.f32 %v543_v3, 0.0 }
 0x155   : > { %v552_v12 = vmax.f32 %v544_v4, 0.0  ;;  %v553_v13 = vmax.f32 %v545_v5, 0.0  ;;  %v554_v14 = vmax.f32 %v546_v6, 0.0  ;;  %v555_v15 = vmax.f32 %v547_v7, 0.0 }
 0x156   : > { %556 = vst.msk [vmem:[%s202_s11] sm:$0xff] %vm446_vm0, %v548_v8  ;;  %557 = vst.msk [vmem:[%s202_s11 + $0x8] sm:$0xff] %vm446_vm0, %v549_v9 }
 0x157   : > { %558 = vst.msk [vmem:[%s202_s11 + $0x10] sm:$0xff] %vm446_vm0, %v550_v10  ;;  %559 = vst.msk [vmem:[%s202_s11 + $0x18] sm:$0xff] %vm446_vm0, %v551_v11 }
 0x158   : > { %560 = vst.msk [vmem:[%s202_s11 + $0x20] sm:$0xff] %vm446_vm0, %v552_v12  ;;  %561 = vst.msk [vmem:[%s202_s11 + $0x28] sm:$0xff] %vm446_vm0, %v553_v13 }
 0x159   : > { %562 = vst.msk [vmem:[%s202_s11 + $0x30] sm:$0xff] %vm446_vm0, %v554_v14  ;;  %563 = vst.msk [vmem:[%s202_s11 + $0x38] sm:$0xff] %vm446_vm0, %v555_v15 }
 0x15a PF: > { %s14_s15 = sadd.s32 1, %s759_s15  }
 0x15b   : > { %p11_p4 = scmp.ge.s32.totalorder %s14_s15, 4  }
 0x15d   :  { %13 = sbr.rel (!%p11_p4) target bundleno = 1 (0x1), region = 66 }

// kernel: rsm_forward.24
= control target key start
LH: loop header
LB: loop body
LE: loop exit
PB: predicated region body
PF: predicated region fallthrough
CT: control target
= control target key end

     0   :  { %s851_s15 = smov 0   ;;  %s982_s0 = inlined_call_operand.vmem [shape: bf16[32,512], index: 0, kind: input, shape index: {}]   ;;  %s983_s1 = inlined_call_operand.vmem [shape: bf16[512,64], index: 1, kind: input, shape index: {}]   ;;  %s984_s2 = inlined_call_operand.vmem [shape: f32[1,64], index: 2, kind: input, shape index: {}]   ;;  %s985_s3 = inlined_call_operand.vmem [shape: f32[1,64], index: 3, kind: input, shape index: {}]   ;;  %s986_s4 = inlined_call_operand.vmem [shape: f32[32,64], index: 4, kind: output, shape index: {}]  }
   0x1 LB: > { %s675_s16 = sadd.s32 4294967295, %s824_s15   ;;  %p679_p0 = scmp.ge.s32.totalorder %s824_s15, 1  ;;  %s824_s15 = sphi %s851_s15, %s14_s15  }
   0x2   : > { %p164_p1 = scmp.lt.s32.totalorder %s824_s15, 3 }
   0x4   : > { %p165_p2 = pnand %p679_p0, %p164_p1 }
   0x5   : > { %v778_v0 = vld [vmem:[%s983_s1 + $0x40] sm:$0xff] (!%p165_p2)   ;;  %v782_v4 = vld [vmem:[%s983_s1 + $0x48] sm:$0xff] (!%p165_p2)   ;;  %v786_v8 = vld [vmem:[%s983_s1 + $0x50] sm:$0xff] (!%p165_p2)   ;;  %s680_s25 = sshll.u32 (!%p165_p2), %s675_s16, 1  ;;  %vm567_vm0 = vcmask (!%p165_p2), 523264  }
   0x6   : > { %168 = sbr.rel (%p165_p2) target bundleno = 319 (0x13f), region = 36  ;;  %v779_v1 = vld [vmem:[%s983_s1 + $0xc0] sm:$0xff] (!%p165_p2)   ;;  %726 = vmatprep.subr.bf16.mxu0 (!%p165_p2), %v778_v0  ;;  %v783_v5 = vld [vmem:[%s983_s1 + $0xc8] sm:$0xff] (!%p165_p2)   ;;  %v787_v9 = vld [vmem:[%s983_s1 + $0xd0] sm:$0xff] (!%p165_p2)   ;;  %p192_p3 = scmp.lt.s32.totalorder (!%p165_p2), %s680_s25, 3 }
   0x7   : > { %v780_v2 = vld [vmem:[%s983_s1] sm:$0xff] (!%p165_p2)   ;;  %748 = vmatprep.subr.bf16.mxu1 (!%p165_p2), %v779_v1  ;;  %v784_v6 = vld [vmem:[%s983_s1 + $0x8] sm:$0xff] (!%p165_p2)   ;;  %v788_v10 = vld [vmem:[%s983_s1 + $0x10] sm:$0xff] (!%p165_p2)  }
   0x8   : > { %v781_v3 = vld [vmem:[%s983_s1 + $0x80] sm:$0xff] (!%p165_p2)   ;;  %727 = vmatpush3.bf16.msra.mxu0 (!%p165_p2), %v780_v2  ;;  %v785_v7 = vld [vmem:[%s983_s1 + $0x88] sm:$0xff] (!%p165_p2)   ;;  %v789_v11 = vld [vmem:[%s983_s1 + $0x90] sm:$0xff] (!%p165_p2)  }
   0x9   : > { %749 = vmatpush3.bf16.msra.mxu1 (!%p165_p2), %v781_v3  ;;  %728 = vmatprep.subr.bf16.mxu0 (!%p165_p2), %v782_v4  ;;  %v790_v12 = vld [vmem:[%s983_s1 + $0x58] sm:$0xff] (!%p165_p2)   ;;  %v794_v16 = vld [vmem:[%s983_s1 + $0x60] sm:$0xff] (!%p165_p2)   ;;  %v798_v20 = vld [vmem:[%s983_s1 + $0x68] sm:$0xff] (!%p165_p2)  }
   0xa   : > { %750 = vmatprep.subr.bf16.mxu1 (!%p165_p2), %v783_v5  ;;  %v791_v13 = vld [vmem:[%s983_s1 + $0xd8] sm:$0xff] (!%p165_p2)   ;;  %v795_v17 = vld [vmem:[%s983_s1 + $0xe0] sm:$0xff] (!%p165_p2)   ;;  %v799_v21 = vld [vmem:[%s983_s1 + $0xe8] sm:$0xff] (!%p165_p2)  }
   0xb   : > { %v792_v14 = vld [vmem:[%s983_s1 + $0x18] sm:$0xff] (!%p165_p2)   ;;  %v796_v18 = vld [vmem:[%s983_s1 + $0x20] sm:$0xff] (!%p165_p2)   ;;  %v800_v22 = vld [vmem:[%s983_s1 + $0x28] sm:$0xff] (!%p165_p2)  }
   0xc   : > { %729 = vmatpush3.bf16.msra.mxu0 (!%p165_p2), %v784_v6  ;;  %v793_v15 = vld [vmem:[%s983_s1 + $0x98] sm:$0xff] (!%p165_p2)   ;;  %v797_v19 = vld [vmem:[%s983_s1 + $0xa0] sm:$0xff] (!%p165_p2)   ;;  %v801_v23 = vld [vmem:[%s983_s1 + $0xa8] sm:$0xff] (!%p165_p2)  }
   0xd   : > { %751 = vmatpush3.bf16.msra.mxu1 %v785_v7  ;;  %730 = vmatprep.subr.bf16.mxu0 %v786_v8  ;;  %s988_s25 = smov (!%p192_p3, %s680_s25), 3  ;;  %v802_v24 = vld [vmem:[%s983_s1 + $0x70] sm:$0xff]   ;;  %v806_v28 = vld [vmem:[%s983_s1 + $0x78] sm:$0xff]  }
   0xe   : > { %752 = vmatprep.subr.bf16.mxu1 %v787_v9  ;;  %v803_v25 = vld [vmem:[%s983_s1 + $0xf0] sm:$0xff]   ;;  %s725_s23 = sshll.u32 %s988_s25, 4  ;;  %v807_v29 = vld [vmem:[%s983_s1 + $0xf8] sm:$0xff]   ;;  %s684_s17 = sshll.u32 %s988_s25, 3 }
   0xf   : > { %v804_v26 = vld [vmem:[%s983_s1 + $0x30] sm:$0xff]   ;;  %s196_s7 = scalar_lea.vmem %s982_s0, %s725_s23  ;;  %v808_v30 = vld [vmem:[%s983_s1 + $0x38] sm:$0xff]   ;;  %s202_s20 = scalar_lea.vmem %s986_s4, %s684_s17 }
  0x10   : > { %731 = vmatpush3.bf16.msra.mxu0 %v788_v10  ;;  %v805_v27 = vld [vmem:[%s983_s1 + $0xb0] sm:$0xff]   ;;  %v809_v31 = vld [vmem:[%s983_s1 + $0xb8] sm:$0xff]  }
  0x11   : > { %753 = vmatpush3.bf16.msra.mxu1 %v789_v11  ;;  %732 = vmatprep.subr.bf16.mxu0 %v790_v12  ;;  %v810_v32 = vld [vmem:[%s196_s7] ss:$16 sps:$4 sm:$0xff]   ;;  %v812_v33 = vld [vmem:[%s196_s7 + $0x4] ss:$16 sps:$4 sm:$0xff]   ;;  %v813_v34 = vld [vmem:[%s196_s7 + $0x8] ss:$16 sps:$4 sm:$0xff]  }
  0x12   : > { %754 = vmatprep.subr.bf16.mxu1 %v791_v13  ;;  %v815_v35 = vld [vmem:[%s196_s7 + $0xc] ss:$16 sps:$4 sm:$0xff]   ;;  %517 = vmatprep.mubr.bf16.mxu0 %v812_v33  ;;  %v721_v12 = vld [vmem:[%s984_s2] ss:$0 sm:$0xff] }
  0x13   : > { %558 = vmatprep.mubr.bf16.mxu1 %v815_v35 }
  0x14   : > { %733 = vmatpush3.bf16.msra.mxu0 %v792_v14 }
  0x15   : > { %755 = vmatpush3.bf16.msra.mxu1 %v793_v15  ;;  %734 = vmatprep.subr.bf16.mxu0 %v794_v16  ;;  %v722_v15 = vld [vmem:[%s985_s3] ss:$0 sm:$0xff] }
  0x16   : > { %756 = vmatprep.subr.bf16.mxu1 %v795_v17 }
  0x18   : > { %735 = vmatpush3.bf16.msra.mxu0 %v796_v18 }
  0x19   : > { %757 = vmatpush3.bf16.msra.mxu1 %v797_v19  ;;  %736 = vmatprep.subr.bf16.mxu0 %v798_v20 }
  0x1a   : > { %758 = vmatprep.subr.bf16.mxu1 %v799_v21 }
  0x1c   : > { %737 = vmatpush3.bf16.msra.mxu0 %v800_v22 }
  0x1d   : > { %759 = vmatpush3.bf16.msra.mxu1 %v801_v23  ;;  %738 = vmatprep.subr.bf16.mxu0 %v802_v24 }
  0x1e   : > { %760 = vmatprep.subr.bf16.mxu1 %v803_v25 }
  0x20   : > { %739 = vmatpush3.bf16.msra.mxu0 %v804_v26 }
  0x21   : > { %761 = vmatpush3.bf16.msra.mxu1 %v805_v27  ;;  %740 = vmatprep.subr.bf16.mxu0 %v806_v28 }
  0x22   : > { %762 = vmatprep.subr.bf16.mxu1 %v807_v29 }
  0x24   : > { %741 = vmatpush3.bf16.msra.mxu0 %v808_v30 }
  0x25   : > { %763 = vmatpush3.bf16.msra.mxu1 %v809_v31 }
  0x27   : > { %518 = vmatmul.mubr.bf16.vlgmr.msra.gmra.mrb[0].mxu0 %v810_v32 }
  0x28   : > { %559 = vmatmul.mubr.bf16.vlgmr.msra.gmra.mrb[0].mxu1 %v813_v34 }
  0xfa   : > { %v742_v36 = vpop.f32.mrb[0].mxu0 }
  0xfb   : > { %v764_v37 = vpop.f32.mrb[0].mxu1  ;;  %v743_v38 = vpop.f32.mrb[1].mxu0 }
  0xfc   : > { %v744_v39 = vadd.f32 %v743_v38, %v742_v36  ;;  %v765_v40 = vpop.f32.mrb[1].mxu1  ;;  %v745_v41 = vpop.f32.mrb[2].mxu0 }
  0xfd   : > { %v766_v42 = vadd.f32 %v765_v40, %v764_v37  ;;  %v767_v43 = vpop.f32.mrb[2].mxu1  ;;  %v746_v44 = vpop.f32.mrb[3].mxu0 }
  0xfe   : > { %v747_v45 = vadd.f32 %v746_v44, %v745_v41  ;;  %v768_v46 = vpop.f32.mrb[3].mxu1 }
  0xff   : > { %v561_v47 = vadd.f32 %v766_v42, %v744_v39  ;;  %v769_v48 = vadd.f32 %v768_v46, %v767_v43 }
 0x101   : > { %v564_v49 = vadd.f32 %v769_v48, %v747_v45  ;;  %v568_v50 = vsel %vm567_vm0, %v561_v47, 0.0 }
 0x103   : > { %v569_v51 = vsel %vm567_vm0, %v564_v49, 0.0 }
 0x104   : > { %v570_v52 = vadd.f32 %v569_v51, %v568_v50 }
 0x106   : > { %v571_v53 = vrot.slane %v570_v52, 4 }
 0x108   : > { %v572_v54 = vadd.f32 %v571_v53, %v570_v52 }
 0x10a   : > { %v573_v55 = vrot.slane %v572_v54, 2 }
 0x10c   : > { %v574_v56 = vadd.f32 %v573_v55, %v572_v54 }
 0x10e   : > { %v575_v57 = vrot.slane %v574_v56, 1 }
 0x110   : > { %v576_v58 = vadd.f32 %v575_v57, %v574_v56 }
 0x112   : > { %v578_v59 = vmul.f32 0.0625, %v576_v58 }
 0x114   : > { %v579_v60 = vsub.f32 %v561_v47, %v578_v59  ;;  %v580_v61 = vsub.f32 %v564_v49, %v578_v59 }
 0x116   : > { %v581_v62 = vmul.f32 %v579_v60, %v579_v60  ;;  %v582_v63 = vmul.f32 %v580_v61, %v580_v61 }
 0x118   : > { %v583_v0 = vsel %vm567_vm0, %v581_v62, 0.0  ;;  %v584_v1 = vsel %vm567_vm0, %v582_v63, 0.0 }
 0x119   : > { %v585_v2 = vadd.f32 %v584_v1, %v583_v0 }
 0x11b   : > { %v586_v3 = vrot.slane %v585_v2, 4 }
 0x11d   : > { %v587_v4 = vadd.f32 %v586_v3, %v585_v2 }
 0x11f   : > { %v588_v5 = vrot.slane %v587_v4, 2 }
 0x121   : > { %v589_v6 = vadd.f32 %v588_v5, %v587_v4 }
 0x123   : > { %v590_v7 = vrot.slane %v589_v6, 1 }
 0x125   : > { %v591_v8 = vadd.f32 %v590_v7, %v589_v6 }
 0x127   : > { %v592_v9 = vmul.f32 0.0625, %v591_v8 }
 0x129   : > { %v593_v10 = vadd.f32 1e-05, %v592_v9 }
 0x12b   : > { %816 = vrsqrt.f32 %v593_v10 }
 0x135   : > { %v817_v11 = vpop.eup %816 }
 0x136   : > { %v595_v13 = vmul.f32 %v817_v11, %v579_v60  ;;  %v596_v14 = vmul.f32 %v817_v11, %v580_v61 }
 0x138   : > { %v604_v16 = vmul.f32 %v721_v12, %v595_v13  ;;  %v605_v17 = vmul.f32 %v721_v12, %v596_v14 }
 0x13a   : > { %v613_v18 = vadd.f32 %v722_v15, %v604_v16  ;;  %v614_v19 = vadd.f32 %v722_v15, %v605_v17 }
 0x13c   : > { %v615_v20 = vmax.f32 %v613_v18, 0.0  ;;  %v616_v21 = vmax.f32 %v614_v19, 0.0 }
 0x13e   : > { %617 = vst.msk [vmem:[%s202_s20] sm:$0xff] %vm567_vm0, %v615_v20  ;;  %618 = vst.msk [vmem:[%s202_s20 + $0x8] sm:$0xff] %vm567_vm0, %v616_v21 }
 0x13f PF: > { %s14_s15 = sadd.s32 1, %s824_s15  }
 0x140   : > { %p11_p4 = scmp.ge.s32.totalorder %s14_s15, 4  }
 0x142   :  { %13 = sbr.rel (!%p11_p4) target bundleno = 1 (0x1), region = 66 }

// kernel: rsm_forward.25
= control target key start
LH: loop header
LB: loop body
LE: loop exit
PB: predicated region body
PF: predicated region fallthrough
CT: control target
= control target key end

     0   :  { %s890_s12 = smov 0   ;;  %s1034_s0 = inlined_call_operand.vmem [shape: bf16[32,576], index: 0, kind: input, shape index: {}]   ;;  %s1035_s1 = inlined_call_operand.vmem [shape: bf16[576,64], index: 1, kind: input, shape index: {}]   ;;  %s1036_s2 = inlined_call_operand.vmem [shape: f32[1,64], index: 2, kind: input, shape index: {}]   ;;  %s1037_s3 = inlined_call_operand.vmem [shape: f32[32,64], index: 3, kind: output, shape index: {}]  }
   0x1 LB: > { %s691_s13 = sadd.s32 4294967295, %s866_s12   ;;  %p695_p0 = scmp.ge.s32.totalorder %s866_s12, 1  ;;  %s866_s12 = sphi %s890_s12, %s13_s12  }
   0x2   : > { %p139_p1 = scmp.lt.s32.totalorder %s866_s12, 3 }
   0x4   : > { %p140_p2 = pnand %p695_p0, %p139_p1 }
   0x5   : > { %v817_v0 = vld [vmem:[%s1035_s1 + $0x40] sm:$0xff] (!%p140_p2)   ;;  %v821_v4 = vld [vmem:[%s1035_s1 + $0x48] sm:$0xff] (!%p140_p2)   ;;  %v825_v8 = vld [vmem:[%s1035_s1 + $0x50] sm:$0xff] (!%p140_p2)   ;;  %s696_s17 = sshll.u32 (!%p140_p2), %s691_s13, 1  ;;  %v868_v33 = vmov (!%p140_p2), 0.0   ;;  %vm869_vm0 = vmmov (!%p140_p2), 0  }
   0x6   : > { %143 = sbr.rel (%p140_p2) target bundleno = 273 (0x111), region = 32  ;;  %v818_v1 = vld [vmem:[%s1035_s1] sm:$0xff] (!%p140_p2)   ;;  %745 = vmatprep.subr.bf16.mxu0 (!%p140_p2), %v817_v0  ;;  %v822_v5 = vld [vmem:[%s1035_s1 + $0x8] sm:$0xff] (!%p140_p2)   ;;  %v826_v9 = vld [vmem:[%s1035_s1 + $0x10] sm:$0xff] (!%p140_p2)   ;;  %p165_p3 = scmp.lt.s32.totalorder (!%p140_p2), %s696_s17, 3  ;;  %vm504_vm1 = vcmask (!%p140_p2), 523264  }
   0x7   : > { %v819_v2 = vld [vmem:[%s1035_s1 + $0xc0] sm:$0xff] (!%p140_p2)   ;;  %746 = vmatpush3.bf16.msra.mxu0 (!%p140_p2), %v818_v1  ;;  %v823_v6 = vld [vmem:[%s1035_s1 + $0xc8] sm:$0xff] (!%p140_p2)   ;;  %v827_v10 = vld [vmem:[%s1035_s1 + $0xd0] sm:$0xff] (!%p140_p2)  }
   0x8   : > { %v820_v3 = vld [vmem:[%s1035_s1 + $0x80] sm:$0xff] (!%p140_p2)   ;;  %767 = vmatprep.subr.bf16.mxu1 (!%p140_p2), %v819_v2  ;;  %747 = vmatprep.subr.bf16.mxu0 (!%p140_p2), %v821_v4  ;;  %v824_v7 = vld [vmem:[%s1035_s1 + $0x88] sm:$0xff] (!%p140_p2)   ;;  %v828_v11 = vld [vmem:[%s1035_s1 + $0x90] sm:$0xff] (!%p140_p2)  }
   0x9   : > { %768 = vmatpush3.bf16.msra.mxu1 (!%p140_p2), %v820_v3  ;;  %v829_v12 = vld [vmem:[%s1035_s1 + $0x58] sm:$0xff] (!%p140_p2)   ;;  %v833_v16 = vld [vmem:[%s1035_s1 + $0x60] sm:$0xff] (!%p140_p2)   ;;  %v837_v20 = vld [vmem:[%s1035_s1 + $0x68] sm:$0xff] (!%p140_p2)  }
   0xa   : > { %769 = vmatprep.subr.bf16.mxu1 (!%p140_p2), %v823_v6  ;;  %v830_v13 = vld [vmem:[%s1035_s1 + $0x18] sm:$0xff] (!%p140_p2)   ;;  %v834_v17 = vld [vmem:[%s1035_s1 + $0x20] sm:$0xff] (!%p140_p2)   ;;  %v838_v21 = vld [vmem:[%s1035_s1 + $0x28] sm:$0xff] (!%p140_p2)  }
   0xb   : > { %748 = vmatpush3.bf16.msra.mxu0 (!%p140_p2), %v822_v5  ;;  %v831_v14 = vld [vmem:[%s1035_s1 + $0xd8] sm:$0xff] (!%p140_p2)   ;;  %v835_v18 = vld [vmem:[%s1035_s1 + $0xe0] sm:$0xff] (!%p140_p2)   ;;  %v839_v22 = vld [vmem:[%s1035_s1 + $0xe8] sm:$0xff] (!%p140_p2)  }
   0xc   : > { %749 = vmatprep.subr.bf16.mxu0 (!%p140_p2), %v825_v8  ;;  %v832_v15 = vld [vmem:[%s1035_s1 + $0x98] sm:$0xff] (!%p140_p2)   ;;  %v836_v19 = vld [vmem:[%s1035_s1 + $0xa0] sm:$0xff] (!%p140_p2)   ;;  %v840_v23 = vld [vmem:[%s1035_s1 + $0xa8] sm:$0xff] (!%p140_p2)  }
   0xd   : > { %770 = vmatpush3.bf16.msra.mxu1 %v824_v7  ;;  %s1039_s17 = smov (!%p165_p3, %s696_s17), 3  ;;  %v841_v24 = vld [vmem:[%s1035_s1 + $0x70] sm:$0xff]   ;;  %v845_v28 = vld [vmem:[%s1035_s1 + $0x78] sm:$0xff]   ;;  %v855_v37 = vld [vmem:[%s1035_s1 + $0x100] sm:$0xff]  }
   0xe   : > { %771 = vmatprep.subr.bf16.mxu1 %v827_v10  ;;  %s806_s14 = smul.u32 20, %s1039_s17  ;;  %v842_v25 = vld [vmem:[%s1035_s1 + $0x30] sm:$0xff]   ;;  %v846_v29 = vld [vmem:[%s1035_s1 + $0x38] sm:$0xff]   ;;  %v856_v38 = vld [vmem:[%s1035_s1 + $0x108] sm:$0xff]   ;;  %s699_s18 = sshll.u32 %s1039_s17, 3 }
   0xf   : > { %750 = vmatpush3.bf16.msra.mxu0 %v826_v9  ;;  %v843_v26 = vld [vmem:[%s1035_s1 + $0xf0] sm:$0xff]   ;;  %v847_v30 = vld [vmem:[%s1035_s1 + $0xf8] sm:$0xff]   ;;  %v700_v43 = vld [vmem:[%s1036_s2] ss:$0 sm:$0xff]  ;;  %s175_s21 = scalar_lea.vmem %s1037_s3, %s699_s18 }
  0x10   : > { %751 = vmatprep.subr.bf16.mxu0 %v829_v12  ;;  %v844_v27 = vld [vmem:[%s1035_s1 + $0xb0] sm:$0xff]   ;;  %s993_s13 = scalar_lea.vmem %s1034_s0, %s806_s14  ;;  %v851_v34 = vld [vmem:[%s1035_s1 + $0xb8] sm:$0xff]  }
  0x11   : > { %772 = vmatpush3.bf16.msra.mxu1 %v828_v11  ;;  %v848_v31 = vld [vmem:[%s993_s13] ss:$20 sps:$4 sm:$0xff]   ;;  %v850_v32 = vld [vmem:[%s993_s13 + $0x4] ss:$20 sps:$4 sm:$0xff]   ;;  %v852_v35 = vld [vmem:[%s993_s13 + $0x8] ss:$20 sps:$4 sm:$0xff]  }
  0x12   : > { %773 = vmatprep.subr.bf16.mxu1 %v831_v14  ;;  %540 = vmatprep.mubr.bf16.mxu0 %v850_v32  ;;  %v854_v36 = vld [vmem:[%s993_s13 + $0xc] ss:$20 sps:$4 sm:$0xff]   ;;  %v857_v39 = vld [vmem:[%s1035_s1 + $0x110] sm:$0xff]   ;;  %v858_v40 = vld [vmem:[%s1035_s1 + $0x118] sm:$0xff]  }
  0x13   : > { %752 = vmatpush3.bf16.msra.mxu0 %v830_v13  ;;  %581 = vmatprep.mubr.bf16.mxu1 %v854_v36  ;;  %v859_v41 = vld [vmem:[%s993_s13 + $0x10] ss:$20 sps:$4 sm:$0xff]  }
  0x14   : > { %753 = vmatprep.subr.bf16.mxu0 %v833_v16 }
  0x15   : > { %774 = vmatpush3.bf16.msra.mxu1 %v832_v15 }
  0x16   : > { %775 = vmatprep.subr.bf16.mxu1 %v835_v18 }
  0x17   : > { %754 = vmatpush3.bf16.msra.mxu0 %v834_v17 }
  0x18   : > { %755 = vmatprep.subr.bf16.mxu0 %v837_v20 }
  0x19   : > { %776 = vmatpush3.bf16.msra.mxu1 %v836_v19 }
  0x1a   : > { %777 = vmatprep.subr.bf16.mxu1 %v839_v22 }
  0x1b   : > { %756 = vmatpush3.bf16.msra.mxu0 %v838_v21 }
  0x1c   : > { %757 = vmatprep.subr.bf16.mxu0 %v841_v24 }
  0x1d   : > { %778 = vmatpush3.bf16.msra.mxu1 %v840_v23 }
  0x1e   : > { %779 = vmatprep.subr.bf16.mxu1 %v843_v26 }
  0x1f   : > { %758 = vmatpush3.bf16.msra.mxu0 %v842_v25 }
  0x20   : > { %759 = vmatprep.subr.bf16.mxu0 %v845_v28 }
  0x21   : > { %780 = vmatpush3.bf16.msra.mxu1 %v844_v27 }
  0x22   : > { %781 = vmatprep.subr.bf16.mxu1 %v847_v30 }
  0x23   : > { %760 = vmatpush3.bf16.msra.mxu0 %v846_v29 }
  0x24   : > { %794 = vmatprep.subr.bf16.mxu0 %v868_v33 }
  0x25   : > { %782 = vmatpush3.bf16.msra.mxu1 %v851_v34 }
  0x26   : > { %541 = vmatmul.mubr.bf16.vlgmr.msra.gmra.mrb[0].mxu0 %v848_v31 }
  0x27   : > { %802 = vmatprep.mubr.msk.bf16.mxu0 %vm869_vm0, %v868_v33  ;;  %795 = vmatpush3.bf16.msra.mxu0 %v855_v37 }
  0x28   : > { %582 = vmatmul.mubr.bf16.vlgmr.msra.gmra.mrb[0].mxu1 %v852_v35  ;;  %796 = vmatprep.subr.bf16.mxu0 %v868_v33 }
  0x2b   : > { %797 = vmatpush3.bf16.msra.mxu0 %v856_v38 }
  0x2c   : > { %798 = vmatprep.subr.bf16.mxu0 %v868_v33 }
  0x2f   : > { %799 = vmatpush3.bf16.msra.mxu0 %v857_v39 }
  0x30   : > { %800 = vmatprep.subr.bf16.mxu0 %v868_v33 }
  0x33   : > { %801 = vmatpush3.bf16.msra.mxu0 %v858_v40 }
  0x36   : > { %803 = vmatmul.mubr.msk.bf16.vlgmr.msra.gmra.mrb[4].mxu0 %vm504_vm1, %v859_v41 }
  0xf9   : > { %v761_v42 = vpop.f32.mrb[0].mxu0 }
  0xfa   : > { %v762_v44 = vpop.f32.mrb[1].mxu0 }
  0xfb   : > { %v763_v45 = vadd.f32 %v762_v44, %v761_v42  ;;  %v764_v46 = vpop.f32.mrb[2].mxu0  ;;  %v783_v47 = vpop.f32.mrb[0].mxu1 }
  0xfc   : > { %v765_v48 = vpop.f32.mrb[3].mxu0  ;;  %v784_v51 = vpop.f32.mrb[1].mxu1 }
  0xfd   : > { %v543_v49 = vadd.f32 %v763_v45, %v700_v43  ;;  %v766_v50 = vadd.f32 %v765_v48, %v764_v46  ;;  %v785_v52 = vadd.f32 %v784_v51, %v783_v47  ;;  %v786_v53 = vpop.f32.mrb[2].mxu1 }
  0xfe   : > { %v787_v55 = vpop.f32.mrb[3].mxu1 }
  0xff   : > { %v546_v54 = vadd.f32 %v766_v50, %v700_v43  ;;  %v788_v56 = vadd.f32 %v787_v55, %v786_v53  ;;  %v584_v57 = vadd.f32 %v785_v52, %v543_v49 }
 0x101   : > { %v587_v58 = vadd.f32 %v788_v56, %v546_v54 }
 0x109   : > { %v624_v59 = vpop.f32.mrb[4].mxu0 }
 0x10a   : > { %v625_v60 = vadd.f32 %v624_v59, %v584_v57  ;;  %v804_v61 = vpop.f32.mrb[5].mxu0 }
 0x10b   : > { %v627_v62 = vpop.f32.mrb[6].mxu0 }
 0x10c   : > { %v631_v63 = vmax.f32 %v625_v60, 0.0  ;;  %v628_v0 = vadd.f32 %v627_v62, %v587_v58  ;;  %v805_v1 = vpop.f32.mrb[7].mxu0 }
 0x10e   : > { %633 = vst.msk [vmem:[%s175_s21] sm:$0xff] %vm504_vm1, %v631_v63  ;;  %v632_v2 = vmax.f32 %v628_v0, 0.0 }
 0x110   : > { %634 = vst.msk [vmem:[%s175_s21 + $0x8] sm:$0xff] %vm504_vm1, %v632_v2 }
 0x111 PF: > { %s13_s12 = sadd.s32 1, %s866_s12  }
 0x112   : > { %p10_p4 = scmp.ge.s32.totalorder %s13_s12, 4  }
 0x114   :  { %12 = sbr.rel (!%p10_p4) target bundleno = 1 (0x1), region = 62 }

// kernel: rsm_forward.28
= control target key start
LH: loop header
LB: loop body
LE: loop exit
PB: predicated region body
PF: predicated region fallthrough
CT: control target
= control target key end

     0   :  { %s663_s21 = smov 0   ;;  %s726_s0 = inlined_call_operand.vmem [shape: f32[32,64], index: 0, kind: input, shape index: {}]   ;;  %s727_s1 = inlined_call_operand.vmem [shape: f32[32,64], index: 1, kind: input, shape index: {}]   ;;  %s728_s2 = inlined_call_operand.vmem [shape: f32[64,4], index: 2, kind: input, shape index: {}]   ;;  %s729_s3 = inlined_call_operand.vmem [shape: f32[1,4], index: 3, kind: input, shape index: {}]   ;;  %s730_s4 = inlined_call_operand.vmem [shape: f32[4,64], index: 4, kind: input, shape index: {}]   ;;  %s731_s5 = inlined_call_operand.vmem [shape: f32[1,64], index: 5, kind: input, shape index: {}]   ;;  %s732_s6 = inlined_call_operand.vmem [shape: f32[32,64], index: 6, kind: output, shape index: {}]  }
   0x1 LB: > { %s538_s22 = sadd.s32 4294967295, %s623_s21   ;;  %p542_p0 = scmp.ge.s32.totalorder %s623_s21, 1  ;;  %s623_s21 = sphi %s663_s21, %s16_s21  }
   0x2   : > { %p224_p1 = scmp.lt.s32.totalorder %s623_s21, 3 }
   0x4   : > { %p225_p2 = pnand %p542_p0, %p224_p1 }
   0x5   : > { %v289_v0 = vld [vmem:[%s728_s2] sm:$0xff] (!%p225_p2)  ;;  %v290_v1 = vld [vmem:[%s728_s2 + $0x8] sm:$0xff] (!%p225_p2)  ;;  %v291_v2 = vld [vmem:[%s728_s2 + $0x10] sm:$0xff] (!%p225_p2)  ;;  %v625_v3 = vmov (!%p225_p2), 0.0|0.0   ;;  %vm626_vm0 = vmmov (!%p225_p2), 0   ;;  %v627_v6 = vmov (!%p225_p2), 0.0   ;;  %v458_v38 = vlaneseq (!%p225_p2) }
   0x6   : > { %228 = sbr.rel (%p225_p2) target bundleno = 495 (0x1ef), region = 44  ;;  %590 = vmatprep.subr.bf16.mxu0 (!%p225_p2), %v625_v3  ;;  %v591_v4 = vpack.c.bf16 (!%p225_p2), %v290_v1, %v289_v0  ;;  %v292_v5 = vld [vmem:[%s728_s2 + $0x18] sm:$0xff] (!%p225_p2)  ;;  %582 = vmatprep.mubr.msk.f32.mxu0 (!%p225_p2), %vm626_vm0, %v627_v6  ;;  %s543_s7 = sshll.u32 (!%p225_p2), %s538_s22, 1  ;;  %v293_v8 = vld [vmem:[%s728_s2 + $0x20] sm:$0xff] (!%p225_p2)  ;;  %v294_v9 = vld [vmem:[%s728_s2 + $0x28] sm:$0xff] (!%p225_p2)  ;;  %vm279_vm1 = vcmask (!%p225_p2), 523264  }
   0x7   : > { %p260_p3 = scmp.lt.s32.totalorder (!%p225_p2), %s543_s7, 3  ;;  %585 = vmatprep.subr.mxu1 (!%p225_p2), %v627_v6  ;;  %587 = vmatprep.mubr.msk.f32.mxu1 (!%p225_p2), %vm626_vm0, %v627_v6  ;;  %v594_v7 = vpack.c.bf16 (!%p225_p2), %v292_v5, %v291_v2  ;;  %v597_v10 = vpack.c.bf16 (!%p225_p2), %v294_v9, %v293_v8  ;;  %v295_v11 = vld [vmem:[%s728_s2 + $0x30] sm:$0xff] (!%p225_p2)  ;;  %v296_v12 = vld [vmem:[%s728_s2 + $0x38] sm:$0xff] (!%p225_p2)  ;;  %v372_v25 = vld [vmem:[%s730_s4] sm:$0xf] (!%p225_p2)  ;;  %vm378_vm2 = vcmask (!%p225_p2), 1043456  }
   0x8   : > { %592 = vmatpush3.bf16.msra.mxu0 (!%p225_p2), %v591_v4  ;;  %v600_v18 = vpack.c.bf16 (!%p225_p2), %v296_v12, %v295_v11  ;;  %586 = vmatpush3.msk.msra.mxu1 (!%p225_p2), %vm378_vm2, %v372_v25  ;;  %v297_v26 = vld [vmem:[%s729_s3] sm:$0x1] (!%p225_p2)  ;;  %vm374_vm3 = vcmask (!%p225_p2), 31744   ;;  %v459_v39 = vshrl.u32 (!%p225_p2), %v458_v38, 7 }
   0x9   : > { %593 = vmatprep.subr.bf16.mxu0 (!%p225_p2), %v625_v3  ;;  %v373_v31 = vld [vmem:[%s731_s5] sm:$0x1] (!%p225_p2) }
   0xa   : > { %v460_v40 = vsub.s32 (!%p225_p2), 0, %v459_v39 }
   0xc   : > { %595 = vmatpush3.bf16.msra.mxu0 (!%p225_p2), %v594_v7 }
   0xd   : > { %s734_s7 = smov (!%p260_p3, %s543_s7), 3  ;;  %596 = vmatprep.subr.bf16.mxu0 %v625_v3 }
   0xe   : > { %s689_s12 = sshll.u32 %s734_s7, 3 }
   0xf   : > { %s263_s17 = scalar_lea.vmem %s726_s0, %s689_s12  ;;  %s269_s29 = scalar_lea.vmem %s727_s1, %s689_s12 }
  0x10   : > { %v277_v13 = vld [vmem:[%s263_s17] sm:$0xff]  ;;  %v278_v14 = vld [vmem:[%s263_s17 + $0x8] sm:$0xff]  ;;  %598 = vmatpush3.bf16.msra.mxu0 %v597_v10  ;;  %s275_s8 = scalar_lea.vmem %s732_s6, %s689_s12 }
  0x11   : > { %v280_v15 = vsel %vm279_vm1, %v277_v13, -inf  ;;  %v281_v16 = vsel %vm279_vm1, %v278_v14, -inf  ;;  %599 = vmatprep.subr.bf16.mxu0 %v625_v3  ;;  %v464_v43 = vld [vmem:[%s269_s29] sm:$0xff]  ;;  %v465_v44 = vld [vmem:[%s269_s29 + $0x8] sm:$0xff] }
  0x12   : > { %v282_v17 = vmax.f32 %v280_v15, %v281_v16 }
  0x14   : > { %v283_v19 = vrot.slane %v282_v17, 4  ;;  %601 = vmatpush3.bf16.msra.mxu0 %v600_v18 }
  0x16   : > { %v284_v20 = vmax.f32 %v282_v17, %v283_v19 }
  0x18   : > { %v285_v21 = vrot.slane %v284_v20, 2 }
  0x1a   : > { %v286_v22 = vmax.f32 %v284_v20, %v285_v21 }
  0x1c   : > { %v287_v23 = vrot.slane %v286_v22, 1 }
  0x1e   : > { %v288_v24 = vmax.f32 %v286_v22, %v287_v23 }
  0x20   : > { %583 = vmatmul.mubr.msk.f32.vlgmr.msra.gmra.mrb[0].mxu0 %vm279_vm1, %v288_v24 }
  0xf3   : > { %v367_v27 = vpop.f32.mrb[0].mxu0 }
  0xf4   : > { %v368_v28 = vadd.f32 %v367_v27, %v297_v26  ;;  %v584_v29 = vpop.f32.mrb[1].mxu0 }
  0xf6   : > { %v371_v30 = vmax.f32 %v368_v28, 0.0 }
  0xf8   : > { %588 = vmatmul.mubr.msk.f32.vlgmr.msra.gmra.mrb[0].mxu1 %vm374_vm3, %v371_v30 }
 0x1cb   : > { %v448_v32 = vpop.f32.mrb[0].mxu1 }
 0x1cc   : > { %v449_v33 = vadd.f32 %v448_v32, %v373_v31  ;;  %v589_v34 = vpop.f32.mrb[1].mxu1 }
 0x1ce   : > { %v552_v35 = vmul.f32 -1.442695, %v449_v33 }
 0x1d0   : > { %613 = vpow2.f32 %v552_v35 }
 0x1da   : > { %v614_v36 = vpop.eup %613 }
 0x1db   : > { %v455_v37 = vadd.f32 1.0, %v614_v36 }
 0x1dd   : > { %615 = vrcp.f32 %v455_v37 }
 0x1e7   : > { %v616_v41 = vpop.eup %615 }
 0x1e8   : > { %v461_v42 = vrot.slane %v616_v41, %v460_v40 }
 0x1ea   : > { %v462_v45 = vmul.f32 %v461_v42, %v277_v13  ;;  %v463_v46 = vmul.f32 %v461_v42, %v278_v14 }
 0x1ec   : > { %v466_v47 = vadd.f32 %v464_v43, %v462_v45  ;;  %v467_v48 = vadd.f32 %v465_v44, %v463_v46 }
 0x1ee   : > { %468 = vst.msk [vmem:[%s275_s8] sm:$0xff] %vm279_vm1, %v466_v47  ;;  %469 = vst.msk [vmem:[%s275_s8 + $0x8] sm:$0xff] %vm279_vm1, %v467_v48 }
 0x1ef PF: > { %s16_s21 = sadd.s32 1, %s623_s21  }
 0x1f0   : > { %p13_p4 = scmp.ge.s32.totalorder %s16_s21, 4  }
 0x1f2   :  { %15 = sbr.rel (!%p13_p4) target bundleno = 1 (0x1), region = 77 }

// kernel: rsm_forward.33
= control target key start
LH: loop header
LB: loop body
LE: loop exit
PB: predicated region body
PF: predicated region fallthrough
CT: control target
= control target key end

     0   :  { %s965_s15 = smov 0   ;;  %s1109_s0 = inlined_call_operand.vmem [shape: bf16[32,576], index: 0, kind: input, shape index: {}]   ;;  %s1110_s1 = inlined_call_operand.vmem [shape: bf16[576,64], index: 1, kind: input, shape index: {}]   ;;  %s1111_s2 = inlined_call_operand.vmem [shape: f32[1,64], index: 2, kind: input, shape index: {}]   ;;  %s1112_s3 = inlined_call_operand.vmem [shape: f32[1,64], index: 3, kind: input, shape index: {}]   ;;  %s1113_s4 = inlined_call_operand.vmem [shape: f32[32,64], index: 4, kind: output, shape index: {}]  }
   0x1 LB: > { %s758_s16 = sadd.s32 4294967295, %s936_s15   ;;  %p762_p0 = scmp.ge.s32.totalorder %s936_s15, 1  ;;  %s936_s15 = sphi %s965_s15, %s14_s15  }
   0x2   : > { %p164_p1 = scmp.lt.s32.totalorder %s936_s15, 3 }
   0x4   : > { %p165_p2 = pnand %p762_p0, %p164_p1 }
   0x5   : > { %v885_v0 = vld [vmem:[%s1110_s1 + $0x40] sm:$0xff] (!%p165_p2)   ;;  %v889_v4 = vld [vmem:[%s1110_s1 + $0x48] sm:$0xff] (!%p165_p2)   ;;  %v893_v8 = vld [vmem:[%s1110_s1 + $0x50] sm:$0xff] (!%p165_p2)   ;;  %s763_s23 = sshll.u32 (!%p165_p2), %s758_s16, 1  ;;  %v938_v34 = vmov (!%p165_p2), 0.0   ;;  %vm939_vm0 = vmmov (!%p165_p2), 0  }
   0x6   : > { %168 = sbr.rel (%p165_p2) target bundleno = 331 (0x14b), region = 36  ;;  %v886_v1 = vld [vmem:[%s1110_s1 + $0xc0] sm:$0xff] (!%p165_p2)   ;;  %813 = vmatprep.subr.bf16.mxu0 (!%p165_p2), %v885_v0  ;;  %v890_v5 = vld [vmem:[%s1110_s1 + $0xc8] sm:$0xff] (!%p165_p2)   ;;  %v894_v9 = vld [vmem:[%s1110_s1 + $0xd0] sm:$0xff] (!%p165_p2)   ;;  %p192_p3 = scmp.lt.s32.totalorder (!%p165_p2), %s763_s23, 3  ;;  %vm524_vm1 = vcmask (!%p165_p2), 523264  }
   0x7   : > { %v887_v2 = vld [vmem:[%s1110_s1] sm:$0xff] (!%p165_p2)   ;;  %835 = vmatprep.subr.bf16.mxu1 (!%p165_p2), %v886_v1  ;;  %v891_v6 = vld [vmem:[%s1110_s1 + $0x8] sm:$0xff] (!%p165_p2)   ;;  %v895_v10 = vld [vmem:[%s1110_s1 + $0x10] sm:$0xff] (!%p165_p2)  }
   0x8   : > { %v888_v3 = vld [vmem:[%s1110_s1 + $0x80] sm:$0xff] (!%p165_p2)   ;;  %814 = vmatpush3.bf16.msra.mxu0 (!%p165_p2), %v887_v2  ;;  %v892_v7 = vld [vmem:[%s1110_s1 + $0x88] sm:$0xff] (!%p165_p2)   ;;  %v896_v11 = vld [vmem:[%s1110_s1 + $0x90] sm:$0xff] (!%p165_p2)  }
   0x9   : > { %836 = vmatpush3.bf16.msra.mxu1 (!%p165_p2), %v888_v3  ;;  %815 = vmatprep.subr.bf16.mxu0 (!%p165_p2), %v889_v4  ;;  %v897_v12 = vld [vmem:[%s1110_s1 + $0x58] sm:$0xff] (!%p165_p2)   ;;  %v901_v16 = vld [vmem:[%s1110_s1 + $0x60] sm:$0xff] (!%p165_p2)   ;;  %v905_v20 = vld [vmem:[%s1110_s1 + $0x68] sm:$0xff] (!%p165_p2)  }
   0xa   : > { %837 = vmatprep.subr.bf16.mxu1 (!%p165_p2), %v890_v5  ;;  %v898_v13 = vld [vmem:[%s1110_s1 + $0xd8] sm:$0xff] (!%p165_p2)   ;;  %v902_v17 = vld [vmem:[%s1110_s1 + $0xe0] sm:$0xff] (!%p165_p2)   ;;  %v906_v21 = vld [vmem:[%s1110_s1 + $0xe8] sm:$0xff] (!%p165_p2)  }
   0xb   : > { %v899_v14 = vld [vmem:[%s1110_s1 + $0x18] sm:$0xff] (!%p165_p2)   ;;  %v903_v18 = vld [vmem:[%s1110_s1 + $0x20] sm:$0xff] (!%p165_p2)   ;;  %v907_v22 = vld [vmem:[%s1110_s1 + $0x28] sm:$0xff] (!%p165_p2)  }
   0xc   : > { %816 = vmatpush3.bf16.msra.mxu0 (!%p165_p2), %v891_v6  ;;  %v900_v15 = vld [vmem:[%s1110_s1 + $0x98] sm:$0xff] (!%p165_p2)   ;;  %v904_v19 = vld [vmem:[%s1110_s1 + $0xa0] sm:$0xff] (!%p165_p2)   ;;  %v908_v23 = vld [vmem:[%s1110_s1 + $0xa8] sm:$0xff] (!%p165_p2)  }
   0xd   : > { %838 = vmatpush3.bf16.msra.mxu1 %v892_v7  ;;  %817 = vmatprep.subr.bf16.mxu0 %v893_v8  ;;  %s1115_s23 = smov (!%p192_p3, %s763_s23), 3  ;;  %v909_v24 = vld [vmem:[%s1110_s1 + $0x70] sm:$0xff]   ;;  %v913_v28 = vld [vmem:[%s1110_s1 + $0x78] sm:$0xff]   ;;  %v923_v37 = vld [vmem:[%s1110_s1 + $0x100] sm:$0xff]  }
   0xe   : > { %839 = vmatprep.subr.bf16.mxu1 %v894_v9  ;;  %v910_v25 = vld [vmem:[%s1110_s1 + $0xf0] sm:$0xff]   ;;  %s874_s21 = smul.u32 20, %s1115_s23  ;;  %v914_v29 = vld [vmem:[%s1110_s1 + $0xf8] sm:$0xff]   ;;  %v924_v38 = vld [vmem:[%s1110_s1 + $0x108] sm:$0xff]   ;;  %s766_s26 = sshll.u32 %s1115_s23, 3 }
   0xf   : > { %v911_v26 = vld [vmem:[%s1110_s1 + $0x30] sm:$0xff]   ;;  %v915_v30 = vld [vmem:[%s1110_s1 + $0x38] sm:$0xff]   ;;  %s202_s29 = scalar_lea.vmem %s1113_s4, %s766_s26 }
  0x10   : > { %818 = vmatpush3.bf16.msra.mxu0 %v895_v10  ;;  %v912_v27 = vld [vmem:[%s1110_s1 + $0xb0] sm:$0xff]   ;;  %s196_s6 = scalar_lea.vmem %s1109_s0, %s874_s21  ;;  %v916_v31 = vld [vmem:[%s1110_s1 + $0xb8] sm:$0xff]  }
  0x11   : > { %840 = vmatpush3.bf16.msra.mxu1 %v896_v11  ;;  %819 = vmatprep.subr.bf16.mxu0 %v897_v12  ;;  %v917_v32 = vld [vmem:[%s196_s6] ss:$20 sps:$4 sm:$0xff]   ;;  %v919_v33 = vld [vmem:[%s196_s6 + $0x4] ss:$20 sps:$4 sm:$0xff]   ;;  %v920_v35 = vld [vmem:[%s196_s6 + $0x8] ss:$20 sps:$4 sm:$0xff]  }
  0x12   : > { %841 = vmatprep.subr.bf16.mxu1 %v898_v13  ;;  %v922_v36 = vld [vmem:[%s196_s6 + $0xc] ss:$20 sps:$4 sm:$0xff]   ;;  %560 = vmatprep.mubr.bf16.mxu0 %v919_v33  ;;  %v925_v39 = vld [vmem:[%s1110_s1 + $0x110] sm:$0xff]   ;;  %v926_v40 = vld [vmem:[%s1110_s1 + $0x118] sm:$0xff]  }
  0x13   : > { %601 = vmatprep.mubr.bf16.mxu1 %v922_v36  ;;  %v927_v41 = vld [vmem:[%s196_s6 + $0x10] ss:$20 sps:$4 sm:$0xff]  }
  0x14   : > { %820 = vmatpush3.bf16.msra.mxu0 %v899_v14 }
  0x15   : > { %842 = vmatpush3.bf16.msra.mxu1 %v900_v15  ;;  %821 = vmatprep.subr.bf16.mxu0 %v901_v16 }
  0x16   : > { %843 = vmatprep.subr.bf16.mxu1 %v902_v17 }
  0x18   : > { %822 = vmatpush3.bf16.msra.mxu0 %v903_v18 }
  0x19   : > { %844 = vmatpush3.bf16.msra.mxu1 %v904_v19  ;;  %823 = vmatprep.subr.bf16.mxu0 %v905_v20 }
  0x1a   : > { %845 = vmatprep.subr.bf16.mxu1 %v906_v21 }
  0x1c   : > { %824 = vmatpush3.bf16.msra.mxu0 %v907_v22 }
  0x1d   : > { %846 = vmatpush3.bf16.msra.mxu1 %v908_v23  ;;  %825 = vmatprep.subr.bf16.mxu0 %v909_v24  ;;  %v809_v24 = vld [vmem:[%s1111_s2] ss:$0 sm:$0xff] }
  0x1e   : > { %847 = vmatprep.subr.bf16.mxu1 %v910_v25 }
  0x20   : > { %826 = vmatpush3.bf16.msra.mxu0 %v911_v26 }
  0x21   : > { %848 = vmatpush3.bf16.msra.mxu1 %v912_v27  ;;  %827 = vmatprep.subr.bf16.mxu0 %v913_v28  ;;  %v810_v27 = vld [vmem:[%s1112_s3] ss:$0 sm:$0xff] }
  0x22   : > { %849 = vmatprep.subr.bf16.mxu1 %v914_v29 }
  0x24   : > { %828 = vmatpush3.bf16.msra.mxu0 %v915_v30 }
  0x25   : > { %850 = vmatpush3.bf16.msra.mxu1 %v916_v31  ;;  %862 = vmatprep.subr.bf16.mxu0 %v938_v34 }
  0x27   : > { %561 = vmatmul.mubr.bf16.vlgmr.msra.gmra.mrb[0].mxu0 %v917_v32 }
  0x28   : > { %602 = vmatmul.mubr.bf16.vlgmr.msra.gmra.mrb[0].mxu1 %v920_v35  ;;  %863 = vmatpush3.bf16.msra.mxu0 %v923_v37 }
  0x29   : > { %864 = vmatprep.subr.bf16.mxu0 %v938_v34  ;;  %870 = vmatprep.mubr.msk.bf16.mxu0 %vm939_vm0, %v938_v34 }
  0x2c   : > { %865 = vmatpush3.bf16.msra.mxu0 %v924_v38 }
  0x2d   : > { %866 = vmatprep.subr.bf16.mxu0 %v938_v34 }
  0x30   : > { %867 = vmatpush3.bf16.msra.mxu0 %v925_v39 }
  0x31   : > { %868 = vmatprep.subr.bf16.mxu0 %v938_v34 }
  0x34   : > { %869 = vmatpush3.bf16.msra.mxu0 %v926_v40 }
  0x37   : > { %871 = vmatmul.mubr.msk.bf16.vlgmr.msra.gmra.mrb[4].mxu0 %vm524_vm1, %v927_v41 }
  0xfa   : > { %v829_v42 = vpop.f32.mrb[0].mxu0 }
  0xfb   : > { %v851_v43 = vpop.f32.mrb[0].mxu1  ;;  %v830_v44 = vpop.f32.mrb[1].mxu0 }
  0xfc   : > { %v831_v45 = vadd.f32 %v830_v44, %v829_v42  ;;  %v852_v46 = vpop.f32.mrb[1].mxu1  ;;  %v832_v47 = vpop.f32.mrb[2].mxu0 }
  0xfd   : > { %v853_v48 = vadd.f32 %v852_v46, %v851_v43  ;;  %v854_v49 = vpop.f32.mrb[2].mxu1  ;;  %v833_v50 = vpop.f32.mrb[3].mxu0 }
  0xfe   : > { %v834_v51 = vadd.f32 %v833_v50, %v832_v47  ;;  %v855_v52 = vpop.f32.mrb[3].mxu1 }
  0xff   : > { %v856_v53 = vadd.f32 %v855_v52, %v854_v49  ;;  %v604_v54 = vadd.f32 %v853_v48, %v831_v45 }
 0x101   : > { %v607_v55 = vadd.f32 %v856_v53, %v834_v51 }
 0x10a   : > { %v644_v56 = vpop.f32.mrb[4].mxu0 }
 0x10b   : > { %v645_v57 = vadd.f32 %v644_v56, %v604_v54  ;;  %v872_v58 = vpop.f32.mrb[5].mxu0 }
 0x10c   : > { %v647_v59 = vpop.f32.mrb[6].mxu0 }
 0x10d   : > { %v648_v60 = vadd.f32 %v647_v59, %v607_v55  ;;  %v873_v61 = vpop.f32.mrb[7].mxu0  ;;  %v651_v62 = vsel %vm524_vm1, %v645_v57, 0.0 }
 0x10f   : > { %v652_v63 = vsel %vm524_vm1, %v648_v60, 0.0 }
 0x110   : > { %v653_v0 = vadd.f32 %v652_v63, %v651_v62 }
 0x112   : > { %v654_v1 = vrot.slane %v653_v0, 4 }
 0x114   : > { %v655_v2 = vadd.f32 %v654_v1, %v653_v0 }
 0x116   : > { %v656_v3 = vrot.slane %v655_v2, 2 }
 0x118   : > { %v657_v4 = vadd.f32 %v656_v3, %v655_v2 }
 0x11a   : > { %v658_v5 = vrot.slane %v657_v4, 1 }
 0x11c   : > { %v659_v6 = vadd.f32 %v658_v5, %v657_v4 }
 0x11e   : > { %v661_v7 = vmul.f32 0.0625, %v659_v6 }
 0x120   : > { %v662_v8 = vsub.f32 %v645_v57, %v661_v7  ;;  %v663_v9 = vsub.f32 %v648_v60, %v661_v7 }
 0x122   : > { %v664_v10 = vmul.f32 %v662_v8, %v662_v8  ;;  %v665_v11 = vmul.f32 %v663_v9, %v663_v9 }
 0x124   : > { %v666_v12 = vsel %vm524_vm1, %v664_v10, 0.0  ;;  %v667_v13 = vsel %vm524_vm1, %v665_v11, 0.0 }
 0x125   : > { %v668_v14 = vadd.f32 %v667_v13, %v666_v12 }
 0x127   : > { %v669_v15 = vrot.slane %v668_v14, 4 }
 0x129   : > { %v670_v16 = vadd.f32 %v669_v15, %v668_v14 }
 0x12b   : > { %v671_v17 = vrot.slane %v670_v16, 2 }
 0x12d   : > { %v672_v18 = vadd.f32 %v671_v17, %v670_v16 }
 0x12f   : > { %v673_v19 = vrot.slane %v672_v18, 1 }
 0x131   : > { %v674_v20 = vadd.f32 %v673_v19, %v672_v18 }
 0x133   : > { %v675_v21 = vmul.f32 0.0625, %v674_v20 }
 0x135   : > { %v676_v22 = vadd.f32 1e-05, %v675_v21 }
 0x137   : > { %928 = vrsqrt.f32 %v676_v22 }
 0x141   : > { %v929_v23 = vpop.eup %928 }
 0x142   : > { %v678_v25 = vmul.f32 %v929_v23, %v662_v8  ;;  %v679_v26 = vmul.f32 %v929_v23, %v663_v9 }
 0x144   : > { %v687_v28 = vmul.f32 %v809_v24, %v678_v25  ;;  %v688_v29 = vmul.f32 %v809_v24, %v679_v26 }
 0x146   : > { %v696_v30 = vadd.f32 %v810_v27, %v687_v28  ;;  %v697_v31 = vadd.f32 %v810_v27, %v688_v29 }
 0x148   : > { %v698_v32 = vmax.f32 %v696_v30, 0.0  ;;  %v699_v33 = vmax.f32 %v697_v31, 0.0 }
 0x14a   : > { %700 = vst.msk [vmem:[%s202_s29] sm:$0xff] %vm524_vm1, %v698_v32  ;;  %701 = vst.msk [vmem:[%s202_s29 + $0x8] sm:$0xff] %vm524_vm1, %v699_v33 }
 0x14b PF: > { %s14_s15 = sadd.s32 1, %s936_s15  }
 0x14c   : > { %p11_p4 = scmp.ge.s32.totalorder %s14_s15, 4  }
 0x14e   :  { %13 = sbr.rel (!%p11_p4) target bundleno = 1 (0x1), region = 66 }

// kernel: rsm_forward.34
= control target key start
LH: loop header
LB: loop body
LE: loop exit
PB: predicated region body
PF: predicated region fallthrough
CT: control target
= control target key end

     0   :  { %s1035_s18 = smov 0   ;;  %s1182_s0 = inlined_call_operand.vmem [shape: bf16[32,576], index: 0, kind: input, shape index: {}]   ;;  %s1183_s1 = inlined_call_operand.vmem [shape: bf16[576,64], index: 1, kind: input, shape index: {}]   ;;  %s1184_s2 = inlined_call_operand.vmem [shape: f32[1,64], index: 2, kind: input, shape index: {}]   ;;  %s1185_s3 = inlined_call_operand.vmem [shape: f32[1,64], index: 3, kind: input, shape index: {}]   ;;  %s1186_s4 = inlined_call_operand.vmem [shape: f32[32,64], index: 4, kind: input, shape index: {}]   ;;  %s1187_s5 = inlined_call_operand.vmem [shape: f32[32,64], index: 5, kind: output, shape index: {}]  }
   0x1 LB: > { %s821_s19 = sadd.s32 4294967295, %s1001_s18   ;;  %p825_p0 = scmp.ge.s32.totalorder %s1001_s18, 1  ;;  %s1001_s18 = sphi %s1035_s18, %s15_s18  }
   0x2   : > { %p200_p1 = scmp.lt.s32.totalorder %s1001_s18, 3 }
   0x4   : > { %p201_p2 = pnand %p825_p0, %p200_p1 }
   0x5   : > { %v950_v0 = vld [vmem:[%s1183_s1 + $0x40] sm:$0xff] (!%p201_p2)   ;;  %v954_v4 = vld [vmem:[%s1183_s1 + $0x48] sm:$0xff] (!%p201_p2)   ;;  %v958_v8 = vld [vmem:[%s1183_s1 + $0x50] sm:$0xff] (!%p201_p2)   ;;  %s826_s27 = sshll.u32 (!%p201_p2), %s821_s19, 1  ;;  %v1003_v34 = vmov (!%p201_p2), 0.0   ;;  %vm1004_vm0 = vmmov (!%p201_p2), 0  }
   0x6   : > { %204 = sbr.rel (%p201_p2) target bundleno = 331 (0x14b), region = 40  ;;  %v951_v1 = vld [vmem:[%s1183_s1 + $0xc0] sm:$0xff] (!%p201_p2)   ;;  %878 = vmatprep.subr.bf16.mxu0 (!%p201_p2), %v950_v0  ;;  %v955_v5 = vld [vmem:[%s1183_s1 + $0xc8] sm:$0xff] (!%p201_p2)   ;;  %v959_v9 = vld [vmem:[%s1183_s1 + $0xd0] sm:$0xff] (!%p201_p2)   ;;  %p235_p3 = scmp.lt.s32.totalorder (!%p201_p2), %s826_s27, 3  ;;  %vm573_vm1 = vcmask (!%p201_p2), 523264  }
   0x7   : > { %v952_v2 = vld [vmem:[%s1183_s1] sm:$0xff] (!%p201_p2)   ;;  %900 = vmatprep.subr.bf16.mxu1 (!%p201_p2), %v951_v1  ;;  %v956_v6 = vld [vmem:[%s1183_s1 + $0x8] sm:$0xff] (!%p201_p2)   ;;  %v960_v10 = vld [vmem:[%s1183_s1 + $0x10] sm:$0xff] (!%p201_p2)  }
   0x8   : > { %v953_v3 = vld [vmem:[%s1183_s1 + $0x80] sm:$0xff] (!%p201_p2)   ;;  %879 = vmatpush3.bf16.msra.mxu0 (!%p201_p2), %v952_v2  ;;  %v957_v7 = vld [vmem:[%s1183_s1 + $0x88] sm:$0xff] (!%p201_p2)   ;;  %v961_v11 = vld [vmem:[%s1183_s1 + $0x90] sm:$0xff] (!%p201_p2)  }
   0x9   : > { %901 = vmatpush3.bf16.msra.mxu1 (!%p201_p2), %v953_v3  ;;  %880 = vmatprep.subr.bf16.mxu0 (!%p201_p2), %v954_v4  ;;  %v962_v12 = vld [vmem:[%s1183_s1 + $0x58] sm:$0xff] (!%p201_p2)   ;;  %v966_v16 = vld [vmem:[%s1183_s1 + $0x60] sm:$0xff] (!%p201_p2)   ;;  %v970_v20 = vld [vmem:[%s1183_s1 + $0x68] sm:$0xff] (!%p201_p2)  }
   0xa   : > { %902 = vmatprep.subr.bf16.mxu1 (!%p201_p2), %v955_v5  ;;  %v963_v13 = vld [vmem:[%s1183_s1 + $0xd8] sm:$0xff] (!%p201_p2)   ;;  %v967_v17 = vld [vmem:[%s1183_s1 + $0xe0] sm:$0xff] (!%p201_p2)   ;;  %v971_v21 = vld [vmem:[%s1183_s1 + $0xe8] sm:$0xff] (!%p201_p2)  }
   0xb   : > { %v964_v14 = vld [vmem:[%s1183_s1 + $0x18] sm:$0xff] (!%p201_p2)   ;;  %v968_v18 = vld [vmem:[%s1183_s1 + $0x20] sm:$0xff] (!%p201_p2)   ;;  %v972_v22 = vld [vmem:[%s1183_s1 + $0x28] sm:$0xff] (!%p201_p2)  }
   0xc   : > { %881 = vmatpush3.bf16.msra.mxu0 (!%p201_p2), %v956_v6  ;;  %v965_v15 = vld [vmem:[%s1183_s1 + $0x98] sm:$0xff] (!%p201_p2)   ;;  %v969_v19 = vld [vmem:[%s1183_s1 + $0xa0] sm:$0xff] (!%p201_p2)   ;;  %v973_v23 = vld [vmem:[%s1183_s1 + $0xa8] sm:$0xff] (!%p201_p2)  }
   0xd   : > { %903 = vmatpush3.bf16.msra.mxu1 %v957_v7  ;;  %882 = vmatprep.subr.bf16.mxu0 %v958_v8  ;;  %s1189_s27 = smov (!%p235_p3, %s826_s27), 3  ;;  %v974_v24 = vld [vmem:[%s1183_s1 + $0x70] sm:$0xff]   ;;  %v978_v28 = vld [vmem:[%s1183_s1 + $0x78] sm:$0xff]   ;;  %v988_v37 = vld [vmem:[%s1183_s1 + $0x100] sm:$0xff]  }
   0xe   : > { %904 = vmatprep.subr.bf16.mxu1 %v959_v9  ;;  %v975_v25 = vld [vmem:[%s1183_s1 + $0xf0] sm:$0xff]   ;;  %s939_s26 = smul.u32 20, %s1189_s27  ;;  %v979_v29 = vld [vmem:[%s1183_s1 + $0xf8] sm:$0xff]   ;;  %v989_v38 = vld [vmem:[%s1183_s1 + $0x108] sm:$0xff]   ;;  %s829_s28 = sshll.u32 %s1189_s27, 3 }
   0xf   : > { %v976_v26 = vld [vmem:[%s1183_s1 + $0x30] sm:$0xff]   ;;  %v980_v30 = vld [vmem:[%s1183_s1 + $0x38] sm:$0xff]   ;;  %s245_s8 = scalar_lea.vmem %s1186_s4, %s829_s28  ;;  %s251_s11 = scalar_lea.vmem %s1187_s5, %s829_s28 }
  0x10   : > { %883 = vmatpush3.bf16.msra.mxu0 %v960_v10  ;;  %v977_v27 = vld [vmem:[%s1183_s1 + $0xb0] sm:$0xff]   ;;  %s239_s12 = scalar_lea.vmem %s1182_s0, %s939_s26  ;;  %v981_v31 = vld [vmem:[%s1183_s1 + $0xb8] sm:$0xff]  }
  0x11   : > { %905 = vmatpush3.bf16.msra.mxu1 %v961_v11  ;;  %884 = vmatprep.subr.bf16.mxu0 %v962_v12  ;;  %v982_v32 = vld [vmem:[%s239_s12] ss:$20 sps:$4 sm:$0xff]   ;;  %v984_v33 = vld [vmem:[%s239_s12 + $0x4] ss:$20 sps:$4 sm:$0xff]   ;;  %v985_v35 = vld [vmem:[%s239_s12 + $0x8] ss:$20 sps:$4 sm:$0xff]  }
  0x12   : > { %906 = vmatprep.subr.bf16.mxu1 %v963_v13  ;;  %v987_v36 = vld [vmem:[%s239_s12 + $0xc] ss:$20 sps:$4 sm:$0xff]   ;;  %609 = vmatprep.mubr.bf16.mxu0 %v984_v33  ;;  %v990_v39 = vld [vmem:[%s1183_s1 + $0x110] sm:$0xff]   ;;  %v991_v40 = vld [vmem:[%s1183_s1 + $0x118] sm:$0xff]  }
  0x13   : > { %650 = vmatprep.mubr.bf16.mxu1 %v987_v36  ;;  %v992_v41 = vld [vmem:[%s239_s12 + $0x10] ss:$20 sps:$4 sm:$0xff]  }
  0x14   : > { %885 = vmatpush3.bf16.msra.mxu0 %v964_v14 }
  0x15   : > { %907 = vmatpush3.bf16.msra.mxu1 %v965_v15  ;;  %886 = vmatprep.subr.bf16.mxu0 %v966_v16 }
  0x16   : > { %908 = vmatprep.subr.bf16.mxu1 %v967_v17 }
  0x18   : > { %887 = vmatpush3.bf16.msra.mxu0 %v968_v18 }
  0x19   : > { %909 = vmatpush3.bf16.msra.mxu1 %v969_v19  ;;  %888 = vmatprep.subr.bf16.mxu0 %v970_v20 }
  0x1a   : > { %910 = vmatprep.subr.bf16.mxu1 %v971_v21 }
  0x1c   : > { %889 = vmatpush3.bf16.msra.mxu0 %v972_v22 }
  0x1d   : > { %911 = vmatpush3.bf16.msra.mxu1 %v973_v23  ;;  %890 = vmatprep.subr.bf16.mxu0 %v974_v24  ;;  %v874_v24 = vld [vmem:[%s1184_s2] ss:$0 sm:$0xff] }
  0x1e   : > { %912 = vmatprep.subr.bf16.mxu1 %v975_v25 }
  0x20   : > { %891 = vmatpush3.bf16.msra.mxu0 %v976_v26 }
  0x21   : > { %913 = vmatpush3.bf16.msra.mxu1 %v977_v27  ;;  %892 = vmatprep.subr.bf16.mxu0 %v978_v28  ;;  %v875_v27 = vld [vmem:[%s1185_s3] ss:$0 sm:$0xff] }
  0x22   : > { %914 = vmatprep.subr.bf16.mxu1 %v979_v29 }
  0x24   : > { %893 = vmatpush3.bf16.msra.mxu0 %v980_v30  ;;  %v747_v30 = vld [vmem:[%s245_s8] sm:$0xff] }
  0x25   : > { %915 = vmatpush3.bf16.msra.mxu1 %v981_v31  ;;  %927 = vmatprep.subr.bf16.mxu0 %v1003_v34  ;;  %v748_v31 = vld [vmem:[%s245_s8 + $0x8] sm:$0xff] }
  0x27   : > { %610 = vmatmul.mubr.bf16.vlgmr.msra.gmra.mrb[0].mxu0 %v982_v32 }
  0x28   : > { %651 = vmatmul.mubr.bf16.vlgmr.msra.gmra.mrb[0].mxu1 %v985_v35  ;;  %928 = vmatpush3.bf16.msra.mxu0 %v988_v37 }
  0x29   : > { %929 = vmatprep.subr.bf16.mxu0 %v1003_v34  ;;  %935 = vmatprep.mubr.msk.bf16.mxu0 %vm1004_vm0, %v1003_v34 }
  0x2c   : > { %930 = vmatpush3.bf16.msra.mxu0 %v989_v38 }
  0x2d   : > { %931 = vmatprep.subr.bf16.mxu0 %v1003_v34 }
  0x30   : > { %932 = vmatpush3.bf16.msra.mxu0 %v990_v39 }
  0x31   : > { %933 = vmatprep.subr.bf16.mxu0 %v1003_v34 }
  0x34   : > { %934 = vmatpush3.bf16.msra.mxu0 %v991_v40 }
  0x37   : > { %936 = vmatmul.mubr.msk.bf16.vlgmr.msra.gmra.mrb[4].mxu0 %vm573_vm1, %v992_v41 }
  0xfa   : > { %v894_v42 = vpop.f32.mrb[0].mxu0 }
  0xfb   : > { %v916_v43 = vpop.f32.mrb[0].mxu1  ;;  %v895_v44 = vpop.f32.mrb[1].mxu0 }
  0xfc   : > { %v896_v45 = vadd.f32 %v895_v44, %v894_v42  ;;  %v917_v46 = vpop.f32.mrb[1].mxu1  ;;  %v897_v47 = vpop.f32.mrb[2].mxu0 }
  0xfd   : > { %v918_v48 = vadd.f32 %v917_v46, %v916_v43  ;;  %v919_v49 = vpop.f32.mrb[2].mxu1  ;;  %v898_v50 = vpop.f32.mrb[3].mxu0 }
  0xfe   : > { %v899_v51 = vadd.f32 %v898_v50, %v897_v47  ;;  %v920_v52 = vpop.f32.mrb[3].mxu1 }
  0xff   : > { %v921_v53 = vadd.f32 %v920_v52, %v919_v49  ;;  %v653_v54 = vadd.f32 %v918_v48, %v896_v45 }
 0x101   : > { %v656_v55 = vadd.f32 %v921_v53, %v899_v51 }
 0x10a   : > { %v693_v56 = vpop.f32.mrb[4].mxu0 }
 0x10b   : > { %v694_v57 = vadd.f32 %v693_v56, %v653_v54  ;;  %v937_v58 = vpop.f32.mrb[5].mxu0 }
 0x10c   : > { %v696_v59 = vpop.f32.mrb[6].mxu0 }
 0x10d   : > { %v697_v60 = vadd.f32 %v696_v59, %v656_v55  ;;  %v938_v61 = vpop.f32.mrb[7].mxu0  ;;  %v700_v62 = vsel %vm573_vm1, %v694_v57, 0.0 }
 0x10f   : > { %v701_v63 = vsel %vm573_vm1, %v697_v60, 0.0 }
 0x110   : > { %v702_v0 = vadd.f32 %v701_v63, %v700_v62 }
 0x112   : > { %v703_v1 = vrot.slane %v702_v0, 4 }
 0x114   : > { %v704_v2 = vadd.f32 %v703_v1, %v702_v0 }
 0x116   : > { %v705_v3 = vrot.slane %v704_v2, 2 }
 0x118   : > { %v706_v4 = vadd.f32 %v705_v3, %v704_v2 }
 0x11a   : > { %v707_v5 = vrot.slane %v706_v4, 1 }
 0x11c   : > { %v708_v6 = vadd.f32 %v707_v5, %v706_v4 }
 0x11e   : > { %v710_v7 = vmul.f32 0.0625, %v708_v6 }
 0x120   : > { %v711_v8 = vsub.f32 %v694_v57, %v710_v7  ;;  %v712_v9 = vsub.f32 %v697_v60, %v710_v7 }
 0x122   : > { %v713_v10 = vmul.f32 %v711_v8, %v711_v8  ;;  %v714_v11 = vmul.f32 %v712_v9, %v712_v9 }
 0x124   : > { %v715_v12 = vsel %vm573_vm1, %v713_v10, 0.0  ;;  %v716_v13 = vsel %vm573_vm1, %v714_v11, 0.0 }
 0x125   : > { %v717_v14 = vadd.f32 %v716_v13, %v715_v12 }
 0x127   : > { %v718_v15 = vrot.slane %v717_v14, 4 }
 0x129   : > { %v719_v16 = vadd.f32 %v718_v15, %v717_v14 }
 0x12b   : > { %v720_v17 = vrot.slane %v719_v16, 2 }
 0x12d   : > { %v721_v18 = vadd.f32 %v720_v17, %v719_v16 }
 0x12f   : > { %v722_v19 = vrot.slane %v721_v18, 1 }
 0x131   : > { %v723_v20 = vadd.f32 %v722_v19, %v721_v18 }
 0x133   : > { %v724_v21 = vmul.f32 0.0625, %v723_v20 }
 0x135   : > { %v725_v22 = vadd.f32 1e-05, %v724_v21 }
 0x137   : > { %993 = vrsqrt.f32 %v725_v22 }
 0x141   : > { %v994_v23 = vpop.eup %993 }
 0x142   : > { %v727_v25 = vmul.f32 %v994_v23, %v711_v8  ;;  %v728_v26 = vmul.f32 %v994_v23, %v712_v9 }
 0x144   : > { %v736_v28 = vmul.f32 %v874_v24, %v727_v25  ;;  %v737_v29 = vmul.f32 %v874_v24, %v728_v26 }
 0x146   : > { %v745_v32 = vadd.f32 %v875_v27, %v736_v28  ;;  %v746_v33 = vadd.f32 %v875_v27, %v737_v29 }
 0x148   : > { %v749_v34 = vadd.f32 %v747_v30, %v745_v32  ;;  %v750_v35 = vadd.f32 %v748_v31, %v746_v33 }
 0x14a   : > { %751 = vst.msk [vmem:[%s251_s11] sm:$0xff] %vm573_vm1, %v749_v34  ;;  %752 = vst.msk [vmem:[%s251_s11 + $0x8] sm:$0xff] %vm573_vm1, %v750_v35 }
 0x14b PF: > { %s15_s18 = sadd.s32 1, %s1001_s18  }
 0x14c   : > { %p12_p4 = scmp.ge.s32.totalorder %s15_s18, 4  }
 0x14e   :  { %14 = sbr.rel (!%p12_p4) target bundleno = 1 (0x1), region = 73 }

// kernel: rsm_forward.37
= control target key start
LH: loop header
LB: loop body
LE: loop exit
PB: predicated region body
PF: predicated region fallthrough
CT: control target
= control target key end

     0   :  { %s888_s12 = smov 0   ;;  %s1029_s0 = inlined_call_operand.vmem [shape: bf16[32,576], index: 0, kind: input, shape index: {}]   ;;  %s1030_s1 = inlined_call_operand.vmem [shape: bf16[576,128], index: 1, kind: input, shape index: {}]   ;;  %s1031_s2 = inlined_call_operand.vmem [shape: f32[1,128], index: 2, kind: input, shape index: {}]   ;;  %s1032_s3 = inlined_call_operand.vmem [shape: f32[32,128], index: 3, kind: output, shape index: {}]  }
   0x1 LB: > { %s689_s13 = sadd.s32 4294967295, %s864_s12   ;;  %p693_p0 = scmp.ge.s32.totalorder %s864_s12, 1  ;;  %s864_s12 = sphi %s888_s12, %s13_s12  }
   0x2   : > { %p139_p1 = scmp.lt.s32.totalorder %s864_s12, 3 }
   0x4   : > { %p140_p2 = pnand %p693_p0, %p139_p1 }
   0x5   : > { %v815_v0 = vld [vmem:[%s1030_s1 + $0x40] sm:$0xff] (!%p140_p2)   ;;  %v819_v4 = vld [vmem:[%s1030_s1 + $0x48] sm:$0xff] (!%p140_p2)   ;;  %v823_v8 = vld [vmem:[%s1030_s1 + $0x50] sm:$0xff] (!%p140_p2)   ;;  %s694_s17 = sshll.u32 (!%p140_p2), %s689_s13, 1  ;;  %v866_v33 = vmov (!%p140_p2), 0.0   ;;  %vm867_vm0 = vmmov (!%p140_p2), 0  }
   0x6   : > { %143 = sbr.rel (%p140_p2) target bundleno = 271 (0x10f), region = 32  ;;  %v816_v1 = vld [vmem:[%s1030_s1] sm:$0xff] (!%p140_p2)   ;;  %743 = vmatprep.subr.bf16.mxu0 (!%p140_p2), %v815_v0  ;;  %v820_v5 = vld [vmem:[%s1030_s1 + $0x8] sm:$0xff] (!%p140_p2)   ;;  %v824_v9 = vld [vmem:[%s1030_s1 + $0x10] sm:$0xff] (!%p140_p2)   ;;  %p165_p3 = scmp.lt.s32.totalorder (!%p140_p2), %s694_s17, 3  ;;  %vm504_vm1 = vcmask (!%p140_p2), 523264  }
   0x7   : > { %v817_v2 = vld [vmem:[%s1030_s1 + $0xc0] sm:$0xff] (!%p140_p2)   ;;  %744 = vmatpush3.bf16.msra.mxu0 (!%p140_p2), %v816_v1  ;;  %v821_v6 = vld [vmem:[%s1030_s1 + $0xc8] sm:$0xff] (!%p140_p2)   ;;  %v825_v10 = vld [vmem:[%s1030_s1 + $0xd0] sm:$0xff] (!%p140_p2)  }
   0x8   : > { %v818_v3 = vld [vmem:[%s1030_s1 + $0x80] sm:$0xff] (!%p140_p2)   ;;  %765 = vmatprep.subr.bf16.mxu1 (!%p140_p2), %v817_v2  ;;  %745 = vmatprep.subr.bf16.mxu0 (!%p140_p2), %v819_v4  ;;  %v822_v7 = vld [vmem:[%s1030_s1 + $0x88] sm:$0xff] (!%p140_p2)   ;;  %v826_v11 = vld [vmem:[%s1030_s1 + $0x90] sm:$0xff] (!%p140_p2)  }
   0x9   : > { %766 = vmatpush3.bf16.msra.mxu1 (!%p140_p2), %v818_v3  ;;  %v827_v12 = vld [vmem:[%s1030_s1 + $0x58] sm:$0xff] (!%p140_p2)   ;;  %v831_v16 = vld [vmem:[%s1030_s1 + $0x60] sm:$0xff] (!%p140_p2)   ;;  %v835_v20 = vld [vmem:[%s1030_s1 + $0x68] sm:$0xff] (!%p140_p2)  }
   0xa   : > { %767 = vmatprep.subr.bf16.mxu1 (!%p140_p2), %v821_v6  ;;  %v828_v13 = vld [vmem:[%s1030_s1 + $0x18] sm:$0xff] (!%p140_p2)   ;;  %v832_v17 = vld [vmem:[%s1030_s1 + $0x20] sm:$0xff] (!%p140_p2)   ;;  %v836_v21 = vld [vmem:[%s1030_s1 + $0x28] sm:$0xff] (!%p140_p2)  }
   0xb   : > { %746 = vmatpush3.bf16.msra.mxu0 (!%p140_p2), %v820_v5  ;;  %v829_v14 = vld [vmem:[%s1030_s1 + $0xd8] sm:$0xff] (!%p140_p2)   ;;  %v833_v18 = vld [vmem:[%s1030_s1 + $0xe0] sm:$0xff] (!%p140_p2)   ;;  %v837_v22 = vld [vmem:[%s1030_s1 + $0xe8] sm:$0xff] (!%p140_p2)  }
   0xc   : > { %747 = vmatprep.subr.bf16.mxu0 (!%p140_p2), %v823_v8  ;;  %v830_v15 = vld [vmem:[%s1030_s1 + $0x98] sm:$0xff] (!%p140_p2)   ;;  %v834_v19 = vld [vmem:[%s1030_s1 + $0xa0] sm:$0xff] (!%p140_p2)   ;;  %v838_v23 = vld [vmem:[%s1030_s1 + $0xa8] sm:$0xff] (!%p140_p2)  }
   0xd   : > { %768 = vmatpush3.bf16.msra.mxu1 %v822_v7  ;;  %s1034_s17 = smov (!%p165_p3, %s694_s17), 3  ;;  %v839_v24 = vld [vmem:[%s1030_s1 + $0x70] sm:$0xff]   ;;  %v843_v28 = vld [vmem:[%s1030_s1 + $0x78] sm:$0xff]   ;;  %v853_v37 = vld [vmem:[%s1030_s1 + $0x100] sm:$0xff]  }
   0xe   : > { %769 = vmatprep.subr.bf16.mxu1 %v825_v10  ;;  %s804_s14 = smul.u32 20, %s1034_s17  ;;  %v840_v25 = vld [vmem:[%s1030_s1 + $0x30] sm:$0xff]   ;;  %v844_v29 = vld [vmem:[%s1030_s1 + $0x38] sm:$0xff]   ;;  %v854_v38 = vld [vmem:[%s1030_s1 + $0x108] sm:$0xff]   ;;  %s697_s18 = sshll.u32 %s1034_s17, 3 }
   0xf   : > { %748 = vmatpush3.bf16.msra.mxu0 %v824_v9  ;;  %v841_v26 = vld [vmem:[%s1030_s1 + $0xf0] sm:$0xff]   ;;  %v845_v30 = vld [vmem:[%s1030_s1 + $0xf8] sm:$0xff]   ;;  %v698_v43 = vld [vmem:[%s1031_s2] ss:$0 sm:$0xff]  ;;  %s175_s21 = scalar_lea.vmem %s1032_s3, %s697_s18 }
  0x10   : > { %749 = vmatprep.subr.bf16.mxu0 %v827_v12  ;;  %v842_v27 = vld [vmem:[%s1030_s1 + $0xb0] sm:$0xff]   ;;  %s991_s13 = scalar_lea.vmem %s1029_s0, %s804_s14  ;;  %v849_v34 = vld [vmem:[%s1030_s1 + $0xb8] sm:$0xff]  }
  0x11   : > { %770 = vmatpush3.bf16.msra.mxu1 %v826_v11  ;;  %v846_v31 = vld [vmem:[%s991_s13] ss:$20 sps:$4 sm:$0xff]   ;;  %v848_v32 = vld [vmem:[%s991_s13 + $0x4] ss:$20 sps:$4 sm:$0xff]   ;;  %v850_v35 = vld [vmem:[%s991_s13 + $0x8] ss:$20 sps:$4 sm:$0xff]  }
  0x12   : > { %771 = vmatprep.subr.bf16.mxu1 %v829_v14  ;;  %540 = vmatprep.mubr.bf16.mxu0 %v848_v32  ;;  %v852_v36 = vld [vmem:[%s991_s13 + $0xc] ss:$20 sps:$4 sm:$0xff]   ;;  %v855_v39 = vld [vmem:[%s1030_s1 + $0x110] sm:$0xff]   ;;  %v856_v40 = vld [vmem:[%s1030_s1 + $0x118] sm:$0xff]  }
  0x13   : > { %750 = vmatpush3.bf16.msra.mxu0 %v828_v13  ;;  %581 = vmatprep.mubr.bf16.mxu1 %v852_v36  ;;  %v857_v41 = vld [vmem:[%s991_s13 + $0x10] ss:$20 sps:$4 sm:$0xff]  }
  0x14   : > { %751 = vmatprep.subr.bf16.mxu0 %v831_v16 }
  0x15   : > { %772 = vmatpush3.bf16.msra.mxu1 %v830_v15 }
  0x16   : > { %773 = vmatprep.subr.bf16.mxu1 %v833_v18 }
  0x17   : > { %752 = vmatpush3.bf16.msra.mxu0 %v832_v17 }
  0x18   : > { %753 = vmatprep.subr.bf16.mxu0 %v835_v20 }
  0x19   : > { %774 = vmatpush3.bf16.msra.mxu1 %v834_v19 }
  0x1a   : > { %775 = vmatprep.subr.bf16.mxu1 %v837_v22 }
  0x1b   : > { %754 = vmatpush3.bf16.msra.mxu0 %v836_v21 }
  0x1c   : > { %755 = vmatprep.subr.bf16.mxu0 %v839_v24 }
  0x1d   : > { %776 = vmatpush3.bf16.msra.mxu1 %v838_v23 }
  0x1e   : > { %777 = vmatprep.subr.bf16.mxu1 %v841_v26 }
  0x1f   : > { %756 = vmatpush3.bf16.msra.mxu0 %v840_v25 }
  0x20   : > { %757 = vmatprep.subr.bf16.mxu0 %v843_v28 }
  0x21   : > { %778 = vmatpush3.bf16.msra.mxu1 %v842_v27 }
  0x22   : > { %779 = vmatprep.subr.bf16.mxu1 %v845_v30 }
  0x23   : > { %758 = vmatpush3.bf16.msra.mxu0 %v844_v29 }
  0x24   : > { %792 = vmatprep.subr.bf16.mxu0 %v866_v33 }
  0x25   : > { %780 = vmatpush3.bf16.msra.mxu1 %v849_v34 }
  0x26   : > { %541 = vmatmul.mubr.bf16.vlgmr.msra.gmra.mrb[0].mxu0 %v846_v31 }
  0x27   : > { %800 = vmatprep.mubr.msk.bf16.mxu0 %vm867_vm0, %v866_v33  ;;  %793 = vmatpush3.bf16.msra.mxu0 %v853_v37 }
  0x28   : > { %582 = vmatmul.mubr.bf16.vlgmr.msra.gmra.mrb[0].mxu1 %v850_v35  ;;  %794 = vmatprep.subr.bf16.mxu0 %v866_v33 }
  0x2b   : > { %795 = vmatpush3.bf16.msra.mxu0 %v854_v38 }
  0x2c   : > { %796 = vmatprep.subr.bf16.mxu0 %v866_v33 }
  0x2f   : > { %797 = vmatpush3.bf16.msra.mxu0 %v855_v39 }
  0x30   : > { %798 = vmatprep.subr.bf16.mxu0 %v866_v33 }
  0x33   : > { %799 = vmatpush3.bf16.msra.mxu0 %v856_v40 }
  0x36   : > { %801 = vmatmul.mubr.msk.bf16.vlgmr.msra.gmra.mrb[4].mxu0 %vm504_vm1, %v857_v41 }
  0xf9   : > { %v759_v42 = vpop.f32.mrb[0].mxu0 }
  0xfa   : > { %v760_v44 = vpop.f32.mrb[1].mxu0 }
  0xfb   : > { %v761_v45 = vadd.f32 %v760_v44, %v759_v42  ;;  %v762_v46 = vpop.f32.mrb[2].mxu0  ;;  %v781_v47 = vpop.f32.mrb[0].mxu1 }
  0xfc   : > { %v763_v48 = vpop.f32.mrb[3].mxu0  ;;  %v782_v51 = vpop.f32.mrb[1].mxu1 }
  0xfd   : > { %v543_v49 = vadd.f32 %v761_v45, %v698_v43  ;;  %v764_v50 = vadd.f32 %v763_v48, %v762_v46  ;;  %v783_v52 = vadd.f32 %v782_v51, %v781_v47  ;;  %v784_v53 = vpop.f32.mrb[2].mxu1 }
  0xfe   : > { %v785_v55 = vpop.f32.mrb[3].mxu1 }
  0xff   : > { %v546_v54 = vadd.f32 %v764_v50, %v698_v43  ;;  %v786_v56 = vadd.f32 %v785_v55, %v784_v53  ;;  %v584_v57 = vadd.f32 %v783_v52, %v543_v49 }
 0x101   : > { %v587_v58 = vadd.f32 %v786_v56, %v546_v54 }
 0x109   : > { %v624_v59 = vpop.f32.mrb[4].mxu0 }
 0x10a   : > { %v625_v60 = vadd.f32 %v624_v59, %v584_v57  ;;  %v802_v61 = vpop.f32.mrb[5].mxu0 }
 0x10b   : > { %v627_v62 = vpop.f32.mrb[6].mxu0 }
 0x10c   : > { %631 = vst [vmem:[%s175_s21] sm:$0xff] %v625_v60  ;;  %v628_v63 = vadd.f32 %v627_v62, %v587_v58  ;;  %v803_v0 = vpop.f32.mrb[7].mxu0 }
 0x10e   : > { %632 = vst [vmem:[%s175_s21 + $0x8] sm:$0xff] %v628_v63 }
 0x10f PF: > { %s13_s12 = sadd.s32 1, %s864_s12  }
 0x110   : > { %p10_p4 = scmp.ge.s32.totalorder %s13_s12, 4  }
 0x112   :  { %12 = sbr.rel (!%p10_p4) target bundleno = 1 (0x1), region = 62 }

// kernel: rsm_forward.38
= control target key start
LH: loop header
LB: loop body
LE: loop exit
PB: predicated region body
PF: predicated region fallthrough
CT: control target
= control target key end

     0   :  { %s407_s12 = smov 0   ;;  %s461_s0 = inlined_call_operand.vmem [shape: f32[128,32], index: 0, kind: input, shape index: {}]   ;;  %s462_s1 = inlined_call_operand.vmem [shape: f32[1,32], index: 1, kind: input, shape index: {}]   ;;  %s463_s2 = inlined_call_operand.vmem [shape: f32[1,32], index: 2, kind: input, shape index: {}]   ;;  %s464_s3 = inlined_call_operand.vmem [shape: f32[128,32], index: 3, kind: output, shape index: {}]  }
   0x1 LB: > { %s356_s13 = sadd.s32 4294967295, %s385_s12   ;;  %p360_p0 = scmp.ge.s32.totalorder %s385_s12, 1  ;;  %s385_s12 = sphi %s407_s12, %s13_s12  }
   0x2   : > { %p138_p1 = scmp.lt.s32.totalorder %s385_s12, 3 }
   0x4   : > { %p139_p2 = pnand %p360_p0, %p138_p1 }
   0x5   : > { %s361_s14 = sshll.u32 (!%p139_p2), %s356_s13, 3  ;;  %vm182_vm0 = vcmask (!%p139_p2), 261120  }
   0x6   : > { %142 = sbr.rel (%p139_p2) target bundleno = 104 (0x68), region = 32  ;;  %p163_p3 = scmp.lt.s32.totalorder (!%p139_p2), %s361_s14, 15 }
   0xd   : > { %s466_s14 = smov (!%p163_p3, %s361_s14), 15 }
   0xe   : > { %s362_s15 = sshll.u32 %s466_s14, 3 }
   0xf   : > { %s166_s18 = scalar_lea.vmem %s461_s0, %s362_s15  ;;  %s172_s25 = scalar_lea.vmem %s464_s3, %s362_s15 }
  0x10   : > { %v174_v0 = vld [vmem:[%s166_s18] sm:$0xff]  ;;  %v175_v1 = vld [vmem:[%s166_s18 + $0x8] sm:$0xff]  ;;  %v176_v2 = vld [vmem:[%s166_s18 + $0x10] sm:$0xff] }
  0x11   : > { %v177_v3 = vld [vmem:[%s166_s18 + $0x18] sm:$0xff]  ;;  %v183_v4 = vsel %vm182_vm0, %v174_v0, 0.0  ;;  %v184_v5 = vsel %vm182_vm0, %v175_v1, 0.0  ;;  %v186_v6 = vsel %vm182_vm0, %v176_v2, 0.0  ;;  %v178_v7 = vld [vmem:[%s166_s18 + $0x20] sm:$0xff]  ;;  %v179_v10 = vld [vmem:[%s166_s18 + $0x28] sm:$0xff] }
  0x12   : > { %v185_v8 = vadd.f32 %v184_v5, %v183_v4  ;;  %v188_v9 = vsel %vm182_vm0, %v177_v3, 0.0  ;;  %v190_v12 = vsel %vm182_vm0, %v178_v7, 0.0  ;;  %v180_v13 = vld [vmem:[%s166_s18 + $0x30] sm:$0xff]  ;;  %v192_v15 = vsel %vm182_vm0, %v179_v10, 0.0  ;;  %v181_v16 = vld [vmem:[%s166_s18 + $0x38] sm:$0xff] }
  0x13   : > { %v194_v18 = vsel %vm182_vm0, %v180_v13, 0.0  ;;  %v196_v20 = vsel %vm182_vm0, %v181_v16, 0.0 }
  0x14   : > { %v187_v11 = vadd.f32 %v186_v6, %v185_v8  ;;  %v365_v6 = vld [vmem:[%s462_s1] ss:$0 sm:$0xff] }
  0x16   : > { %v189_v14 = vadd.f32 %v188_v9, %v187_v11  ;;  %v366_v11 = vld [vmem:[%s463_s2] ss:$0 sm:$0xff] }
  0x18   : > { %v191_v17 = vadd.f32 %v190_v12, %v189_v14 }
  0x1a   : > { %v193_v19 = vadd.f32 %v192_v15, %v191_v17 }
  0x1c   : > { %v195_v21 = vadd.f32 %v194_v18, %v193_v19 }
  0x1e   : > { %v197_v22 = vadd.f32 %v196_v20, %v195_v21 }
  0x20   : > { %v198_v23 = vrot.slane %v197_v22, 4 }
  0x22   : > { %v199_v24 = vadd.f32 %v198_v23, %v197_v22 }
  0x24   : > { %v200_v25 = vrot.slane %v199_v24, 2 }
  0x26   : > { %v201_v26 = vadd.f32 %v200_v25, %v199_v24 }
  0x28   : > { %v202_v27 = vrot.slane %v201_v26, 1 }
  0x2a   : > { %v203_v28 = vadd.f32 %v202_v27, %v201_v26 }
  0x2c   : > { %v205_v29 = vmul.f32 0.015625, %v203_v28 }
  0x2e   : > { %v206_v30 = vsub.f32 %v174_v0, %v205_v29  ;;  %v207_v31 = vsub.f32 %v175_v1, %v205_v29  ;;  %v208_v32 = vsub.f32 %v176_v2, %v205_v29  ;;  %v209_v33 = vsub.f32 %v177_v3, %v205_v29 }
  0x2f   : > { %v210_v34 = vsub.f32 %v178_v7, %v205_v29  ;;  %v211_v35 = vsub.f32 %v179_v10, %v205_v29  ;;  %v212_v40 = vsub.f32 %v180_v13, %v205_v29  ;;  %v213_v46 = vsub.f32 %v181_v16, %v205_v29 }
  0x30   : > { %v214_v36 = vmul.f32 %v206_v30, %v206_v30  ;;  %v215_v37 = vmul.f32 %v207_v31, %v207_v31  ;;  %v216_v38 = vmul.f32 %v208_v32, %v208_v32  ;;  %v217_v39 = vmul.f32 %v209_v33, %v209_v33 }
  0x31   : > { %v218_v41 = vmul.f32 %v210_v34, %v210_v34  ;;  %v219_v47 = vmul.f32 %v211_v35, %v211_v35  ;;  %v220_v50 = vmul.f32 %v212_v40, %v212_v40  ;;  %v221_v53 = vmul.f32 %v213_v46, %v213_v46 }
  0x32   : > { %v222_v42 = vsel %vm182_vm0, %v214_v36, 0.0  ;;  %v223_v43 = vsel %vm182_vm0, %v215_v37, 0.0  ;;  %v225_v44 = vsel %vm182_vm0, %v216_v38, 0.0  ;;  %v227_v48 = vsel %vm182_vm0, %v217_v39, 0.0 }
  0x33   : > { %v224_v45 = vadd.f32 %v223_v43, %v222_v42  ;;  %v229_v51 = vsel %vm182_vm0, %v218_v41, 0.0  ;;  %v231_v54 = vsel %vm182_vm0, %v219_v47, 0.0  ;;  %v233_v56 = vsel %vm182_vm0, %v220_v50, 0.0 }
  0x34   : > { %v235_v58 = vsel %vm182_vm0, %v221_v53, 0.0 }
  0x35   : > { %v226_v49 = vadd.f32 %v225_v44, %v224_v45 }
  0x37   : > { %v228_v52 = vadd.f32 %v227_v48, %v226_v49 }
  0x39   : > { %v230_v55 = vadd.f32 %v229_v51, %v228_v52 }
  0x3b   : > { %v232_v57 = vadd.f32 %v231_v54, %v230_v55 }
  0x3d   : > { %v234_v59 = vadd.f32 %v233_v56, %v232_v57 }
  0x3f   : > { %v236_v60 = vadd.f32 %v235_v58, %v234_v59 }
  0x41   : > { %v237_v61 = vrot.slane %v236_v60, 4 }
  0x43   : > { %v238_v62 = vadd.f32 %v237_v61, %v236_v60 }
  0x45   : > { %v239_v63 = vrot.slane %v238_v62, 2 }
  0x47   : > { %v240_v0 = vadd.f32 %v239_v63, %v238_v62 }
  0x49   : > { %v241_v1 = vrot.slane %v240_v0, 1 }
  0x4b   : > { %v242_v2 = vadd.f32 %v241_v1, %v240_v0 }
  0x4d   : > { %v243_v3 = vmul.f32 0.015625, %v242_v2 }
  0x4f   : > { %v244_v4 = vadd.f32 1e-05, %v243_v3 }
  0x51   : > { %377 = vrsqrt.f32 %v244_v4 }
  0x5b   : > { %v378_v5 = vpop.eup %377 }
  0x5c   : > { %v246_v7 = vmul.f32 %v378_v5, %v206_v30  ;;  %v247_v8 = vmul.f32 %v378_v5, %v207_v31  ;;  %v248_v9 = vmul.f32 %v378_v5, %v208_v32  ;;  %v249_v10 = vmul.f32 %v378_v5, %v209_v33 }
  0x5d   : > { %v250_v12 = vmul.f32 %v378_v5, %v210_v34  ;;  %v251_v13 = vmul.f32 %v378_v5, %v211_v35  ;;  %v252_v14 = vmul.f32 %v378_v5, %v212_v40  ;;  %v253_v15 = vmul.f32 %v378_v5, %v213_v46 }
  0x5e   : > { %v261_v16 = vmul.f32 %v365_v6, %v246_v7  ;;  %v262_v17 = vmul.f32 %v365_v6, %v247_v8  ;;  %v263_v18 = vmul.f32 %v365_v6, %v248_v9  ;;  %v264_v19 = vmul.f32 %v365_v6, %v249_v10 }
  0x5f   : > { %v265_v20 = vmul.f32 %v365_v6, %v250_v12  ;;  %v266_v21 = vmul.f32 %v365_v6, %v251_v13  ;;  %v267_v22 = vmul.f32 %v365_v6, %v252_v14  ;;  %v268_v23 = vmul.f32 %v365_v6, %v253_v15 }
  0x60   : > { %v276_v24 = vadd.f32 %v366_v11, %v261_v16  ;;  %v277_v25 = vadd.f32 %v366_v11, %v262_v17  ;;  %v278_v26 = vadd.f32 %v366_v11, %v263_v18  ;;  %v279_v27 = vadd.f32 %v366_v11, %v264_v19 }
  0x61   : > { %v280_v28 = vadd.f32 %v366_v11, %v265_v20  ;;  %v281_v29 = vadd.f32 %v366_v11, %v266_v21  ;;  %v282_v30 = vadd.f32 %v366_v11, %v267_v22  ;;  %v283_v31 = vadd.f32 %v366_v11, %v268_v23 }
  0x62   : > { %v284_v32 = vmax.f32 %v276_v24, 0.0  ;;  %v285_v33 = vmax.f32 %v277_v25, 0.0  ;;  %v286_v34 = vmax.f32 %v278_v26, 0.0  ;;  %v287_v35 = vmax.f32 %v279_v27, 0.0 }
  0x63   : > { %v288_v36 = vmax.f32 %v280_v28, 0.0  ;;  %v289_v37 = vmax.f32 %v281_v29, 0.0  ;;  %v290_v38 = vmax.f32 %v282_v30, 0.0  ;;  %v291_v39 = vmax.f32 %v283_v31, 0.0 }
  0x64   : > { %292 = vst.msk [vmem:[%s172_s25] sm:$0xff] %vm182_vm0, %v284_v32  ;;  %293 = vst.msk [vmem:[%s172_s25 + $0x8] sm:$0xff] %vm182_vm0, %v285_v33 }
  0x65   : > { %294 = vst.msk [vmem:[%s172_s25 + $0x10] sm:$0xff] %vm182_vm0, %v286_v34  ;;  %295 = vst.msk [vmem:[%s172_s25 + $0x18] sm:$0xff] %vm182_vm0, %v287_v35 }
  0x66   : > { %296 = vst.msk [vmem:[%s172_s25 + $0x20] sm:$0xff] %vm182_vm0, %v288_v36  ;;  %297 = vst.msk [vmem:[%s172_s25 + $0x28] sm:$0xff] %vm182_vm0, %v289_v37 }
  0x67   : > { %298 = vst.msk [vmem:[%s172_s25 + $0x30] sm:$0xff] %vm182_vm0, %v290_v38  ;;  %299 = vst.msk [vmem:[%s172_s25 + $0x38] sm:$0xff] %vm182_vm0, %v291_v39 }
  0x68 PF: > { %s13_s12 = sadd.s32 1, %s385_s12  }
  0x69   : > { %p10_p4 = scmp.ge.s32.totalorder %s13_s12, 4  }
  0x6b   :  { %12 = sbr.rel (!%p10_p4) target bundleno = 1 (0x1), region = 62 }

// kernel: rsm_forward.39
= control target key start
LH: loop header
LB: loop body
LE: loop exit
PB: predicated region body
PF: predicated region fallthrough
CT: control target
= control target key end

     0   :  { %s804_s12 = smov 0   ;;  %s918_s0 = inlined_call_operand.vmem [shape: bf16[128,288], index: 0, kind: input, shape index: {}]   ;;  %s919_s1 = inlined_call_operand.vmem [shape: bf16[288,64], index: 1, kind: input, shape index: {}]   ;;  %s920_s2 = inlined_call_operand.vmem [shape: f32[1,64], index: 2, kind: input, shape index: {}]   ;;  %s921_s3 = inlined_call_operand.vmem [shape: f32[128,64], index: 3, kind: output, shape index: {}]  }
   0x1 LB: > { %s613_s13 = sadd.s32 4294967295, %s782_s12   ;;  %p617_p0 = scmp.ge.s32.totalorder %s782_s12, 1  ;;  %s782_s12 = sphi %s804_s12, %s13_s12  }
   0x2   : > { %p139_p1 = scmp.lt.s32.totalorder %s782_s12, 3 }
   0x4   : > { %p140_p2 = pnand %p617_p0, %p139_p1 }
   0x5   : > { %v742_v0 = vld [vmem:[%s919_s1 + $0x40] sm:$0xff] (!%p140_p2)   ;;  %s618_s16 = sshll.u32 (!%p140_p2), %s613_s13, 3  ;;  %v744_v2 = vld [vmem:[%s919_s1 + $0x48] sm:$0xff] (!%p140_p2)   ;;  %v746_v4 = vld [vmem:[%s919_s1 + $0x50] sm:$0xff] (!%p140_p2)   ;;  %vm405_vm0 = vcmask (!%p140_p2), 261120   ;;  %vm548_vm1 = vcmask (!%p140_p2), 523264  }
   0x6   : > { %143 = sbr.rel (%p140_p2) target bundleno = 276 (0x114), region = 32  ;;  %v743_v1 = vld [vmem:[%s919_s1] sm:$0xff] (!%p140_p2)   ;;  %659 = vmatprep.subr.bf16.mxu0 (!%p140_p2), %v742_v0  ;;  %717 = vmatprep.subr.bf16.mxu1 (!%p140_p2), %v742_v0  ;;  %p165_p3 = scmp.lt.s32.totalorder (!%p140_p2), %s618_s16, 15  ;;  %v745_v3 = vld [vmem:[%s919_s1 + $0x8] sm:$0xff] (!%p140_p2)   ;;  %v747_v5 = vld [vmem:[%s919_s1 + $0x10] sm:$0xff] (!%p140_p2)  }
   0x7   : > { %660 = vmatpush3.bf16.msra.mxu0 (!%p140_p2), %v743_v1  ;;  %725 = vmatpush3.bf16.msra.mxu1 (!%p140_p2), %v743_v1  ;;  %v748_v6 = vld [vmem:[%s919_s1 + $0x58] sm:$0xff] (!%p140_p2)   ;;  %v750_v8 = vld [vmem:[%s919_s1 + $0x60] sm:$0xff] (!%p140_p2)   ;;  %v752_v10 = vld [vmem:[%s919_s1 + $0x68] sm:$0xff] (!%p140_p2)  }
   0x8   : > { %661 = vmatprep.subr.bf16.mxu0 (!%p140_p2), %v744_v2  ;;  %718 = vmatprep.subr.bf16.mxu1 (!%p140_p2), %v744_v2  ;;  %v749_v7 = vld [vmem:[%s919_s1 + $0x18] sm:$0xff] (!%p140_p2)   ;;  %v751_v9 = vld [vmem:[%s919_s1 + $0x20] sm:$0xff] (!%p140_p2)   ;;  %v753_v13 = vld [vmem:[%s919_s1 + $0x28] sm:$0xff] (!%p140_p2)  }
   0x9   : > { %v754_v14 = vld [vmem:[%s919_s1 + $0x70] sm:$0xff] (!%p140_p2)   ;;  %v756_v16 = vld [vmem:[%s919_s1 + $0x78] sm:$0xff] (!%p140_p2)   ;;  %v764_v18 = vld [vmem:[%s919_s1 + $0x80] sm:$0xff] (!%p140_p2)  }
   0xa   : > { %v755_v15 = vld [vmem:[%s919_s1 + $0x30] sm:$0xff] (!%p140_p2)   ;;  %v757_v17 = vld [vmem:[%s919_s1 + $0x38] sm:$0xff] (!%p140_p2)   ;;  %v765_v22 = vld [vmem:[%s919_s1 + $0x88] sm:$0xff] (!%p140_p2)  }
   0xb   : > { %662 = vmatpush3.bf16.msra.mxu0 (!%p140_p2), %v745_v3  ;;  %726 = vmatpush3.bf16.msra.mxu1 (!%p140_p2), %v745_v3  ;;  %v622_v42 = vld [vmem:[%s920_s2] ss:$0 sm:$0xff] (!%p140_p2) }
   0xc   : > { %663 = vmatprep.subr.bf16.mxu0 (!%p140_p2), %v746_v4  ;;  %719 = vmatprep.subr.bf16.mxu1 (!%p140_p2), %v746_v4 }
   0xd   : > { %s923_s16 = smov (!%p165_p3, %s618_s16), 15 }
   0xe   : > { %s733_s29 = smul.u32 12, %s923_s16  ;;  %s621_s5 = sshll.u32 %s923_s16, 3 }
   0xf   : > { %664 = vmatpush3.bf16.msra.mxu0 %v747_v5  ;;  %727 = vmatpush3.bf16.msra.mxu1 %v747_v5  ;;  %s897_s8 = scalar_lea.vmem %s921_s3, %s621_s5 }
  0x10   : > { %665 = vmatprep.subr.bf16.mxu0 %v748_v6  ;;  %720 = vmatprep.subr.bf16.mxu1 %v748_v6  ;;  %s845_s9 = scalar_lea.vmem %s918_s0, %s733_s29 }
  0x11   : > { %v760_v11 = vld [vmem:[%s845_s9 + $0x4] ss:$12 sps:$4 sm:$0xff]   ;;  %v763_v12 = vld [vmem:[%s845_s9 + $0x4c] ss:$12 sps:$4 sm:$0xff]   ;;  %v761_v20 = vld [vmem:[%s845_s9 + $0x48] ss:$12 sps:$4 sm:$0xff]  }
  0x12   : > { %450 = vmatprep.mubr.bf16.mxu0 %v760_v11  ;;  %474 = vmatprep.mubr.bf16.mxu1 %v763_v12  ;;  %v758_v19 = vld [vmem:[%s845_s9] ss:$12 sps:$4 sm:$0xff]   ;;  %v766_v21 = vld [vmem:[%s845_s9 + $0x1c] ss:$12 sps:$4 sm:$0xff]   ;;  %v769_v24 = vld [vmem:[%s845_s9 + $0x18] ss:$12 sps:$4 sm:$0xff]  }
  0x13   : > { %666 = vmatpush3.bf16.msra.mxu0 %v749_v7  ;;  %728 = vmatpush3.bf16.msra.mxu1 %v749_v7  ;;  %v768_v23 = vld [vmem:[%s845_s9 + $0x8] ss:$12 sps:$4 sm:$0xff]   ;;  %v770_v25 = vld [vmem:[%s845_s9 + $0x20] ss:$12 sps:$4 sm:$0xff]   ;;  %v773_v27 = vld [vmem:[%s845_s9 + $0x38] ss:$12 sps:$4 sm:$0xff]  }
  0x14   : > { %667 = vmatprep.subr.bf16.mxu0 %v750_v8  ;;  %721 = vmatprep.subr.bf16.mxu1 %v750_v8  ;;  %v771_v26 = vld [vmem:[%s845_s9 + $0x34] ss:$12 sps:$4 sm:$0xff]   ;;  %v774_v28 = vld [vmem:[%s845_s9 + $0x30] ss:$12 sps:$4 sm:$0xff]  }
  0x15   : > { %v775_v29 = vld [vmem:[%s845_s9 + $0x50] ss:$12 sps:$4 sm:$0xff]  }
  0x17   : > { %668 = vmatpush3.bf16.msra.mxu0 %v751_v9  ;;  %729 = vmatpush3.bf16.msra.mxu1 %v751_v9 }
  0x18   : > { %669 = vmatprep.subr.bf16.mxu0 %v752_v10  ;;  %722 = vmatprep.subr.bf16.mxu1 %v752_v10 }
  0x1b   : > { %670 = vmatpush3.bf16.msra.mxu0 %v753_v13  ;;  %730 = vmatpush3.bf16.msra.mxu1 %v753_v13 }
  0x1c   : > { %671 = vmatprep.subr.bf16.mxu0 %v754_v14  ;;  %723 = vmatprep.subr.bf16.mxu1 %v754_v14 }
  0x1f   : > { %672 = vmatpush3.bf16.msra.mxu0 %v755_v15  ;;  %731 = vmatpush3.bf16.msra.mxu1 %v755_v15 }
  0x20   : > { %673 = vmatprep.subr.bf16.mxu0 %v756_v16  ;;  %724 = vmatprep.subr.bf16.mxu1 %v756_v16 }
  0x23   : > { %674 = vmatpush3.bf16.msra.mxu0 %v757_v17  ;;  %732 = vmatpush3.bf16.msra.mxu1 %v757_v17 }
  0x24   : > { %705 = vmatprep.subr.bf16.mxu1 %v764_v18 }
  0x26   : > { %451 = vmatmul.mubr.bf16.vlgmr.msra.gmra.mrb[0].mxu0 %v758_v19  ;;  %475 = vmatmul.mubr.bf16.vlgmr.msra.gmra.mrb[0].mxu1 %v761_v20 }
  0x27   : > { %706 = vmatpush3.bf16.msra.mxu1 %v764_v18  ;;  %458 = vmatprep.mubr.bf16.mxu0 %v766_v21 }
  0x28   : > { %707 = vmatprep.subr.bf16.mxu1 %v765_v22  ;;  %709 = vmatprep.mubr.msk.bf16.mxu1 %vm405_vm0, %v768_v23 }
  0x2b   : > { %708 = vmatpush3.bf16.msra.mxu1 %v765_v22 }
  0x2e   : > { %459 = vmatmul.mubr.bf16.gmra.mrb[4].mxu0 %v769_v24  ;;  %710 = vmatmul.mubr.msk.bf16.vlgmr.msra.gmra.mrb[4].mxu1 %vm405_vm0, %v770_v25 }
  0x2f   : > { %466 = vmatprep.mubr.bf16.mxu0 %v771_v26  ;;  %713 = vmatprep.mubr.msk.bf16.mxu1 %vm405_vm0, %v773_v27 }
  0x36   : > { %467 = vmatmul.mubr.bf16.gmra.mrb[8].mxu0 %v774_v28  ;;  %714 = vmatmul.mubr.msk.bf16.gmra.mrb[8].mxu1 %vm405_vm0, %v775_v29 }
  0xf9   : > { %v675_v30 = vpop.f32.mrb[0].mxu0  ;;  %v693_v31 = vpop.f32.mrb[0].mxu1 }
  0xfa   : > { %v676_v32 = vpop.f32.mrb[1].mxu0  ;;  %v694_v33 = vpop.f32.mrb[1].mxu1 }
  0xfb   : > { %v677_v34 = vadd.f32 %v676_v32, %v675_v30  ;;  %v678_v35 = vpop.f32.mrb[2].mxu0  ;;  %v695_v36 = vadd.f32 %v694_v33, %v693_v31  ;;  %v696_v37 = vpop.f32.mrb[2].mxu1 }
  0xfc   : > { %v679_v38 = vpop.f32.mrb[3].mxu0  ;;  %v697_v39 = vpop.f32.mrb[3].mxu1 }
  0xfd   : > { %v680_v40 = vadd.f32 %v679_v38, %v678_v35  ;;  %v698_v41 = vadd.f32 %v697_v39, %v696_v37  ;;  %v453_v45 = vadd.f32 %v677_v34, %v622_v42  ;;  %v477_v60 = vadd.f32 %v695_v36, %v622_v42 }
  0xff   : > { %v456_v52 = vadd.f32 %v680_v40, %v622_v42  ;;  %v480_v3 = vadd.f32 %v698_v41, %v622_v42 }
 0x101   : > { %v681_v43 = vpop.f32.mrb[4].mxu0  ;;  %v711_v44 = vpop.f32.mrb[4].mxu1 }
 0x102   : > { %v682_v46 = vpop.f32.mrb[5].mxu0  ;;  %v517_v47 = vpop.f32.mrb[5].mxu1 }
 0x103   : > { %v683_v48 = vadd.f32 %v682_v46, %v681_v43  ;;  %v518_v49 = vadd.f32 %v517_v47, %v453_v45  ;;  %v684_v50 = vpop.f32.mrb[6].mxu0  ;;  %v712_v51 = vpop.f32.mrb[6].mxu1 }
 0x104   : > { %v685_v53 = vpop.f32.mrb[7].mxu0  ;;  %v520_v54 = vpop.f32.mrb[7].mxu1 }
 0x105   : > { %v461_v55 = vadd.f32 %v683_v48, %v622_v42  ;;  %549 = vst.msk [vmem:[%s897_s8] sm:$0xff] %vm548_vm1, %v518_v49  ;;  %v686_v56 = vadd.f32 %v685_v53, %v684_v50  ;;  %v521_v57 = vadd.f32 %v520_v54, %v456_v52 }
 0x107   : > { %v526_v58 = vadd.f32 %v711_v44, %v461_v55  ;;  %v464_v59 = vadd.f32 %v686_v56, %v622_v42  ;;  %550 = vst.msk [vmem:[%s897_s8 + $0x8] sm:$0xff] %vm548_vm1, %v521_v57 }
 0x109   : > { %551 = vst.msk [vmem:[%s897_s8 + $0x10] sm:$0xff] %vm548_vm1, %v526_v58  ;;  %v529_v61 = vadd.f32 %v712_v51, %v464_v59  ;;  %v687_v62 = vpop.f32.mrb[8].mxu0  ;;  %v715_v63 = vpop.f32.mrb[8].mxu1 }
 0x10a   : > { %v542_v0 = vadd.f32 %v715_v63, %v477_v60  ;;  %v688_v1 = vpop.f32.mrb[9].mxu0  ;;  %v533_v2 = vpop.f32.mrb[9].mxu1 }
 0x10b   : > { %552 = vst.msk [vmem:[%s897_s8 + $0x18] sm:$0xff] %vm548_vm1, %v529_v61  ;;  %v689_v4 = vadd.f32 %v688_v1, %v687_v62  ;;  %v690_v5 = vpop.f32.mrb[10].mxu0  ;;  %v716_v6 = vpop.f32.mrb[10].mxu1 }
 0x10c   : > { %555 = vst.msk [vmem:[%s897_s8 + $0x30] sm:$0xff] %vm548_vm1, %v542_v0  ;;  %v545_v7 = vadd.f32 %v716_v6, %v480_v3  ;;  %v691_v8 = vpop.f32.mrb[11].mxu0  ;;  %v536_v9 = vpop.f32.mrb[11].mxu1 }
 0x10d   : > { %v469_v10 = vadd.f32 %v689_v4, %v622_v42  ;;  %v692_v11 = vadd.f32 %v691_v8, %v690_v5 }
 0x10e   : > { %556 = vst.msk [vmem:[%s897_s8 + $0x38] sm:$0xff] %vm548_vm1, %v545_v7 }
 0x10f   : > { %v534_v12 = vadd.f32 %v533_v2, %v469_v10  ;;  %v472_v13 = vadd.f32 %v692_v11, %v622_v42 }
 0x111   : > { %553 = vst.msk [vmem:[%s897_s8 + $0x20] sm:$0xff] %vm548_vm1, %v534_v12  ;;  %v537_v14 = vadd.f32 %v536_v9, %v472_v13 }
 0x113   : > { %554 = vst.msk [vmem:[%s897_s8 + $0x28] sm:$0xff] %vm548_vm1, %v537_v14 }
 0x114 PF: > { %s13_s12 = sadd.s32 1, %s782_s12  }
 0x115   : > { %p10_p4 = scmp.ge.s32.totalorder %s13_s12, 4  }
 0x117   :  { %12 = sbr.rel (!%p10_p4) target bundleno = 1 (0x1), region = 62 }

// kernel: rsm_forward.40
= control target key start
LH: loop header
LB: loop body
LE: loop exit
PB: predicated region body
PF: predicated region fallthrough
CT: control target
= control target key end

     0   :  { %s695_s12 = smov 0   ;;  %s1313_s0 = inlined_call_operand.vmem [shape: f32[512,16], index: 0, kind: input, shape index: {}]   ;;  %s1314_s1 = inlined_call_operand.vmem [shape: f32[1,16], index: 1, kind: input, shape index: {}]   ;;  %s1315_s2 = inlined_call_operand.vmem [shape: f32[1,16], index: 2, kind: input, shape index: {}]   ;;  %s1316_s3 = inlined_call_operand.vmem [shape: f32[512,16], index: 3, kind: output, shape index: {}]  }
   0x1 LB: > { %s644_s13 = sadd.s32 4294967295, %s673_s12   ;;  %p648_p0 = scmp.ge.s32.totalorder %s673_s12, 1  ;;  %s673_s12 = sphi %s695_s12, %s13_s12  }
   0x2   : > { %p138_p1 = scmp.lt.s32.totalorder %s673_s12, 3 }
   0x4   : > { %p139_p2 = pnand %p648_p0, %p138_p1 }
   0x5   : > { %s649_s14 = sshll.u32 (!%p139_p2), %s644_s13, 5  ;;  %vm206_vm0 = vcmask (!%p139_p2), 130048  }
   0x6   : > { %142 = sbr.rel (%p139_p2) target bundleno = 227 (0xe3), region = 32  ;;  %p163_p3 = scmp.lt.s32.totalorder (!%p139_p2), %s649_s14, 63 }
   0xd   : > { %s1318_s14 = smov (!%p163_p3, %s649_s14), 63 }
   0xe   : > { %s650_s15 = sshll.u32 %s1318_s14, 3 }
   0xf   : > { %s711_s18 = scalar_lea.vmem %s1313_s0, %s650_s15  ;;  %s1144_s25 = scalar_lea.vmem %s1316_s3, %s650_s15 }
  0x10   : > { %v714_v0 = vld [vmem:[%s711_s18] sm:$0xff]  ;;  %v717_v1 = vld [vmem:[%s711_s18 + $0x8] sm:$0xff]  ;;  %v720_v2 = vld [vmem:[%s711_s18 + $0x10] sm:$0xff] }
  0x11   : > { %v723_v3 = vld [vmem:[%s711_s18 + $0x18] sm:$0xff]  ;;  %v207_v4 = vsel %vm206_vm0, %v714_v0, 0.0  ;;  %v208_v5 = vsel %vm206_vm0, %v717_v1, 0.0  ;;  %v210_v6 = vsel %vm206_vm0, %v720_v2, 0.0  ;;  %v732_v7 = vld [vmem:[%s711_s18 + $0x20] sm:$0xff]  ;;  %v737_v10 = vld [vmem:[%s711_s18 + $0x28] sm:$0xff] }
  0x12   : > { %v209_v8 = vadd.f32 %v208_v5, %v207_v4  ;;  %v212_v9 = vsel %vm206_vm0, %v723_v3, 0.0  ;;  %v214_v12 = vsel %vm206_vm0, %v732_v7, 0.0  ;;  %v742_v13 = vld [vmem:[%s711_s18 + $0x30] sm:$0xff]  ;;  %v216_v15 = vsel %vm206_vm0, %v737_v10, 0.0  ;;  %v747_v16 = vld [vmem:[%s711_s18 + $0x38] sm:$0xff]  ;;  %v752_v19 = vld [vmem:[%s711_s18 + $0x40] sm:$0xff] }
  0x13   : > { %v218_v18 = vsel %vm206_vm0, %v742_v13, 0.0  ;;  %v220_v21 = vsel %vm206_vm0, %v747_v16, 0.0  ;;  %v757_v22 = vld [vmem:[%s711_s18 + $0x48] sm:$0xff]  ;;  %v222_v24 = vsel %vm206_vm0, %v752_v19, 0.0  ;;  %v762_v25 = vld [vmem:[%s711_s18 + $0x50] sm:$0xff]  ;;  %v767_v28 = vld [vmem:[%s711_s18 + $0x58] sm:$0xff] }
  0x14   : > { %v211_v11 = vadd.f32 %v210_v6, %v209_v8  ;;  %v224_v27 = vsel %vm206_vm0, %v757_v22, 0.0  ;;  %v226_v30 = vsel %vm206_vm0, %v762_v25, 0.0  ;;  %v772_v31 = vld [vmem:[%s711_s18 + $0x60] sm:$0xff]  ;;  %v228_v33 = vsel %vm206_vm0, %v767_v28, 0.0  ;;  %v777_v34 = vld [vmem:[%s711_s18 + $0x68] sm:$0xff]  ;;  %v782_v37 = vld [vmem:[%s711_s18 + $0x70] sm:$0xff] }
  0x15   : > { %v230_v36 = vsel %vm206_vm0, %v772_v31, 0.0  ;;  %v232_v39 = vsel %vm206_vm0, %v777_v34, 0.0  ;;  %v787_v40 = vld [vmem:[%s711_s18 + $0x78] sm:$0xff]  ;;  %v234_v42 = vsel %vm206_vm0, %v782_v37, 0.0  ;;  %v792_v43 = vld [vmem:[%s711_s18 + $0x80] sm:$0xff]  ;;  %v797_v46 = vld [vmem:[%s711_s18 + $0x88] sm:$0xff] }
  0x16   : > { %v213_v14 = vadd.f32 %v212_v9, %v211_v11  ;;  %v236_v45 = vsel %vm206_vm0, %v787_v40, 0.0  ;;  %v238_v48 = vsel %vm206_vm0, %v792_v43, 0.0  ;;  %v802_v49 = vld [vmem:[%s711_s18 + $0x90] sm:$0xff]  ;;  %v240_v51 = vsel %vm206_vm0, %v797_v46, 0.0  ;;  %v807_v52 = vld [vmem:[%s711_s18 + $0x98] sm:$0xff]  ;;  %v812_v55 = vld [vmem:[%s711_s18 + $0xa0] sm:$0xff] }
  0x17   : > { %v242_v54 = vsel %vm206_vm0, %v802_v49, 0.0  ;;  %v244_v57 = vsel %vm206_vm0, %v807_v52, 0.0  ;;  %v817_v58 = vld [vmem:[%s711_s18 + $0xa8] sm:$0xff]  ;;  %v246_v60 = vsel %vm206_vm0, %v812_v55, 0.0  ;;  %v822_v61 = vld [vmem:[%s711_s18 + $0xb0] sm:$0xff]  ;;  %v827_v4 = vld [vmem:[%s711_s18 + $0xb8] sm:$0xff] }
  0x18   : > { %v215_v17 = vadd.f32 %v214_v12, %v213_v14  ;;  %v248_v63 = vsel %vm206_vm0, %v817_v58, 0.0  ;;  %v250_v6 = vsel %vm206_vm0, %v822_v61, 0.0  ;;  %v832_v8 = vld [vmem:[%s711_s18 + $0xc0] sm:$0xff]  ;;  %v252_v11 = vsel %vm206_vm0, %v827_v4, 0.0  ;;  %v837_v12 = vld [vmem:[%s711_s18 + $0xc8] sm:$0xff] }
  0x1a   : > { %v217_v20 = vadd.f32 %v216_v15, %v215_v17  ;;  %v254_v15 = vsel %vm206_vm0, %v832_v8, 0.0  ;;  %v842_v17 = vld [vmem:[%s711_s18 + $0xd0] sm:$0xff] }
  0x1c   : > { %v219_v23 = vadd.f32 %v218_v18, %v217_v20  ;;  %v256_v20 = vsel %vm206_vm0, %v837_v12, 0.0 }
  0x1e   : > { %v221_v26 = vadd.f32 %v220_v21, %v219_v23  ;;  %v847_v21 = vld [vmem:[%s711_s18 + $0xd8] sm:$0xff] }
  0x20   : > { %v223_v29 = vadd.f32 %v222_v24, %v221_v26  ;;  %v258_v24 = vsel %vm206_vm0, %v842_v17, 0.0  ;;  %v852_v26 = vld [vmem:[%s711_s18 + $0xe0] sm:$0xff] }
  0x22   : > { %v225_v32 = vadd.f32 %v224_v27, %v223_v29  ;;  %v260_v29 = vsel %vm206_vm0, %v847_v21, 0.0 }
  0x24   : > { %v227_v35 = vadd.f32 %v226_v30, %v225_v32  ;;  %v857_v30 = vld [vmem:[%s711_s18 + $0xe8] sm:$0xff] }
  0x26   : > { %v229_v38 = vadd.f32 %v228_v33, %v227_v35  ;;  %v262_v33 = vsel %vm206_vm0, %v852_v26, 0.0  ;;  %v862_v35 = vld [vmem:[%s711_s18 + $0xf0] sm:$0xff] }
  0x28   : > { %v231_v41 = vadd.f32 %v230_v36, %v229_v38  ;;  %v264_v38 = vsel %vm206_vm0, %v857_v30, 0.0 }
  0x2a   : > { %v233_v44 = vadd.f32 %v232_v39, %v231_v41  ;;  %v867_v39 = vld [vmem:[%s711_s18 + $0xf8] sm:$0xff] }
  0x2c   : > { %v235_v47 = vadd.f32 %v234_v42, %v233_v44  ;;  %v266_v42 = vsel %vm206_vm0, %v862_v35, 0.0 }
  0x2e   : > { %v237_v50 = vadd.f32 %v236_v45, %v235_v47  ;;  %v268_v45 = vsel %vm206_vm0, %v867_v39, 0.0 }
  0x30   : > { %v239_v53 = vadd.f32 %v238_v48, %v237_v50 }
  0x32   : > { %v241_v56 = vadd.f32 %v240_v51, %v239_v53 }
  0x34   : > { %v243_v59 = vadd.f32 %v242_v54, %v241_v56 }
  0x36   : > { %v245_v62 = vadd.f32 %v244_v57, %v243_v59 }
  0x38   : > { %v247_v5 = vadd.f32 %v246_v60, %v245_v62 }
  0x3a   : > { %v249_v9 = vadd.f32 %v248_v63, %v247_v5 }
  0x3c   : > { %v251_v14 = vadd.f32 %v250_v6, %v249_v9 }
  0x3e   : > { %v253_v18 = vadd.f32 %v252_v11, %v251_v14 }
  0x40   : > { %v255_v23 = vadd.f32 %v254_v15, %v253_v18 }
  0x42   : > { %v257_v27 = vadd.f32 %v256_v20, %v255_v23 }
  0x44   : > { %v259_v32 = vadd.f32 %v258_v24, %v257_v27 }
  0x46   : > { %v261_v36 = vadd.f32 %v260_v29, %v259_v32 }
  0x48   : > { %v263_v41 = vadd.f32 %v262_v33, %v261_v36 }
  0x4a   : > { %v265_v44 = vadd.f32 %v264_v38, %v263_v41 }
  0x4c   : > { %v267_v47 = vadd.f32 %v266_v42, %v265_v44 }
  0x4e   : > { %v269_v48 = vadd.f32 %v268_v45, %v267_v47 }
  0x50   : > { %v270_v50 = vrot.slane %v269_v48, 4 }
  0x52   : > { %v271_v51 = vadd.f32 %v270_v50, %v269_v48 }
  0x54   : > { %v272_v53 = vrot.slane %v271_v51, 2 }
  0x56   : > { %v273_v54 = vadd.f32 %v272_v53, %v271_v51 }
  0x58   : > { %v274_v56 = vrot.slane %v273_v54, 1 }
  0x5a   : > { %v275_v57 = vadd.f32 %v274_v56, %v273_v54 }
  0x5c   : > { %v873_v59 = vmul.f32 0.00390625, %v275_v57 }
  0x5e   : > { %v877_v60 = vsub.f32 %v714_v0, %v873_v59  ;;  %v881_v62 = vsub.f32 %v717_v1, %v873_v59  ;;  %v885_v63 = vsub.f32 %v720_v2, %v873_v59  ;;  %v889_v5 = vsub.f32 %v723_v3, %v873_v59 }
  0x5f   : > { %v893_v6 = vsub.f32 %v732_v7, %v873_v59  ;;  %v903_v2 = vsub.f32 %v737_v10, %v873_v59  ;;  %v909_v7 = vsub.f32 %v742_v13, %v873_v59  ;;  %v918_v10 = vsub.f32 %v747_v16, %v873_v59 }
  0x60   : > { %v310_v0 = vmul.f32 %v877_v60, %v877_v60  ;;  %v311_v9 = vmul.f32 %v881_v62, %v881_v62  ;;  %v312_v1 = vmul.f32 %v885_v63, %v885_v63  ;;  %v313_v3 = vmul.f32 %v889_v5, %v889_v5 }
  0x61   : > { %v314_v11 = vmul.f32 %v893_v6, %v893_v6  ;;  %v315_v23 = vmul.f32 %v903_v2, %v903_v2  ;;  %v925_v27 = vsub.f32 %v752_v19, %v873_v59  ;;  %v316_v29 = vmul.f32 %v909_v7, %v909_v7 }
  0x62   : > { %v342_v14 = vsel %vm206_vm0, %v310_v0, 0.0  ;;  %v343_v15 = vsel %vm206_vm0, %v311_v9, 0.0  ;;  %v345_v18 = vsel %vm206_vm0, %v312_v1, 0.0  ;;  %v347_v13 = vsel %vm206_vm0, %v313_v3, 0.0 }
  0x63   : > { %v344_v20 = vadd.f32 %v343_v15, %v342_v14  ;;  %v349_v32 = vsel %vm206_vm0, %v314_v11, 0.0  ;;  %v932_v16 = vsub.f32 %v757_v22, %v873_v59  ;;  %v317_v36 = vmul.f32 %v918_v10, %v918_v10 }
  0x64   : > { %v351_v38 = vsel %vm206_vm0, %v315_v23, 0.0  ;;  %v939_v19 = vsub.f32 %v762_v25, %v873_v59  ;;  %v318_v42 = vmul.f32 %v925_v27, %v925_v27  ;;  %v353_v44 = vsel %vm206_vm0, %v316_v29, 0.0 }
  0x65   : > { %v346_v24 = vadd.f32 %v345_v18, %v344_v20  ;;  %v946_v22 = vsub.f32 %v767_v28, %v873_v59  ;;  %v319_v47 = vmul.f32 %v932_v16, %v932_v16  ;;  %v355_v48 = vsel %vm206_vm0, %v317_v36, 0.0 }
  0x66   : > { %v953_v25 = vsub.f32 %v772_v31, %v873_v59  ;;  %v320_v51 = vmul.f32 %v939_v19, %v939_v19  ;;  %v357_v53 = vsel %vm206_vm0, %v318_v42, 0.0  ;;  %v960_v28 = vsub.f32 %v777_v34, %v873_v59 }
  0x67   : > { %v348_v33 = vadd.f32 %v347_v13, %v346_v24  ;;  %v321_v56 = vmul.f32 %v946_v22, %v946_v22  ;;  %v359_v57 = vsel %vm206_vm0, %v319_v47, 0.0  ;;  %v967_v31 = vsub.f32 %v782_v37, %v873_v59 }
  0x68   : > { %v322_v9 = vmul.f32 %v953_v25, %v953_v25  ;;  %v361_v1 = vsel %vm206_vm0, %v320_v51, 0.0  ;;  %v974_v34 = vsub.f32 %v787_v40, %v873_v59  ;;  %v323_v11 = vmul.f32 %v960_v28, %v960_v28 }
  0x69   : > { %v350_v41 = vadd.f32 %v349_v32, %v348_v33  ;;  %v363_v14 = vsel %vm206_vm0, %v321_v56, 0.0  ;;  %v981_v37 = vsub.f32 %v792_v43, %v873_v59  ;;  %v324_v18 = vmul.f32 %v967_v31, %v967_v31 }
  0x6a   : > { %v365_v20 = vsel %vm206_vm0, %v322_v9, 0.0  ;;  %v988_v40 = vsub.f32 %v797_v46, %v873_v59  ;;  %v325_v13 = vmul.f32 %v974_v34, %v974_v34  ;;  %v367_v24 = vsel %vm206_vm0, %v323_v11, 0.0 }
  0x6b   : > { %v352_v45 = vadd.f32 %v351_v38, %v350_v41  ;;  %v995_v43 = vsub.f32 %v802_v49, %v873_v59  ;;  %v326_v32 = vmul.f32 %v981_v37, %v981_v37  ;;  %v369_v33 = vsel %vm206_vm0, %v324_v18, 0.0 }
  0x6c   : > { %v1002_v46 = vsub.f32 %v807_v52, %v873_v59  ;;  %v327_v38 = vmul.f32 %v988_v40, %v988_v40  ;;  %v371_v41 = vsel %vm206_vm0, %v325_v13, 0.0  ;;  %v1009_v49 = vsub.f32 %v812_v55, %v873_v59 }
  0x6d   : > { %v354_v50 = vadd.f32 %v353_v44, %v352_v45  ;;  %v328_v44 = vmul.f32 %v995_v43, %v995_v43  ;;  %v373_v45 = vsel %vm206_vm0, %v326_v32, 0.0  ;;  %v1016_v52 = vsub.f32 %v817_v58, %v873_v59 }
  0x6e   : > { %v1023_v55 = vsub.f32 %v822_v61, %v873_v59  ;;  %v1030_v58 = vsub.f32 %v827_v4, %v873_v59  ;;  %v1037_v61 = vsub.f32 %v832_v8, %v873_v59  ;;  %v1044_v4 = vsub.f32 %v837_v12, %v873_v59 }
  0x6f   : > { %v356_v54 = vadd.f32 %v355_v48, %v354_v50  ;;  %v329_v48 = vmul.f32 %v1002_v46, %v1002_v46  ;;  %v375_v50 = vsel %vm206_vm0, %v327_v38, 0.0  ;;  %v1051_v8 = vsub.f32 %v842_v17, %v873_v59 }
  0x70   : > { %v1058_v12 = vsub.f32 %v847_v21, %v873_v59  ;;  %v1065_v17 = vsub.f32 %v852_v26, %v873_v59  ;;  %v1072_v21 = vsub.f32 %v857_v30, %v873_v59  ;;  %v1079_v26 = vsub.f32 %v862_v35, %v873_v59 }
  0x71   : > { %v358_v0 = vadd.f32 %v357_v53, %v356_v54  ;;  %v330_v53 = vmul.f32 %v1009_v49, %v1009_v49  ;;  %v377_v54 = vsel %vm206_vm0, %v328_v44, 0.0  ;;  %v1086_v30 = vsub.f32 %v867_v39, %v873_v59 }
  0x72   : > { %v340_v35 = vmul.f32 %v1079_v26, %v1079_v26 }
  0x73   : > { %v360_v3 = vadd.f32 %v359_v57, %v358_v0  ;;  %v331_v57 = vmul.f32 %v1016_v52, %v1016_v52  ;;  %v379_v0 = vsel %vm206_vm0, %v329_v48, 0.0 }
  0x74   : > { %v401_v39 = vsel %vm206_vm0, %v340_v35, 0.0 }
  0x75   : > { %v362_v15 = vadd.f32 %v361_v1, %v360_v3  ;;  %v332_v1 = vmul.f32 %v1023_v55, %v1023_v55  ;;  %v381_v3 = vsel %vm206_vm0, %v330_v53, 0.0 }
  0x77   : > { %v364_v23 = vadd.f32 %v363_v14, %v362_v15  ;;  %v333_v14 = vmul.f32 %v1030_v58, %v1030_v58  ;;  %v383_v15 = vsel %vm206_vm0, %v331_v57, 0.0  ;;  %v341_v57 = vmul.f32 %v1086_v30, %v1086_v30 }
  0x79   : > { %v366_v29 = vadd.f32 %v365_v20, %v364_v23  ;;  %v334_v20 = vmul.f32 %v1037_v61, %v1037_v61  ;;  %v385_v23 = vsel %vm206_vm0, %v332_v1, 0.0  ;;  %v403_v1 = vsel %vm206_vm0, %v341_v57, 0.0 }
  0x7b   : > { %v368_v36 = vadd.f32 %v367_v24, %v366_v29  ;;  %v335_v24 = vmul.f32 %v1044_v4, %v1044_v4  ;;  %v387_v29 = vsel %vm206_vm0, %v333_v14, 0.0 }
  0x7d   : > { %v370_v42 = vadd.f32 %v369_v33, %v368_v36  ;;  %v336_v33 = vmul.f32 %v1051_v8, %v1051_v8  ;;  %v389_v36 = vsel %vm206_vm0, %v334_v20, 0.0 }
  0x7f   : > { %v372_v47 = vadd.f32 %v371_v41, %v370_v42  ;;  %v337_v41 = vmul.f32 %v1058_v12, %v1058_v12  ;;  %v391_v42 = vsel %vm206_vm0, %v335_v24, 0.0 }
  0x81   : > { %v374_v51 = vadd.f32 %v373_v45, %v372_v47  ;;  %v338_v45 = vmul.f32 %v1065_v17, %v1065_v17  ;;  %v393_v47 = vsel %vm206_vm0, %v336_v33, 0.0  ;;  %v1104_v33 = vld [vmem:[%s1314_s1] ss:$0 sm:$0xff] }
  0x83   : > { %v376_v56 = vadd.f32 %v375_v50, %v374_v51  ;;  %v339_v50 = vmul.f32 %v1072_v21, %v1072_v21  ;;  %v395_v51 = vsel %vm206_vm0, %v337_v41, 0.0 }
  0x85   : > { %v378_v9 = vadd.f32 %v377_v54, %v376_v56  ;;  %v397_v54 = vsel %vm206_vm0, %v338_v45, 0.0 }
  0x87   : > { %v380_v11 = vadd.f32 %v379_v0, %v378_v9  ;;  %v399_v0 = vsel %vm206_vm0, %v339_v50, 0.0 }
  0x89   : > { %v382_v18 = vadd.f32 %v381_v3, %v380_v11 }
  0x8b   : > { %v384_v13 = vadd.f32 %v383_v15, %v382_v18 }
  0x8d   : > { %v386_v32 = vadd.f32 %v385_v23, %v384_v13 }
  0x8f   : > { %v388_v38 = vadd.f32 %v387_v29, %v386_v32 }
  0x91   : > { %v390_v44 = vadd.f32 %v389_v36, %v388_v38 }
  0x93   : > { %v392_v48 = vadd.f32 %v391_v42, %v390_v44  ;;  %v1117_v44 = vld [vmem:[%s1315_s2] ss:$0 sm:$0xff] }
  0x95   : > { %v394_v53 = vadd.f32 %v393_v47, %v392_v48 }
  0x97   : > { %v396_v56 = vadd.f32 %v395_v51, %v394_v53 }
  0x99   : > { %v398_v9 = vadd.f32 %v397_v54, %v396_v56 }
  0x9b   : > { %v400_v59 = vadd.f32 %v399_v0, %v398_v9 }
  0x9d   : > { %v402_v3 = vadd.f32 %v401_v39, %v400_v59 }
  0x9f   : > { %v404_v11 = vadd.f32 %v403_v1, %v402_v3 }
  0xa1   : > { %v405_v14 = vrot.slane %v404_v11, 4 }
  0xa3   : > { %v406_v15 = vadd.f32 %v405_v14, %v404_v11 }
  0xa5   : > { %v407_v18 = vrot.slane %v406_v15, 2 }
  0xa7   : > { %v408_v20 = vadd.f32 %v407_v18, %v406_v15 }
  0xa9   : > { %v409_v23 = vrot.slane %v408_v20, 1 }
  0xab   : > { %v410_v13 = vadd.f32 %v409_v23, %v408_v20 }
  0xad   : > { %v411_v24 = vmul.f32 0.00390625, %v410_v13 }
  0xaf   : > { %v412_v29 = vadd.f32 1e-05, %v411_v24 }
  0xb1   : > { %665 = vrsqrt.f32 %v412_v29 }
  0xbb   : > { %v1099_v32 = vpop.eup %665 }
  0xbc   : > { %v414_v36 = vmul.f32 %v1099_v32, %v877_v60  ;;  %v415_v38 = vmul.f32 %v1099_v32, %v881_v62  ;;  %v416_v41 = vmul.f32 %v1099_v32, %v885_v63  ;;  %v417_v42 = vmul.f32 %v1099_v32, %v889_v5 }
  0xbd   : > { %v418_v45 = vmul.f32 %v1099_v32, %v893_v6  ;;  %v419_v60 = vmul.f32 %v1099_v32, %v903_v2  ;;  %v420_v62 = vmul.f32 %v1099_v32, %v909_v7  ;;  %v421_v63 = vmul.f32 %v1099_v32, %v918_v10 }
  0xbe   : > { %v453_v5 = vmul.f32 %v1104_v33, %v414_v36  ;;  %v454_v47 = vmul.f32 %v1104_v33, %v415_v38  ;;  %v455_v48 = vmul.f32 %v1104_v33, %v416_v41  ;;  %v456_v50 = vmul.f32 %v1104_v33, %v417_v42 }
  0xbf   : > { %v457_v6 = vmul.f32 %v1104_v33, %v418_v45  ;;  %v458_v51 = vmul.f32 %v1104_v33, %v419_v60  ;;  %v459_v2 = vmul.f32 %v1104_v33, %v420_v62  ;;  %v460_v53 = vmul.f32 %v1104_v33, %v421_v63 }
  0xc0   : > { %v492_v7 = vadd.f32 %v1117_v44, %v453_v5  ;;  %v493_v10 = vadd.f32 %v1117_v44, %v454_v47  ;;  %v494_v35 = vadd.f32 %v1117_v44, %v455_v48  ;;  %v495_v54 = vadd.f32 %v1117_v44, %v456_v50 }
  0xc1   : > { %v496_v56 = vadd.f32 %v1117_v44, %v457_v6  ;;  %v497_v57 = vadd.f32 %v1117_v44, %v458_v51  ;;  %v498_v0 = vadd.f32 %v1117_v44, %v459_v2  ;;  %v499_v9 = vadd.f32 %v1117_v44, %v460_v53 }
  0xc2   : > { %v524_v39 = vmax.f32 %v492_v7, 0.0  ;;  %v525_v59 = vmax.f32 %v493_v10, 0.0  ;;  %v526_v1 = vmax.f32 %v494_v35, 0.0  ;;  %v527_v3 = vmax.f32 %v495_v54, 0.0 }
  0xc3   : > { %v528_v11 = vmax.f32 %v496_v56, 0.0  ;;  %v529_v14 = vmax.f32 %v497_v57, 0.0  ;;  %v530_v15 = vmax.f32 %v498_v0, 0.0  ;;  %v531_v18 = vmax.f32 %v499_v9, 0.0 }
  0xc4   : > { %556 = vst.msk [vmem:[%s1144_s25] sm:$0xff] %vm206_vm0, %v524_v39  ;;  %557 = vst.msk [vmem:[%s1144_s25 + $0x8] sm:$0xff] %vm206_vm0, %v525_v59  ;;  %v422_v20 = vmul.f32 %v1099_v32, %v925_v27  ;;  %v423_v23 = vmul.f32 %v1099_v32, %v932_v16  ;;  %v424_v13 = vmul.f32 %v1099_v32, %v939_v19 }
  0xc5   : > { %558 = vst.msk [vmem:[%s1144_s25 + $0x10] sm:$0xff] %vm206_vm0, %v526_v1  ;;  %559 = vst.msk [vmem:[%s1144_s25 + $0x18] sm:$0xff] %vm206_vm0, %v527_v3  ;;  %v425_v24 = vmul.f32 %v1099_v32, %v946_v22  ;;  %v426_v27 = vmul.f32 %v1099_v32, %v953_v25  ;;  %v427_v16 = vmul.f32 %v1099_v32, %v960_v28 }
  0xc6   : > { %560 = vst.msk [vmem:[%s1144_s25 + $0x20] sm:$0xff] %vm206_vm0, %v528_v11  ;;  %561 = vst.msk [vmem:[%s1144_s25 + $0x28] sm:$0xff] %vm206_vm0, %v529_v14  ;;  %v428_v19 = vmul.f32 %v1099_v32, %v967_v31  ;;  %v429_v22 = vmul.f32 %v1099_v32, %v974_v34  ;;  %v461_v29 = vmul.f32 %v1104_v33, %v422_v20 }
  0xc7   : > { %562 = vst.msk [vmem:[%s1144_s25 + $0x30] sm:$0xff] %vm206_vm0, %v530_v15  ;;  %563 = vst.msk [vmem:[%s1144_s25 + $0x38] sm:$0xff] %vm206_vm0, %v531_v18  ;;  %v462_v36 = vmul.f32 %v1104_v33, %v423_v23  ;;  %v463_v38 = vmul.f32 %v1104_v33, %v424_v13  ;;  %v464_v41 = vmul.f32 %v1104_v33, %v425_v24 }
  0xc8   : > { %v465_v42 = vmul.f32 %v1104_v33, %v426_v27  ;;  %v466_v25 = vmul.f32 %v1104_v33, %v427_v16  ;;  %v467_v28 = vmul.f32 %v1104_v33, %v428_v19  ;;  %v468_v45 = vmul.f32 %v1104_v33, %v429_v22 }
  0xc9   : > { %v500_v31 = vadd.f32 %v1117_v44, %v461_v29  ;;  %v501_v34 = vadd.f32 %v1117_v44, %v462_v36  ;;  %v502_v60 = vadd.f32 %v1117_v44, %v463_v38  ;;  %v503_v62 = vadd.f32 %v1117_v44, %v464_v41 }
  0xca   : > { %v504_v63 = vadd.f32 %v1117_v44, %v465_v42  ;;  %v505_v5 = vadd.f32 %v1117_v44, %v466_v25  ;;  %v506_v47 = vadd.f32 %v1117_v44, %v467_v28  ;;  %v507_v48 = vadd.f32 %v1117_v44, %v468_v45 }
  0xcb   : > { %v532_v50 = vmax.f32 %v500_v31, 0.0  ;;  %v533_v6 = vmax.f32 %v501_v34, 0.0  ;;  %v534_v51 = vmax.f32 %v502_v60, 0.0  ;;  %v535_v2 = vmax.f32 %v503_v62, 0.0 }
  0xcc   : > { %v536_v53 = vmax.f32 %v504_v63, 0.0  ;;  %v537_v7 = vmax.f32 %v505_v5, 0.0  ;;  %v538_v10 = vmax.f32 %v506_v47, 0.0  ;;  %v539_v35 = vmax.f32 %v507_v48, 0.0 }
  0xcd   : > { %564 = vst.msk [vmem:[%s1144_s25 + $0x40] sm:$0xff] %vm206_vm0, %v532_v50  ;;  %565 = vst.msk [vmem:[%s1144_s25 + $0x48] sm:$0xff] %vm206_vm0, %v533_v6  ;;  %v430_v54 = vmul.f32 %v1099_v32, %v981_v37  ;;  %v431_v56 = vmul.f32 %v1099_v32, %v988_v40  ;;  %v432_v57 = vmul.f32 %v1099_v32, %v995_v43 }
  0xce   : > { %566 = vst.msk [vmem:[%s1144_s25 + $0x50] sm:$0xff] %vm206_vm0, %v534_v51  ;;  %567 = vst.msk [vmem:[%s1144_s25 + $0x58] sm:$0xff] %vm206_vm0, %v535_v2  ;;  %v433_v0 = vmul.f32 %v1099_v32, %v1002_v46  ;;  %v434_v37 = vmul.f32 %v1099_v32, %v1009_v49  ;;  %v435_v40 = vmul.f32 %v1099_v32, %v1016_v52 }
  0xcf   : > { %568 = vst.msk [vmem:[%s1144_s25 + $0x60] sm:$0xff] %vm206_vm0, %v536_v53  ;;  %569 = vst.msk [vmem:[%s1144_s25 + $0x68] sm:$0xff] %vm206_vm0, %v537_v7  ;;  %v436_v43 = vmul.f32 %v1099_v32, %v1023_v55  ;;  %v437_v46 = vmul.f32 %v1099_v32, %v1030_v58  ;;  %v469_v9 = vmul.f32 %v1104_v33, %v430_v54 }
  0xd0   : > { %570 = vst.msk [vmem:[%s1144_s25 + $0x70] sm:$0xff] %vm206_vm0, %v538_v10  ;;  %571 = vst.msk [vmem:[%s1144_s25 + $0x78] sm:$0xff] %vm206_vm0, %v539_v35  ;;  %v470_v39 = vmul.f32 %v1104_v33, %v431_v56  ;;  %v471_v59 = vmul.f32 %v1104_v33, %v432_v57  ;;  %v472_v1 = vmul.f32 %v1104_v33, %v433_v0 }
  0xd1   : > { %v473_v3 = vmul.f32 %v1104_v33, %v434_v37  ;;  %v474_v49 = vmul.f32 %v1104_v33, %v435_v40  ;;  %v475_v52 = vmul.f32 %v1104_v33, %v436_v43  ;;  %v476_v11 = vmul.f32 %v1104_v33, %v437_v46 }
  0xd2   : > { %v508_v55 = vadd.f32 %v1117_v44, %v469_v9  ;;  %v509_v58 = vadd.f32 %v1117_v44, %v470_v39  ;;  %v510_v14 = vadd.f32 %v1117_v44, %v471_v59  ;;  %v511_v15 = vadd.f32 %v1117_v44, %v472_v1 }
  0xd3   : > { %v512_v18 = vadd.f32 %v1117_v44, %v473_v3  ;;  %v513_v20 = vadd.f32 %v1117_v44, %v474_v49  ;;  %v514_v23 = vadd.f32 %v1117_v44, %v475_v52  ;;  %v515_v13 = vadd.f32 %v1117_v44, %v476_v11 }
  0xd4   : > { %v540_v24 = vmax.f32 %v508_v55, 0.0  ;;  %v541_v27 = vmax.f32 %v509_v58, 0.0  ;;  %v542_v16 = vmax.f32 %v510_v14, 0.0  ;;  %v543_v19 = vmax.f32 %v511_v15, 0.0 }
  0xd5   : > { %v544_v22 = vmax.f32 %v512_v18, 0.0  ;;  %v545_v29 = vmax.f32 %v513_v20, 0.0  ;;  %v546_v36 = vmax.f32 %v514_v23, 0.0  ;;  %v547_v38 = vmax.f32 %v515_v13, 0.0 }
  0xd6   : > { %572 = vst.msk [vmem:[%s1144_s25 + $0x80] sm:$0xff] %vm206_vm0, %v540_v24  ;;  %573 = vst.msk [vmem:[%s1144_s25 + $0x88] sm:$0xff] %vm206_vm0, %v541_v27  ;;  %v438_v41 = vmul.f32 %v1099_v32, %v1037_v61  ;;  %v439_v42 = vmul.f32 %v1099_v32, %v1044_v4  ;;  %v440_v25 = vmul.f32 %v1099_v32, %v1051_v8 }
  0xd7   : > { %574 = vst.msk [vmem:[%s1144_s25 + $0x90] sm:$0xff] %vm206_vm0, %v542_v16  ;;  %575 = vst.msk [vmem:[%s1144_s25 + $0x98] sm:$0xff] %vm206_vm0, %v543_v19  ;;  %v441_v28 = vmul.f32 %v1099_v32, %v1058_v12  ;;  %v442_v61 = vmul.f32 %v1099_v32, %v1065_v17  ;;  %v443_v4 = vmul.f32 %v1099_v32, %v1072_v21 }
  0xd8   : > { %576 = vst.msk [vmem:[%s1144_s25 + $0xa0] sm:$0xff] %vm206_vm0, %v544_v22  ;;  %577 = vst.msk [vmem:[%s1144_s25 + $0xa8] sm:$0xff] %vm206_vm0, %v545_v29  ;;  %v444_v8 = vmul.f32 %v1099_v32, %v1079_v26  ;;  %v445_v12 = vmul.f32 %v1099_v32, %v1086_v30  ;;  %v477_v45 = vmul.f32 %v1104_v33, %v438_v41 }
  0xd9   : > { %578 = vst.msk [vmem:[%s1144_s25 + $0xb0] sm:$0xff] %vm206_vm0, %v546_v36  ;;  %579 = vst.msk [vmem:[%s1144_s25 + $0xb8] sm:$0xff] %vm206_vm0, %v547_v38  ;;  %v478_v31 = vmul.f32 %v1104_v33, %v439_v42  ;;  %v479_v34 = vmul.f32 %v1104_v33, %v440_v25  ;;  %v480_v60 = vmul.f32 %v1104_v33, %v441_v28 }
  0xda   : > { %v481_v62 = vmul.f32 %v1104_v33, %v442_v61  ;;  %v482_v17 = vmul.f32 %v1104_v33, %v443_v4  ;;  %v483_v21 = vmul.f32 %v1104_v33, %v444_v8  ;;  %v484_v63 = vmul.f32 %v1104_v33, %v445_v12 }
  0xdb   : > { %v516_v26 = vadd.f32 %v1117_v44, %v477_v45  ;;  %v517_v30 = vadd.f32 %v1117_v44, %v478_v31  ;;  %v518_v32 = vadd.f32 %v1117_v44, %v479_v34  ;;  %v519_v5 = vadd.f32 %v1117_v44, %v480_v60 }
  0xdc   : > { %v520_v47 = vadd.f32 %v1117_v44, %v481_v62  ;;  %v521_v48 = vadd.f32 %v1117_v44, %v482_v17  ;;  %v522_v33 = vadd.f32 %v1117_v44, %v483_v21  ;;  %v523_v50 = vadd.f32 %v1117_v44, %v484_v63 }
  0xdd   : > { %v548_v6 = vmax.f32 %v516_v26, 0.0  ;;  %v549_v51 = vmax.f32 %v517_v30, 0.0  ;;  %v550_v2 = vmax.f32 %v518_v32, 0.0  ;;  %v551_v53 = vmax.f32 %v519_v5, 0.0 }
  0xde   : > { %v552_v7 = vmax.f32 %v520_v47, 0.0  ;;  %v553_v10 = vmax.f32 %v521_v48, 0.0  ;;  %v554_v35 = vmax.f32 %v522_v33, 0.0  ;;  %v555_v54 = vmax.f32 %v523_v50, 0.0 }
  0xdf   : > { %580 = vst.msk [vmem:[%s1144_s25 + $0xc0] sm:$0xff] %vm206_vm0, %v548_v6  ;;  %581 = vst.msk [vmem:[%s1144_s25 + $0xc8] sm:$0xff] %vm206_vm0, %v549_v51 }
  0xe0   : > { %582 = vst.msk [vmem:[%s1144_s25 + $0xd0] sm:$0xff] %vm206_vm0, %v550_v2  ;;  %583 = vst.msk [vmem:[%s1144_s25 + $0xd8] sm:$0xff] %vm206_vm0, %v551_v53 }
  0xe1   : > { %584 = vst.msk [vmem:[%s1144_s25 + $0xe0] sm:$0xff] %vm206_vm0, %v552_v7  ;;  %585 = vst.msk [vmem:[%s1144_s25 + $0xe8] sm:$0xff] %vm206_vm0, %v553_v10 }
  0xe2   : > { %586 = vst.msk [vmem:[%s1144_s25 + $0xf0] sm:$0xff] %vm206_vm0, %v554_v35  ;;  %587 = vst.msk [vmem:[%s1144_s25 + $0xf8] sm:$0xff] %vm206_vm0, %v555_v54 }
  0xe3 PF: > { %s13_s12 = sadd.s32 1, %s673_s12  }
  0xe4   : > { %p10_p4 = scmp.ge.s32.totalorder %s13_s12, 4  }
  0xe6   :  { %12 = sbr.rel (!%p10_p4) target bundleno = 1 (0x1), region = 62 }

// kernel: rsm_forward.41
= control target key start
LH: loop header
LB: loop body
LE: loop exit
PB: predicated region body
PF: predicated region fallthrough
CT: control target
= control target key end

     0   :  { %s2981_s12 = smov 0   ;;  %s3598_s0 = inlined_call_operand.vmem [shape: bf16[512,784], index: 0, kind: input, shape index: {}]   ;;  %s3599_s1 = inlined_call_operand.vmem [shape: bf16[784,3], index: 1, kind: input, shape index: {}]   ;;  %s3600_s2 = inlined_call_operand.vmem [shape: f32[1,3], index: 2, kind: input, shape index: {}]   ;;  %s3601_s3 = inlined_call_operand.vmem [shape: f32[512,3], index: 3, kind: output, shape index: {}]  }
   0x1 LB: > { %s2143_s13 = sadd.s32 4294967295, %s2959_s12   ;;  %p2147_p0 = scmp.ge.s32.totalorder %s2959_s12, 1  ;;  %s2959_s12 = sphi %s2981_s12, %s13_s12  }
   0x2   : > { %p139_p1 = scmp.lt.s32.totalorder %s2959_s12, 3 }
   0x4   : > { %p140_p2 = pnand %p2147_p0, %p139_p1 }
   0x5   : > { %v2744_v0 = vld [vmem:[%s3599_s1 + $0x40] sm:$0xff] (!%p140_p2)   ;;  %s2148_s16 = sshll.u32 (!%p140_p2), %s2143_s13, 5  ;;  %v2746_v2 = vld [vmem:[%s3599_s1 + $0x48] sm:$0xff] (!%p140_p2)   ;;  %v2748_v4 = vld [vmem:[%s3599_s1 + $0x50] sm:$0xff] (!%p140_p2)   ;;  %vm1265_vm0 = vcmask (!%p140_p2), 130048   ;;  %vm2054_vm1 = vcmask (!%p140_p2), 23552  }
   0x6   : > { %143 = sbr.rel (%p140_p2) target bundleno = 482 (0x1e2), region = 32  ;;  %v2745_v1 = vld [vmem:[%s3599_s1] sm:$0xff] (!%p140_p2)   ;;  %2332 = vmatprep.subr.bf16.mxu0 (!%p140_p2), %v2744_v0  ;;  %2719 = vmatprep.subr.bf16.mxu1 (!%p140_p2), %v2744_v0  ;;  %p165_p3 = scmp.lt.s32.totalorder (!%p140_p2), %s2148_s16, 63  ;;  %v2747_v3 = vld [vmem:[%s3599_s1 + $0x8] sm:$0xff] (!%p140_p2)   ;;  %v2749_v5 = vld [vmem:[%s3599_s1 + $0x10] sm:$0xff] (!%p140_p2)  }
   0x7   : > { %2333 = vmatpush3.bf16.msra.mxu0 (!%p140_p2), %v2745_v1  ;;  %2727 = vmatpush3.bf16.msra.mxu1 (!%p140_p2), %v2745_v1  ;;  %v2750_v6 = vld [vmem:[%s3599_s1 + $0x58] sm:$0xff] (!%p140_p2)   ;;  %v2752_v8 = vld [vmem:[%s3599_s1 + $0x60] sm:$0xff] (!%p140_p2)   ;;  %v2754_v10 = vld [vmem:[%s3599_s1 + $0x68] sm:$0xff] (!%p140_p2)  }
   0x8   : > { %2334 = vmatprep.subr.bf16.mxu0 (!%p140_p2), %v2746_v2  ;;  %2720 = vmatprep.subr.bf16.mxu1 (!%p140_p2), %v2746_v2  ;;  %v2751_v7 = vld [vmem:[%s3599_s1 + $0x18] sm:$0xff] (!%p140_p2)   ;;  %v2753_v9 = vld [vmem:[%s3599_s1 + $0x20] sm:$0xff] (!%p140_p2)   ;;  %v2755_v13 = vld [vmem:[%s3599_s1 + $0x28] sm:$0xff] (!%p140_p2)  }
   0x9   : > { %v2756_v14 = vld [vmem:[%s3599_s1 + $0x70] sm:$0xff] (!%p140_p2)   ;;  %v2758_v16 = vld [vmem:[%s3599_s1 + $0x78] sm:$0xff] (!%p140_p2)   ;;  %v2766_v18 = vld [vmem:[%s3599_s1 + $0xc0] sm:$0xff] (!%p140_p2)  }
   0xa   : > { %v2757_v15 = vld [vmem:[%s3599_s1 + $0x30] sm:$0xff] (!%p140_p2)   ;;  %v2759_v17 = vld [vmem:[%s3599_s1 + $0x38] sm:$0xff] (!%p140_p2)   ;;  %v2767_v21 = vld [vmem:[%s3599_s1 + $0x140] sm:$0xff] (!%p140_p2)  }
   0xb   : > { %2335 = vmatpush3.bf16.msra.mxu0 (!%p140_p2), %v2747_v3  ;;  %2728 = vmatpush3.bf16.msra.mxu1 (!%p140_p2), %v2747_v3  ;;  %v2768_v22 = vld [vmem:[%s3599_s1 + $0x80] sm:$0xff] (!%p140_p2)   ;;  %v2770_v24 = vld [vmem:[%s3599_s1 + $0xc8] sm:$0xff] (!%p140_p2)   ;;  %v2778_v32 = vld [vmem:[%s3599_s1 + $0xd0] sm:$0xff] (!%p140_p2)  }
   0xc   : > { %2336 = vmatprep.subr.bf16.mxu0 (!%p140_p2), %v2748_v4  ;;  %2721 = vmatprep.subr.bf16.mxu1 (!%p140_p2), %v2748_v4  ;;  %v2769_v23 = vld [vmem:[%s3599_s1 + $0x100] sm:$0xff] (!%p140_p2)   ;;  %v2781_v27 = vld [vmem:[%s3599_s1 + $0x148] sm:$0xff] (!%p140_p2)   ;;  %v2779_v33 = vld [vmem:[%s3599_s1 + $0x90] sm:$0xff] (!%p140_p2)  }
   0xd   : > { %s3603_s16 = smov (!%p165_p3, %s2148_s16), 63  ;;  %v2771_v28 = vld [vmem:[%s3599_s1 + $0x88] sm:$0xff]   ;;  %v2780_v34 = vld [vmem:[%s3599_s1 + $0xd8] sm:$0xff]   ;;  %v2790_v38 = vld [vmem:[%s3599_s1 + $0xe0] sm:$0xff]  }
   0xe   : > { %s2735_s29 = smul.u32 28, %s3603_s16  ;;  %v2783_v29 = vld [vmem:[%s3599_s1 + $0x108] sm:$0xff]   ;;  %v2782_v37 = vld [vmem:[%s3599_s1 + $0x98] sm:$0xff]   ;;  %v2801_v41 = vld [vmem:[%s3599_s1 + $0x150] sm:$0xff]   ;;  %s2151_s21 = sshll.u32 %s3603_s16, 3 }
   0xf   : > { %2337 = vmatpush3.bf16.msra.mxu0 %v2749_v5  ;;  %2729 = vmatpush3.bf16.msra.mxu1 %v2749_v5  ;;  %v2791_v42 = vld [vmem:[%s3599_s1 + $0xa0] sm:$0xff]   ;;  %v2792_v43 = vld [vmem:[%s3599_s1 + $0xe8] sm:$0xff]   ;;  %v2803_v44 = vld [vmem:[%s3599_s1 + $0x110] sm:$0xff]   ;;  %s3486_s24 = scalar_lea.vmem %s3601_s3, %s2151_s21 }
  0x10   : > { %2338 = vmatprep.subr.bf16.mxu0 %v2750_v6  ;;  %2722 = vmatprep.subr.bf16.mxu1 %v2750_v6  ;;  %s3022_s9 = scalar_lea.vmem %s3598_s0, %s2735_s29  ;;  %v2793_v47 = vld [vmem:[%s3599_s1 + $0xa8] sm:$0xff]   ;;  %v2800_v48 = vld [vmem:[%s3599_s1 + $0xf0] sm:$0xff]   ;;  %v2812_v51 = vld [vmem:[%s3599_s1 + $0x158] sm:$0xff]  }
  0x11   : > { %v2762_v11 = vld [vmem:[%s3022_s9 + $0x4] ss:$28 sps:$4 sm:$0xff]   ;;  %v2772_v25 = vld [vmem:[%s3022_s9 + $0x3c] ss:$28 sps:$4 sm:$0xff]   ;;  %v2784_v35 = vld [vmem:[%s3022_s9 + $0x74] ss:$28 sps:$4 sm:$0xff]  }
  0x12   : > { %v2765_v12 = vld [vmem:[%s3022_s9 + $0x2a4] ss:$28 sps:$4 sm:$0xff]   ;;  %1346 = vmatprep.mubr.bf16.mxu0 %v2762_v11  ;;  %v2774_v26 = vld [vmem:[%s3022_s9 + $0x2dc] ss:$28 sps:$4 sm:$0xff]   ;;  %v2786_v36 = vld [vmem:[%s3022_s9 + $0x314] ss:$28 sps:$4 sm:$0xff]  }
  0x13   : > { %2339 = vmatpush3.bf16.msra.mxu0 %v2751_v7  ;;  %2730 = vmatpush3.bf16.msra.mxu1 %v2751_v7  ;;  %v2760_v19 = vld [vmem:[%s3022_s9] ss:$28 sps:$4 sm:$0xff]   ;;  %v2776_v30 = vld [vmem:[%s3022_s9 + $0x38] ss:$28 sps:$4 sm:$0xff]   ;;  %v2788_v39 = vld [vmem:[%s3022_s9 + $0x70] ss:$28 sps:$4 sm:$0xff]  }
  0x14   : > { %2340 = vmatprep.subr.bf16.mxu0 %v2752_v8  ;;  %2723 = vmatprep.subr.bf16.mxu1 %v2752_v8  ;;  %v2763_v20 = vld [vmem:[%s3022_s9 + $0x2a0] ss:$28 sps:$4 sm:$0xff]   ;;  %v2777_v31 = vld [vmem:[%s3022_s9 + $0x2d8] ss:$28 sps:$4 sm:$0xff]   ;;  %v2789_v40 = vld [vmem:[%s3022_s9 + $0x310] ss:$28 sps:$4 sm:$0xff]  }
  0x15   : > { %1442 = vmatprep.mubr.bf16.mxu1 %v2765_v12  ;;  %v2794_v45 = vld [vmem:[%s3022_s9 + $0xac] ss:$28 sps:$4 sm:$0xff]   ;;  %v2802_v52 = vld [vmem:[%s3599_s1 + $0xb0] sm:$0xff]   ;;  %v2814_v53 = vld [vmem:[%s3599_s1 + $0x118] sm:$0xff]  }
  0x16   : > { %v2796_v46 = vld [vmem:[%s3022_s9 + $0x34c] ss:$28 sps:$4 sm:$0xff]   ;;  %v2806_v54 = vld [vmem:[%s3022_s9 + $0xe4] ss:$28 sps:$4 sm:$0xff]   ;;  %v2804_v55 = vld [vmem:[%s3599_s1 + $0xf8] sm:$0xff]  }
  0x17   : > { %2341 = vmatpush3.bf16.msra.mxu0 %v2753_v9  ;;  %2731 = vmatpush3.bf16.msra.mxu1 %v2753_v9  ;;  %v2798_v49 = vld [vmem:[%s3022_s9 + $0xa8] ss:$28 sps:$4 sm:$0xff]   ;;  %v2805_v57 = vld [vmem:[%s3599_s1 + $0xb8] sm:$0xff]   ;;  %v2821_v5 = vld [vmem:[%s3022_s9 + $0x154] ss:$28 sps:$4 sm:$0xff]  }
  0x18   : > { %2342 = vmatprep.subr.bf16.mxu0 %v2754_v10  ;;  %2724 = vmatprep.subr.bf16.mxu1 %v2754_v10  ;;  %v2799_v50 = vld [vmem:[%s3022_s9 + $0x348] ss:$28 sps:$4 sm:$0xff]   ;;  %v2811_v62 = vld [vmem:[%s3022_s9 + $0xe0] ss:$28 sps:$4 sm:$0xff]   ;;  %v2819_v3 = vld [vmem:[%s3022_s9 + $0x118] ss:$28 sps:$4 sm:$0xff]  }
  0x19   : > { %v2810_v56 = vld [vmem:[%s3022_s9 + $0xc] ss:$28 sps:$4 sm:$0xff]   ;;  %v2813_v58 = vld [vmem:[%s3599_s1 + $0x180] sm:$0xff]   ;;  %v2815_v63 = vld [vmem:[%s3022_s9 + $0x11c] ss:$28 sps:$4 sm:$0xff]  }
  0x1a   : > { %v2808_v59 = vld [vmem:[%s3022_s9 + $0x8] ss:$28 sps:$4 sm:$0xff]   ;;  %v2820_v4 = vld [vmem:[%s3022_s9 + $0x40] ss:$28 sps:$4 sm:$0xff]   ;;  %v2849_v7 = vld [vmem:[%s3599_s1 + $0x170] sm:$0xff]  }
  0x1b   : > { %2343 = vmatpush3.bf16.msra.mxu0 %v2755_v13  ;;  %2732 = vmatpush3.bf16.msra.mxu1 %v2755_v13  ;;  %v2827_v60 = vld [vmem:[%s3599_s1 + $0x160] sm:$0xff]   ;;  %v2835_v1 = vld [vmem:[%s3599_s1 + $0x168] sm:$0xff]   ;;  %v2823_v6 = vld [vmem:[%s3022_s9 + $0x7c] ss:$28 sps:$4 sm:$0xff]  }
  0x1c   : > { %2344 = vmatprep.subr.bf16.mxu0 %v2756_v14  ;;  %2725 = vmatprep.subr.bf16.mxu1 %v2756_v14  ;;  %v2828_v61 = vld [vmem:[%s3599_s1 + $0x120] sm:$0xff]   ;;  %v2836_v2 = vld [vmem:[%s3599_s1 + $0x128] sm:$0xff]   ;;  %v2850_v8 = vld [vmem:[%s3599_s1 + $0x130] sm:$0xff]  }
  0x1d   : > { %v2817_v0 = vld [vmem:[%s3022_s9 + $0x44] ss:$28 sps:$4 sm:$0xff]   ;;  %v2825_v9 = vld [vmem:[%s3022_s9 + $0x150] ss:$28 sps:$4 sm:$0xff]   ;;  %v2826_v10 = vld [vmem:[%s3022_s9 + $0x78] ss:$28 sps:$4 sm:$0xff]  }
  0x1e   : > { %v2829_v11 = vld [vmem:[%s3022_s9 + $0x18c] ss:$28 sps:$4 sm:$0xff]   ;;  %v2857_v12 = vld [vmem:[%s3599_s1 + $0x178] sm:$0xff]   ;;  %v2831_v14 = vld [vmem:[%s3022_s9 + $0xb4] ss:$28 sps:$4 sm:$0xff]  }
  0x1f   : > { %2345 = vmatpush3.bf16.msra.mxu0 %v2757_v15  ;;  %2733 = vmatpush3.bf16.msra.mxu1 %v2757_v15  ;;  %v2858_v13 = vld [vmem:[%s3599_s1 + $0x138] sm:$0xff]   ;;  %v2833_v15 = vld [vmem:[%s3022_s9 + $0x188] ss:$28 sps:$4 sm:$0xff]  }
  0x20   : > { %2346 = vmatprep.subr.bf16.mxu0 %v2758_v16  ;;  %2726 = vmatprep.subr.bf16.mxu1 %v2758_v16  ;;  %v2834_v16 = vld [vmem:[%s3022_s9 + $0xb0] ss:$28 sps:$4 sm:$0xff]  }
  0x23   : > { %2347 = vmatpush3.bf16.msra.mxu0 %v2759_v17  ;;  %2734 = vmatpush3.bf16.msra.mxu1 %v2759_v17  ;;  %v2837_v17 = vld [vmem:[%s3022_s9 + $0x1c4] ss:$28 sps:$4 sm:$0xff]  }
  0x24   : > { %2444 = vmatprep.subr.bf16.mxu1 %v2766_v18  ;;  %2556 = vmatprep.subr.bf16.mxu0 %v2767_v21  ;;  %v2839_v18 = vld [vmem:[%s3022_s9 + $0xec] ss:$28 sps:$4 sm:$0xff]   ;;  %v2843_v21 = vld [vmem:[%s3022_s9 + $0x1fc] ss:$28 sps:$4 sm:$0xff]  }
  0x26   : > { %1347 = vmatmul.mubr.bf16.vlgmr.msra.gmra.mrb[0].mxu0 %v2760_v19  ;;  %1443 = vmatmul.mubr.bf16.vlgmr.msra.gmra.mrb[0].mxu1 %v2763_v20  ;;  %v2841_v19 = vld [vmem:[%s3022_s9 + $0x1c0] ss:$28 sps:$4 sm:$0xff]   ;;  %v2842_v20 = vld [vmem:[%s3022_s9 + $0xe8] ss:$28 sps:$4 sm:$0xff]  }
  0x27   : > { %2445 = vmatpush3.bf16.msra.mxu1 %v2768_v22  ;;  %2557 = vmatpush3.bf16.msra.mxu0 %v2769_v23  ;;  %v2845_v22 = vld [vmem:[%s3022_s9 + $0x124] ss:$28 sps:$4 sm:$0xff]   ;;  %v2847_v23 = vld [vmem:[%s3022_s9 + $0x1f8] ss:$28 sps:$4 sm:$0xff]  }
  0x28   : > { %2446 = vmatprep.subr.bf16.mxu1 %v2770_v24  ;;  %1354 = vmatprep.mubr.bf16.mxu0 %v2772_v25  ;;  %v2848_v24 = vld [vmem:[%s3022_s9 + $0x120] ss:$28 sps:$4 sm:$0xff]   ;;  %v2851_v25 = vld [vmem:[%s3022_s9 + $0x234] ss:$28 sps:$4 sm:$0xff]  }
  0x29   : > { %1450 = vmatprep.mubr.bf16.mxu1 %v2774_v26  ;;  %2558 = vmatprep.subr.bf16.mxu0 %v2781_v27  ;;  %v2853_v26 = vld [vmem:[%s3022_s9 + $0x15c] ss:$28 sps:$4 sm:$0xff]   ;;  %v2855_v27 = vld [vmem:[%s3022_s9 + $0x230] ss:$28 sps:$4 sm:$0xff]  }
  0x2b   : > { %2447 = vmatpush3.bf16.msra.mxu1 %v2771_v28  ;;  %2559 = vmatpush3.bf16.msra.mxu0 %v2783_v29  ;;  %v2856_v28 = vld [vmem:[%s3022_s9 + $0x158] ss:$28 sps:$4 sm:$0xff]   ;;  %v2859_v29 = vld [vmem:[%s3022_s9 + $0x26c] ss:$28 sps:$4 sm:$0xff]  }
  0x2c   : > { %2448 = vmatprep.subr.bf16.mxu1 %v2778_v32  ;;  %2560 = vmatprep.subr.bf16.mxu0 %v2801_v41  ;;  %v2864_v32 = vld [vmem:[%s3022_s9 + $0x190] ss:$28 sps:$4 sm:$0xff]   ;;  %v2877_v41 = vld [vmem:[%s3022_s9 + $0x23c] ss:$28 sps:$4 sm:$0xff]  }
  0x2e   : > { %1355 = vmatmul.mubr.bf16.gmra.mrb[4].mxu0 %v2776_v30  ;;  %1451 = vmatmul.mubr.bf16.gmra.mrb[4].mxu1 %v2777_v31  ;;  %v2861_v30 = vld [vmem:[%s3022_s9 + $0x194] ss:$28 sps:$4 sm:$0xff]   ;;  %v2863_v31 = vld [vmem:[%s3022_s9 + $0x268] ss:$28 sps:$4 sm:$0xff]  }
  0x2f   : > { %2449 = vmatpush3.bf16.msra.mxu1 %v2779_v33  ;;  %1362 = vmatprep.mubr.bf16.mxu0 %v2784_v35  ;;  %v2865_v33 = vld [vmem:[%s3022_s9 + $0x1cc] ss:$28 sps:$4 sm:$0xff]  }
  0x30   : > { %2450 = vmatprep.subr.bf16.mxu1 %v2780_v34  ;;  %1458 = vmatprep.mubr.bf16.mxu1 %v2786_v36  ;;  %v2869_v34 = vld [vmem:[%s3022_s9 + $0x14] ss:$28 sps:$4 sm:$0xff]   ;;  %v2870_v36 = vld [vmem:[%s3022_s9 + $0x1c8] ss:$28 sps:$4 sm:$0xff]  }
  0x31   : > { %2561 = vmatpush3.bf16.msra.mxu0 %v2803_v44  ;;  %v2867_v35 = vld [vmem:[%s3022_s9 + $0x10] ss:$28 sps:$4 sm:$0xff]   ;;  %v2882_v44 = vld [vmem:[%s3022_s9 + $0x80] ss:$28 sps:$4 sm:$0xff]  }
  0x32   : > { %2562 = vmatprep.subr.bf16.mxu0 %v2812_v51  ;;  %v2893_v51 = vld [vmem:[%s3022_s9 + $0x2a8] ss:$28 sps:$4 sm:$0xff]  }
  0x33   : > { %2451 = vmatpush3.bf16.msra.mxu1 %v2782_v37  ;;  %v2871_v37 = vld [vmem:[%s3022_s9 + $0x204] ss:$28 sps:$4 sm:$0xff]  }
  0x34   : > { %2452 = vmatprep.subr.bf16.mxu1 %v2790_v38  ;;  %v2873_v38 = vld [vmem:[%s3022_s9 + $0x4c] ss:$28 sps:$4 sm:$0xff]  }
  0x35   : > { %2563 = vmatpush3.bf16.msra.mxu0 %v2814_v53  ;;  %v2895_v53 = vld [vmem:[%s3022_s9 + $0x2e4] ss:$28 sps:$4 sm:$0xff]  }
  0x36   : > { %1363 = vmatmul.mubr.bf16.gmra.mrb[8].mxu0 %v2788_v39  ;;  %1459 = vmatmul.mubr.bf16.gmra.mrb[8].mxu1 %v2789_v40  ;;  %v2875_v39 = vld [vmem:[%s3022_s9 + $0x200] ss:$28 sps:$4 sm:$0xff]   ;;  %v2876_v40 = vld [vmem:[%s3022_s9 + $0x48] ss:$28 sps:$4 sm:$0xff]  }
  0x37   : > { %2453 = vmatpush3.bf16.msra.mxu1 %v2791_v42  ;;  %1370 = vmatprep.mubr.bf16.mxu0 %v2794_v45  ;;  %v2879_v42 = vld [vmem:[%s3022_s9 + $0x84] ss:$28 sps:$4 sm:$0xff]   ;;  %v2883_v45 = vld [vmem:[%s3022_s9 + $0x274] ss:$28 sps:$4 sm:$0xff]  }
  0x38   : > { %2454 = vmatprep.subr.bf16.mxu1 %v2792_v43  ;;  %1466 = vmatprep.mubr.bf16.mxu1 %v2796_v46  ;;  %v2881_v43 = vld [vmem:[%s3022_s9 + $0x238] ss:$28 sps:$4 sm:$0xff]  }
  0x39   : > { %2564 = vmatprep.subr.bf16.mxu0 %v2827_v60  ;;  %v2885_v46 = vld [vmem:[%s3022_s9 + $0xbc] ss:$28 sps:$4 sm:$0xff]  }
  0x3a   : > { %2565 = vmatpush3.bf16.msra.mxu0 %v2828_v61  ;;  %v2906_v60 = vld [vmem:[%s3022_s9 + $0x160] ss:$28 sps:$4 sm:$0xff]   ;;  %v2907_v61 = vld [vmem:[%s3022_s9 + $0x354] ss:$28 sps:$4 sm:$0xff]  }
  0x3b   : > { %2455 = vmatpush3.bf16.msra.mxu1 %v2793_v47  ;;  %2566 = vmatprep.subr.bf16.mxu0 %v2835_v1  ;;  %v2887_v47 = vld [vmem:[%s3022_s9 + $0x270] ss:$28 sps:$4 sm:$0xff]  }
  0x3c   : > { %2456 = vmatprep.subr.bf16.mxu1 %v2800_v48  ;;  %v2888_v48 = vld [vmem:[%s3022_s9 + $0xb8] ss:$28 sps:$4 sm:$0xff]  }
  0x3d   : > { %v2913_v1 = vld [vmem:[%s3022_s9 + $0x1d4] ss:$28 sps:$4 sm:$0xff]  }
  0x3e   : > { %1371 = vmatmul.mubr.bf16.gmra.mrb[12].mxu0 %v2798_v49  ;;  %1467 = vmatmul.mubr.bf16.gmra.mrb[12].mxu1 %v2799_v50  ;;  %v2889_v49 = vld [vmem:[%s3022_s9 + $0x2ac] ss:$28 sps:$4 sm:$0xff]   ;;  %v2891_v50 = vld [vmem:[%s3022_s9 + $0xf4] ss:$28 sps:$4 sm:$0xff]  }
  0x3f   : > { %2457 = vmatpush3.bf16.msra.mxu1 %v2802_v52  ;;  %1378 = vmatprep.mubr.bf16.mxu0 %v2806_v54  ;;  %v2894_v52 = vld [vmem:[%s3022_s9 + $0xf0] ss:$28 sps:$4 sm:$0xff]  }
  0x40   : > { %2458 = vmatprep.subr.bf16.mxu1 %v2804_v55  ;;  %1507 = vmatprep.mubr.bf16.mxu1 %v2810_v56  ;;  %v2897_v54 = vld [vmem:[%s3022_s9 + $0x12c] ss:$28 sps:$4 sm:$0xff]   ;;  %v2899_v55 = vld [vmem:[%s3022_s9 + $0x2e0] ss:$28 sps:$4 sm:$0xff]  }
  0x41   : > { %2567 = vmatpush3.bf16.msra.mxu0 %v2836_v2  ;;  %v2900_v56 = vld [vmem:[%s3022_s9 + $0x128] ss:$28 sps:$4 sm:$0xff]   ;;  %v2915_v2 = vld [vmem:[%s3022_s9 + $0x18] ss:$28 sps:$4 sm:$0xff]  }
  0x42   : > { %2568 = vmatprep.subr.bf16.mxu0 %v2849_v7  ;;  %v2921_v7 = vld [vmem:[%s3022_s9 + $0x208] ss:$28 sps:$4 sm:$0xff]  }
  0x43   : > { %2459 = vmatpush3.bf16.msra.mxu1 %v2805_v57  ;;  %v2901_v57 = vld [vmem:[%s3022_s9 + $0x31c] ss:$28 sps:$4 sm:$0xff]  }
  0x44   : > { %2685 = vmatprep.subr.bf16.mxu1 %v2813_v58 }
  0x45   : > { %2569 = vmatpush3.bf16.msra.mxu0 %v2850_v8  ;;  %v2922_v8 = vld [vmem:[%s3022_s9 + $0xc0] ss:$28 sps:$4 sm:$0xff]  }
  0x46   : > { %1379 = vmatmul.mubr.bf16.gmra.mrb[16].mxu0 %v2811_v62  ;;  %1508 = vmatmul.mubr.bf16.vlgmr.msra.gmra.mrb[16].mxu1 %v2808_v59  ;;  %v2905_v59 = vld [vmem:[%s3022_s9 + $0x318] ss:$28 sps:$4 sm:$0xff]  }
  0x47   : > { %2686 = vmatpush3.bf16.msra.mxu1 %v2813_v58  ;;  %1386 = vmatprep.mubr.bf16.mxu0 %v2815_v63  ;;  %v2903_v58 = vld [vmem:[%s3022_s9 + $0x164] ss:$28 sps:$4 sm:$0xff]   ;;  %v2909_v62 = vld [vmem:[%s3022_s9 + $0x19c] ss:$28 sps:$4 sm:$0xff]   ;;  %v2911_v63 = vld [vmem:[%s3022_s9 + $0x350] ss:$28 sps:$4 sm:$0xff]  }
  0x48   : > { %1515 = vmatprep.mubr.bf16.mxu1 %v2817_v0  ;;  %2570 = vmatprep.subr.bf16.mxu0 %v2857_v12  ;;  %v2912_v0 = vld [vmem:[%s3022_s9 + $0x198] ss:$28 sps:$4 sm:$0xff]   ;;  %v2927_v12 = vld [vmem:[%s3022_s9 + $0x130] ss:$28 sps:$4 sm:$0xff]  }
  0x49   : > { %2571 = vmatpush3.bf16.msra.mxu0 %v2858_v13  ;;  %v2928_v13 = vld [vmem:[%s3022_s9 + $0x27c] ss:$28 sps:$4 sm:$0xff]  }
  0x4e   : > { %1387 = vmatmul.mubr.bf16.gmra.mrb[20].mxu0 %v2819_v3  ;;  %1516 = vmatmul.mubr.bf16.gmra.mrb[20].mxu1 %v2820_v4  ;;  %v2916_v3 = vld [vmem:[%s3022_s9 + $0x1d0] ss:$28 sps:$4 sm:$0xff]  }
  0x4f   : > { %1394 = vmatprep.mubr.bf16.mxu0 %v2821_v5  ;;  %1523 = vmatprep.mubr.bf16.mxu1 %v2823_v6  ;;  %v2917_v4 = vld [vmem:[%s3022_s9 + $0x50] ss:$28 sps:$4 sm:$0xff]   ;;  %v2920_v6 = vld [vmem:[%s3022_s9 + $0x88] ss:$28 sps:$4 sm:$0xff]  }
  0x50   : > { %v2918_v5 = vld [vmem:[%s3022_s9 + $0x20c] ss:$28 sps:$4 sm:$0xff]  }
  0x56   : > { %1395 = vmatmul.mubr.bf16.gmra.mrb[24].mxu0 %v2825_v9  ;;  %1524 = vmatmul.mubr.bf16.gmra.mrb[24].mxu1 %v2826_v10  ;;  %v2923_v9 = vld [vmem:[%s3022_s9 + $0x244] ss:$28 sps:$4 sm:$0xff]   ;;  %v2925_v10 = vld [vmem:[%s3022_s9 + $0xf8] ss:$28 sps:$4 sm:$0xff]  }
  0x57   : > { %1402 = vmatprep.mubr.bf16.mxu0 %v2829_v11  ;;  %1531 = vmatprep.mubr.bf16.mxu1 %v2831_v14  ;;  %v2926_v11 = vld [vmem:[%s3022_s9 + $0x240] ss:$28 sps:$4 sm:$0xff]   ;;  %v2930_v14 = vld [vmem:[%s3022_s9 + $0x168] ss:$28 sps:$4 sm:$0xff]  }
  0x5e   : > { %1403 = vmatmul.mubr.bf16.gmra.mrb[28].mxu0 %v2833_v15  ;;  %1532 = vmatmul.mubr.bf16.gmra.mrb[28].mxu1 %v2834_v16  ;;  %v2931_v15 = vld [vmem:[%s3022_s9 + $0x278] ss:$28 sps:$4 sm:$0xff]   ;;  %v2932_v16 = vld [vmem:[%s3022_s9 + $0x1a0] ss:$28 sps:$4 sm:$0xff]  }
  0x5f   : > { %1410 = vmatprep.mubr.bf16.mxu0 %v2837_v17  ;;  %1539 = vmatprep.mubr.bf16.mxu1 %v2839_v18  ;;  %v2933_v17 = vld [vmem:[%s3022_s9 + $0x2b4] ss:$28 sps:$4 sm:$0xff]  }
  0x60   : > { %v2935_v18 = vld [vmem:[%s3022_s9 + $0x1d8] ss:$28 sps:$4 sm:$0xff]  }
  0x66   : > { %1411 = vmatmul.mubr.bf16.gmra.mrb[32].mxu0 %v2841_v19  ;;  %1540 = vmatmul.mubr.bf16.gmra.mrb[32].mxu1 %v2842_v20  ;;  %v2936_v19 = vld [vmem:[%s3022_s9 + $0x2b0] ss:$28 sps:$4 sm:$0xff]  }
  0x67   : > { %1418 = vmatprep.mubr.bf16.mxu0 %v2843_v21  ;;  %1547 = vmatprep.mubr.bf16.mxu1 %v2845_v22  ;;  %v2937_v20 = vld [vmem:[%s3022_s9 + $0x210] ss:$28 sps:$4 sm:$0xff]   ;;  %v2940_v22 = vld [vmem:[%s3022_s9 + $0x248] ss:$28 sps:$4 sm:$0xff]  }
  0x68   : > { %v2938_v21 = vld [vmem:[%s3022_s9 + $0x2ec] ss:$28 sps:$4 sm:$0xff]  }
  0x6e   : > { %1419 = vmatmul.mubr.bf16.gmra.mrb[36].mxu0 %v2847_v23  ;;  %1548 = vmatmul.mubr.bf16.gmra.mrb[36].mxu1 %v2848_v24  ;;  %v2941_v23 = vld [vmem:[%s3022_s9 + $0x2e8] ss:$28 sps:$4 sm:$0xff]   ;;  %v2942_v24 = vld [vmem:[%s3022_s9 + $0x280] ss:$28 sps:$4 sm:$0xff]  }
  0x6f   : > { %1426 = vmatprep.mubr.bf16.mxu0 %v2851_v25  ;;  %1555 = vmatprep.mubr.bf16.mxu1 %v2853_v26  ;;  %v2943_v25 = vld [vmem:[%s3022_s9 + $0x324] ss:$28 sps:$4 sm:$0xff]   ;;  %v2945_v26 = vld [vmem:[%s3022_s9 + $0x2b8] ss:$28 sps:$4 sm:$0xff]  }
  0x76   : > { %1427 = vmatmul.mubr.bf16.gmra.mrb[40].mxu0 %v2855_v27  ;;  %1556 = vmatmul.mubr.bf16.gmra.mrb[40].mxu1 %v2856_v28  ;;  %v2946_v27 = vld [vmem:[%s3022_s9 + $0x320] ss:$28 sps:$4 sm:$0xff]   ;;  %v2947_v28 = vld [vmem:[%s3022_s9 + $0x2f0] ss:$28 sps:$4 sm:$0xff]  }
  0x77   : > { %1434 = vmatprep.mubr.bf16.mxu0 %v2859_v29  ;;  %1563 = vmatprep.mubr.bf16.mxu1 %v2861_v30  ;;  %v2948_v29 = vld [vmem:[%s3022_s9 + $0x35c] ss:$28 sps:$4 sm:$0xff]   ;;  %v2950_v30 = vld [vmem:[%s3022_s9 + $0x328] ss:$28 sps:$4 sm:$0xff]  }
  0x7e   : > { %1435 = vmatmul.mubr.bf16.gmra.mrb[44].mxu0 %v2863_v31  ;;  %1564 = vmatmul.mubr.bf16.gmra.mrb[44].mxu1 %v2864_v32 }
  0x7f   : > { %1571 = vmatprep.mubr.bf16.mxu1 %v2865_v33  ;;  %1668 = vmatprep.mubr.bf16.mxu0 %v2869_v34 }
  0x86   : > { %1572 = vmatmul.mubr.bf16.gmra.mrb[48].mxu1 %v2870_v36  ;;  %1669 = vmatmul.mubr.bf16.vlgmr.msra.gmra.mrb[48].mxu0 %v2867_v35  ;;  %v2951_v35 = vld [vmem:[%s3022_s9 + $0x358] ss:$28 sps:$4 sm:$0xff]   ;;  %v2952_v36 = vld [vmem:[%s3022_s9 + $0x360] ss:$28 sps:$4 sm:$0xff]  }
  0x87   : > { %1579 = vmatprep.mubr.bf16.mxu1 %v2871_v37  ;;  %1676 = vmatprep.mubr.bf16.mxu0 %v2873_v38 }
  0x8e   : > { %1580 = vmatmul.mubr.bf16.gmra.mrb[52].mxu1 %v2875_v39  ;;  %1677 = vmatmul.mubr.bf16.gmra.mrb[52].mxu0 %v2876_v40 }
  0x8f   : > { %1587 = vmatprep.mubr.bf16.mxu1 %v2877_v41  ;;  %1684 = vmatprep.mubr.bf16.mxu0 %v2879_v42 }
  0x96   : > { %1588 = vmatmul.mubr.bf16.gmra.mrb[56].mxu1 %v2881_v43  ;;  %1685 = vmatmul.mubr.bf16.gmra.mrb[56].mxu0 %v2882_v44 }
  0x97   : > { %1595 = vmatprep.mubr.bf16.mxu1 %v2883_v45  ;;  %1692 = vmatprep.mubr.bf16.mxu0 %v2885_v46 }
  0x9e   : > { %1596 = vmatmul.mubr.bf16.gmra.mrb[60].mxu1 %v2887_v47  ;;  %1693 = vmatmul.mubr.bf16.gmra.mrb[60].mxu0 %v2888_v48 }
  0x9f   : > { %1603 = vmatprep.mubr.bf16.mxu1 %v2889_v49  ;;  %1700 = vmatprep.mubr.bf16.mxu0 %v2891_v50 }
  0xa6   : > { %1604 = vmatmul.mubr.bf16.gmra.mrb[64].mxu1 %v2893_v51  ;;  %1701 = vmatmul.mubr.bf16.gmra.mrb[64].mxu0 %v2894_v52 }
  0xa7   : > { %1611 = vmatprep.mubr.bf16.mxu1 %v2895_v53  ;;  %1708 = vmatprep.mubr.bf16.mxu0 %v2897_v54 }
  0xae   : > { %1612 = vmatmul.mubr.bf16.gmra.mrb[68].mxu1 %v2899_v55  ;;  %1709 = vmatmul.mubr.bf16.gmra.mrb[68].mxu0 %v2900_v56 }
  0xaf   : > { %1619 = vmatprep.mubr.bf16.mxu1 %v2901_v57  ;;  %1716 = vmatprep.mubr.bf16.mxu0 %v2903_v58 }
  0xb6   : > { %1620 = vmatmul.mubr.bf16.gmra.mrb[72].mxu1 %v2905_v59  ;;  %1717 = vmatmul.mubr.bf16.gmra.mrb[72].mxu0 %v2906_v60 }
  0xb7   : > { %1627 = vmatprep.mubr.bf16.mxu1 %v2907_v61  ;;  %1724 = vmatprep.mubr.bf16.mxu0 %v2909_v62 }
  0xbe   : > { %1628 = vmatmul.mubr.bf16.gmra.mrb[76].mxu1 %v2911_v63  ;;  %1725 = vmatmul.mubr.bf16.gmra.mrb[76].mxu0 %v2912_v0 }
  0xbf   : > { %1732 = vmatprep.mubr.bf16.mxu0 %v2913_v1  ;;  %2687 = vmatprep.mubr.msk.bf16.mxu1 %vm1265_vm0, %v2915_v2 }
  0xc6   : > { %1733 = vmatmul.mubr.bf16.gmra.mrb[80].mxu0 %v2916_v3  ;;  %2688 = vmatmul.mubr.msk.bf16.vlgmr.msra.gmra.mrb[80].mxu1 %vm1265_vm0, %v2917_v4 }
  0xc7   : > { %1740 = vmatprep.mubr.bf16.mxu0 %v2918_v5  ;;  %2691 = vmatprep.mubr.msk.bf16.mxu1 %vm1265_vm0, %v2920_v6 }
  0xce   : > { %1741 = vmatmul.mubr.bf16.gmra.mrb[84].mxu0 %v2921_v7  ;;  %2692 = vmatmul.mubr.msk.bf16.gmra.mrb[84].mxu1 %vm1265_vm0, %v2922_v8 }
  0xcf   : > { %1748 = vmatprep.mubr.bf16.mxu0 %v2923_v9  ;;  %2695 = vmatprep.mubr.msk.bf16.mxu1 %vm1265_vm0, %v2925_v10 }
  0xd6   : > { %1749 = vmatmul.mubr.bf16.gmra.mrb[88].mxu0 %v2926_v11  ;;  %2696 = vmatmul.mubr.msk.bf16.gmra.mrb[88].mxu1 %vm1265_vm0, %v2927_v12 }
  0xd7   : > { %1756 = vmatprep.mubr.bf16.mxu0 %v2928_v13  ;;  %2699 = vmatprep.mubr.msk.bf16.mxu1 %vm1265_vm0, %v2930_v14 }
  0xde   : > { %1757 = vmatmul.mubr.bf16.gmra.mrb[92].mxu0 %v2931_v15  ;;  %2700 = vmatmul.mubr.msk.bf16.gmra.mrb[92].mxu1 %vm1265_vm0, %v2932_v16 }
  0xdf   : > { %1764 = vmatprep.mubr.bf16.mxu0 %v2933_v17  ;;  %2703 = vmatprep.mubr.msk.bf16.mxu1 %vm1265_vm0, %v2935_v18  ;;  %v3291_v17 = vld [vmem:[%s3600_s2] ss:$0 sm:$0xff] }
  0xe6   : > { %1765 = vmatmul.mubr.bf16.gmra.mrb[96].mxu0 %v2936_v19  ;;  %2704 = vmatmul.mubr.msk.bf16.gmra.mrb[96].mxu1 %vm1265_vm0, %v2937_v20 }
  0xe7   : > { %1772 = vmatprep.mubr.bf16.mxu0 %v2938_v21  ;;  %2707 = vmatprep.mubr.msk.bf16.mxu1 %vm1265_vm0, %v2940_v22 }
  0xee   : > { %1773 = vmatmul.mubr.bf16.gmra.mrb[100].mxu0 %v2941_v23  ;;  %2708 = vmatmul.mubr.msk.bf16.gmra.mrb[100].mxu1 %vm1265_vm0, %v2942_v24 }
  0xef   : > { %1780 = vmatprep.mubr.bf16.mxu0 %v2943_v25  ;;  %2711 = vmatprep.mubr.msk.bf16.mxu1 %vm1265_vm0, %v2945_v26 }
  0xf6   : > { %1781 = vmatmul.mubr.bf16.gmra.mrb[104].mxu0 %v2946_v27  ;;  %2712 = vmatmul.mubr.msk.bf16.gmra.mrb[104].mxu1 %vm1265_vm0, %v2947_v28 }
  0xf7   : > { %1788 = vmatprep.mubr.bf16.mxu0 %v2948_v29  ;;  %2715 = vmatprep.mubr.msk.bf16.mxu1 %vm1265_vm0, %v2950_v30 }
  0xf9   : > { %v2348_v31 = vpop.f32.mrb[0].mxu0  ;;  %v2420_v32 = vpop.f32.mrb[0].mxu1 }
  0xfa   : > { %v2349_v33 = vpop.f32.mrb[1].mxu0  ;;  %v2421_v34 = vpop.f32.mrb[1].mxu1 }
  0xfb   : > { %v2350_v37 = vadd.f32 %v2349_v33, %v2348_v31  ;;  %v2351_v38 = vpop.f32.mrb[2].mxu0  ;;  %v3271_v39 = vadd.f32 %v2421_v34, %v2420_v32  ;;  %v2423_v40 = vpop.f32.mrb[2].mxu1 }
  0xfc   : > { %v2352_v41 = vpop.f32.mrb[3].mxu0  ;;  %v2424_v42 = vpop.f32.mrb[3].mxu1 }
  0xfd   : > { %v2353_v43 = vadd.f32 %v2352_v41, %v2351_v38  ;;  %v3273_v44 = vadd.f32 %v2424_v42, %v2423_v40  ;;  %v1349_v22 = vadd.f32 %v2350_v37, %v3291_v17 }
  0xfe   : > { %1789 = vmatmul.mubr.bf16.gmra.mrb[108].mxu0 %v2951_v35  ;;  %2716 = vmatmul.mubr.msk.bf16.gmra.mrb[108].mxu1 %vm1265_vm0, %v2952_v36 }
  0xff   : > { %v1352_v29 = vadd.f32 %v2353_v43, %v3291_v17 }
 0x101   : > { %v2354_v45 = vpop.f32.mrb[4].mxu0  ;;  %v2426_v46 = vpop.f32.mrb[4].mxu1 }
 0x102   : > { %v2355_v47 = vpop.f32.mrb[5].mxu0  ;;  %v2427_v48 = vpop.f32.mrb[5].mxu1 }
 0x103   : > { %v2356_v49 = vadd.f32 %v2355_v47, %v2354_v45  ;;  %v2357_v50 = vpop.f32.mrb[6].mxu0  ;;  %v3276_v51 = vadd.f32 %v2427_v48, %v2426_v46  ;;  %v2429_v52 = vpop.f32.mrb[6].mxu1 }
 0x104   : > { %v2358_v53 = vpop.f32.mrb[7].mxu0  ;;  %v2430_v54 = vpop.f32.mrb[7].mxu1 }
 0x105   : > { %v2359_v55 = vadd.f32 %v2358_v53, %v2357_v50  ;;  %v3278_v56 = vadd.f32 %v2430_v54, %v2429_v52  ;;  %v1357_v37 = vadd.f32 %v2356_v49, %v3291_v17 }
 0x107   : > { %v1360_v43 = vadd.f32 %v2359_v55, %v3291_v17 }
 0x109   : > { %v2360_v57 = vpop.f32.mrb[8].mxu0  ;;  %v2432_v58 = vpop.f32.mrb[8].mxu1 }
 0x10a   : > { %v2361_v59 = vpop.f32.mrb[9].mxu0  ;;  %v2433_v60 = vpop.f32.mrb[9].mxu1 }
 0x10b   : > { %v2362_v61 = vadd.f32 %v2361_v59, %v2360_v57  ;;  %v2363_v62 = vpop.f32.mrb[10].mxu0  ;;  %v3280_v63 = vadd.f32 %v2433_v60, %v2432_v58  ;;  %v2435_v0 = vpop.f32.mrb[10].mxu1 }
 0x10c   : > { %v2364_v1 = vpop.f32.mrb[11].mxu0  ;;  %v2436_v2 = vpop.f32.mrb[11].mxu1 }
 0x10d   : > { %v2365_v3 = vadd.f32 %v2364_v1, %v2363_v62  ;;  %v3282_v4 = vadd.f32 %v2436_v2, %v2435_v0  ;;  %v1365_v49 = vadd.f32 %v2362_v61, %v3291_v17 }
 0x10f   : > { %v1368_v55 = vadd.f32 %v2365_v3, %v3291_v17 }
 0x111   : > { %v2366_v5 = vpop.f32.mrb[12].mxu0  ;;  %v2438_v6 = vpop.f32.mrb[12].mxu1 }
 0x112   : > { %v2367_v7 = vpop.f32.mrb[13].mxu0  ;;  %v2439_v8 = vpop.f32.mrb[13].mxu1 }
 0x113   : > { %v2368_v9 = vadd.f32 %v2367_v7, %v2366_v5  ;;  %v2369_v10 = vpop.f32.mrb[14].mxu0  ;;  %v3284_v11 = vadd.f32 %v2439_v8, %v2438_v6  ;;  %v2441_v12 = vpop.f32.mrb[14].mxu1 }
 0x114   : > { %v2370_v13 = vpop.f32.mrb[15].mxu0  ;;  %v2442_v14 = vpop.f32.mrb[15].mxu1 }
 0x115   : > { %v2371_v15 = vadd.f32 %v2370_v13, %v2369_v10  ;;  %v3286_v16 = vadd.f32 %v2442_v14, %v2441_v12  ;;  %v1373_v61 = vadd.f32 %v2368_v9, %v3291_v17 }
 0x117   : > { %v1376_v3 = vadd.f32 %v2371_v15, %v3291_v17 }
 0x119   : > { %v2372_v18 = vpop.f32.mrb[16].mxu0  ;;  %v2460_v19 = vpop.f32.mrb[16].mxu1 }
 0x11a   : > { %v2373_v20 = vpop.f32.mrb[17].mxu0  ;;  %v2461_v21 = vpop.f32.mrb[17].mxu1 }
 0x11b   : > { %v3294_v23 = vadd.f32 %v2373_v20, %v2372_v18  ;;  %v2462_v24 = vadd.f32 %v2461_v21, %v2460_v19  ;;  %v2375_v25 = vpop.f32.mrb[18].mxu0  ;;  %v2463_v26 = vpop.f32.mrb[18].mxu1 }
 0x11c   : > { %v2376_v27 = vpop.f32.mrb[19].mxu0  ;;  %v2464_v28 = vpop.f32.mrb[19].mxu1 }
 0x11d   : > { %v3297_v30 = vadd.f32 %v2462_v24, %v1349_v22  ;;  %v2377_v31 = vadd.f32 %v2376_v27, %v2375_v25  ;;  %v2465_v32 = vadd.f32 %v2464_v28, %v2463_v26  ;;  %v1381_v9 = vadd.f32 %v3294_v23, %v3291_v17 }
 0x11f   : > { %v3299_v33 = vadd.f32 %v2465_v32, %v1352_v29 }
 0x121   : > { %v2378_v34 = vpop.f32.mrb[20].mxu0  ;;  %v2466_v35 = vpop.f32.mrb[20].mxu1 }
 0x122   : > { %v2379_v36 = vpop.f32.mrb[21].mxu0  ;;  %v2467_v38 = vpop.f32.mrb[21].mxu1 }
 0x123   : > { %v3302_v40 = vadd.f32 %v2379_v36, %v2378_v34  ;;  %v2468_v41 = vadd.f32 %v2467_v38, %v2466_v35  ;;  %v2381_v42 = vpop.f32.mrb[22].mxu0  ;;  %v2469_v45 = vpop.f32.mrb[22].mxu1 }
 0x124   : > { %v2382_v46 = vpop.f32.mrb[23].mxu0  ;;  %v2470_v47 = vpop.f32.mrb[23].mxu1 }
 0x125   : > { %v3305_v48 = vadd.f32 %v2468_v41, %v1357_v37  ;;  %v2383_v50 = vadd.f32 %v2382_v46, %v2381_v42  ;;  %v2471_v52 = vadd.f32 %v2470_v47, %v2469_v45  ;;  %v1384_v46 = vadd.f32 %v2377_v31, %v3291_v17 }
 0x126   : > { %v1389_v23 = vadd.f32 %v3302_v40, %v3291_v17 }
 0x127   : > { %v3307_v53 = vadd.f32 %v2471_v52, %v1360_v43 }
 0x129   : > { %v2384_v54 = vpop.f32.mrb[24].mxu0  ;;  %v2472_v57 = vpop.f32.mrb[24].mxu1 }
 0x12a   : > { %v2385_v58 = vpop.f32.mrb[25].mxu0  ;;  %v2473_v59 = vpop.f32.mrb[25].mxu1 }
 0x12b   : > { %v3310_v60 = vadd.f32 %v2385_v58, %v2384_v54  ;;  %v2474_v62 = vadd.f32 %v2473_v59, %v2472_v57  ;;  %v2387_v0 = vpop.f32.mrb[26].mxu0  ;;  %v2475_v1 = vpop.f32.mrb[26].mxu1 }
 0x12c   : > { %v2388_v2 = vpop.f32.mrb[27].mxu0  ;;  %v2476_v5 = vpop.f32.mrb[27].mxu1 }
 0x12d   : > { %v3313_v6 = vadd.f32 %v2474_v62, %v1365_v49  ;;  %v2389_v7 = vadd.f32 %v2388_v2, %v2387_v0  ;;  %v2477_v8 = vadd.f32 %v2476_v5, %v2475_v1  ;;  %v1397_v40 = vadd.f32 %v3310_v60, %v3291_v17 }
 0x12f   : > { %v3315_v10 = vadd.f32 %v2477_v8, %v1368_v55  ;;  %v1392_v55 = vadd.f32 %v2383_v50, %v3291_v17 }
 0x131   : > { %v2390_v12 = vpop.f32.mrb[28].mxu0  ;;  %v2478_v13 = vpop.f32.mrb[28].mxu1 }
 0x132   : > { %v2391_v14 = vpop.f32.mrb[29].mxu0  ;;  %v2479_v18 = vpop.f32.mrb[29].mxu1 }
 0x133   : > { %v3318_v19 = vadd.f32 %v2391_v14, %v2390_v12  ;;  %v2480_v20 = vadd.f32 %v2479_v18, %v2478_v13  ;;  %v2393_v21 = vpop.f32.mrb[30].mxu0  ;;  %v2481_v22 = vpop.f32.mrb[30].mxu1 }
 0x134   : > { %v2394_v24 = vpop.f32.mrb[31].mxu0  ;;  %v2482_v25 = vpop.f32.mrb[31].mxu1 }
 0x135   : > { %v3321_v26 = vadd.f32 %v2480_v20, %v1373_v61  ;;  %v2395_v27 = vadd.f32 %v2394_v24, %v2393_v21  ;;  %v2483_v28 = vadd.f32 %v2482_v25, %v2481_v22 }
 0x137   : > { %v3323_v29 = vadd.f32 %v2483_v28, %v1376_v3 }
 0x139   : > { %v2396_v32 = vpop.f32.mrb[32].mxu0  ;;  %v2484_v34 = vpop.f32.mrb[32].mxu1 }
 0x13a   : > { %v2397_v35 = vpop.f32.mrb[33].mxu0  ;;  %v2485_v36 = vpop.f32.mrb[33].mxu1 }
 0x13b   : > { %v3327_v38 = vadd.f32 %v2397_v35, %v2396_v32  ;;  %v2486_v37 = vadd.f32 %v2485_v36, %v2484_v34  ;;  %v2399_v41 = vpop.f32.mrb[34].mxu0  ;;  %v2487_v42 = vpop.f32.mrb[34].mxu1  ;;  %v1400_v32 = vadd.f32 %v2389_v7, %v3291_v17 }
 0x13c   : > { %v2400_v45 = vpop.f32.mrb[35].mxu0  ;;  %v2488_v15 = vpop.f32.mrb[35].mxu1 }
 0x13d   : > { %v3330_v47 = vadd.f32 %v2486_v37, %v1381_v9  ;;  %v2401_v43 = vadd.f32 %v2400_v45, %v2399_v41  ;;  %v2489_v52 = vadd.f32 %v2488_v15, %v2487_v42  ;;  %v1405_v45 = vadd.f32 %v3318_v19, %v3291_v17 }
 0x13f   : > { %v3332_v54 = vadd.f32 %v2489_v52, %v1384_v46 }
 0x141   : > { %v2402_v57 = vpop.f32.mrb[36].mxu0  ;;  %v2490_v58 = vpop.f32.mrb[36].mxu1 }
 0x142   : > { %v2403_v59 = vpop.f32.mrb[37].mxu0  ;;  %v2491_v49 = vpop.f32.mrb[37].mxu1 }
 0x143   : > { %v3336_v62 = vadd.f32 %v2403_v59, %v2402_v57  ;;  %v2492_v0 = vadd.f32 %v2491_v49, %v2490_v58  ;;  %v2405_v1 = vpop.f32.mrb[38].mxu0  ;;  %v2493_v2 = vpop.f32.mrb[38].mxu1  ;;  %v1408_v59 = vadd.f32 %v2395_v27, %v3291_v17  ;;  %v1416_v27 = vadd.f32 %v2401_v43, %v3291_v17 }
 0x144   : > { %v2406_v5 = vpop.f32.mrb[39].mxu0  ;;  %v2494_v31 = vpop.f32.mrb[39].mxu1 }
 0x145   : > { %v3339_v8 = vadd.f32 %v2492_v0, %v1389_v23  ;;  %v2407_v12 = vadd.f32 %v2406_v5, %v2405_v1  ;;  %v2495_v13 = vadd.f32 %v2494_v31, %v2493_v2  ;;  %v1421_v43 = vadd.f32 %v3336_v62, %v3291_v17 }
 0x147   : > { %v3341_v14 = vadd.f32 %v2495_v13, %v1392_v55  ;;  %v1413_v55 = vadd.f32 %v3327_v38, %v3291_v17 }
 0x149   : > { %v2408_v18 = vpop.f32.mrb[40].mxu0  ;;  %v2496_v61 = vpop.f32.mrb[40].mxu1 }
 0x14a   : > { %v2409_v20 = vpop.f32.mrb[41].mxu0  ;;  %v2497_v21 = vpop.f32.mrb[41].mxu1 }
 0x14b   : > { %v3345_v22 = vadd.f32 %v2409_v20, %v2408_v18  ;;  %v2498_v24 = vadd.f32 %v2497_v21, %v2496_v61  ;;  %v2411_v25 = vpop.f32.mrb[42].mxu0  ;;  %v2499_v3 = vpop.f32.mrb[42].mxu1 }
 0x14c   : > { %v2412_v28 = vpop.f32.mrb[43].mxu0  ;;  %v2500_v50 = vpop.f32.mrb[43].mxu1 }
 0x14d   : > { %v3348_v34 = vadd.f32 %v2498_v24, %v1397_v40  ;;  %v3350_v35 = vadd.f32 %v2412_v28, %v2411_v25  ;;  %v2501_v36 = vadd.f32 %v2500_v50, %v2499_v3 }
 0x14f   : > { %v3352_v9 = vadd.f32 %v2501_v36, %v1400_v32 }
 0x151   : > { %v2414_v37 = vpop.f32.mrb[44].mxu0  ;;  %v2502_v41 = vpop.f32.mrb[44].mxu1 }
 0x152   : > { %v2415_v42 = vpop.f32.mrb[45].mxu0  ;;  %v2503_v60 = vpop.f32.mrb[45].mxu1 }
 0x153   : > { %v3356_v15 = vadd.f32 %v2415_v42, %v2414_v37  ;;  %v2504_v46 = vadd.f32 %v2503_v60, %v2502_v41  ;;  %v2417_v52 = vpop.f32.mrb[46].mxu0  ;;  %v2505_v57 = vpop.f32.mrb[46].mxu1 }
 0x154   : > { %v2418_v7 = vpop.f32.mrb[47].mxu0  ;;  %v2506_v58 = vpop.f32.mrb[47].mxu1 }
 0x155   : > { %v3359_v49 = vadd.f32 %v2504_v46, %v1405_v45  ;;  %v3361_v23 = vadd.f32 %v2418_v7, %v2417_v52  ;;  %v2507_v0 = vadd.f32 %v2506_v58, %v2505_v57  ;;  %v1424_v52 = vadd.f32 %v2407_v12, %v3291_v17 }
 0x156   : > { %v1429_v12 = vadd.f32 %v3345_v22, %v3291_v17 }
 0x157   : > { %v3363_v1 = vadd.f32 %v2507_v0, %v1408_v59 }
 0x159   : > { %v2508_v2 = vpop.f32.mrb[48].mxu1  ;;  %v2572_v5 = vpop.f32.mrb[48].mxu0 }
 0x15a   : > { %v2509_v31 = vpop.f32.mrb[49].mxu1  ;;  %v2573_v19 = vpop.f32.mrb[49].mxu0 }
 0x15b   : > { %v2510_v13 = vadd.f32 %v2509_v31, %v2508_v2  ;;  %v2574_v18 = vadd.f32 %v2573_v19, %v2572_v5  ;;  %v2511_v61 = vpop.f32.mrb[50].mxu1  ;;  %v2575_v20 = vpop.f32.mrb[50].mxu0 }
 0x15c   : > { %v2512_v21 = vpop.f32.mrb[51].mxu1  ;;  %v2576_v40 = vpop.f32.mrb[51].mxu0 }
 0x15d   : > { %v3368_v24 = vadd.f32 %v2510_v13, %v1413_v55  ;;  %v2513_v25 = vadd.f32 %v2512_v21, %v2511_v61  ;;  %v2577_v3 = vadd.f32 %v2576_v40, %v2575_v20  ;;  %v3371_v28 = vadd.f32 %v2574_v18, %v3297_v30 }
 0x15f   : > { %v3373_v50 = vadd.f32 %v2513_v25, %v1416_v27  ;;  %v3376_v32 = vadd.f32 %v2577_v3, %v3299_v33 }
 0x161   : > { %v2514_v38 = vpop.f32.mrb[52].mxu1  ;;  %v2578_v36 = vpop.f32.mrb[52].mxu0 }
 0x162   : > { %v2515_v37 = vpop.f32.mrb[53].mxu1  ;;  %v2579_v41 = vpop.f32.mrb[53].mxu0 }
 0x163   : > { %v2516_v42 = vadd.f32 %v2515_v37, %v2514_v38  ;;  %v2580_v60 = vadd.f32 %v2579_v41, %v2578_v36  ;;  %v2517_v45 = vpop.f32.mrb[54].mxu1  ;;  %v2581_v46 = vpop.f32.mrb[54].mxu0 }
 0x164   : > { %v2518_v30 = vpop.f32.mrb[55].mxu1  ;;  %v2582_v57 = vpop.f32.mrb[55].mxu0 }
 0x165   : > { %v3381_v7 = vadd.f32 %v2516_v42, %v1421_v43  ;;  %v2519_v58 = vadd.f32 %v2518_v30, %v2517_v45  ;;  %v2583_v33 = vadd.f32 %v2582_v57, %v2581_v46  ;;  %v3384_v59 = vadd.f32 %v2580_v60, %v3305_v48 }
 0x166   : > { %v1432_v48 = vadd.f32 %v3350_v35, %v3291_v17  ;;  %v1437_v35 = vadd.f32 %v3356_v15, %v3291_v17 }
 0x167   : > { %v3386_v0 = vadd.f32 %v2519_v58, %v1424_v52  ;;  %v3389_v2 = vadd.f32 %v2583_v33, %v3307_v53 }
 0x169   : > { %v2520_v62 = vpop.f32.mrb[56].mxu1  ;;  %v2584_v5 = vpop.f32.mrb[56].mxu0 }
 0x16a   : > { %v2521_v31 = vpop.f32.mrb[57].mxu1  ;;  %v2585_v19 = vpop.f32.mrb[57].mxu0 }
 0x16b   : > { %v2522_v55 = vadd.f32 %v2521_v31, %v2520_v62  ;;  %v2586_v13 = vadd.f32 %v2585_v19, %v2584_v5  ;;  %v2523_v18 = vpop.f32.mrb[58].mxu1  ;;  %v2587_v61 = vpop.f32.mrb[58].mxu0 }
 0x16c   : > { %v2524_v20 = vpop.f32.mrb[59].mxu1  ;;  %v2588_v27 = vpop.f32.mrb[59].mxu0 }
 0x16d   : > { %v3395_v21 = vadd.f32 %v2522_v55, %v1429_v12  ;;  %v2525_v53 = vadd.f32 %v2524_v20, %v2523_v18  ;;  %v2589_v40 = vadd.f32 %v2588_v27, %v2587_v61  ;;  %v3398_v25 = vadd.f32 %v2586_v13, %v3313_v6 }
 0x16e   : > { %v1440_v6 = vadd.f32 %v3361_v23, %v3291_v17  ;;  %v1445_v23 = vadd.f32 %v3271_v39, %v3291_v17 }
 0x16f   : > { %v3400_v3 = vadd.f32 %v2525_v53, %v1432_v48  ;;  %v3403_v22 = vadd.f32 %v2589_v40, %v3315_v10 }
 0x171   : > { %v2526_v38 = vpop.f32.mrb[60].mxu1  ;;  %v2590_v36 = vpop.f32.mrb[60].mxu0 }
 0x172   : > { %v2527_v37 = vpop.f32.mrb[61].mxu1  ;;  %v2591_v41 = vpop.f32.mrb[61].mxu0 }
 0x173   : > { %v2528_v43 = vadd.f32 %v2527_v37, %v2526_v38  ;;  %v2592_v42 = vadd.f32 %v2591_v41, %v2590_v36  ;;  %v2529_v60 = vpop.f32.mrb[62].mxu1  ;;  %v2593_v45 = vpop.f32.mrb[62].mxu0 }
 0x174   : > { %v2530_v46 = vpop.f32.mrb[63].mxu1  ;;  %v2594_v52 = vpop.f32.mrb[63].mxu0 }
 0x175   : > { %v3409_v30 = vadd.f32 %v2528_v43, %v1437_v35  ;;  %v2531_v10 = vadd.f32 %v2530_v46, %v2529_v60  ;;  %v2595_v57 = vadd.f32 %v2594_v52, %v2593_v45  ;;  %v3412_v58 = vadd.f32 %v2592_v42, %v3321_v26 }
 0x176   : > { %v1448_v26 = vadd.f32 %v3273_v44, %v3291_v17  ;;  %v1453_v44 = vadd.f32 %v3276_v51, %v3291_v17 }
 0x177   : > { %v3414_v33 = vadd.f32 %v2531_v10, %v1440_v6  ;;  %v3417_v15 = vadd.f32 %v2595_v57, %v3323_v29 }
 0x179   : > { %v2532_v62 = vpop.f32.mrb[64].mxu1  ;;  %v2596_v5 = vpop.f32.mrb[64].mxu0 }
 0x17a   : > { %v2533_v31 = vpop.f32.mrb[65].mxu1  ;;  %v2597_v19 = vpop.f32.mrb[65].mxu0 }
 0x17b   : > { %v2534_v12 = vadd.f32 %v2533_v31, %v2532_v62  ;;  %v2598_v55 = vadd.f32 %v2597_v19, %v2596_v5  ;;  %v2535_v13 = vpop.f32.mrb[66].mxu1  ;;  %v2599_v18 = vpop.f32.mrb[66].mxu0 }
 0x17c   : > { %v2536_v61 = vpop.f32.mrb[67].mxu1  ;;  %v2600_v48 = vpop.f32.mrb[67].mxu0 }
 0x17d   : > { %v3423_v20 = vadd.f32 %v2534_v12, %v1445_v23  ;;  %v2537_v29 = vadd.f32 %v2536_v61, %v2535_v13  ;;  %v2601_v27 = vadd.f32 %v2600_v48, %v2599_v18  ;;  %v3426_v53 = vadd.f32 %v2598_v55, %v3330_v47 }
 0x17e   : > { %v1456_v47 = vadd.f32 %v3278_v56, %v3291_v17  ;;  %v1461_v56 = vadd.f32 %v3280_v63, %v3291_v17 }
 0x17f   : > { %v3428_v40 = vadd.f32 %v2537_v29, %v1448_v26  ;;  %v3431_v39 = vadd.f32 %v2601_v27, %v3332_v54 }
 0x181   : > { %v2538_v38 = vpop.f32.mrb[68].mxu1  ;;  %v2602_v36 = vpop.f32.mrb[68].mxu0 }
 0x182   : > { %v2539_v37 = vpop.f32.mrb[69].mxu1  ;;  %v2603_v41 = vpop.f32.mrb[69].mxu0 }
 0x183   : > { %v2540_v35 = vadd.f32 %v2539_v37, %v2538_v38  ;;  %v2604_v43 = vadd.f32 %v2603_v41, %v2602_v36  ;;  %v2541_v42 = vpop.f32.mrb[70].mxu1  ;;  %v2605_v60 = vpop.f32.mrb[70].mxu0 }
 0x184   : > { %v2542_v45 = vpop.f32.mrb[71].mxu1  ;;  %v2606_v6 = vpop.f32.mrb[71].mxu0 }
 0x185   : > { %v3437_v46 = vadd.f32 %v2540_v35, %v1453_v44  ;;  %v2543_v54 = vadd.f32 %v2542_v45, %v2541_v42  ;;  %v2607_v52 = vadd.f32 %v2606_v6, %v2605_v60  ;;  %v3440_v10 = vadd.f32 %v2604_v43, %v3339_v8 }
 0x186   : > { %v1464_v8 = vadd.f32 %v3282_v4, %v3291_v17  ;;  %v1469_v4 = vadd.f32 %v3284_v11, %v3291_v17 }
 0x187   : > { %v3442_v57 = vadd.f32 %v2543_v54, %v1456_v47  ;;  %v3445_v51 = vadd.f32 %v2607_v52, %v3341_v14 }
 0x189   : > { %v2544_v62 = vpop.f32.mrb[72].mxu1  ;;  %v2608_v5 = vpop.f32.mrb[72].mxu0 }
 0x18a   : > { %v2545_v31 = vpop.f32.mrb[73].mxu1  ;;  %v2609_v19 = vpop.f32.mrb[73].mxu0 }
 0x18b   : > { %v2546_v23 = vadd.f32 %v2545_v31, %v2544_v62  ;;  %v2610_v12 = vadd.f32 %v2609_v19, %v2608_v5  ;;  %v2547_v55 = vpop.f32.mrb[74].mxu1  ;;  %v2611_v13 = vpop.f32.mrb[74].mxu0 }
 0x18c   : > { %v2548_v18 = vpop.f32.mrb[75].mxu1  ;;  %v2612_v26 = vpop.f32.mrb[75].mxu0 }
 0x18d   : > { %v3451_v61 = vadd.f32 %v2546_v23, %v1461_v56  ;;  %v2549_v14 = vadd.f32 %v2548_v18, %v2547_v55  ;;  %v2613_v48 = vadd.f32 %v2612_v26, %v2611_v13  ;;  %v3454_v29 = vadd.f32 %v2610_v12, %v3348_v34 }
 0x18e   : > { %v1472_v34 = vadd.f32 %v3286_v16, %v3291_v17 }
 0x18f   : > { %v3456_v27 = vadd.f32 %v2549_v14, %v1464_v8  ;;  %v3459_v63 = vadd.f32 %v2613_v48, %v3352_v9 }
 0x191   : > { %v2550_v38 = vpop.f32.mrb[76].mxu1  ;;  %v2614_v36 = vpop.f32.mrb[76].mxu0 }
 0x192   : > { %v2551_v37 = vpop.f32.mrb[77].mxu1  ;;  %v2615_v41 = vpop.f32.mrb[77].mxu0 }
 0x193   : > { %v2552_v44 = vadd.f32 %v2551_v37, %v2550_v38  ;;  %v2616_v35 = vadd.f32 %v2615_v41, %v2614_v36  ;;  %v2553_v43 = vpop.f32.mrb[78].mxu1  ;;  %v2617_v42 = vpop.f32.mrb[78].mxu0 }
 0x194   : > { %v2554_v60 = vpop.f32.mrb[79].mxu1  ;;  %v2618_v47 = vpop.f32.mrb[79].mxu0 }
 0x195   : > { %v3465_v45 = vadd.f32 %v2552_v44, %v1469_v4  ;;  %v2555_v9 = vadd.f32 %v2554_v60, %v2553_v43  ;;  %v2619_v6 = vadd.f32 %v2618_v47, %v2617_v42  ;;  %v3468_v54 = vadd.f32 %v2616_v35, %v3359_v49 }
 0x197   : > { %v3470_v52 = vadd.f32 %v2555_v9, %v1472_v34  ;;  %v3473_v11 = vadd.f32 %v2619_v6, %v3363_v1 }
 0x199   : > { %v2620_v62 = vpop.f32.mrb[80].mxu0  ;;  %v2689_v5 = vpop.f32.mrb[80].mxu1 }
 0x19a   : > { %v1840_v31 = vadd.f32 %v2689_v5, %v3384_v59  ;;  %v2621_v16 = vpop.f32.mrb[81].mxu0  ;;  %v1831_v17 = vpop.f32.mrb[81].mxu1 }
 0x19b   : > { %v2622_v19 = vadd.f32 %v2621_v16, %v2620_v62  ;;  %v1832_v56 = vadd.f32 %v1831_v17, %v3371_v28  ;;  %v2623_v23 = vpop.f32.mrb[82].mxu0  ;;  %v2690_v12 = vpop.f32.mrb[82].mxu1 }
 0x19c   : > { %v1960_v55 = vmax.f32 %v1840_v31, 0.0  ;;  %v1843_v49 = vadd.f32 %v2690_v12, %v3389_v2  ;;  %v2624_v13 = vpop.f32.mrb[83].mxu0  ;;  %v1834_v8 = vpop.f32.mrb[83].mxu1 }
 0x19d   : > { %v1958_v18 = vmax.f32 %v1832_v56, 0.0  ;;  %v2625_v1 = vadd.f32 %v2624_v13, %v2623_v23  ;;  %v1835_v26 = vadd.f32 %v1834_v8, %v3376_v32  ;;  %v3481_v14 = vadd.f32 %v2622_v19, %v3368_v24 }
 0x19e   : > { %v1992_v59 = vmin.f32 %v1960_v55, 6.0  ;;  %v1961_v48 = vmax.f32 %v1843_v49, 0.0 }
 0x19f   : > { %v1990_v28 = vmin.f32 %v1958_v18, 6.0  ;;  %v1959_v2 = vmax.f32 %v1835_v26, 0.0  ;;  %v3489_v38 = vadd.f32 %v2625_v1, %v3373_v50 }
 0x1a0   : > { %v2024_v36 = vmul.f32 0.16666667, %v1992_v59  ;;  %v1993_v32 = vmin.f32 %v1961_v48, 6.0 }
 0x1a1   : > { %v2022_v24 = vmul.f32 0.16666667, %v1990_v28  ;;  %v1991_v37 = vmin.f32 %v1959_v2, 6.0  ;;  %v2626_v41 = vpop.f32.mrb[84].mxu0  ;;  %v2693_v4 = vpop.f32.mrb[84].mxu1 }
 0x1a2   : > { %2057 = vst.msk [vmem:[%s3486_s24 + $0x10] sm:$0xff] %vm2054_vm1, %v2024_v36  ;;  %v2025_v44 = vmul.f32 0.16666667, %v1993_v32  ;;  %v1856_v35 = vadd.f32 %v2693_v4, %v3412_v58  ;;  %v2627_v43 = vpop.f32.mrb[85].mxu0  ;;  %v1847_v42 = vpop.f32.mrb[85].mxu1 }
 0x1a3   : > { %2055 = vst.msk [vmem:[%s3486_s24] sm:$0xff] %vm2054_vm1, %v2022_v24  ;;  %v2023_v34 = vmul.f32 0.16666667, %v1991_v37  ;;  %v2628_v50 = vadd.f32 %v2627_v43, %v2626_v41  ;;  %v1848_v60 = vadd.f32 %v1847_v42, %v3398_v25  ;;  %v2629_v47 = vpop.f32.mrb[86].mxu0  ;;  %v2694_v9 = vpop.f32.mrb[86].mxu1 }
 0x1a4   : > { %2058 = vst.msk [vmem:[%s3486_s24 + $0x18] sm:$0xff] %vm2054_vm1, %v2025_v44  ;;  %v1964_v6 = vmax.f32 %v1856_v35, 0.0  ;;  %v1859_v62 = vadd.f32 %v2694_v9, %v3417_v15  ;;  %v2630_v5 = vpop.f32.mrb[87].mxu0  ;;  %v1850_v31 = vpop.f32.mrb[87].mxu1 }
 0x1a5   : > { %2056 = vst.msk [vmem:[%s3486_s24 + $0x8] sm:$0xff] %vm2054_vm1, %v2023_v34  ;;  %v1962_v58 = vmax.f32 %v1848_v60, 0.0  ;;  %v2631_v16 = vadd.f32 %v2630_v5, %v2629_v47  ;;  %v1851_v17 = vadd.f32 %v1850_v31, %v3403_v22  ;;  %v3504_v19 = vadd.f32 %v2628_v50, %v3381_v7 }
 0x1a6   : > { %v1996_v25 = vmin.f32 %v1964_v6, 6.0  ;;  %v1965_v56 = vmax.f32 %v1859_v62, 0.0 }
 0x1a7   : > { %v1994_v23 = vmin.f32 %v1962_v58, 6.0  ;;  %v1963_v12 = vmax.f32 %v1851_v17, 0.0  ;;  %v3507_v55 = vadd.f32 %v2631_v16, %v3386_v0 }
 0x1a8   : > { %v2028_v15 = vmul.f32 0.16666667, %v1996_v25  ;;  %v1997_v49 = vmin.f32 %v1965_v56, 6.0 }
 0x1a9   : > { %v2026_v13 = vmul.f32 0.16666667, %v1994_v23  ;;  %v1995_v8 = vmin.f32 %v1963_v12, 6.0  ;;  %v2632_v18 = vpop.f32.mrb[88].mxu0  ;;  %v2697_v1 = vpop.f32.mrb[88].mxu1 }
 0x1aa   : > { %2061 = vst.msk [vmem:[%s3486_s24 + $0x30] sm:$0xff] %vm2054_vm1, %v2028_v15  ;;  %v2029_v7 = vmul.f32 0.16666667, %v1997_v49  ;;  %v1872_v22 = vadd.f32 %v2697_v1, %v3440_v10  ;;  %v2633_v26 = vpop.f32.mrb[89].mxu0  ;;  %v1863_v59 = vpop.f32.mrb[89].mxu1 }
 0x1ab   : > { %2059 = vst.msk [vmem:[%s3486_s24 + $0x20] sm:$0xff] %vm2054_vm1, %v2026_v13  ;;  %v2027_v48 = vmul.f32 0.16666667, %v1995_v8  ;;  %v2634_v0 = vadd.f32 %v2633_v26, %v2632_v18  ;;  %v1864_v28 = vadd.f32 %v1863_v59, %v3426_v53  ;;  %v2635_v2 = vpop.f32.mrb[90].mxu0  ;;  %v2698_v36 = vpop.f32.mrb[90].mxu1 }
 0x1ac   : > { %2062 = vst.msk [vmem:[%s3486_s24 + $0x38] sm:$0xff] %vm2054_vm1, %v2029_v7  ;;  %v1968_v32 = vmax.f32 %v1872_v22, 0.0  ;;  %v1875_v24 = vadd.f32 %v2698_v36, %v3445_v51  ;;  %v2636_v37 = vpop.f32.mrb[91].mxu0  ;;  %v1866_v41 = vpop.f32.mrb[91].mxu1 }
 0x1ad   : > { %2060 = vst.msk [vmem:[%s3486_s24 + $0x28] sm:$0xff] %vm2054_vm1, %v2027_v48  ;;  %v1966_v10 = vmax.f32 %v1864_v28, 0.0  ;;  %v2637_v4 = vadd.f32 %v2636_v37, %v2635_v2  ;;  %v1867_v44 = vadd.f32 %v1866_v41, %v3431_v39  ;;  %v3522_v35 = vadd.f32 %v2634_v0, %v3395_v21 }
 0x1ae   : > { %v2000_v53 = vmin.f32 %v1968_v32, 6.0  ;;  %v1969_v43 = vmax.f32 %v1875_v24, 0.0 }
 0x1af   : > { %v1998_v42 = vmin.f32 %v1966_v10, 6.0  ;;  %v1967_v34 = vmax.f32 %v1867_v44, 0.0  ;;  %v3525_v50 = vadd.f32 %v2637_v4, %v3400_v3 }
 0x1b0   : > { %v2032_v51 = vmul.f32 0.16666667, %v2000_v53  ;;  %v2001_v60 = vmin.f32 %v1969_v43, 6.0 }
 0x1b1   : > { %v2030_v47 = vmul.f32 0.16666667, %v1998_v42  ;;  %v1999_v9 = vmin.f32 %v1967_v34, 6.0  ;;  %v2638_v6 = vpop.f32.mrb[92].mxu0  ;;  %v2701_v62 = vpop.f32.mrb[92].mxu1 }
 0x1b2   : > { %2065 = vst.msk [vmem:[%s3486_s24 + $0x50] sm:$0xff] %vm2054_vm1, %v2032_v51  ;;  %v2033_v21 = vmul.f32 0.16666667, %v2001_v60  ;;  %v1888_v39 = vadd.f32 %v2701_v62, %v3468_v54  ;;  %v2639_v5 = vpop.f32.mrb[93].mxu0  ;;  %v1879_v31 = vpop.f32.mrb[93].mxu1 }
 0x1b3   : > { %2063 = vst.msk [vmem:[%s3486_s24 + $0x40] sm:$0xff] %vm2054_vm1, %v2030_v47  ;;  %v2031_v58 = vmul.f32 0.16666667, %v1999_v9  ;;  %v2640_v3 = vadd.f32 %v2639_v5, %v2638_v6  ;;  %v1880_v16 = vadd.f32 %v1879_v31, %v3454_v29  ;;  %v2641_v17 = vpop.f32.mrb[94].mxu0  ;;  %v2702_v25 = vpop.f32.mrb[94].mxu1 }
 0x1b4   : > { %2066 = vst.msk [vmem:[%s3486_s24 + $0x58] sm:$0xff] %vm2054_vm1, %v2033_v21  ;;  %v1972_v56 = vmax.f32 %v1888_v39, 0.0  ;;  %v1891_v23 = vadd.f32 %v2702_v25, %v3473_v11  ;;  %v2642_v12 = vpop.f32.mrb[95].mxu0  ;;  %v1882_v15 = vpop.f32.mrb[95].mxu1 }
 0x1b5   : > { %2064 = vst.msk [vmem:[%s3486_s24 + $0x48] sm:$0xff] %vm2054_vm1, %v2031_v58  ;;  %v1970_v54 = vmax.f32 %v1880_v16, 0.0  ;;  %v2643_v49 = vadd.f32 %v2642_v12, %v2641_v17  ;;  %v1883_v13 = vadd.f32 %v1882_v15, %v3459_v63  ;;  %v1759_v8 = vadd.f32 %v2640_v3, %v3409_v30 }
 0x1b6   : > { %v2004_v18 = vmin.f32 %v1972_v56, 6.0  ;;  %v1973_v29 = vmax.f32 %v1891_v23, 0.0 }
 0x1b7   : > { %v2002_v1 = vmin.f32 %v1970_v54, 6.0  ;;  %v1971_v7 = vmax.f32 %v1883_v13, 0.0  ;;  %v1762_v22 = vadd.f32 %v2643_v49, %v3414_v33 }
 0x1b8   : > { %v2036_v26 = vmul.f32 0.16666667, %v2004_v18  ;;  %v2005_v11 = vmin.f32 %v1973_v29, 6.0 }
 0x1b9   : > { %v2034_v59 = vmul.f32 0.16666667, %v2002_v1  ;;  %v2003_v48 = vmin.f32 %v1971_v7, 6.0  ;;  %v2644_v0 = vpop.f32.mrb[96].mxu0  ;;  %v2705_v28 = vpop.f32.mrb[96].mxu1 }
 0x1ba   : > { %2069 = vst.msk [vmem:[%s3486_s24 + $0x70] sm:$0xff] %vm2054_vm1, %v2036_v26  ;;  %v2037_v63 = vmul.f32 0.16666667, %v2005_v11  ;;  %v1904_v30 = vadd.f32 %v2705_v28, %v3504_v19  ;;  %v2645_v2 = vpop.f32.mrb[97].mxu0  ;;  %v1895_v36 = vpop.f32.mrb[97].mxu1 }
 0x1bb   : > { %2067 = vst.msk [vmem:[%s3486_s24 + $0x60] sm:$0xff] %vm2054_vm1, %v2034_v59  ;;  %v2035_v32 = vmul.f32 0.16666667, %v2003_v48  ;;  %v2646_v24 = vadd.f32 %v2645_v2, %v2644_v0  ;;  %v1896_v33 = vadd.f32 %v1895_v36, %v3481_v14  ;;  %v2647_v37 = vpop.f32.mrb[98].mxu0  ;;  %v2706_v41 = vpop.f32.mrb[98].mxu1 }
 0x1bc   : > { %2070 = vst.msk [vmem:[%s3486_s24 + $0x78] sm:$0xff] %vm2054_vm1, %v2037_v63  ;;  %v1976_v10 = vmax.f32 %v1904_v30, 0.0  ;;  %v1907_v4 = vadd.f32 %v2706_v41, %v3507_v55  ;;  %v2648_v44 = vpop.f32.mrb[99].mxu0  ;;  %v1898_v53 = vpop.f32.mrb[99].mxu1 }
 0x1bd   : > { %2068 = vst.msk [vmem:[%s3486_s24 + $0x68] sm:$0xff] %vm2054_vm1, %v2035_v32  ;;  %v1974_v19 = vmax.f32 %v1896_v33, 0.0  ;;  %v2649_v43 = vadd.f32 %v2648_v44, %v2647_v37  ;;  %v1899_v42 = vadd.f32 %v1898_v53, %v3489_v38  ;;  %v1767_v34 = vadd.f32 %v2646_v24, %v3423_v20 }
 0x1be   : > { %v2008_v51 = vmin.f32 %v1976_v10, 6.0  ;;  %v1977_v14 = vmax.f32 %v1907_v4, 0.0 }
 0x1bf   : > { %v2006_v60 = vmin.f32 %v1974_v19, 6.0  ;;  %v1975_v47 = vmax.f32 %v1899_v42, 0.0  ;;  %v1770_v9 = vadd.f32 %v2649_v43, %v3428_v40 }
 0x1c0   : > { %v2040_v6 = vmul.f32 0.16666667, %v2008_v51  ;;  %v2009_v55 = vmin.f32 %v1977_v14, 6.0 }
 0x1c1   : > { %v2038_v62 = vmul.f32 0.16666667, %v2006_v60  ;;  %v2007_v21 = vmin.f32 %v1975_v47, 6.0  ;;  %v2650_v39 = vpop.f32.mrb[100].mxu0  ;;  %v2709_v5 = vpop.f32.mrb[100].mxu1 }
 0x1c2   : > { %2073 = vst.msk [vmem:[%s3486_s24 + $0x90] sm:$0xff] %vm2054_vm1, %v2040_v6  ;;  %v2041_v38 = vmul.f32 0.16666667, %v2009_v55  ;;  %v1920_v31 = vadd.f32 %v2709_v5, %v1759_v8  ;;  %v2651_v20 = vpop.f32.mrb[101].mxu0  ;;  %v1911_v58 = vpop.f32.mrb[101].mxu1 }
 0x1c3   : > { %2071 = vst.msk [vmem:[%s3486_s24 + $0x80] sm:$0xff] %vm2054_vm1, %v2038_v62  ;;  %v2039_v3 = vmul.f32 0.16666667, %v2007_v21  ;;  %v2652_v16 = vadd.f32 %v2651_v20, %v2650_v39  ;;  %v1912_v40 = vadd.f32 %v1911_v58, %v3522_v35  ;;  %v2653_v17 = vpop.f32.mrb[102].mxu0  ;;  %v2710_v25 = vpop.f32.mrb[102].mxu1 }
 0x1c4   : > { %2074 = vst.msk [vmem:[%s3486_s24 + $0x98] sm:$0xff] %vm2054_vm1, %v2041_v38  ;;  %v1980_v56 = vmax.f32 %v1920_v31, 0.0  ;;  %v1923_v23 = vadd.f32 %v2710_v25, %v1762_v22  ;;  %v2654_v12 = vpop.f32.mrb[103].mxu0  ;;  %v1914_v15 = vpop.f32.mrb[103].mxu1 }
 0x1c5   : > { %2072 = vst.msk [vmem:[%s3486_s24 + $0x88] sm:$0xff] %vm2054_vm1, %v2039_v3  ;;  %v1978_v54 = vmax.f32 %v1912_v40, 0.0  ;;  %v2655_v49 = vadd.f32 %v2654_v12, %v2653_v17  ;;  %v1915_v13 = vadd.f32 %v1914_v15, %v3525_v50  ;;  %v1775_v8 = vadd.f32 %v2652_v16, %v3437_v46 }
 0x1c6   : > { %v2012_v18 = vmin.f32 %v1980_v56, 6.0  ;;  %v1981_v35 = vmax.f32 %v1923_v23, 0.0 }
 0x1c7   : > { %v2010_v29 = vmin.f32 %v1978_v54, 6.0  ;;  %v1979_v1 = vmax.f32 %v1915_v13, 0.0  ;;  %v1778_v7 = vadd.f32 %v2655_v49, %v3442_v57 }
 0x1c8   : > { %v2044_v26 = vmul.f32 0.16666667, %v2012_v18  ;;  %v2013_v22 = vmin.f32 %v1981_v35, 6.0 }
 0x1c9   : > { %v2042_v11 = vmul.f32 0.16666667, %v2010_v29  ;;  %v2011_v59 = vmin.f32 %v1979_v1, 6.0  ;;  %v2656_v48 = vpop.f32.mrb[104].mxu0  ;;  %v2713_v0 = vpop.f32.mrb[104].mxu1 }
 0x1ca   : > { %2077 = vst.msk [vmem:[%s3486_s24 + $0xb0] sm:$0xff] %vm2054_vm1, %v2044_v26  ;;  %v2045_v50 = vmul.f32 0.16666667, %v2013_v22  ;;  %v1936_v28 = vadd.f32 %v2713_v0, %v1775_v8  ;;  %v2657_v46 = vpop.f32.mrb[105].mxu0  ;;  %v1927_v63 = vpop.f32.mrb[105].mxu1 }
 0x1cb   : > { %2075 = vst.msk [vmem:[%s3486_s24 + $0xa0] sm:$0xff] %vm2054_vm1, %v2042_v11  ;;  %v2043_v30 = vmul.f32 0.16666667, %v2011_v59  ;;  %v2658_v2 = vadd.f32 %v2657_v46, %v2656_v48  ;;  %v1928_v36 = vadd.f32 %v1927_v63, %v1767_v34  ;;  %v2659_v57 = vpop.f32.mrb[106].mxu0  ;;  %v2714_v32 = vpop.f32.mrb[106].mxu1 }
 0x1cc   : > { %2078 = vst.msk [vmem:[%s3486_s24 + $0xb8] sm:$0xff] %vm2054_vm1, %v2045_v50  ;;  %v1984_v24 = vmax.f32 %v1936_v28, 0.0  ;;  %v1939_v33 = vadd.f32 %v2714_v32, %v1778_v7  ;;  %v2660_v37 = vpop.f32.mrb[107].mxu0  ;;  %v1930_v41 = vpop.f32.mrb[107].mxu1 }
 0x1cd   : > { %2076 = vst.msk [vmem:[%s3486_s24 + $0xa8] sm:$0xff] %vm2054_vm1, %v2043_v30  ;;  %v1982_v10 = vmax.f32 %v1928_v36, 0.0  ;;  %v2661_v4 = vadd.f32 %v2660_v37, %v2659_v57  ;;  %v1931_v44 = vadd.f32 %v1930_v41, %v1770_v9  ;;  %v1783_v53 = vadd.f32 %v2658_v2, %v3451_v61 }
 0x1ce   : > { %v2016_v19 = vmin.f32 %v1984_v24, 6.0  ;;  %v1985_v43 = vmax.f32 %v1939_v33, 0.0 }
 0x1cf   : > { %v2014_v42 = vmin.f32 %v1982_v10, 6.0  ;;  %v1983_v34 = vmax.f32 %v1931_v44, 0.0  ;;  %v1786_v51 = vadd.f32 %v2661_v4, %v3456_v27 }
 0x1d0   : > { %v2048_v14 = vmul.f32 0.16666667, %v2016_v19  ;;  %v2017_v60 = vmin.f32 %v1985_v43, 6.0 }
 0x1d1   : > { %v2046_v47 = vmul.f32 0.16666667, %v2014_v42  ;;  %v2015_v6 = vmin.f32 %v1983_v34, 6.0  ;;  %v2662_v55 = vpop.f32.mrb[108].mxu0  ;;  %v2717_v62 = vpop.f32.mrb[108].mxu1 }
 0x1d2   : > { %2081 = vst.msk [vmem:[%s3486_s24 + $0xd0] sm:$0xff] %vm2054_vm1, %v2048_v14  ;;  %v2049_v9 = vmul.f32 0.16666667, %v2017_v60  ;;  %v2663_v21 = vpop.f32.mrb[109].mxu0  ;;  %v1943_v61 = vpop.f32.mrb[109].mxu1 }
 0x1d3   : > { %2079 = vst.msk [vmem:[%s3486_s24 + $0xc0] sm:$0xff] %vm2054_vm1, %v2046_v47  ;;  %v2047_v39 = vmul.f32 0.16666667, %v2015_v6  ;;  %v2664_v5 = vadd.f32 %v2663_v21, %v2662_v55  ;;  %v1944_v38 = vadd.f32 %v1943_v61, %v1783_v53  ;;  %v2665_v31 = vpop.f32.mrb[110].mxu0  ;;  %v2718_v27 = vpop.f32.mrb[110].mxu1 }
 0x1d4   : > { %2082 = vst.msk [vmem:[%s3486_s24 + $0xd8] sm:$0xff] %vm2054_vm1, %v2049_v9  ;;  %v2666_v20 = vpop.f32.mrb[111].mxu0  ;;  %v1946_v58 = vpop.f32.mrb[111].mxu1 }
 0x1d5   : > { %2080 = vst.msk [vmem:[%s3486_s24 + $0xc8] sm:$0xff] %vm2054_vm1, %v2047_v39  ;;  %v1791_v3 = vadd.f32 %v2664_v5, %v3465_v45  ;;  %v1986_v16 = vmax.f32 %v1944_v38, 0.0  ;;  %v2667_v40 = vadd.f32 %v2666_v20, %v2665_v31  ;;  %v1947_v17 = vadd.f32 %v1946_v58, %v1786_v51 }
 0x1d7   : > { %v1952_v25 = vadd.f32 %v2717_v62, %v1791_v3  ;;  %v2018_v56 = vmin.f32 %v1986_v16, 6.0  ;;  %v1794_v23 = vadd.f32 %v2667_v40, %v3470_v52  ;;  %v1987_v12 = vmax.f32 %v1947_v17, 0.0 }
 0x1d9   : > { %v1988_v15 = vmax.f32 %v1952_v25, 0.0  ;;  %v2050_v54 = vmul.f32 0.16666667, %v2018_v56  ;;  %v1955_v49 = vadd.f32 %v2718_v27, %v1794_v23  ;;  %v2019_v13 = vmin.f32 %v1987_v12, 6.0 }
 0x1db   : > { %v2020_v8 = vmin.f32 %v1988_v15, 6.0  ;;  %2083 = vst.msk [vmem:[%s3486_s24 + $0xe0] sm:$0xff] %vm2054_vm1, %v2050_v54  ;;  %v1989_v18 = vmax.f32 %v1955_v49, 0.0  ;;  %v2051_v45 = vmul.f32 0.16666667, %v2019_v13 }
 0x1dd   : > { %v2052_v35 = vmul.f32 0.16666667, %v2020_v8  ;;  %v2021_v29 = vmin.f32 %v1989_v18, 6.0  ;;  %2084 = vst.msk [vmem:[%s3486_s24 + $0xe8] sm:$0xff] %vm2054_vm1, %v2051_v45 }
 0x1df   : > { %2085 = vst.msk [vmem:[%s3486_s24 + $0xf0] sm:$0xff] %vm2054_vm1, %v2052_v35  ;;  %v2053_v1 = vmul.f32 0.16666667, %v2021_v29 }
 0x1e1   : > { %2086 = vst.msk [vmem:[%s3486_s24 + $0xf8] sm:$0xff] %vm2054_vm1, %v2053_v1 }
 0x1e2 PF: > { %s13_s12 = sadd.s32 1, %s2959_s12  }
 0x1e3   : > { %p10_p4 = scmp.ge.s32.totalorder %s13_s12, 4  }
 0x1e5   :  { %12 = sbr.rel (!%p10_p4) target bundleno = 1 (0x1), region = 62 }

</bundles_post_ra>
